<compile_context>
chip_gen: v5e
topology: v5e:2x2
jax: 0.10.0
libtpu: 0.0.40
codegen_flags: <defaults>
</compile_context>

<pallas_src>
import functools

import numpy as np
import jax
import jax.numpy as jnp
from jax.experimental import pallas as pl
from jax.experimental.pallas import tpu as pltpu

LANE = 128


def _round_up(x, m):
    return (x + m - 1) // m * m


def _const_spec(shape):
    """BlockSpec for an operand that is identical on every grid step.

    Single-buffered (pipeline_mode=pl.Buffered(1)) when supported -> halves the
    VMEM held by weights; falls back to the default constant-index spec.
    """
    rank = len(shape)

    def idx(n, _r=rank):
        return (0,) * _r

    try:
        return pl.BlockSpec(shape, idx, pipeline_mode=pl.Buffered(1))
    except (TypeError, AttributeError):
        return pl.BlockSpec(shape, idx)


def _build_phase_info(H, W, s):
    """Polyphase row ordering of the HxW grid for a 3x3 / pad-1 / stride-s conv.

    Returns perm (permuted row -> original flat h*W+w), per-phase slab
    rectangles, the start row of the stride-s residual block, the per-phase
    padded slab extents (Hq, Wq) and the conv output extents (Ho, Wo).
    """
    Hp, Wp = H + 2, W + 2
    Hq, Wq = -(-Hp // s), -(-Wp // s)
    Ho = (H - 1) // s + 1
    Wo = (W - 1) // s + 1
    perm, phase_meta, start = [], [], 0
    for p in range(s):
        for q in range(s):
            i_vals = [rp // s for rp in range(1, H + 1) if rp % s == p]
            j_vals = [cp // s for cp in range(1, W + 1) if cp % s == q]
            nh, nw = len(i_vals), len(j_vals)
            i_lo = i_vals[0] if nh else 0
            j_lo = j_vals[0] if nw else 0
            for i in i_vals:
                h = s * i + p - 1
                for j in j_vals:
                    w = s * j + q - 1
                    perm.append(h * W + w)
            phase_meta.append((start, i_lo, j_lo, nh, nw))
            start += nh * nw
    assert len(perm) == H * W
    res_phase = (1 % s) * s + (1 % s)          # positions with h%s==0 and w%s==0
    res_start = phase_meta[res_phase][0]
    assert phase_meta[res_phase][3] == Ho and phase_meta[res_phase][4] == Wo
    return np.asarray(perm, np.int32), phase_meta, res_start, Hq, Wq, Ho, Wo


def _group_avg_matrix(c_real, c_pad, groups):
    """A[i, j] = 1/group_size if i, j are real channels of the same GN group."""
    gs = c_real // groups
    ch = np.arange(c_pad)
    grp = ch // gs
    same = ((grp[:, None] == grp[None, :])
            & (ch[:, None] < c_real) & (ch[None, :] < c_real))
    return jnp.asarray(same.astype(np.float32) / float(gs))


def std_weight(w, eps=1e-5):
    """StdConv2d weight standardization (biased var).  w: (Cout, Cin, kh, kw)."""
    m = jnp.mean(w, axis=(1, 2, 3), keepdims=True)
    v = jnp.var(w, axis=(1, 2, 3), keepdims=True)
    return (w - m) / jnp.sqrt(v + eps)


def _prep_w1x1(w, cin_p, cout_p):
    wm = jnp.transpose(std_weight(w)[:, :, 0, 0], (1, 0))            # (cin, cout)
    wm = jnp.pad(wm, ((0, cin_p - wm.shape[0]), (0, cout_p - wm.shape[1])))
    return wm.astype(jnp.bfloat16)


def _prep_w3x3_cat(w, cin_p, cout_p):
    """(Cout, Cin, 3, 3) -> (9*cin_p, cout_p) bf16, rows tap-major (t = kh*3+kw)."""
    cout, cin = w.shape[0], w.shape[1]
    wt = jnp.transpose(std_weight(w), (2, 3, 1, 0))                   # (3,3,cin,cout)
    wt = jnp.pad(wt, ((0, 0), (0, 0), (0, cin_p - cin), (0, cout_p - cout)))
    return wt.reshape(9 * cin_p, cout_p).astype(jnp.bfloat16)


def _pad_vec(v, c_pad):
    return jnp.pad(v, (0, c_pad - v.shape[0])).reshape(1, c_pad).astype(jnp.float32)


# -----------------------------------------------------------------------------
# Fused PreActBottleneck forward.
# -----------------------------------------------------------------------------
def preact_bottleneck_pallas(x_nchw, params, *, cin, cout, cmid, stride):
    assert cmid % 32 == 0 and cout % 32 == 0, "GroupNorm(32, .) needs multiples of 32"
    N, _, H, W = x_nchw.shape
    s = int(stride)
    has_down = (s != 1) or (cin != cout)

    cin_p = _round_up(cin, LANE)
    cmid_p = _round_up(cmid, LANE)
    cout_p = _round_up(cout, LANE)

    perm, phase_meta, res_start, Hq, Wq, Ho, Wo = _build_phase_info(H, W, s)
    HW, HWo, P = H * W, Ho * Wo, s * s
    use_A_mid = (cmid // 32) > 1        # gn1 / gn2 need group averaging
    use_A_out = (cout // 32) > 1        # gn3 needs group averaging

    # --- input prep: one fused XLA pass (transpose + polyphase row permutation
    #     + lane padding + bf16 cast).  The permutation makes every 3x3 tap
    #     window and the strided downsample contiguous slices in the kernel.
    xt = jnp.transpose(x_nchw, (0, 2, 3, 1)).reshape(N, HW, cin)
    xt = jnp.take(xt, jnp.asarray(perm), axis=1)
    xt = jnp.pad(xt, ((0, 0), (0, 0), (0, cin_p - cin))).astype(jnp.bfloat16)

    # --- weights / GN params (standardized in f32, MXU operands in bf16).
    w1 = _prep_w1x1(params["w1"], cin_p, cmid_p)
    w2 = _prep_w3x3_cat(params["w2"], cmid_p, cmid_p)
    w3 = _prep_w1x1(params["w3"], cmid_p, cout_p)
    g1, b1 = _pad_vec(params["gamma1"], cmid_p), _pad_vec(params["beta1"], cmid_p)
    g2, b2 = _pad_vec(params["gamma2"], cmid_p), _pad_vec(params["beta2"], cmid_p)
    g3, b3 = _pad_vec(params["gamma3"], cout_p), _pad_vec(params["beta3"], cout_p)

    in_arrays = [xt, w1, w2, w3, g1, b1, g2, b2, g3, b3]
    if use_A_mid:
        in_arrays.append(_group_avg_matrix(cmid, cmid_p, 32))
    if use_A_out:
        in_arrays.append(_group_avg_matrix(cout, cout_p, 32))
    if has_down:
        in_arrays += [_prep_w1x1(params["w_down"], cin_p, cout_p),
                      _pad_vec(params["gamma_p"], cout_p),
                      _pad_vec(params["beta_p"], cout_p)]

    const_bytes = sum(int(np.prod(a.shape)) * jnp.dtype(a.dtype).itemsize
                      for a in in_arrays[1:])

    # --- choose samples-per-block (bigger MXU M / fewer grid steps when it fits)
    #     and a VMEM limit derived from actual block + scratch sizes.
    def block_bytes(bt):
        sub = lambda n: _round_up(max(n, 1), 8)
        x_blk = bt * HW * cin_p * 2
        o_blk = bt * HWo * cout_p * 4
        slab = bt * P * Hq * sub(Wq) * cmid_p * 2
        col = bt * HWo * 9 * cmid_p * 2
        live = bt * (HW * cmid_p * 3 + HWo * (10 * cmid_p + 2 * cout_p)) * 4
        return 2 * (x_blk + o_blk) + slab + col + live

    Bt = 1
    for cand in range(1, N + 1):
        if N % cand == 0 and block_bytes(cand) <= (24 << 20):
            Bt = cand
    vmem_limit = int(min(max(1.3 * (block_bytes(Bt) + 2 * const_bytes), 32 << 20),
                         100 << 20))

    # -------------------------------------------------------------------------
    def kernel(*refs):
        it = iter(refs)
        x_ref = next(it)
        w1_ref, w2_ref, w3_ref = next(it), next(it), next(it)
        g1_ref, b1_ref = next(it), next(it)
        g2_ref, b2_ref = next(it), next(it)
        g3_ref, b3_ref = next(it), next(it)
        am_ref = next(it) if use_A_mid else None
        ao_ref = next(it) if use_A_out else None
        if has_down:
            wd_ref, gp_ref, bp_ref = next(it), next(it), next(it)
        o_ref = next(it)
        slab_ref, col_ref = next(it), next(it)
        f32 = jnp.float32

        def group_norm(a2d, rows, g_ref, b_ref, eps, a_mat_ref):
            """Per-sample GroupNorm (f32); a_mat_ref=None -> per-channel groups."""
            C = a2d.shape[-1]
            inv = 1.0 / float(rows)
            a3d = a2d.reshape(Bt, rows, C)
            s1 = jnp.sum(a3d, axis=1)                                   # (Bt, C)
            mean = (jnp.dot(s1, a_mat_ref[...], preferred_element_type=f32)
                    if a_mat_ref is not None else s1) * inv
            cen = a3d - mean[:, None, :]
            s2 = jnp.sum(cen * cen, axis=1)
            var = (jnp.dot(s2, a_mat_ref[...], preferred_element_type=f32)
                   if a_mat_ref is not None else s2) * inv
            y = cen * jax.lax.rsqrt(var + eps)[:, None, :]
            return y.reshape(Bt * rows, C) * g_ref[...] + b_ref[...]

        xb = x_ref[...]                                 # (Bt, HW, cin_p) bf16

        # ---- conv1 (1x1) + gn1 + relu (bf16 MXU, f32 accumulation) ----------
        a1 = jnp.dot(xb.reshape(Bt * HW, cin_p), w1_ref[...],
                     preferred_element_type=f32)
        y1 = jnp.maximum(group_norm(a1, HW, g1_ref, b1_ref, 1e-6, am_ref), 0.0)
        y1 = y1.astype(jnp.bfloat16).reshape(Bt, HW, cmid_p)

        # ---- scatter y1 into zero-padded polyphase slabs (VMEM only) --------
        # Re-zero every step (scratch is per-core; "parallel" grid sharding).
        slab_ref[...] = jnp.zeros_like(slab_ref)
        for pidx, (st, i_lo, j_lo, nh, nw) in enumerate(phase_meta):
            if nh == 0 or nw == 0:
                continue
            r0 = pidx * Hq + i_lo
            for ii in range(nh):
                slab_ref[:, r0 + ii, j_lo:j_lo + nw, :] = (
                    y1[:, st + ii * nw:st + (ii + 1) * nw, :])

        # ---- build the (Bt*HWo, 9*cmid_p) im2col operand (lane-aligned) -----
        for kh in range(3):
            for kw in range(3):
                t = kh * 3 + kw
                pidx = (kh % s) * s + (kw % s)
                r0 = pidx * Hq + kh // s
                c0 = kw // s
                win = slab_ref[:, r0:r0 + Ho, c0:c0 + Wo, :]
                col_ref[:, t * cmid_p:(t + 1) * cmid_p] = (
                    win.reshape(Bt * HWo, cmid_p))

        # ---- conv2 (3x3 / stride) + gn2 + relu: ONE K=9*cmid matmul ---------
        a2 = jnp.dot(col_ref[...], w2_ref[...], preferred_element_type=f32)
        y2 = jnp.maximum(group_norm(a2, HWo, g2_ref, b2_ref, 1e-6, am_ref), 0.0)
        y2 = y2.astype(jnp.bfloat16)

        # ---- conv3 (1x1) + gn3 ----------------------------------------------
        a3 = jnp.dot(y2, w3_ref[...], preferred_element_type=f32)
        y3 = group_norm(a3, HWo, g3_ref, b3_ref, 1e-6, ao_ref)

        # ---- residual branch from the already-resident input block ----------
        xr = xb[:, res_start:res_start + HWo, :]        # (Bt, HWo, cin_p)
        if has_down:
            ar = jnp.dot(xr.reshape(Bt * HWo, cin_p), wd_ref[...],
                         preferred_element_type=f32)
            res = group_norm(ar, HWo, gp_ref, bp_ref, 1e-5, None)   # per-channel
        else:
            res = xr.reshape(Bt * HWo, cin_p).astype(f32)

        o_ref[...] = jnp.maximum(res + y3, 0.0).reshape(Bt, HWo, cout_p)

    # -------------------------------------------------------------------------
    in_specs = [pl.BlockSpec((Bt, HW, cin_p), lambda n: (n, 0, 0))]
    in_specs += [_const_spec(tuple(a.shape)) for a in in_arrays[1:]]

    out = pl.pallas_call(
        kernel,
        out_shape=jax.ShapeDtypeStruct((N, HWo, cout_p), jnp.float32),
        grid=(N // Bt,),
        in_specs=in_specs,
        out_specs=pl.BlockSpec((Bt, HWo, cout_p), lambda n: (n, 0, 0)),
        scratch_shapes=[
            pltpu.VMEM((Bt, P * Hq, Wq, cmid_p), jnp.bfloat16),  # padded polyphase
            pltpu.VMEM((Bt * HWo, 9 * cmid_p), jnp.bfloat16),    # im2col operand
        ],
        compiler_params=pltpu.CompilerParams(
            dimension_semantics=("parallel",),
            vmem_limit_bytes=vmem_limit),
    )(*in_arrays)

    out = out[:, :, :cout].reshape(N, Ho, Wo, cout)
    return jnp.transpose(out, (0, 3, 1, 2))            # module contract: NCHW


# -----------------------------------------------------------------------------
# Parameter init + pure-JAX reference (mirrors the PyTorch forward).
# -----------------------------------------------------------------------------
def init_params(key, cin, cout, cmid, stride):
    ks = jax.random.split(key, 12)
    p = {
        "w1": 0.05 * jax.random.normal(ks[0], (cmid, cin, 1, 1), jnp.float32),
        "w2": 0.05 * jax.random.normal(ks[1], (cmid, cmid, 3, 3), jnp.float32),
        "w3": 0.05 * jax.random.normal(ks[2], (cout, cmid, 1, 1), jnp.float32),
        "gamma1": 1.0 + 0.1 * jax.random.normal(ks[3], (cmid,), jnp.float32),
        "beta1": 0.1 * jax.random.normal(ks[4], (cmid,), jnp.float32),
        "gamma2": 1.0 + 0.1 * jax.random.normal(ks[5], (cmid,), jnp.float32),
        "beta2": 0.1 * jax.random.normal(ks[6], (cmid,), jnp.float32),
        "gamma3": 1.0 + 0.1 * jax.random.normal(ks[7], (cout,), jnp.float32),
        "beta3": 0.1 * jax.random.normal(ks[8], (cout,), jnp.float32),
    }
    if stride != 1 or cin != cout:
        p["w_down"] = 0.05 * jax.random.normal(ks[9], (cout, cin, 1, 1), jnp.float32)
        p["gamma_p"] = 1.0 + 0.1 * jax.random.normal(ks[10], (cout,), jnp.float32)
        p["beta_p"] = 0.1 * jax.random.normal(ks[11], (cout,), jnp.float32)
    return p


def preact_bottleneck_ref(x, params, *, cin, cout, cmid, stride,
                          conv_dtype=jnp.float32):
    def stdconv(x, w, stride, pad):
        return jax.lax.conv_general_dilated(
            x.astype(conv_dtype), std_weight(w).astype(conv_dtype),
            (stride, stride), [(pad, pad), (pad, pad)],
            dimension_numbers=("NCHW", "OIHW", "NCHW"),
            preferred_element_type=jnp.float32)

    def gn(x, gamma, beta, groups, eps):
        N, C, H, W = x.shape
        xg = x.reshape(N, groups, C // groups, H, W)
        m = xg.mean(axis=(2, 3, 4), keepdims=True)
        v = xg.var(axis=(2, 3, 4), keepdims=True)
        xn = ((xg - m) / jnp.sqrt(v + eps)).reshape(N, C, H, W)
        return xn * gamma[None, :, None, None] + beta[None, :, None, None]

    has_down = (stride != 1) or (cin != cout)
    residual = x
    if has_down:
        residual = gn(stdconv(x, params["w_down"], stride, 0),
                      params["gamma_p"], params["beta_p"], cout, 1e-5)
    y = jax.nn.relu(gn(stdconv(x, params["w1"], 1, 0),
                       params["gamma1"], params["beta1"], 32, 1e-6))
    y = jax.nn.relu(gn(stdconv(y, params["w2"], stride, 1),
                       params["gamma2"], params["beta2"], 32, 1e-6))
    y = gn(stdconv(y, params["w3"], 1, 0),
           params["gamma3"], params["beta3"], 32, 1e-6)
    return jax.nn.relu(residual + y)


# -----------------------------------------------------------------------------
if __name__ == "__main__":
    def run_case(name, N, cin, cout, cmid, stride, H, W, tol):
        key = jax.random.PRNGKey(0)
        kx, kp = jax.random.split(key)
        x = jax.random.normal(kx, (N, cin, H, W), jnp.float32)
        params = init_params(kp, cin, cout, cmid, stride)

        fwd = functools.partial(preact_bottleneck_pallas,
                                cin=cin, cout=cout, cmid=cmid, stride=stride)
        out = jax.block_until_ready(jax.jit(fwd)(x, params))
        Ho = (H - 1) // stride + 1
        Wo = (W - 1) // stride + 1
        assert out.shape == (N, cout, Ho, Wo), (name, out.shape)

        # Tight check vs a reference using the same mixed-precision policy.
        ref_mixed = preact_bottleneck_ref(
            x, params, cin=cin, cout=cout, cmid=cmid, stride=stride,
            conv_dtype=jnp.bfloat16)
        assert jnp.allclose(out, ref_mixed, atol=tol, rtol=tol), (
            name, float(jnp.max(jnp.abs(out - ref_mixed))))

        # Loose check vs full-f32 module semantics (bounds bf16 MXU drift).
        ref_f32 = preact_bottleneck_ref(
            x, params, cin=cin, cout=cout, cmid=cmid, stride=stride,
            conv_dtype=jnp.float32)
        assert jnp.allclose(out, ref_f32, atol=1.5e-1, rtol=1.5e-1), (
            name, float(jnp.max(jnp.abs(out - ref_f32))))

    # Downsample path: stride-2 projection + per-channel gn_proj.
    run_case("stride2_proj", N=2, cin=64, cout=128, cmid=32, stride=2,
             H=16, W=16, tol=5e-3)
    # Identity-residual path (stride 1, cin == cout; residual carried in bf16).
    run_case("stride1_identity", N=2, cin=64, cout=64, cmid=32, stride=1,
             H=16, W=16, tol=2e-2)

    print("KERNEL_OK")
</pallas_src>

<mosaic_0001>
module attributes {stable_mosaic.version = 11 : i64} {
  func.func @kernel(%arg0: i32, %arg1: memref<2x256x128xbf16, #tpu.memory_space<vmem>>, %arg2: memref<128x128xbf16, #tpu.memory_space<vmem>>, %arg3: memref<1152x128xbf16, #tpu.memory_space<vmem>>, %arg4: memref<128x128xbf16, #tpu.memory_space<vmem>>, %arg5: memref<1x128xf32, #tpu.memory_space<vmem>>, %arg6: memref<1x128xf32, #tpu.memory_space<vmem>>, %arg7: memref<1x128xf32, #tpu.memory_space<vmem>>, %arg8: memref<1x128xf32, #tpu.memory_space<vmem>>, %arg9: memref<1x128xf32, #tpu.memory_space<vmem>>, %arg10: memref<1x128xf32, #tpu.memory_space<vmem>>, %arg11: memref<128x128xf32, #tpu.memory_space<vmem>>, %arg12: memref<128x128xbf16, #tpu.memory_space<vmem>>, %arg13: memref<1x128xf32, #tpu.memory_space<vmem>>, %arg14: memref<1x128xf32, #tpu.memory_space<vmem>>, %arg15: memref<2x64x128xf32, #tpu.memory_space<vmem>>, %arg16: memref<2x36x9x128xbf16, #tpu.memory_space<vmem>>, %arg17: memref<128x1152xbf16, #tpu.memory_space<vmem>>) attributes {dimension_semantics = [#tpu.dimension_semantics<parallel>], iteration_bounds = array<i64: 1>, scalar_prefetch = 0 : i64, scratch_operands = 2 : i64, tpu.core_type = #tpu.core_type<tc>, window_params = [{transform_indices = @transform_0, window_bounds = array<i64: 2, 256, 128>}, {pipeline_mode = #tpu.pipeline_mode<synchronous>, transform_indices = @transform_1, window_bounds = array<i64: 128, 128>}, {pipeline_mode = #tpu.pipeline_mode<synchronous>, transform_indices = @transform_2, window_bounds = array<i64: 1152, 128>}, {pipeline_mode = #tpu.pipeline_mode<synchronous>, transform_indices = @transform_3, window_bounds = array<i64: 128, 128>}, {pipeline_mode = #tpu.pipeline_mode<synchronous>, transform_indices = @transform_4, window_bounds = array<i64: 1, 128>}, {pipeline_mode = #tpu.pipeline_mode<synchronous>, transform_indices = @transform_5, window_bounds = array<i64: 1, 128>}, {pipeline_mode = #tpu.pipeline_mode<synchronous>, transform_indices = @transform_6, window_bounds = array<i64: 1, 128>}, {pipeline_mode = #tpu.pipeline_mode<synchronous>, transform_indices = @transform_7, window_bounds = array<i64: 1, 128>}, {pipeline_mode = #tpu.pipeline_mode<synchronous>, transform_indices = @transform_8, window_bounds = array<i64: 1, 128>}, {pipeline_mode = #tpu.pipeline_mode<synchronous>, transform_indices = @transform_9, window_bounds = array<i64: 1, 128>}, {pipeline_mode = #tpu.pipeline_mode<synchronous>, transform_indices = @transform_10, window_bounds = array<i64: 128, 128>}, {pipeline_mode = #tpu.pipeline_mode<synchronous>, transform_indices = @transform_11, window_bounds = array<i64: 128, 128>}, {pipeline_mode = #tpu.pipeline_mode<synchronous>, transform_indices = @transform_12, window_bounds = array<i64: 1, 128>}, {pipeline_mode = #tpu.pipeline_mode<synchronous>, transform_indices = @transform_13, window_bounds = array<i64: 1, 128>}, {transform_indices = @transform_14, window_bounds = array<i64: 2, 64, 128>}]} {
    %c0 = arith.constant 0 : index
    %c0_0 = arith.constant 0 : index
    %c0_1 = arith.constant 0 : index
    %0 = vector.load %arg1[%c0, %c0_0, %c0_1] : memref<2x256x128xbf16, #tpu.memory_space<vmem>>, vector<2x256x128xbf16>
    %1 = vector.shape_cast %0 : vector<2x256x128xbf16> to vector<512x128xbf16>
    %c0_2 = arith.constant 0 : index
    %c0_3 = arith.constant 0 : index
    %2 = vector.load %arg2[%c0_2, %c0_3] : memref<128x128xbf16, #tpu.memory_space<vmem>>, vector<128x128xbf16>
    %cst = arith.constant dense<0.000000e+00> : vector<512x128xf32>
    %3 = tpu.matmul %1, %2, %cst {dimension_numbers = #tpu.dot_dimension_numbers<[1], [0], [0], [1], [0, 0, 1, 1], [], []>} : vector<512x128xbf16>, vector<128x128xbf16>, vector<512x128xf32> -> vector<512x128xf32>
    %4 = vector.shape_cast %3 : vector<512x128xf32> to vector<2x256x128xf32>
    %cst_4 = arith.constant dense<0.000000e+00> : vector<2x128xf32>
    %5 = vector.multi_reduction <add>, %4, %cst_4 [1] : vector<2x256x128xf32> to vector<2x128xf32>
    %cst_5 = arith.constant 3.906250e-03 : f32
    %6 = vector.broadcast %cst_5 : f32 to vector<2x128xf32>
    %7 = arith.mulf %5, %6 : vector<2x128xf32>
    %8 = vector.shape_cast %7 : vector<2x128xf32> to vector<2x1x128xf32>
    %9 = vector.broadcast %8 : vector<2x1x128xf32> to vector<2x256x128xf32>
    %10 = arith.subf %4, %9 : vector<2x256x128xf32>
    %11 = arith.mulf %10, %10 : vector<2x256x128xf32>
    %cst_6 = arith.constant dense<0.000000e+00> : vector<2x128xf32>
    %12 = vector.multi_reduction <add>, %11, %cst_6 [1] : vector<2x256x128xf32> to vector<2x128xf32>
    %cst_7 = arith.constant 3.906250e-03 : f32
    %13 = vector.broadcast %cst_7 : f32 to vector<2x128xf32>
    %14 = arith.mulf %12, %13 : vector<2x128xf32>
    %cst_8 = arith.constant 9.99999997E-7 : f32
    %15 = vector.broadcast %cst_8 : f32 to vector<2x128xf32>
    %16 = arith.addf %14, %15 : vector<2x128xf32>
    %17 = math.rsqrt %16 : vector<2x128xf32>
    %18 = vector.shape_cast %17 : vector<2x128xf32> to vector<2x1x128xf32>
    %19 = vector.broadcast %18 : vector<2x1x128xf32> to vector<2x256x128xf32>
    %20 = arith.mulf %10, %19 : vector<2x256x128xf32>
    %21 = vector.shape_cast %20 : vector<2x256x128xf32> to vector<512x128xf32>
    %c0_9 = arith.constant 0 : index
    %c0_10 = arith.constant 0 : index
    %22 = vector.load %arg5[%c0_9, %c0_10] : memref<1x128xf32, #tpu.memory_space<vmem>>, vector<1x128xf32>
    %23 = vector.broadcast %22 : vector<1x128xf32> to vector<512x128xf32>
    %24 = arith.mulf %21, %23 : vector<512x128xf32>
    %c0_11 = arith.constant 0 : index
    %c0_12 = arith.constant 0 : index
    %25 = vector.load %arg6[%c0_11, %c0_12] : memref<1x128xf32, #tpu.memory_space<vmem>>, vector<1x128xf32>
    %26 = vector.broadcast %25 : vector<1x128xf32> to vector<512x128xf32>
    %27 = arith.addf %24, %26 : vector<512x128xf32>
    %cst_13 = arith.constant 0.000000e+00 : f32
    %28 = vector.broadcast %cst_13 : f32 to vector<512x128xf32>
    %29 = arith.maximumf %27, %28 : vector<512x128xf32>
    %30 = arith.truncf %29 : vector<512x128xf32> to vector<512x128xbf16>
    %31 = vector.shape_cast %30 : vector<512x128xbf16> to vector<2x256x128xbf16>
    %cst_14 = arith.constant 0.000000e+00 : bf16
    %32 = vector.broadcast %cst_14 : bf16 to vector<2x36x9x128xbf16>
    %c0_15 = arith.constant 0 : index
    %c0_16 = arith.constant 0 : index
    %c0_17 = arith.constant 0 : index
    %c0_18 = arith.constant 0 : index
    %33 = vector.load %arg16[%c0_15, %c0_16, %c0_17, %c0_18] : memref<2x36x9x128xbf16, #tpu.memory_space<vmem>>, vector<2x36x9x128xbf16>
    tpu.vector_store %arg16[%c0_15, %c0_16, %c0_17, %c0_18], %32 {strides = array<i32>} : memref<2x36x9x128xbf16, #tpu.memory_space<vmem>>, vector<2x36x9x128xbf16>,
    %34 = vector.extract_strided_slice %31 {offsets = [0, 0, 0], sizes = [2, 8, 128], strides = [1, 1, 1]} : vector<2x256x128xbf16> to vector<2x8x128xbf16>
    %c0_19 = arith.constant 0 : index
    %c1 = arith.constant 1 : index
    %c1_20 = arith.constant 1 : index
    %c0_21 = arith.constant 0 : index
    %35 = vector.load %arg16[%c0_19, %c1, %c1_20, %c0_21] : memref<2x36x9x128xbf16, #tpu.memory_space<vmem>>, vector<2x1x8x128xbf16>
    %36 = vector.shape_cast %35 : vector<2x1x8x128xbf16> to vector<2x8x128xbf16>
    %37 = vector.shape_cast %34 : vector<2x8x128xbf16> to vector<2x1x8x128xbf16>
    tpu.vector_store %arg16[%c0_19, %c1, %c1_20, %c0_21], %37 {strides = array<i32>} : memref<2x36x9x128xbf16, #tpu.memory_space<vmem>>, vector<2x1x8x128xbf16>,
    %38 = vector.extract_strided_slice %31 {offsets = [0, 8, 0], sizes = [2, 8, 128], strides = [1, 1, 1]} : vector<2x256x128xbf16> to vector<2x8x128xbf16>
    %c0_22 = arith.constant 0 : index
    %c2 = arith.constant 2 : index
    %c1_23 = arith.constant 1 : index
    %c0_24 = arith.constant 0 : index
    %39 = vector.load %arg16[%c0_22, %c2, %c1_23, %c0_24] : memref<2x36x9x128xbf16, #tpu.memory_space<vmem>>, vector<2x1x8x128xbf16>
    %40 = vector.shape_cast %39 : vector<2x1x8x128xbf16> to vector<2x8x128xbf16>
    %41 = vector.shape_cast %38 : vector<2x8x128xbf16> to vector<2x1x8x128xbf16>
    tpu.vector_store %arg16[%c0_22, %c2, %c1_23, %c0_24], %41 {strides = array<i32>} : memref<2x36x9x128xbf16, #tpu.memory_space<vmem>>, vector<2x1x8x128xbf16>,
    %42 = vector.extract_strided_slice %31 {offsets = [0, 16, 0], sizes = [2, 8, 128], strides = [1, 1, 1]} : vector<2x256x128xbf16> to vector<2x8x128xbf16>
    %c0_25 = arith.constant 0 : index
    %c3 = arith.constant 3 : index
    %c1_26 = arith.constant 1 : index
    %c0_27 = arith.constant 0 : index
    %43 = vector.load %arg16[%c0_25, %c3, %c1_26, %c0_27] : memref<2x36x9x128xbf16, #tpu.memory_space<vmem>>, vector<2x1x8x128xbf16>
    %44 = vector.shape_cast %43 : vector<2x1x8x128xbf16> to vector<2x8x128xbf16>
    %45 = vector.shape_cast %42 : vector<2x8x128xbf16> to vector<2x1x8x128xbf16>
    tpu.vector_store %arg16[%c0_25, %c3, %c1_26, %c0_27], %45 {strides = array<i32>} : memref<2x36x9x128xbf16, #tpu.memory_space<vmem>>, vector<2x1x8x128xbf16>,
    %46 = vector.extract_strided_slice %31 {offsets = [0, 24, 0], sizes = [2, 8, 128], strides = [1, 1, 1]} : vector<2x256x128xbf16> to vector<2x8x128xbf16>
    %c0_28 = arith.constant 0 : index
    %c4 = arith.constant 4 : index
    %c1_29 = arith.constant 1 : index
    %c0_30 = arith.constant 0 : index
    %47 = vector.load %arg16[%c0_28, %c4, %c1_29, %c0_30] : memref<2x36x9x128xbf16, #tpu.memory_space<vmem>>, vector<2x1x8x128xbf16>
    %48 = vector.shape_cast %47 : vector<2x1x8x128xbf16> to vector<2x8x128xbf16>
    %49 = vector.shape_cast %46 : vector<2x8x128xbf16> to vector<2x1x8x128xbf16>
    tpu.vector_store %arg16[%c0_28, %c4, %c1_29, %c0_30], %49 {strides = array<i32>} : memref<2x36x9x128xbf16, #tpu.memory_space<vmem>>, vector<2x1x8x128xbf16>,
    %50 = vector.extract_strided_slice %31 {offsets = [0, 32, 0], sizes = [2, 8, 128], strides = [1, 1, 1]} : vector<2x256x128xbf16> to vector<2x8x128xbf16>
    %c0_31 = arith.constant 0 : index
    %c5 = arith.constant 5 : index
    %c1_32 = arith.constant 1 : index
    %c0_33 = arith.constant 0 : index
    %51 = vector.load %arg16[%c0_31, %c5, %c1_32, %c0_33] : memref<2x36x9x128xbf16, #tpu.memory_space<vmem>>, vector<2x1x8x128xbf16>
    %52 = vector.shape_cast %51 : vector<2x1x8x128xbf16> to vector<2x8x128xbf16>
    %53 = vector.shape_cast %50 : vector<2x8x128xbf16> to vector<2x1x8x128xbf16>
    tpu.vector_store %arg16[%c0_31, %c5, %c1_32, %c0_33], %53 {strides = array<i32>} : memref<2x36x9x128xbf16, #tpu.memory_space<vmem>>, vector<2x1x8x128xbf16>,
    %54 = vector.extract_strided_slice %31 {offsets = [0, 40, 0], sizes = [2, 8, 128], strides = [1, 1, 1]} : vector<2x256x128xbf16> to vector<2x8x128xbf16>
    %c0_34 = arith.constant 0 : index
    %c6 = arith.constant 6 : index
    %c1_35 = arith.constant 1 : index
    %c0_36 = arith.constant 0 : index
    %55 = vector.load %arg16[%c0_34, %c6, %c1_35, %c0_36] : memref<2x36x9x128xbf16, #tpu.memory_space<vmem>>, vector<2x1x8x128xbf16>
    %56 = vector.shape_cast %55 : vector<2x1x8x128xbf16> to vector<2x8x128xbf16>
    %57 = vector.shape_cast %54 : vector<2x8x128xbf16> to vector<2x1x8x128xbf16>
    tpu.vector_store %arg16[%c0_34, %c6, %c1_35, %c0_36], %57 {strides = array<i32>} : memref<2x36x9x128xbf16, #tpu.memory_space<vmem>>, vector<2x1x8x128xbf16>,
    %58 = vector.extract_strided_slice %31 {offsets = [0, 48, 0], sizes = [2, 8, 128], strides = [1, 1, 1]} : vector<2x256x128xbf16> to vector<2x8x128xbf16>
    %c0_37 = arith.constant 0 : index
    %c7 = arith.constant 7 : index
    %c1_38 = arith.constant 1 : index
    %c0_39 = arith.constant 0 : index
    %59 = vector.load %arg16[%c0_37, %c7, %c1_38, %c0_39] : memref<2x36x9x128xbf16, #tpu.memory_space<vmem>>, vector<2x1x8x128xbf16>
    %60 = vector.shape_cast %59 : vector<2x1x8x128xbf16> to vector<2x8x128xbf16>
    %61 = vector.shape_cast %58 : vector<2x8x128xbf16> to vector<2x1x8x128xbf16>
    tpu.vector_store %arg16[%c0_37, %c7, %c1_38, %c0_39], %61 {strides = array<i32>} : memref<2x36x9x128xbf16, #tpu.memory_space<vmem>>, vector<2x1x8x128xbf16>,
    %62 = vector.extract_strided_slice %31 {offsets = [0, 56, 0], sizes = [2, 8, 128], strides = [1, 1, 1]} : vector<2x256x128xbf16> to vector<2x8x128xbf16>
    %c0_40 = arith.constant 0 : index
    %c8 = arith.constant 8 : index
    %c1_41 = arith.constant 1 : index
    %c0_42 = arith.constant 0 : index
    %63 = vector.load %arg16[%c0_40, %c8, %c1_41, %c0_42] : memref<2x36x9x128xbf16, #tpu.memory_space<vmem>>, vector<2x1x8x128xbf16>
    %64 = vector.shape_cast %63 : vector<2x1x8x128xbf16> to vector<2x8x128xbf16>
    %65 = vector.shape_cast %62 : vector<2x8x128xbf16> to vector<2x1x8x128xbf16>
    tpu.vector_store %arg16[%c0_40, %c8, %c1_41, %c0_42], %65 {strides = array<i32>} : memref<2x36x9x128xbf16, #tpu.memory_space<vmem>>, vector<2x1x8x128xbf16>,
    %66 = vector.extract_strided_slice %31 {offsets = [0, 64, 0], sizes = [2, 8, 128], strides = [1, 1, 1]} : vector<2x256x128xbf16> to vector<2x8x128xbf16>
    %c0_43 = arith.constant 0 : index
    %c10 = arith.constant 10 : index
    %c0_44 = arith.constant 0 : index
    %c0_45 = arith.constant 0 : index
    %67 = vector.load %arg16[%c0_43, %c10, %c0_44, %c0_45] : memref<2x36x9x128xbf16, #tpu.memory_space<vmem>>, vector<2x1x8x128xbf16>
    %68 = vector.shape_cast %67 : vector<2x1x8x128xbf16> to vector<2x8x128xbf16>
    %69 = vector.shape_cast %66 : vector<2x8x128xbf16> to vector<2x1x8x128xbf16>
    tpu.vector_store %arg16[%c0_43, %c10, %c0_44, %c0_45], %69 {strides = array<i32>} : memref<2x36x9x128xbf16, #tpu.memory_space<vmem>>, vector<2x1x8x128xbf16>,
    %70 = vector.extract_strided_slice %31 {offsets = [0, 72, 0], sizes = [2, 8, 128], strides = [1, 1, 1]} : vector<2x256x128xbf16> to vector<2x8x128xbf16>
    %c0_46 = arith.constant 0 : index
    %c11 = arith.constant 11 : index
    %c0_47 = arith.constant 0 : index
    %c0_48 = arith.constant 0 : index
    %71 = vector.load %arg16[%c0_46, %c11, %c0_47, %c0_48] : memref<2x36x9x128xbf16, #tpu.memory_space<vmem>>, vector<2x1x8x128xbf16>
    %72 = vector.shape_cast %71 : vector<2x1x8x128xbf16> to vector<2x8x128xbf16>
    %73 = vector.shape_cast %70 : vector<2x8x128xbf16> to vector<2x1x8x128xbf16>
    tpu.vector_store %arg16[%c0_46, %c11, %c0_47, %c0_48], %73 {strides = array<i32>} : memref<2x36x9x128xbf16, #tpu.memory_space<vmem>>, vector<2x1x8x128xbf16>,
    %74 = vector.extract_strided_slice %31 {offsets = [0, 80, 0], sizes = [2, 8, 128], strides = [1, 1, 1]} : vector<2x256x128xbf16> to vector<2x8x128xbf16>
    %c0_49 = arith.constant 0 : index
    %c12 = arith.constant 12 : index
    %c0_50 = arith.constant 0 : index
    %c0_51 = arith.constant 0 : index
    %75 = vector.load %arg16[%c0_49, %c12, %c0_50, %c0_51] : memref<2x36x9x128xbf16, #tpu.memory_space<vmem>>, vector<2x1x8x128xbf16>
    %76 = vector.shape_cast %75 : vector<2x1x8x128xbf16> to vector<2x8x128xbf16>
    %77 = vector.shape_cast %74 : vector<2x8x128xbf16> to vector<2x1x8x128xbf16>
    tpu.vector_store %arg16[%c0_49, %c12, %c0_50, %c0_51], %77 {strides = array<i32>} : memref<2x36x9x128xbf16, #tpu.memory_space<vmem>>, vector<2x1x8x128xbf16>,
    %78 = vector.extract_strided_slice %31 {offsets = [0, 88, 0], sizes = [2, 8, 128], strides = [1, 1, 1]} : vector<2x256x128xbf16> to vector<2x8x128xbf16>
    %c0_52 = arith.constant 0 : index
    %c13 = arith.constant 13 : index
    %c0_53 = arith.constant 0 : index
    %c0_54 = arith.constant 0 : index
    %79 = vector.load %arg16[%c0_52, %c13, %c0_53, %c0_54] : memref<2x36x9x128xbf16, #tpu.memory_space<vmem>>, vector<2x1x8x128xbf16>
    %80 = vector.shape_cast %79 : vector<2x1x8x128xbf16> to vector<2x8x128xbf16>
    %81 = vector.shape_cast %78 : vector<2x8x128xbf16> to vector<2x1x8x128xbf16>
    tpu.vector_store %arg16[%c0_52, %c13, %c0_53, %c0_54], %81 {strides = array<i32>} : memref<2x36x9x128xbf16, #tpu.memory_space<vmem>>, vector<2x1x8x128xbf16>,
    %82 = vector.extract_strided_slice %31 {offsets = [0, 96, 0], sizes = [2, 8, 128], strides = [1, 1, 1]} : vector<2x256x128xbf16> to vector<2x8x128xbf16>
    %c0_55 = arith.constant 0 : index
    %c14 = arith.constant 14 : index
    %c0_56 = arith.constant 0 : index
    %c0_57 = arith.constant 0 : index
    %83 = vector.load %arg16[%c0_55, %c14, %c0_56, %c0_57] : memref<2x36x9x128xbf16, #tpu.memory_space<vmem>>, vector<2x1x8x128xbf16>
    %84 = vector.shape_cast %83 : vector<2x1x8x128xbf16> to vector<2x8x128xbf16>
    %85 = vector.shape_cast %82 : vector<2x8x128xbf16> to vector<2x1x8x128xbf16>
    tpu.vector_store %arg16[%c0_55, %c14, %c0_56, %c0_57], %85 {strides = array<i32>} : memref<2x36x9x128xbf16, #tpu.memory_space<vmem>>, vector<2x1x8x128xbf16>,
    %86 = vector.extract_strided_slice %31 {offsets = [0, 104, 0], sizes = [2, 8, 128], strides = [1, 1, 1]} : vector<2x256x128xbf16> to vector<2x8x128xbf16>
    %c0_58 = arith.constant 0 : index
    %c15 = arith.constant 15 : index
    %c0_59 = arith.constant 0 : index
    %c0_60 = arith.constant 0 : index
    %87 = vector.load %arg16[%c0_58, %c15, %c0_59, %c0_60] : memref<2x36x9x128xbf16, #tpu.memory_space<vmem>>, vector<2x1x8x128xbf16>
    %88 = vector.shape_cast %87 : vector<2x1x8x128xbf16> to vector<2x8x128xbf16>
    %89 = vector.shape_cast %86 : vector<2x8x128xbf16> to vector<2x1x8x128xbf16>
    tpu.vector_store %arg16[%c0_58, %c15, %c0_59, %c0_60], %89 {strides = array<i32>} : memref<2x36x9x128xbf16, #tpu.memory_space<vmem>>, vector<2x1x8x128xbf16>,
    %90 = vector.extract_strided_slice %31 {offsets = [0, 112, 0], sizes = [2, 8, 128], strides = [1, 1, 1]} : vector<2x256x128xbf16> to vector<2x8x128xbf16>
    %c0_61 = arith.constant 0 : index
    %c16 = arith.constant 16 : index
    %c0_62 = arith.constant 0 : index
    %c0_63 = arith.constant 0 : index
    %91 = vector.load %arg16[%c0_61, %c16, %c0_62, %c0_63] : memref<2x36x9x128xbf16, #tpu.memory_space<vmem>>, vector<2x1x8x128xbf16>
    %92 = vector.shape_cast %91 : vector<2x1x8x128xbf16> to vector<2x8x128xbf16>
    %93 = vector.shape_cast %90 : vector<2x8x128xbf16> to vector<2x1x8x128xbf16>
    tpu.vector_store %arg16[%c0_61, %c16, %c0_62, %c0_63], %93 {strides = array<i32>} : memref<2x36x9x128xbf16, #tpu.memory_space<vmem>>, vector<2x1x8x128xbf16>,
    %94 = vector.extract_strided_slice %31 {offsets = [0, 120, 0], sizes = [2, 8, 128], strides = [1, 1, 1]} : vector<2x256x128xbf16> to vector<2x8x128xbf16>
    %c0_64 = arith.constant 0 : index
    %c17 = arith.constant 17 : index
    %c0_65 = arith.constant 0 : index
    %c0_66 = arith.constant 0 : index
    %95 = vector.load %arg16[%c0_64, %c17, %c0_65, %c0_66] : memref<2x36x9x128xbf16, #tpu.memory_space<vmem>>, vector<2x1x8x128xbf16>
    %96 = vector.shape_cast %95 : vector<2x1x8x128xbf16> to vector<2x8x128xbf16>
    %97 = vector.shape_cast %94 : vector<2x8x128xbf16> to vector<2x1x8x128xbf16>
    tpu.vector_store %arg16[%c0_64, %c17, %c0_65, %c0_66], %97 {strides = array<i32>} : memref<2x36x9x128xbf16, #tpu.memory_space<vmem>>, vector<2x1x8x128xbf16>,
    %98 = vector.extract_strided_slice %31 {offsets = [0, 128, 0], sizes = [2, 8, 128], strides = [1, 1, 1]} : vector<2x256x128xbf16> to vector<2x8x128xbf16>
    %c0_67 = arith.constant 0 : index
    %c18 = arith.constant 18 : index
    %c1_68 = arith.constant 1 : index
    %c0_69 = arith.constant 0 : index
    %99 = vector.load %arg16[%c0_67, %c18, %c1_68, %c0_69] : memref<2x36x9x128xbf16, #tpu.memory_space<vmem>>, vector<2x1x8x128xbf16>
    %100 = vector.shape_cast %99 : vector<2x1x8x128xbf16> to vector<2x8x128xbf16>
    %101 = vector.shape_cast %98 : vector<2x8x128xbf16> to vector<2x1x8x128xbf16>
    tpu.vector_store %arg16[%c0_67, %c18, %c1_68, %c0_69], %101 {strides = array<i32>} : memref<2x36x9x128xbf16, #tpu.memory_space<vmem>>, vector<2x1x8x128xbf16>,
    %102 = vector.extract_strided_slice %31 {offsets = [0, 136, 0], sizes = [2, 8, 128], strides = [1, 1, 1]} : vector<2x256x128xbf16> to vector<2x8x128xbf16>
    %c0_70 = arith.constant 0 : index
    %c19 = arith.constant 19 : index
    %c1_71 = arith.constant 1 : index
    %c0_72 = arith.constant 0 : index
    %103 = vector.load %arg16[%c0_70, %c19, %c1_71, %c0_72] : memref<2x36x9x128xbf16, #tpu.memory_space<vmem>>, vector<2x1x8x128xbf16>
    %104 = vector.shape_cast %103 : vector<2x1x8x128xbf16> to vector<2x8x128xbf16>
    %105 = vector.shape_cast %102 : vector<2x8x128xbf16> to vector<2x1x8x128xbf16>
    tpu.vector_store %arg16[%c0_70, %c19, %c1_71, %c0_72], %105 {strides = array<i32>} : memref<2x36x9x128xbf16, #tpu.memory_space<vmem>>, vector<2x1x8x128xbf16>,
    %106 = vector.extract_strided_slice %31 {offsets = [0, 144, 0], sizes = [2, 8, 128], strides = [1, 1, 1]} : vector<2x256x128xbf16> to vector<2x8x128xbf16>
    %c0_73 = arith.constant 0 : index
    %c20 = arith.constant 20 : index
    %c1_74 = arith.constant 1 : index
    %c0_75 = arith.constant 0 : index
    %107 = vector.load %arg16[%c0_73, %c20, %c1_74, %c0_75] : memref<2x36x9x128xbf16, #tpu.memory_space<vmem>>, vector<2x1x8x128xbf16>
    %108 = vector.shape_cast %107 : vector<2x1x8x128xbf16> to vector<2x8x128xbf16>
    %109 = vector.shape_cast %106 : vector<2x8x128xbf16> to vector<2x1x8x128xbf16>
    tpu.vector_store %arg16[%c0_73, %c20, %c1_74, %c0_75], %109 {strides = array<i32>} : memref<2x36x9x128xbf16, #tpu.memory_space<vmem>>, vector<2x1x8x128xbf16>,
    %110 = vector.extract_strided_slice %31 {offsets = [0, 152, 0], sizes = [2, 8, 128], strides = [1, 1, 1]} : vector<2x256x128xbf16> to vector<2x8x128xbf16>
    %c0_76 = arith.constant 0 : index
    %c21 = arith.constant 21 : index
    %c1_77 = arith.constant 1 : index
    %c0_78 = arith.constant 0 : index
    %111 = vector.load %arg16[%c0_76, %c21, %c1_77, %c0_78] : memref<2x36x9x128xbf16, #tpu.memory_space<vmem>>, vector<2x1x8x128xbf16>
    %112 = vector.shape_cast %111 : vector<2x1x8x128xbf16> to vector<2x8x128xbf16>
    %113 = vector.shape_cast %110 : vector<2x8x128xbf16> to vector<2x1x8x128xbf16>
    tpu.vector_store %arg16[%c0_76, %c21, %c1_77, %c0_78], %113 {strides = array<i32>} : memref<2x36x9x128xbf16, #tpu.memory_space<vmem>>, vector<2x1x8x128xbf16>,
    %114 = vector.extract_strided_slice %31 {offsets = [0, 160, 0], sizes = [2, 8, 128], strides = [1, 1, 1]} : vector<2x256x128xbf16> to vector<2x8x128xbf16>
    %c0_79 = arith.constant 0 : index
    %c22 = arith.constant 22 : index
    %c1_80 = arith.constant 1 : index
    %c0_81 = arith.constant 0 : index
    %115 = vector.load %arg16[%c0_79, %c22, %c1_80, %c0_81] : memref<2x36x9x128xbf16, #tpu.memory_space<vmem>>, vector<2x1x8x128xbf16>
    %116 = vector.shape_cast %115 : vector<2x1x8x128xbf16> to vector<2x8x128xbf16>
    %117 = vector.shape_cast %114 : vector<2x8x128xbf16> to vector<2x1x8x128xbf16>
    tpu.vector_store %arg16[%c0_79, %c22, %c1_80, %c0_81], %117 {strides = array<i32>} : memref<2x36x9x128xbf16, #tpu.memory_space<vmem>>, vector<2x1x8x128xbf16>,
    %118 = vector.extract_strided_slice %31 {offsets = [0, 168, 0], sizes = [2, 8, 128], strides = [1, 1, 1]} : vector<2x256x128xbf16> to vector<2x8x128xbf16>
    %c0_82 = arith.constant 0 : index
    %c23 = arith.constant 23 : index
    %c1_83 = arith.constant 1 : index
    %c0_84 = arith.constant 0 : index
    %119 = vector.load %arg16[%c0_82, %c23, %c1_83, %c0_84] : memref<2x36x9x128xbf16, #tpu.memory_space<vmem>>, vector<2x1x8x128xbf16>
    %120 = vector.shape_cast %119 : vector<2x1x8x128xbf16> to vector<2x8x128xbf16>
    %121 = vector.shape_cast %118 : vector<2x8x128xbf16> to vector<2x1x8x128xbf16>
    tpu.vector_store %arg16[%c0_82, %c23, %c1_83, %c0_84], %121 {strides = array<i32>} : memref<2x36x9x128xbf16, #tpu.memory_space<vmem>>, vector<2x1x8x128xbf16>,
    %122 = vector.extract_strided_slice %31 {offsets = [0, 176, 0], sizes = [2, 8, 128], strides = [1, 1, 1]} : vector<2x256x128xbf16> to vector<2x8x128xbf16>
    %c0_85 = arith.constant 0 : index
    %c24 = arith.constant 24 : index
    %c1_86 = arith.constant 1 : index
    %c0_87 = arith.constant 0 : index
    %123 = vector.load %arg16[%c0_85, %c24, %c1_86, %c0_87] : memref<2x36x9x128xbf16, #tpu.memory_space<vmem>>, vector<2x1x8x128xbf16>
    %124 = vector.shape_cast %123 : vector<2x1x8x128xbf16> to vector<2x8x128xbf16>
    %125 = vector.shape_cast %122 : vector<2x8x128xbf16> to vector<2x1x8x128xbf16>
    tpu.vector_store %arg16[%c0_85, %c24, %c1_86, %c0_87], %125 {strides = array<i32>} : memref<2x36x9x128xbf16, #tpu.memory_space<vmem>>, vector<2x1x8x128xbf16>,
    %126 = vector.extract_strided_slice %31 {offsets = [0, 184, 0], sizes = [2, 8, 128], strides = [1, 1, 1]} : vector<2x256x128xbf16> to vector<2x8x128xbf16>
    %c0_88 = arith.constant 0 : index
    %c25 = arith.constant 25 : index
    %c1_89 = arith.constant 1 : index
    %c0_90 = arith.constant 0 : index
    %127 = vector.load %arg16[%c0_88, %c25, %c1_89, %c0_90] : memref<2x36x9x128xbf16, #tpu.memory_space<vmem>>, vector<2x1x8x128xbf16>
    %128 = vector.shape_cast %127 : vector<2x1x8x128xbf16> to vector<2x8x128xbf16>
    %129 = vector.shape_cast %126 : vector<2x8x128xbf16> to vector<2x1x8x128xbf16>
    tpu.vector_store %arg16[%c0_88, %c25, %c1_89, %c0_90], %129 {strides = array<i32>} : memref<2x36x9x128xbf16, #tpu.memory_space<vmem>>, vector<2x1x8x128xbf16>,
    %130 = vector.extract_strided_slice %31 {offsets = [0, 192, 0], sizes = [2, 8, 128], strides = [1, 1, 1]} : vector<2x256x128xbf16> to vector<2x8x128xbf16>
    %c0_91 = arith.constant 0 : index
    %c27 = arith.constant 27 : index
    %c0_92 = arith.constant 0 : index
    %c0_93 = arith.constant 0 : index
    %131 = vector.load %arg16[%c0_91, %c27, %c0_92, %c0_93] : memref<2x36x9x128xbf16, #tpu.memory_space<vmem>>, vector<2x1x8x128xbf16>
    %132 = vector.shape_cast %131 : vector<2x1x8x128xbf16> to vector<2x8x128xbf16>
    %133 = vector.shape_cast %130 : vector<2x8x128xbf16> to vector<2x1x8x128xbf16>
    tpu.vector_store %arg16[%c0_91, %c27, %c0_92, %c0_93], %133 {strides = array<i32>} : memref<2x36x9x128xbf16, #tpu.memory_space<vmem>>, vector<2x1x8x128xbf16>,
    %134 = vector.extract_strided_slice %31 {offsets = [0, 200, 0], sizes = [2, 8, 128], strides = [1, 1, 1]} : vector<2x256x128xbf16> to vector<2x8x128xbf16>
    %c0_94 = arith.constant 0 : index
    %c28 = arith.constant 28 : index
    %c0_95 = arith.constant 0 : index
    %c0_96 = arith.constant 0 : index
    %135 = vector.load %arg16[%c0_94, %c28, %c0_95, %c0_96] : memref<2x36x9x128xbf16, #tpu.memory_space<vmem>>, vector<2x1x8x128xbf16>
    %136 = vector.shape_cast %135 : vector<2x1x8x128xbf16> to vector<2x8x128xbf16>
    %137 = vector.shape_cast %134 : vector<2x8x128xbf16> to vector<2x1x8x128xbf16>
    tpu.vector_store %arg16[%c0_94, %c28, %c0_95, %c0_96], %137 {strides = array<i32>} : memref<2x36x9x128xbf16, #tpu.memory_space<vmem>>, vector<2x1x8x128xbf16>,
    %138 = vector.extract_strided_slice %31 {offsets = [0, 208, 0], sizes = [2, 8, 128], strides = [1, 1, 1]} : vector<2x256x128xbf16> to vector<2x8x128xbf16>
    %c0_97 = arith.constant 0 : index
    %c29 = arith.constant 29 : index
    %c0_98 = arith.constant 0 : index
    %c0_99 = arith.constant 0 : index
    %139 = vector.load %arg16[%c0_97, %c29, %c0_98, %c0_99] : memref<2x36x9x128xbf16, #tpu.memory_space<vmem>>, vector<2x1x8x128xbf16>
    %140 = vector.shape_cast %139 : vector<2x1x8x128xbf16> to vector<2x8x128xbf16>
    %141 = vector.shape_cast %138 : vector<2x8x128xbf16> to vector<2x1x8x128xbf16>
    tpu.vector_store %arg16[%c0_97, %c29, %c0_98, %c0_99], %141 {strides = array<i32>} : memref<2x36x9x128xbf16, #tpu.memory_space<vmem>>, vector<2x1x8x128xbf16>,
    %142 = vector.extract_strided_slice %31 {offsets = [0, 216, 0], sizes = [2, 8, 128], strides = [1, 1, 1]} : vector<2x256x128xbf16> to vector<2x8x128xbf16>
    %c0_100 = arith.constant 0 : index
    %c30 = arith.constant 30 : index
    %c0_101 = arith.constant 0 : index
    %c0_102 = arith.constant 0 : index
    %143 = vector.load %arg16[%c0_100, %c30, %c0_101, %c0_102] : memref<2x36x9x128xbf16, #tpu.memory_space<vmem>>, vector<2x1x8x128xbf16>
    %144 = vector.shape_cast %143 : vector<2x1x8x128xbf16> to vector<2x8x128xbf16>
    %145 = vector.shape_cast %142 : vector<2x8x128xbf16> to vector<2x1x8x128xbf16>
    tpu.vector_store %arg16[%c0_100, %c30, %c0_101, %c0_102], %145 {strides = array<i32>} : memref<2x36x9x128xbf16, #tpu.memory_space<vmem>>, vector<2x1x8x128xbf16>,
    %146 = vector.extract_strided_slice %31 {offsets = [0, 224, 0], sizes = [2, 8, 128], strides = [1, 1, 1]} : vector<2x256x128xbf16> to vector<2x8x128xbf16>
    %c0_103 = arith.constant 0 : index
    %c31 = arith.constant 31 : index
    %c0_104 = arith.constant 0 : index
    %c0_105 = arith.constant 0 : index
    %147 = vector.load %arg16[%c0_103, %c31, %c0_104, %c0_105] : memref<2x36x9x128xbf16, #tpu.memory_space<vmem>>, vector<2x1x8x128xbf16>
    %148 = vector.shape_cast %147 : vector<2x1x8x128xbf16> to vector<2x8x128xbf16>
    %149 = vector.shape_cast %146 : vector<2x8x128xbf16> to vector<2x1x8x128xbf16>
    tpu.vector_store %arg16[%c0_103, %c31, %c0_104, %c0_105], %149 {strides = array<i32>} : memref<2x36x9x128xbf16, #tpu.memory_space<vmem>>, vector<2x1x8x128xbf16>,
    %150 = vector.extract_strided_slice %31 {offsets = [0, 232, 0], sizes = [2, 8, 128], strides = [1, 1, 1]} : vector<2x256x128xbf16> to vector<2x8x128xbf16>
    %c0_106 = arith.constant 0 : index
    %c32 = arith.constant 32 : index
    %c0_107 = arith.constant 0 : index
    %c0_108 = arith.constant 0 : index
    %151 = vector.load %arg16[%c0_106, %c32, %c0_107, %c0_108] : memref<2x36x9x128xbf16, #tpu.memory_space<vmem>>, vector<2x1x8x128xbf16>
    %152 = vector.shape_cast %151 : vector<2x1x8x128xbf16> to vector<2x8x128xbf16>
    %153 = vector.shape_cast %150 : vector<2x8x128xbf16> to vector<2x1x8x128xbf16>
    tpu.vector_store %arg16[%c0_106, %c32, %c0_107, %c0_108], %153 {strides = array<i32>} : memref<2x36x9x128xbf16, #tpu.memory_space<vmem>>, vector<2x1x8x128xbf16>,
    %154 = vector.extract_strided_slice %31 {offsets = [0, 240, 0], sizes = [2, 8, 128], strides = [1, 1, 1]} : vector<2x256x128xbf16> to vector<2x8x128xbf16>
    %c0_109 = arith.constant 0 : index
    %c33 = arith.constant 33 : index
    %c0_110 = arith.constant 0 : index
    %c0_111 = arith.constant 0 : index
    %155 = vector.load %arg16[%c0_109, %c33, %c0_110, %c0_111] : memref<2x36x9x128xbf16, #tpu.memory_space<vmem>>, vector<2x1x8x128xbf16>
    %156 = vector.shape_cast %155 : vector<2x1x8x128xbf16> to vector<2x8x128xbf16>
    %157 = vector.shape_cast %154 : vector<2x8x128xbf16> to vector<2x1x8x128xbf16>
    tpu.vector_store %arg16[%c0_109, %c33, %c0_110, %c0_111], %157 {strides = array<i32>} : memref<2x36x9x128xbf16, #tpu.memory_space<vmem>>, vector<2x1x8x128xbf16>,
    %158 = vector.extract_strided_slice %31 {offsets = [0, 248, 0], sizes = [2, 8, 128], strides = [1, 1, 1]} : vector<2x256x128xbf16> to vector<2x8x128xbf16>
    %c0_112 = arith.constant 0 : index
    %c34 = arith.constant 34 : index
    %c0_113 = arith.constant 0 : index
    %c0_114 = arith.constant 0 : index
    %159 = vector.load %arg16[%c0_112, %c34, %c0_113, %c0_114] : memref<2x36x9x128xbf16, #tpu.memory_space<vmem>>, vector<2x1x8x128xbf16>
    %160 = vector.shape_cast %159 : vector<2x1x8x128xbf16> to vector<2x8x128xbf16>
    %161 = vector.shape_cast %158 : vector<2x8x128xbf16> to vector<2x1x8x128xbf16>
    tpu.vector_store %arg16[%c0_112, %c34, %c0_113, %c0_114], %161 {strides = array<i32>} : memref<2x36x9x128xbf16, #tpu.memory_space<vmem>>, vector<2x1x8x128xbf16>,
    %c0_115 = arith.constant 0 : index
    %c0_116 = arith.constant 0 : index
    %c0_117 = arith.constant 0 : index
    %c0_118 = arith.constant 0 : index
    %162 = vector.load %arg16[%c0_115, %c0_116, %c0_117, %c0_118] : memref<2x36x9x128xbf16, #tpu.memory_space<vmem>>, vector<2x8x8x128xbf16>
    %163 = vector.shape_cast %162 : vector<2x8x8x128xbf16> to vector<128x128xbf16>
    %c0_119 = arith.constant 0 : index
    %c0_120 = arith.constant 0 : index
    %164 = vector.load %arg17[%c0_119, %c0_120] : memref<128x1152xbf16, #tpu.memory_space<vmem>>, vector<128x128xbf16>
    tpu.vector_store %arg17[%c0_119, %c0_120], %163 {strides = array<i32>} : memref<128x1152xbf16, #tpu.memory_space<vmem>>, vector<128x128xbf16>,
    %c0_121 = arith.constant 0 : index
    %c9 = arith.constant 9 : index
    %c0_122 = arith.constant 0 : index
    %c0_123 = arith.constant 0 : index
    %165 = vector.load %arg16[%c0_121, %c9, %c0_122, %c0_123] : memref<2x36x9x128xbf16, #tpu.memory_space<vmem>>, vector<2x8x8x128xbf16>
    %166 = vector.shape_cast %165 : vector<2x8x8x128xbf16> to vector<128x128xbf16>
    %c0_124 = arith.constant 0 : index
    %c128 = arith.constant 128 : index
    %167 = vector.load %arg17[%c0_124, %c128] : memref<128x1152xbf16, #tpu.memory_space<vmem>>, vector<128x128xbf16>
    tpu.vector_store %arg17[%c0_124, %c128], %166 {strides = array<i32>} : memref<128x1152xbf16, #tpu.memory_space<vmem>>, vector<128x128xbf16>,
    %c0_125 = arith.constant 0 : index
    %c0_126 = arith.constant 0 : index
    %c1_127 = arith.constant 1 : index
    %c0_128 = arith.constant 0 : index
    %168 = vector.load %arg16[%c0_125, %c0_126, %c1_127, %c0_128] : memref<2x36x9x128xbf16, #tpu.memory_space<vmem>>, vector<2x8x8x128xbf16>
    %169 = vector.shape_cast %168 : vector<2x8x8x128xbf16> to vector<128x128xbf16>
    %c0_129 = arith.constant 0 : index
    %c256 = arith.constant 256 : index
    %170 = vector.load %arg17[%c0_129, %c256] : memref<128x1152xbf16, #tpu.memory_space<vmem>>, vector<128x128xbf16>
    tpu.vector_store %arg17[%c0_129, %c256], %169 {strides = array<i32>} : memref<128x1152xbf16, #tpu.memory_space<vmem>>, vector<128x128xbf16>,
    %c0_130 = arith.constant 0 : index
    %c18_131 = arith.constant 18 : index
    %c0_132 = arith.constant 0 : index
    %c0_133 = arith.constant 0 : index
    %171 = vector.load %arg16[%c0_130, %c18_131, %c0_132, %c0_133] : memref<2x36x9x128xbf16, #tpu.memory_space<vmem>>, vector<2x8x8x128xbf16>
    %172 = vector.shape_cast %171 : vector<2x8x8x128xbf16> to vector<128x128xbf16>
    %c0_134 = arith.constant 0 : index
    %c384 = arith.constant 384 : index
    %173 = vector.load %arg17[%c0_134, %c384] : memref<128x1152xbf16, #tpu.memory_space<vmem>>, vector<128x128xbf16>
    tpu.vector_store %arg17[%c0_134, %c384], %172 {strides = array<i32>} : memref<128x1152xbf16, #tpu.memory_space<vmem>>, vector<128x128xbf16>,
    %c0_135 = arith.constant 0 : index
    %c27_136 = arith.constant 27 : index
    %c0_137 = arith.constant 0 : index
    %c0_138 = arith.constant 0 : index
    %174 = vector.load %arg16[%c0_135, %c27_136, %c0_137, %c0_138] : memref<2x36x9x128xbf16, #tpu.memory_space<vmem>>, vector<2x8x8x128xbf16>
    %175 = vector.shape_cast %174 : vector<2x8x8x128xbf16> to vector<128x128xbf16>
    %c0_139 = arith.constant 0 : index
    %c512 = arith.constant 512 : index
    %176 = vector.load %arg17[%c0_139, %c512] : memref<128x1152xbf16, #tpu.memory_space<vmem>>, vector<128x128xbf16>
    tpu.vector_store %arg17[%c0_139, %c512], %175 {strides = array<i32>} : memref<128x1152xbf16, #tpu.memory_space<vmem>>, vector<128x128xbf16>,
    %c0_140 = arith.constant 0 : index
    %c18_141 = arith.constant 18 : index
    %c1_142 = arith.constant 1 : index
    %c0_143 = arith.constant 0 : index
    %177 = vector.load %arg16[%c0_140, %c18_141, %c1_142, %c0_143] : memref<2x36x9x128xbf16, #tpu.memory_space<vmem>>, vector<2x8x8x128xbf16>
    %178 = vector.shape_cast %177 : vector<2x8x8x128xbf16> to vector<128x128xbf16>
    %c0_144 = arith.constant 0 : index
    %c640 = arith.constant 640 : index
    %179 = vector.load %arg17[%c0_144, %c640] : memref<128x1152xbf16, #tpu.memory_space<vmem>>, vector<128x128xbf16>
    tpu.vector_store %arg17[%c0_144, %c640], %178 {strides = array<i32>} : memref<128x1152xbf16, #tpu.memory_space<vmem>>, vector<128x128xbf16>,
    %c0_145 = arith.constant 0 : index
    %c1_146 = arith.constant 1 : index
    %c0_147 = arith.constant 0 : index
    %c0_148 = arith.constant 0 : index
    %180 = vector.load %arg16[%c0_145, %c1_146, %c0_147, %c0_148] : memref<2x36x9x128xbf16, #tpu.memory_space<vmem>>, vector<2x8x8x128xbf16>
    %181 = vector.shape_cast %180 : vector<2x8x8x128xbf16> to vector<128x128xbf16>
    %c0_149 = arith.constant 0 : index
    %c768 = arith.constant 768 : index
    %182 = vector.load %arg17[%c0_149, %c768] : memref<128x1152xbf16, #tpu.memory_space<vmem>>, vector<128x128xbf16>
    tpu.vector_store %arg17[%c0_149, %c768], %181 {strides = array<i32>} : memref<128x1152xbf16, #tpu.memory_space<vmem>>, vector<128x128xbf16>,
    %c0_150 = arith.constant 0 : index
    %c10_151 = arith.constant 10 : index
    %c0_152 = arith.constant 0 : index
    %c0_153 = arith.constant 0 : index
    %183 = vector.load %arg16[%c0_150, %c10_151, %c0_152, %c0_153] : memref<2x36x9x128xbf16, #tpu.memory_space<vmem>>, vector<2x8x8x128xbf16>
    %184 = vector.shape_cast %183 : vector<2x8x8x128xbf16> to vector<128x128xbf16>
    %c0_154 = arith.constant 0 : index
    %c896 = arith.constant 896 : index
    %185 = vector.load %arg17[%c0_154, %c896] : memref<128x1152xbf16, #tpu.memory_space<vmem>>, vector<128x128xbf16>
    tpu.vector_store %arg17[%c0_154, %c896], %184 {strides = array<i32>} : memref<128x1152xbf16, #tpu.memory_space<vmem>>, vector<128x128xbf16>,
    %c0_155 = arith.constant 0 : index
    %c1_156 = arith.constant 1 : index
    %c1_157 = arith.constant 1 : index
    %c0_158 = arith.constant 0 : index
    %186 = vector.load %arg16[%c0_155, %c1_156, %c1_157, %c0_158] : memref<2x36x9x128xbf16, #tpu.memory_space<vmem>>, vector<2x8x8x128xbf16>
    %187 = vector.shape_cast %186 : vector<2x8x8x128xbf16> to vector<128x128xbf16>
    %c0_159 = arith.constant 0 : index
    %c1024 = arith.constant 1024 : index
    %188 = vector.load %arg17[%c0_159, %c1024] : memref<128x1152xbf16, #tpu.memory_space<vmem>>, vector<128x128xbf16>
    tpu.vector_store %arg17[%c0_159, %c1024], %187 {strides = array<i32>} : memref<128x1152xbf16, #tpu.memory_space<vmem>>, vector<128x128xbf16>,
    %c0_160 = arith.constant 0 : index
    %c0_161 = arith.constant 0 : index
    %189 = vector.load %arg17[%c0_160, %c0_161] : memref<128x1152xbf16, #tpu.memory_space<vmem>>, vector<128x1152xbf16>
    %c0_162 = arith.constant 0 : index
    %c0_163 = arith.constant 0 : index
    %190 = vector.load %arg3[%c0_162, %c0_163] : memref<1152x128xbf16, #tpu.memory_space<vmem>>, vector<1152x128xbf16>
    %cst_164 = arith.constant dense<0.000000e+00> : vector<128x128xf32>
    %191 = tpu.matmul %189, %190, %cst_164 {dimension_numbers = #tpu.dot_dimension_numbers<[1], [0], [0], [1], [0, 0, 1, 1], [], []>} : vector<128x1152xbf16>, vector<1152x128xbf16>, vector<128x128xf32> -> vector<128x128xf32>
    %192 = vector.shape_cast %191 : vector<128x128xf32> to vector<2x64x128xf32>
    %cst_165 = arith.constant dense<0.000000e+00> : vector<2x128xf32>
    %193 = vector.multi_reduction <add>, %192, %cst_165 [1] : vector<2x64x128xf32> to vector<2x128xf32>
    %cst_166 = arith.constant 1.562500e-02 : f32
    %194 = vector.broadcast %cst_166 : f32 to vector<2x128xf32>
    %195 = arith.mulf %193, %194 : vector<2x128xf32>
    %196 = vector.shape_cast %195 : vector<2x128xf32> to vector<2x1x128xf32>
    %197 = vector.broadcast %196 : vector<2x1x128xf32> to vector<2x64x128xf32>
    %198 = arith.subf %192, %197 : vector<2x64x128xf32>
    %199 = arith.mulf %198, %198 : vector<2x64x128xf32>
    %cst_167 = arith.constant dense<0.000000e+00> : vector<2x128xf32>
    %200 = vector.multi_reduction <add>, %199, %cst_167 [1] : vector<2x64x128xf32> to vector<2x128xf32>
    %cst_168 = arith.constant 1.562500e-02 : f32
    %201 = vector.broadcast %cst_168 : f32 to vector<2x128xf32>
    %202 = arith.mulf %200, %201 : vector<2x128xf32>
    %cst_169 = arith.constant 9.99999997E-7 : f32
    %203 = vector.broadcast %cst_169 : f32 to vector<2x128xf32>
    %204 = arith.addf %202, %203 : vector<2x128xf32>
    %205 = math.rsqrt %204 : vector<2x128xf32>
    %206 = vector.shape_cast %205 : vector<2x128xf32> to vector<2x1x128xf32>
    %207 = vector.broadcast %206 : vector<2x1x128xf32> to vector<2x64x128xf32>
    %208 = arith.mulf %198, %207 : vector<2x64x128xf32>
    %209 = vector.shape_cast %208 : vector<2x64x128xf32> to vector<128x128xf32>
    %c0_170 = arith.constant 0 : index
    %c0_171 = arith.constant 0 : index
    %210 = vector.load %arg7[%c0_170, %c0_171] : memref<1x128xf32, #tpu.memory_space<vmem>>, vector<1x128xf32>
    %211 = vector.broadcast %210 : vector<1x128xf32> to vector<128x128xf32>
    %212 = arith.mulf %209, %211 : vector<128x128xf32>
    %c0_172 = arith.constant 0 : index
    %c0_173 = arith.constant 0 : index
    %213 = vector.load %arg8[%c0_172, %c0_173] : memref<1x128xf32, #tpu.memory_space<vmem>>, vector<1x128xf32>
    %214 = vector.broadcast %213 : vector<1x128xf32> to vector<128x128xf32>
    %215 = arith.addf %212, %214 : vector<128x128xf32>
    %cst_174 = arith.constant 0.000000e+00 : f32
    %216 = vector.broadcast %cst_174 : f32 to vector<128x128xf32>
    %217 = arith.maximumf %215, %216 : vector<128x128xf32>
    %218 = arith.truncf %217 : vector<128x128xf32> to vector<128x128xbf16>
    %c0_175 = arith.constant 0 : index
    %c0_176 = arith.constant 0 : index
    %219 = vector.load %arg4[%c0_175, %c0_176] : memref<128x128xbf16, #tpu.memory_space<vmem>>, vector<128x128xbf16>
    %cst_177 = arith.constant dense<0.000000e+00> : vector<128x128xf32>
    %220 = tpu.matmul %218, %219, %cst_177 {dimension_numbers = #tpu.dot_dimension_numbers<[1], [0], [0], [1], [0, 0, 1, 1], [], []>} : vector<128x128xbf16>, vector<128x128xbf16>, vector<128x128xf32> -> vector<128x128xf32>
    %221 = vector.shape_cast %220 : vector<128x128xf32> to vector<2x64x128xf32>
    %cst_178 = arith.constant dense<0.000000e+00> : vector<2x128xf32>
    %222 = vector.multi_reduction <add>, %221, %cst_178 [1] : vector<2x64x128xf32> to vector<2x128xf32>
    %c0_179 = arith.constant 0 : index
    %c0_180 = arith.constant 0 : index
    %223 = vector.load %arg11[%c0_179, %c0_180] : memref<128x128xf32, #tpu.memory_space<vmem>>, vector<128x128xf32>
    %cst_181 = arith.constant dense<0.000000e+00> : vector<2x128xf32>
    %224 = tpu.matmul %222, %223, %cst_181 {dimension_numbers = #tpu.dot_dimension_numbers<[1], [0], [0], [1], [0, 0, 1, 1], [], []>} : vector<2x128xf32>, vector<128x128xf32>, vector<2x128xf32> -> vector<2x128xf32>
    %cst_182 = arith.constant 1.562500e-02 : f32
    %225 = vector.broadcast %cst_182 : f32 to vector<2x128xf32>
    %226 = arith.mulf %224, %225 : vector<2x128xf32>
    %227 = vector.shape_cast %226 : vector<2x128xf32> to vector<2x1x128xf32>
    %228 = vector.broadcast %227 : vector<2x1x128xf32> to vector<2x64x128xf32>
    %229 = arith.subf %221, %228 : vector<2x64x128xf32>
    %230 = arith.mulf %229, %229 : vector<2x64x128xf32>
    %cst_183 = arith.constant dense<0.000000e+00> : vector<2x128xf32>
    %231 = vector.multi_reduction <add>, %230, %cst_183 [1] : vector<2x64x128xf32> to vector<2x128xf32>
    %c0_184 = arith.constant 0 : index
    %c0_185 = arith.constant 0 : index
    %232 = vector.load %arg11[%c0_184, %c0_185] : memref<128x128xf32, #tpu.memory_space<vmem>>, vector<128x128xf32>
    %cst_186 = arith.constant dense<0.000000e+00> : vector<2x128xf32>
    %233 = tpu.matmul %231, %232, %cst_186 {dimension_numbers = #tpu.dot_dimension_numbers<[1], [0], [0], [1], [0, 0, 1, 1], [], []>} : vector<2x128xf32>, vector<128x128xf32>, vector<2x128xf32> -> vector<2x128xf32>
    %cst_187 = arith.constant 1.562500e-02 : f32
    %234 = vector.broadcast %cst_187 : f32 to vector<2x128xf32>
    %235 = arith.mulf %233, %234 : vector<2x128xf32>
    %cst_188 = arith.constant 9.99999997E-7 : f32
    %236 = vector.broadcast %cst_188 : f32 to vector<2x128xf32>
    %237 = arith.addf %235, %236 : vector<2x128xf32>
    %238 = math.rsqrt %237 : vector<2x128xf32>
    %239 = vector.shape_cast %238 : vector<2x128xf32> to vector<2x1x128xf32>
    %240 = vector.broadcast %239 : vector<2x1x128xf32> to vector<2x64x128xf32>
    %241 = arith.mulf %229, %240 : vector<2x64x128xf32>
    %242 = vector.shape_cast %241 : vector<2x64x128xf32> to vector<128x128xf32>
    %c0_189 = arith.constant 0 : index
    %c0_190 = arith.constant 0 : index
    %243 = vector.load %arg9[%c0_189, %c0_190] : memref<1x128xf32, #tpu.memory_space<vmem>>, vector<1x128xf32>
    %244 = vector.broadcast %243 : vector<1x128xf32> to vector<128x128xf32>
    %245 = arith.mulf %242, %244 : vector<128x128xf32>
    %c0_191 = arith.constant 0 : index
    %c0_192 = arith.constant 0 : index
    %246 = vector.load %arg10[%c0_191, %c0_192] : memref<1x128xf32, #tpu.memory_space<vmem>>, vector<1x128xf32>
    %247 = vector.broadcast %246 : vector<1x128xf32> to vector<128x128xf32>
    %248 = arith.addf %245, %247 : vector<128x128xf32>
    %249 = vector.extract_strided_slice %0 {offsets = [0, 192, 0], sizes = [2, 64, 128], strides = [1, 1, 1]} : vector<2x256x128xbf16> to vector<2x64x128xbf16>
    %250 = vector.shape_cast %249 : vector<2x64x128xbf16> to vector<128x128xbf16>
    %c0_193 = arith.constant 0 : index
    %c0_194 = arith.constant 0 : index
    %251 = vector.load %arg12[%c0_193, %c0_194] : memref<128x128xbf16, #tpu.memory_space<vmem>>, vector<128x128xbf16>
    %cst_195 = arith.constant dense<0.000000e+00> : vector<128x128xf32>
    %252 = tpu.matmul %250, %251, %cst_195 {dimension_numbers = #tpu.dot_dimension_numbers<[1], [0], [0], [1], [0, 0, 1, 1], [], []>} : vector<128x128xbf16>, vector<128x128xbf16>, vector<128x128xf32> -> vector<128x128xf32>
    %253 = vector.shape_cast %252 : vector<128x128xf32> to vector<2x64x128xf32>
    %cst_196 = arith.constant dense<0.000000e+00> : vector<2x128xf32>
    %254 = vector.multi_reduction <add>, %253, %cst_196 [1] : vector<2x64x128xf32> to vector<2x128xf32>
    %cst_197 = arith.constant 1.562500e-02 : f32
    %255 = vector.broadcast %cst_197 : f32 to vector<2x128xf32>
    %256 = arith.mulf %254, %255 : vector<2x128xf32>
    %257 = vector.shape_cast %256 : vector<2x128xf32> to vector<2x1x128xf32>
    %258 = vector.broadcast %257 : vector<2x1x128xf32> to vector<2x64x128xf32>
    %259 = arith.subf %253, %258 : vector<2x64x128xf32>
    %260 = arith.mulf %259, %259 : vector<2x64x128xf32>
    %cst_198 = arith.constant dense<0.000000e+00> : vector<2x128xf32>
    %261 = vector.multi_reduction <add>, %260, %cst_198 [1] : vector<2x64x128xf32> to vector<2x128xf32>
    %cst_199 = arith.constant 1.562500e-02 : f32
    %262 = vector.broadcast %cst_199 : f32 to vector<2x128xf32>
    %263 = arith.mulf %261, %262 : vector<2x128xf32>
    %cst_200 = arith.constant 9.99999974E-6 : f32
    %264 = vector.broadcast %cst_200 : f32 to vector<2x128xf32>
    %265 = arith.addf %263, %264 : vector<2x128xf32>
    %266 = math.rsqrt %265 : vector<2x128xf32>
    %267 = vector.shape_cast %266 : vector<2x128xf32> to vector<2x1x128xf32>
    %268 = vector.broadcast %267 : vector<2x1x128xf32> to vector<2x64x128xf32>
    %269 = arith.mulf %259, %268 : vector<2x64x128xf32>
    %270 = vector.shape_cast %269 : vector<2x64x128xf32> to vector<128x128xf32>
    %c0_201 = arith.constant 0 : index
    %c0_202 = arith.constant 0 : index
    %271 = vector.load %arg13[%c0_201, %c0_202] : memref<1x128xf32, #tpu.memory_space<vmem>>, vector<1x128xf32>
    %272 = vector.broadcast %271 : vector<1x128xf32> to vector<128x128xf32>
    %273 = arith.mulf %270, %272 : vector<128x128xf32>
    %c0_203 = arith.constant 0 : index
    %c0_204 = arith.constant 0 : index
    %274 = vector.load %arg14[%c0_203, %c0_204] : memref<1x128xf32, #tpu.memory_space<vmem>>, vector<1x128xf32>
    %275 = vector.broadcast %274 : vector<1x128xf32> to vector<128x128xf32>
    %276 = arith.addf %273, %275 : vector<128x128xf32>
    %277 = arith.addf %276, %248 : vector<128x128xf32>
    %cst_205 = arith.constant 0.000000e+00 : f32
    %278 = vector.broadcast %cst_205 : f32 to vector<128x128xf32>
    %279 = arith.maximumf %277, %278 : vector<128x128xf32>
    %280 = vector.shape_cast %279 : vector<128x128xf32> to vector<2x64x128xf32>
    %c0_206 = arith.constant 0 : index
    %c0_207 = arith.constant 0 : index
    %c0_208 = arith.constant 0 : index
    %281 = vector.load %arg15[%c0_206, %c0_207, %c0_208] : memref<2x64x128xf32, #tpu.memory_space<vmem>>, vector<2x64x128xf32>
    tpu.vector_store %arg15[%c0_206, %c0_207, %c0_208], %280 {strides = array<i32>} : memref<2x64x128xf32, #tpu.memory_space<vmem>>, vector<2x64x128xf32>,
    return
  }
  func.func @transform_0(%arg0: i32) -> (i32, i32, i32) {
    %c0_i32 = arith.constant 0 : i32
    %c0_i32_0 = arith.constant 0 : i32
    %c0_i32_1 = arith.constant 0 : i32
    return %arg0, %c0_i32, %c0_i32_0 : i32, i32, i32
  }
  func.func @transform_1(%arg0: i32) -> (i32, i32) {
    %c0_i32 = arith.constant 0 : i32
    %c0_i32_0 = arith.constant 0 : i32
    %c0_i32_1 = arith.constant 0 : i32
    return %c0_i32, %c0_i32_0 : i32, i32
  }
  func.func @transform_2(%arg0: i32) -> (i32, i32) {
    %c0_i32 = arith.constant 0 : i32
    %c0_i32_0 = arith.constant 0 : i32
    %c0_i32_1 = arith.constant 0 : i32
    return %c0_i32, %c0_i32_0 : i32, i32
  }
  func.func @transform_3(%arg0: i32) -> (i32, i32) {
    %c0_i32 = arith.constant 0 : i32
    %c0_i32_0 = arith.constant 0 : i32
    %c0_i32_1 = arith.constant 0 : i32
    return %c0_i32, %c0_i32_0 : i32, i32
  }
  func.func @transform_4(%arg0: i32) -> (i32, i32) {
    %c0_i32 = arith.constant 0 : i32
    %c0_i32_0 = arith.constant 0 : i32
    %c0_i32_1 = arith.constant 0 : i32
    return %c0_i32, %c0_i32_0 : i32, i32
  }
  func.func @transform_5(%arg0: i32) -> (i32, i32) {
    %c0_i32 = arith.constant 0 : i32
    %c0_i32_0 = arith.constant 0 : i32
    %c0_i32_1 = arith.constant 0 : i32
    return %c0_i32, %c0_i32_0 : i32, i32
  }
  func.func @transform_6(%arg0: i32) -> (i32, i32) {
    %c0_i32 = arith.constant 0 : i32
    %c0_i32_0 = arith.constant 0 : i32
    %c0_i32_1 = arith.constant 0 : i32
    return %c0_i32, %c0_i32_0 : i32, i32
  }
  func.func @transform_7(%arg0: i32) -> (i32, i32) {
    %c0_i32 = arith.constant 0 : i32
    %c0_i32_0 = arith.constant 0 : i32
    %c0_i32_1 = arith.constant 0 : i32
    return %c0_i32, %c0_i32_0 : i32, i32
  }
  func.func @transform_8(%arg0: i32) -> (i32, i32) {
    %c0_i32 = arith.constant 0 : i32
    %c0_i32_0 = arith.constant 0 : i32
    %c0_i32_1 = arith.constant 0 : i32
    return %c0_i32, %c0_i32_0 : i32, i32
  }
  func.func @transform_9(%arg0: i32) -> (i32, i32) {
    %c0_i32 = arith.constant 0 : i32
    %c0_i32_0 = arith.constant 0 : i32
    %c0_i32_1 = arith.constant 0 : i32
    return %c0_i32, %c0_i32_0 : i32, i32
  }
  func.func @transform_10(%arg0: i32) -> (i32, i32) {
    %c0_i32 = arith.constant 0 : i32
    %c0_i32_0 = arith.constant 0 : i32
    %c0_i32_1 = arith.constant 0 : i32
    return %c0_i32, %c0_i32_0 : i32, i32
  }
  func.func @transform_11(%arg0: i32) -> (i32, i32) {
    %c0_i32 = arith.constant 0 : i32
    %c0_i32_0 = arith.constant 0 : i32
    %c0_i32_1 = arith.constant 0 : i32
    return %c0_i32, %c0_i32_0 : i32, i32
  }
  func.func @transform_12(%arg0: i32) -> (i32, i32) {
    %c0_i32 = arith.constant 0 : i32
    %c0_i32_0 = arith.constant 0 : i32
    %c0_i32_1 = arith.constant 0 : i32
    return %c0_i32, %c0_i32_0 : i32, i32
  }
  func.func @transform_13(%arg0: i32) -> (i32, i32) {
    %c0_i32 = arith.constant 0 : i32
    %c0_i32_0 = arith.constant 0 : i32
    %c0_i32_1 = arith.constant 0 : i32
    return %c0_i32, %c0_i32_0 : i32, i32
  }
  func.func @transform_14(%arg0: i32) -> (i32, i32, i32) {
    %c0_i32 = arith.constant 0 : i32
    %c0_i32_0 = arith.constant 0 : i32
    %c0_i32_1 = arith.constant 0 : i32
    return %arg0, %c0_i32, %c0_i32_0 : i32, i32, i32
  }
}

</mosaic_0001>

<bundles_post_ra>
// kernel: preact_bottleneck_pallas.1
= control target key start
LH: loop header
LB: loop body
LE: loop exit
PB: predicated region body
PF: predicated region fallthrough
CT: control target
= control target key end

     0   :  { %s9197_s0 = inlined_call_operand.vmem [shape: bf16[2,256,128], index: 0, kind: input, shape index: {}]   ;;  %s9198_s1 = inlined_call_operand.vmem [shape: bf16[128,128], index: 1, kind: input, shape index: {}]   ;;  %s9199_s2 = inlined_call_operand.vmem [shape: bf16[1152,128], index: 2, kind: input, shape index: {}]   ;;  %s9200_s3 = inlined_call_operand.vmem [shape: bf16[128,128], index: 3, kind: input, shape index: {}]   ;;  %s9201_s4 = inlined_call_operand.vmem [shape: f32[1,128], index: 4, kind: input, shape index: {}]   ;;  %s9202_s5 = inlined_call_operand.vmem [shape: f32[1,128], index: 5, kind: input, shape index: {}]   ;;  %s9203_s6 = inlined_call_operand.vmem [shape: f32[1,128], index: 6, kind: input, shape index: {}]   ;;  %s9204_s7 = inlined_call_operand.vmem [shape: f32[1,128], index: 7, kind: input, shape index: {}]   ;;  %s9205_s8 = inlined_call_operand.vmem [shape: f32[1,128], index: 8, kind: input, shape index: {}]   ;;  %s9206_s9 = inlined_call_operand.vmem [shape: f32[1,128], index: 9, kind: input, shape index: {}]   ;;  %s9207_s10 = inlined_call_operand.vmem [shape: f32[128,128], index: 10, kind: input, shape index: {}]   ;;  %s9208_s11 = inlined_call_operand.vmem [shape: bf16[128,128], index: 11, kind: input, shape index: {}]   ;;  %s9209_s12 = inlined_call_operand.vmem [shape: f32[1,128], index: 12, kind: input, shape index: {}]   ;;  %s9210_s13 = inlined_call_operand.vmem [shape: f32[1,128], index: 13, kind: input, shape index: {}]   ;;  %s9211_s14 = inlined_call_operand.hbm [shape: f32[2,64,128], index: 14, kind: output, shape index: {}]  }
   0x1   :  { %v6280_v0 = vld [vmem:[%s9198_s1 + $0x38] sm:$0xff]  ;;  %v6279_v1 = vld [vmem:[%s9198_s1 + $0x30] sm:$0xff]  ;;  %v6278_v2 = vld [vmem:[%s9198_s1 + $0x28] sm:$0xff] }
   0x2   :  { %369 = vmatpush.bf16.msra.mxu0 %v6280_v0 }
   0x6   :  { %370 = vmatpush.bf16.msra.mxu0 %v6279_v1 }
   0x7   :  { %19 = vsyncpa [#allocation5], 0  ;;  %v6277_v3 = vld [vmem:[%s9198_s1 + $0x20] sm:$0xff]  ;;  %v6276_v4 = vld [vmem:[%s9198_s1 + $0x18] sm:$0xff]  ;;  %vm1169_vm0 = vcmask 1040384   ;;  %v6511_v15 = vmov 0  }
   0x8   :  { %v6275_v5 = vld [vmem:[%s9198_s1 + $0x10] sm:$0xff]  ;;  %v6274_v6 = vld [vmem:[%s9198_s1 + $0x8] sm:$0xff]  ;;  %v6273_v7 = vld [vmem:[%s9198_s1] sm:$0xff]  ;;  %vm1170_vm1 = vsmask.f32 256  ;;  %v9224_v17 = vmov 0 }
   0x9   :  { %v6241_v8 = vld [vmem:[%s9197_s0] sm:$0xff]  ;;  %v6242_v9 = vld [vmem:[%s9197_s0 + $0x8] sm:$0xff]  ;;  %v6243_v10 = vld [vmem:[%s9197_s0 + $0x10] sm:$0xff]  ;;  %1175 = vst [vmem:[#allocation2 + $0x8] sm:$0xf] %v6511_v15  ;;  %vm1480_vm6 = vcmask 1043456  }
   0xa   :  { %371 = vmatpush.bf16.msra.mxu0 %v6278_v2  ;;  %v6244_v11 = vld [vmem:[%s9197_s0 + $0x18] sm:$0xff]  ;;  %v6245_v12 = vld [vmem:[%s9197_s0 + $0x20] sm:$0xff]  ;;  %v6246_v13 = vld [vmem:[%s9197_s0 + $0x28] sm:$0xff]  ;;  %1168 = vst [vmem:[#allocation2] sm:$0xf] %v6511_v15 }
   0xb   :  { %v6247_v14 = vld [vmem:[%s9197_s0 + $0x30] sm:$0xff]  ;;  %v1176_v16 = vld [vmem:[#allocation2 + $0xc] sm:$0x1]  ;;  %vm6636_vm2 = vmand %vm1169_vm0, %vm1170_vm1  ;;  %1179 = vst [vmem:[#allocation2 + $0x10] sm:$0xf] %v6511_v15 }
   0xc   :  { %v9225_v17 = vsel %vm6636_vm2, 4294967295, %v9224_v17  ;;  %v1177_v18 = vsel %vm6636_vm2, 0, %v1176_v16  ;;  %1183 = vst [vmem:[#allocation2 + $0x18] sm:$0xf] %v6511_v15  ;;  %v6248_v19 = vld [vmem:[%s9197_s0 + $0x38] sm:$0xff]  ;;  %v6249_v20 = vld [vmem:[%s9197_s0 + $0x40] sm:$0xff] }
   0xd   :  { %9226 = vst [vmem:[#allocation7_spill] sm:$0xff] %v9225_v17  ;;  %v6250_v23 = vld [vmem:[%s9197_s0 + $0x48] sm:$0xff]  ;;  %v6251_v26 = vld [vmem:[%s9197_s0 + $0x50] sm:$0xff]  ;;  %v1184_v29 = vld [vmem:[#allocation2 + $0x1c] sm:$0x1] }
   0xe   :  { %372 = vmatpush.bf16.msra.mxu0 %v6277_v3  ;;  %1178 = vst [vmem:[#allocation2 + $0xc] sm:$0x1] %v1177_v18  ;;  %v1180_v28 = vld [vmem:[#allocation2 + $0x14] sm:$0x1]  ;;  %v1188_v30 = vld [vmem:[#allocation2 + $0x24] sm:$0x1] }
   0xf   :  { %1187 = vst [vmem:[#allocation2 + $0x20] sm:$0xf] %v6511_v15  ;;  %v1181_v31 = vsel %vm6636_vm2, 0, %v1180_v28  ;;  %v1192_v32 = vld [vmem:[#allocation2 + $0x2c] sm:$0x1]  ;;  %v1185_v33 = vsel %vm6636_vm2, 0, %v1184_v29 }
  0x10   :  { %1191 = vst [vmem:[#allocation2 + $0x28] sm:$0xf] %v6511_v15  ;;  %v1196_v35 = vld [vmem:[#allocation2 + $0x34] sm:$0x1]  ;;  %v1189_v36 = vsel %vm6636_vm2, 0, %v1188_v30  ;;  %v1193_v38 = vsel %vm6636_vm2, 0, %v1192_v32 }
  0x11   :  { %1195 = vst [vmem:[#allocation2 + $0x30] sm:$0xf] %v6511_v15  ;;  %v1200_v37 = vld [vmem:[#allocation2 + $0x3c] sm:$0x1]  ;;  %v1204_v39 = vld [vmem:[#allocation2 + $0x44] sm:$0x1] }
  0x12   :  { %373 = vmatpush.bf16.msra.mxu0 %v6276_v4  ;;  %1199 = vst [vmem:[#allocation2 + $0x38] sm:$0xf] %v6511_v15  ;;  %v1197_v40 = vsel %vm6636_vm2, 0, %v1196_v35  ;;  %v1201_v41 = vsel %vm6636_vm2, 0, %v1200_v37  ;;  %v1205_v42 = vsel %vm6636_vm2, 0, %v1204_v39  ;;  %v6252_v43 = vld [vmem:[%s9197_s0 + $0x58] sm:$0xff] }
  0x13   :  { %1203 = vst [vmem:[#allocation2 + $0x40] sm:$0xf] %v6511_v15  ;;  %v6253_v46 = vld [vmem:[%s9197_s0 + $0x60] sm:$0xff]  ;;  %v6254_v49 = vld [vmem:[%s9197_s0 + $0x68] sm:$0xff]  ;;  %v6255_v52 = vld [vmem:[%s9197_s0 + $0x70] sm:$0xff] }
  0x14   :  { %1207 = vst [vmem:[#allocation2 + $0x48] sm:$0xf] %v6511_v15  ;;  %v1244_v54 = vld [vmem:[#allocation2 + $0x94] sm:$0x1]  ;;  %v1248_v57 = vld [vmem:[#allocation2 + $0x9c] sm:$0x1] }
  0x15   :  { %1211 = vst [vmem:[#allocation2 + $0x50] sm:$0xf] %v6511_v15  ;;  %v1245_v55 = vsel %vm6636_vm2, 0, %v1244_v54  ;;  %v1249_v58 = vsel %vm6636_vm2, 0, %v1248_v57  ;;  %v6256_v59 = vld [vmem:[%s9197_s0 + $0x78] sm:$0xff]  ;;  %v6257_v2 = vld [vmem:[%s9197_s0 + $0x80] sm:$0xff] }
  0x16   :  { %374 = vmatpush.bf16.msra.mxu0 %v6275_v5  ;;  %1215 = vst [vmem:[#allocation2 + $0x58] sm:$0xf] %v6511_v15  ;;  %v1252_v61 = vld [vmem:[#allocation2 + $0xa4] sm:$0x1]  ;;  %v1256_v0 = vld [vmem:[#allocation2 + $0xac] sm:$0x1] }
  0x17   :  { %1219 = vst [vmem:[#allocation2 + $0x60] sm:$0xf] %v6511_v15  ;;  %v1253_v62 = vsel %vm6636_vm2, 0, %v1252_v61  ;;  %v1257_v1 = vsel %vm6636_vm2, 0, %v1256_v0  ;;  %v1260_v4 = vld [vmem:[#allocation2 + $0xb4] sm:$0x1] }
  0x18   :  { %1223 = vst [vmem:[#allocation2 + $0x68] sm:$0xf] %v6511_v15  ;;  %v1261_v5 = vsel %vm6636_vm2, 0, %v1260_v4  ;;  %v6259_v16 = vld [vmem:[%s9197_s0 + $0x90] sm:$0xff]  ;;  %v6261_v30 = vld [vmem:[%s9197_s0 + $0xa0] sm:$0xff] }
  0x19   :  { %1227 = vst [vmem:[#allocation2 + $0x70] sm:$0xf] %v6511_v15  ;;  %vm1481_vm7 = vsmask.f32 7938  ;;  %vm2135_vm9 = vsmask.f32 3328 }
  0x1a   :  { %375 = vmatpush.bf16.msra.mxu0 %v6274_v6  ;;  %1231 = vst [vmem:[#allocation2 + $0x78] sm:$0xf] %v6511_v15  ;;  %vm7310_vm8 = vmand %vm1480_vm6, %vm1481_vm7  ;;  %vm2136_vm10 = vsmask.f32 7440 }
  0x1b   :  { %1235 = vst [vmem:[#allocation2 + $0x80] sm:$0xf] %v6511_v15  ;;  %vm7673_vm11 = vmor %vm2135_vm9, %vm2136_vm10 }
  0x1c   :  { %1239 = vst [vmem:[#allocation2 + $0x88] sm:$0xf] %v6511_v15 }
  0x1d   :  { %1243 = vst [vmem:[#allocation2 + $0x90] sm:$0xf] %v6511_v15 }
  0x1e   :  { %376 = vmatpush.bf16.msra.mxu0 %v6273_v7  ;;  %1247 = vst [vmem:[#allocation2 + $0x98] sm:$0xf] %v6511_v15  ;;  %v1264_v7 = vld [vmem:[#allocation2 + $0xbc] sm:$0x1] }
  0x1f   :  { %1251 = vst [vmem:[#allocation2 + $0xa0] sm:$0xf] %v6511_v15 }
  0x20   :  { %1255 = vst [vmem:[#allocation2 + $0xa8] sm:$0xf] %v6511_v15 }
  0x21   :  { %377 = vmatmul.bf16.vlgmr.msra.gmra.mxu0 %v6241_v8  ;;  %1259 = vst [vmem:[#allocation2 + $0xb0] sm:$0xf] %v6511_v15  ;;  %v1265_v8 = vsel %vm6636_vm2, 0, %v1264_v7 }
  0x22   :  { %1263 = vst [vmem:[#allocation2 + $0xb8] sm:$0xf] %v6511_v15 }
  0x23   :  { %1267 = vst [vmem:[#allocation2 + $0xc0] sm:$0xf] %v6511_v15 }
  0x24   :  { %1271 = vst [vmem:[#allocation2 + $0xc8] sm:$0xf] %v6511_v15 }
  0x25   :  { %1279 = vst [vmem:[#allocation2 + $0xd8] sm:$0xf] %v6511_v15 }
  0x26   :  { %1283 = vst [vmem:[#allocation2 + $0xe0] sm:$0xf] %v6511_v15 }
  0x27   :  { %1287 = vst [vmem:[#allocation2 + $0xe8] sm:$0xf] %v6511_v15 }
  0x28   :  { %1291 = vst [vmem:[#allocation2 + $0xf0] sm:$0xf] %v6511_v15 }
  0x29   :  { %1295 = vst [vmem:[#allocation2 + $0xf8] sm:$0xf] %v6511_v15 }
  0x2a   :  { %1299 = vst [vmem:[#allocation2 + $0x100] sm:$0xf] %v6511_v15 }
  0x2b   :  { %1303 = vst [vmem:[#allocation2 + $0x108] sm:$0xf] %v6511_v15 }
  0x2c   :  { %1307 = vst [vmem:[#allocation2 + $0x110] sm:$0xf] %v6511_v15 }
  0x2d   :  { %1315 = vst [vmem:[#allocation2 + $0x120] sm:$0xf] %v6511_v15 }
  0x2e   :  { %1319 = vst [vmem:[#allocation2 + $0x128] sm:$0xf] %v6511_v15 }
  0x2f   :  { %1323 = vst [vmem:[#allocation2 + $0x130] sm:$0xf] %v6511_v15 }
  0x30   :  { %1327 = vst [vmem:[#allocation2 + $0x138] sm:$0xf] %v6511_v15 }
  0x31   :  { %382 = vmatmul.bf16.gmra.mxu0 %v6242_v9  ;;  %1331 = vst [vmem:[#allocation2 + $0x140] sm:$0xf] %v6511_v15  ;;  %v6258_v9 = vld [vmem:[%s9197_s0 + $0x88] sm:$0xff] }
  0x32   :  { %1335 = vst [vmem:[#allocation2 + $0x148] sm:$0xf] %v6511_v15 }
  0x33   :  { %1339 = vst [vmem:[#allocation2 + $0x150] sm:$0xf] %v6511_v15 }
  0x34   :  { %1343 = vst [vmem:[#allocation2 + $0x158] sm:$0xf] %v6511_v15 }
  0x35   :  { %1347 = vst [vmem:[#allocation2 + $0x160] sm:$0xf] %v6511_v15 }
  0x36   :  { %1351 = vst [vmem:[#allocation2 + $0x168] sm:$0xf] %v6511_v15 }
  0x37   :  { %1355 = vst [vmem:[#allocation2 + $0x170] sm:$0xf] %v6511_v15 }
  0x38   :  { %1359 = vst [vmem:[#allocation2 + $0x178] sm:$0xf] %v6511_v15 }
  0x39   :  { %1363 = vst [vmem:[#allocation2 + $0x180] sm:$0xf] %v6511_v15 }
  0x3a   :  { %1367 = vst [vmem:[#allocation2 + $0x188] sm:$0xf] %v6511_v15 }
  0x3b   :  { %1371 = vst [vmem:[#allocation2 + $0x190] sm:$0xf] %v6511_v15 }
  0x3c   :  { %1375 = vst [vmem:[#allocation2 + $0x198] sm:$0xf] %v6511_v15 }
  0x3d   :  { %1379 = vst [vmem:[#allocation2 + $0x1a0] sm:$0xf] %v6511_v15 }
  0x3e   :  { %1383 = vst [vmem:[#allocation2 + $0x1a8] sm:$0xf] %v6511_v15 }
  0x3f   :  { %1387 = vst [vmem:[#allocation2 + $0x1b0] sm:$0xf] %v6511_v15 }
  0x40   :  { %1391 = vst [vmem:[#allocation2 + $0x1b8] sm:$0xf] %v6511_v15 }
  0x41   :  { %387 = vmatmul.bf16.gmra.mxu0 %v6243_v10  ;;  %1395 = vst [vmem:[#allocation2 + $0x1c0] sm:$0xf] %v6511_v15 }
  0x42   :  { %1399 = vst [vmem:[#allocation2 + $0x1c8] sm:$0xf] %v6511_v15 }
  0x43   :  { %1403 = vst [vmem:[#allocation2 + $0x1d0] sm:$0xf] %v6511_v15 }
  0x44   :  { %1407 = vst [vmem:[#allocation2 + $0x1d8] sm:$0xf] %v6511_v15 }
  0x45   :  { %1411 = vst [vmem:[#allocation2 + $0x1e0] sm:$0xf] %v6511_v15 }
  0x46   :  { %1415 = vst [vmem:[#allocation2 + $0x1e8] sm:$0xf] %v6511_v15 }
  0x47   :  { %1423 = vst [vmem:[#allocation2 + $0x1f8] sm:$0xf] %v6511_v15 }
  0x48   :  { %1427 = vst [vmem:[#allocation2 + $0x200] sm:$0xf] %v6511_v15 }
  0x49   :  { %1431 = vst [vmem:[#allocation2 + $0x208] sm:$0xf] %v6511_v15 }
  0x4a   :  { %1435 = vst [vmem:[#allocation2 + $0x210] sm:$0xf] %v6511_v15 }
  0x4b   :  { %1439 = vst [vmem:[#allocation2 + $0x218] sm:$0xf] %v6511_v15 }
  0x4c   :  { %1443 = vst [vmem:[#allocation2 + $0x220] sm:$0xf] %v6511_v15 }
  0x4d   :  { %1447 = vst [vmem:[#allocation2 + $0x228] sm:$0xf] %v6511_v15 }
  0x4e   :  { %1451 = vst [vmem:[#allocation2 + $0x230] sm:$0xf] %v6511_v15 }
  0x4f   :  { %1182 = vst [vmem:[#allocation2 + $0x14] sm:$0x1] %v1181_v31 }
  0x50   :  { %1186 = vst [vmem:[#allocation2 + $0x1c] sm:$0x1] %v1185_v33 }
  0x51   :  { %392 = vmatmul.bf16.gmra.mxu0 %v6244_v11  ;;  %1190 = vst [vmem:[#allocation2 + $0x24] sm:$0x1] %v1189_v36  ;;  %v1268_v11 = vld [vmem:[#allocation2 + $0xc4] sm:$0x1] }
  0x52   :  { %1194 = vst [vmem:[#allocation2 + $0x2c] sm:$0x1] %v1193_v38 }
  0x53   :  { %1198 = vst [vmem:[#allocation2 + $0x34] sm:$0x1] %v1197_v40 }
  0x54   :  { %1202 = vst [vmem:[#allocation2 + $0x3c] sm:$0x1] %v1201_v41 }
  0x55   :  { %1206 = vst [vmem:[#allocation2 + $0x44] sm:$0x1] %v1205_v42  ;;  %v6262_v42 = vld [vmem:[%s9197_s0 + $0xa8] sm:$0xff] }
  0x56   :  { %1246 = vst [vmem:[#allocation2 + $0x94] sm:$0x1] %v1245_v55 }
  0x57   :  { %1250 = vst [vmem:[#allocation2 + $0x9c] sm:$0x1] %v1249_v58 }
  0x58   :  { %1254 = vst [vmem:[#allocation2 + $0xa4] sm:$0x1] %v1253_v62  ;;  %v6263_v62 = vld [vmem:[%s9197_s0 + $0xb0] sm:$0xff] }
  0x59   :  { %1258 = vst [vmem:[#allocation2 + $0xac] sm:$0x1] %v1257_v1 }
  0x5a   :  { %1262 = vst [vmem:[#allocation2 + $0xb4] sm:$0x1] %v1261_v5 }
  0x5b   :  { %1266 = vst [vmem:[#allocation2 + $0xbc] sm:$0x1] %v1265_v8 }
  0x61   :  { %397 = vmatmul.bf16.gmra.mxu0 %v6245_v12  ;;  %v1269_v12 = vsel %vm6636_vm2, 0, %v1268_v11 }
  0x62   :  { %1270 = vst [vmem:[#allocation2 + $0xc4] sm:$0x1] %v1269_v12 }
  0x71   :  { %402 = vmatmul.bf16.gmra.mxu0 %v6246_v13 }
  0x81   :  { %407 = vmatmul.bf16.gmra.mxu0 %v6247_v14  ;;  %v1272_v14 = vld [vmem:[#allocation2 + $0xcc] sm:$0x1] }
  0x82   :  { %v1273_v15 = vsel %vm6636_vm2, 0, %v1272_v14  ;;  %v6264_v14 = vld [vmem:[%s9197_s0 + $0xb8] sm:$0xff] }
  0x83   :  { %1274 = vst [vmem:[#allocation2 + $0xcc] sm:$0x1] %v1273_v15 }
  0x91   :  { %412 = vmatmul.bf16.gmra.mxu0 %v6248_v19 }
  0x9e   :  { %v6676_v21 = vpop.f32.mrf.mxu0 }
  0xa1   :  { %417 = vmatmul.bf16.gmra.mxu0 %v6249_v20  ;;  %v6260_v20 = vld [vmem:[%s9197_s0 + $0x98] sm:$0xff] }
  0xa6   :  { %v6686_v22 = vpop.f32.mrf.mxu0 }
  0xa7   :  { %v538_v28 = vadd.f32 %v6686_v22, %v6676_v21 }
  0xae   :  { %v6699_v24 = vpop.f32.mrf.mxu0 }
  0xaf   :  { %v539_v29 = vadd.f32 %v538_v28, %v6699_v24 }
  0xb1   :  { %422 = vmatmul.bf16.gmra.mxu0 %v6250_v23 }
  0xb6   :  { %v6709_v25 = vpop.f32.mrf.mxu0 }
  0xb7   :  { %v540_v32 = vadd.f32 %v539_v29, %v6709_v25 }
  0xbe   :  { %v6721_v27 = vpop.f32.mrf.mxu0 }
  0xbf   :  { %v541_v33 = vadd.f32 %v540_v32, %v6721_v27 }
  0xc1   :  { %427 = vmatmul.bf16.gmra.mxu0 %v6251_v26 }
  0xc6   :  { %v6735_v34 = vpop.f32.mrf.mxu0 }
  0xc7   :  { %v542_v35 = vadd.f32 %v541_v33, %v6735_v34 }
  0xce   :  { %v6750_v44 = vpop.f32.mrf.mxu0 }
  0xcf   :  { %v543_v36 = vadd.f32 %v542_v35, %v6750_v44 }
  0xd1   :  { %432 = vmatmul.bf16.gmra.mxu0 %v6252_v43 }
  0xd6   :  { %v6752_v45 = vpop.f32.mrf.mxu0 }
  0xd7   :  { %v544_v38 = vadd.f32 %v543_v36, %v6752_v45 }
  0xde   :  { %v6757_v47 = vpop.f32.mrf.mxu0 }
  0xdf   :  { %v545_v39 = vadd.f32 %v544_v38, %v6757_v47  ;;  %v6265_v38 = vld [vmem:[%s9197_s0 + $0xc0] sm:$0xff] }
  0xe1   :  { %437 = vmatmul.bf16.gmra.mxu0 %v6253_v46 }
  0xe6   :  { %v6759_v48 = vpop.f32.mrf.mxu0 }
  0xe7   :  { %v546_v40 = vadd.f32 %v545_v39, %v6759_v48 }
  0xee   :  { %v6764_v50 = vpop.f32.mrf.mxu0 }
  0xef   :  { %v547_v41 = vadd.f32 %v546_v40, %v6764_v50 }
  0xf1   :  { %442 = vmatmul.bf16.gmra.mxu0 %v6254_v49 }
  0xf6   :  { %v6766_v51 = vpop.f32.mrf.mxu0 }
  0xf7   :  { %v548_v46 = vadd.f32 %v547_v41, %v6766_v51 }
  0xfe   :  { %v6771_v53 = vpop.f32.mrf.mxu0 }
  0xff   :  { %v549_v49 = vadd.f32 %v548_v46, %v6771_v53 }
 0x101   :  { %447 = vmatmul.bf16.gmra.mxu0 %v6255_v52 }
 0x106   :  { %v6775_v56 = vpop.f32.mrf.mxu0 }
 0x107   :  { %v550_v52 = vadd.f32 %v549_v49, %v6775_v56 }
 0x10e   :  { %v6782_v60 = vpop.f32.mrf.mxu0 }
 0x10f   :  { %v551_v54 = vadd.f32 %v550_v52, %v6782_v60 }
 0x111   :  { %452 = vmatmul.bf16.gmra.mxu0 %v6256_v59 }
 0x116   :  { %v6786_v63 = vpop.f32.mrf.mxu0 }
 0x117   :  { %v552_v57 = vadd.f32 %v551_v54, %v6786_v63 }
 0x11e   :  { %v6793_v3 = vpop.f32.mrf.mxu0 }
 0x11f   :  { %v553_v58 = vadd.f32 %v552_v57, %v6793_v3 }
 0x121   :  { %457 = vmatmul.bf16.gmra.mxu0 %v6257_v2 }
 0x126   :  { %v6797_v6 = vpop.f32.mrf.mxu0 }
 0x127   :  { %v554_v59 = vadd.f32 %v553_v58, %v6797_v6 }
 0x12e   :  { %v6804_v10 = vpop.f32.mrf.mxu0 }
 0x12f   :  { %v555_v61 = vadd.f32 %v554_v59, %v6804_v10 }
 0x131   :  { %462 = vmatmul.bf16.gmra.mxu0 %v6258_v9 }
 0x136   :  { %v6808_v13 = vpop.f32.mrf.mxu0 }
 0x137   :  { %v556_v1 = vadd.f32 %v555_v61, %v6808_v13 }
 0x13e   :  { %v6815_v18 = vpop.f32.mrf.mxu0 }
 0x13f   :  { %v557_v2 = vadd.f32 %v556_v1, %v6815_v18 }
 0x141   :  { %467 = vmatmul.bf16.gmra.mxu0 %v6259_v16 }
 0x146   :  { %v6817_v19 = vpop.f32.mrf.mxu0 }
 0x147   :  { %v558_v4 = vadd.f32 %v557_v2, %v6817_v19  ;;  %v6266_v2 = vld [vmem:[%s9197_s0 + $0xc8] sm:$0xff] }
 0x14e   :  { %v6822_v23 = vpop.f32.mrf.mxu0 }
 0x14f   :  { %v559_v5 = vadd.f32 %v558_v4, %v6822_v23 }
 0x151   :  { %472 = vmatmul.bf16.gmra.mxu0 %v6260_v20 }
 0x156   :  { %v6824_v26 = vpop.f32.mrf.mxu0 }
 0x157   :  { %v560_v8 = vadd.f32 %v559_v5, %v6824_v26 }
 0x15e   :  { %v6832_v31 = vpop.f32.mrf.mxu0 }
 0x15f   :  { %v561_v9 = vadd.f32 %v560_v8, %v6832_v31 }
 0x161   :  { %477 = vmatmul.bf16.gmra.mxu0 %v6261_v30 }
 0x166   :  { %v6838_v37 = vpop.f32.mrf.mxu0 }
 0x167   :  { %v562_v11 = vadd.f32 %v561_v9, %v6838_v37 }
 0x16e   :  { %v6847_v43 = vpop.f32.mrf.mxu0 }
 0x16f   :  { %v563_v12 = vadd.f32 %v562_v11, %v6847_v43 }
 0x171   :  { %482 = vmatmul.bf16.gmra.mxu0 %v6262_v42 }
 0x176   :  { %v6853_v55 = vpop.f32.mrf.mxu0 }
 0x177   :  { %v564_v16 = vadd.f32 %v563_v12, %v6853_v55 }
 0x17e   :  { %v6862_v0 = vpop.f32.mrf.mxu0 }
 0x17f   :  { %v565_v20 = vadd.f32 %v564_v16, %v6862_v0 }
 0x181   :  { %487 = vmatmul.bf16.gmra.mxu0 %v6263_v62 }
 0x186   :  { %v6868_v7 = vpop.f32.mrf.mxu0 }
 0x187   :  { %v566_v28 = vadd.f32 %v565_v20, %v6868_v7 }
 0x18e   :  { %v6877_v15 = vpop.f32.mrf.mxu0 }
 0x18f   :  { %v567_v29 = vadd.f32 %v566_v28, %v6877_v15 }
 0x191   :  { %492 = vmatmul.bf16.gmra.mxu0 %v6264_v14 }
 0x196   :  { %v6883_v30 = vpop.f32.mrf.mxu0 }
 0x197   :  { %v568_v32 = vadd.f32 %v567_v29, %v6883_v30 }
 0x199   :  { %v569_v33 = vrot.slane %v568_v32, 4 }
 0x19b   :  { %v570_v35 = vadd.f32 %v569_v33, %v568_v32 }
 0x19d   :  { %v571_v36 = vrot.slane %v570_v35, 2 }
 0x19f   :  { %v572_v39 = vadd.f32 %v571_v36, %v570_v35 }
 0x1a1   :  { %497 = vmatmul.bf16.gmra.mxu0 %v6265_v38  ;;  %v573_v40 = vrot.slane %v572_v39, 1 }
 0x1a3   :  { %v574_v41 = vadd.f32 %v573_v40, %v572_v39 }
 0x1a5   :  { %v6889_v42 = vmul.f32 0.00390625, %v574_v41 }
 0x1a7   :  { %v6893_v46 = vsub.f32 %v6676_v21, %v6889_v42  ;;  %v6897_v49 = vsub.f32 %v6686_v22, %v6889_v42  ;;  %v6901_v52 = vsub.f32 %v6699_v24, %v6889_v42  ;;  %v6909_v58 = vsub.f32 %v6709_v25, %v6889_v42 }
 0x1a8   :  { %v6913_v21 = vsub.f32 %v6721_v27, %v6889_v42  ;;  %v6919_v24 = vsub.f32 %v6735_v34, %v6889_v42  ;;  %v6925_v25 = vsub.f32 %v6750_v44, %v6889_v42  ;;  %v6934_v34 = vsub.f32 %v6752_v45, %v6889_v42 }
 0x1a9   :  { %v678_v54 = vmul.f32 %v6893_v46, %v6893_v46  ;;  %v679_v57 = vmul.f32 %v6897_v49, %v6897_v49  ;;  %v680_v22 = vmul.f32 %v6901_v52, %v6901_v52  ;;  %v681_v61 = vmul.f32 %v6909_v58, %v6909_v58 }
 0x1aa   :  { %v682_v27 = vmul.f32 %v6913_v21, %v6913_v21  ;;  %v683_v4 = vmul.f32 %v6919_v24, %v6919_v24  ;;  %v6940_v44 = vsub.f32 %v6757_v47, %v6889_v42  ;;  %v684_v8 = vmul.f32 %v6925_v25, %v6925_v25 }
 0x1ab   :  { %v742_v59 = vadd.f32 %v679_v57, %v678_v54  ;;  %v6946_v11 = vsub.f32 %v6759_v48, %v6889_v42  ;;  %v685_v45 = vmul.f32 %v6934_v34, %v6934_v34  ;;  %v6952_v14 = vsub.f32 %v6764_v50, %v6889_v42 }
 0x1ac   :  { %v686_v47 = vmul.f32 %v6940_v44, %v6940_v44  ;;  %v6958_v20 = vsub.f32 %v6766_v51, %v6889_v42  ;;  %v6964_v29 = vsub.f32 %v6771_v53, %v6889_v42  ;;  %v6970_v33 = vsub.f32 %v6775_v56, %v6889_v42 }
 0x1ad   :  { %v743_v62 = vadd.f32 %v742_v59, %v680_v22  ;;  %v687_v48 = vmul.f32 %v6946_v11, %v6946_v11  ;;  %v688_v50 = vmul.f32 %v6952_v14, %v6952_v14  ;;  %v6976_v36 = vsub.f32 %v6782_v60, %v6889_v42 }
 0x1ae   :  { %v689_v51 = vmul.f32 %v6958_v20, %v6958_v20  ;;  %v690_v53 = vmul.f32 %v6964_v29, %v6964_v29  ;;  %v6982_v39 = vsub.f32 %v6786_v63, %v6889_v42  ;;  %v691_v56 = vmul.f32 %v6970_v33, %v6970_v33 }
 0x1af   :  { %v744_v1 = vadd.f32 %v743_v62, %v681_v61  ;;  %v6988_v41 = vsub.f32 %v6793_v3, %v6889_v42  ;;  %v692_v60 = vmul.f32 %v6976_v36, %v6976_v36  ;;  %v6994_v57 = vsub.f32 %v6797_v6, %v6889_v42 }
 0x1b0   :  { %v693_v63 = vmul.f32 %v6982_v39, %v6982_v39  ;;  %v7000_v59 = vsub.f32 %v6804_v10, %v6889_v42  ;;  %v7006_v62 = vsub.f32 %v6808_v13, %v6889_v42 }
 0x1b1   :  { %v745_v5 = vadd.f32 %v744_v1, %v682_v27  ;;  %502 = vmatmul.bf16.gmra.mxu0 %v6266_v2  ;;  %v694_v3 = vmul.f32 %v6988_v41, %v6988_v41  ;;  %v695_v6 = vmul.f32 %v6994_v57, %v6994_v57  ;;  %v7012_v1 = vsub.f32 %v6815_v18, %v6889_v42 }
 0x1b2   :  { %v696_v10 = vmul.f32 %v7000_v59, %v7000_v59  ;;  %v697_v13 = vmul.f32 %v7006_v62, %v7006_v62  ;;  %v7027_v18 = vsub.f32 %v6822_v23, %v6889_v42 }
 0x1b3   :  { %v746_v9 = vadd.f32 %v745_v5, %v683_v4  ;;  %v7018_v4 = vsub.f32 %v6817_v19, %v6889_v42  ;;  %v7033_v19 = vsub.f32 %v6824_v26, %v6889_v42 }
 0x1b4   :  { %v700_v23 = vmul.f32 %v7027_v18, %v7027_v18 }
 0x1b5   :  { %v747_v12 = vadd.f32 %v746_v9, %v684_v8  ;;  %v6267_v8 = vld [vmem:[%s9197_s0 + $0xd0] sm:$0xff]  ;;  %v698_v9 = vmul.f32 %v7012_v1, %v7012_v1  ;;  %v701_v26 = vmul.f32 %v7033_v19, %v7033_v19 }
 0x1b7   :  { %v748_v16 = vadd.f32 %v747_v12, %v685_v45  ;;  %v699_v12 = vmul.f32 %v7018_v4, %v7018_v4 }
 0x1b9   :  { %v749_v28 = vadd.f32 %v748_v16, %v686_v47  ;;  %v7039_v16 = vsub.f32 %v6832_v31, %v6889_v42 }
 0x1bb   :  { %v750_v32 = vadd.f32 %v749_v28, %v687_v48  ;;  %v7045_v28 = vsub.f32 %v6838_v37, %v6889_v42  ;;  %v702_v31 = vmul.f32 %v7039_v16, %v7039_v16 }
 0x1bd   :  { %v751_v35 = vadd.f32 %v750_v32, %v688_v50  ;;  %v7051_v32 = vsub.f32 %v6847_v43, %v6889_v42  ;;  %v703_v37 = vmul.f32 %v7045_v28, %v7045_v28 }
 0x1bf   :  { %v752_v38 = vadd.f32 %v751_v35, %v689_v51  ;;  %v7057_v35 = vsub.f32 %v6853_v55, %v6889_v42  ;;  %v704_v43 = vmul.f32 %v7051_v32, %v7051_v32 }
 0x1c1   :  { %v753_v40 = vadd.f32 %v752_v38, %v690_v53  ;;  %507 = vmatmul.bf16.gmra.mxu0 %v6267_v8  ;;  %v7063_v38 = vsub.f32 %v6862_v0, %v6889_v42  ;;  %v705_v55 = vmul.f32 %v7057_v35, %v7057_v35 }
 0x1c3   :  { %v754_v54 = vadd.f32 %v753_v40, %v691_v56  ;;  %v7069_v40 = vsub.f32 %v6868_v7, %v6889_v42  ;;  %v706_v0 = vmul.f32 %v7063_v38, %v7063_v38 }
 0x1c5   :  { %v755_v22 = vadd.f32 %v754_v54, %v692_v60  ;;  %v7073_v54 = vpop.f32.mrf.mxu0  ;;  %v707_v7 = vmul.f32 %v7069_v40, %v7069_v40 }
 0x1c7   :  { %v756_v61 = vadd.f32 %v755_v22, %v693_v63  ;;  %v7077_v63 = vsub.f32 %v6877_v15, %v6889_v42 }
 0x1c9   :  { %v757_v27 = vadd.f32 %v756_v61, %v694_v3  ;;  %v645_v3 = vsub.f32 %v6883_v30, %v6889_v42 }
 0x1cb   :  { %v758_v2 = vadd.f32 %v757_v27, %v695_v6  ;;  %v708_v6 = vmul.f32 %v7077_v63, %v7077_v63 }
 0x1cd   :  { %v759_v5 = vadd.f32 %v758_v2, %v696_v10  ;;  %v709_v10 = vmul.f32 %v645_v3, %v645_v3  ;;  %v7087_v15 = vpop.f32.mrf.mxu0 }
 0x1cf   :  { %v760_v45 = vadd.f32 %v759_v5, %v697_v13 }
 0x1d1   :  { %v761_v47 = vadd.f32 %v760_v45, %v698_v9 }
 0x1d3   :  { %v762_v48 = vadd.f32 %v761_v47, %v699_v12 }
 0x1d5   :  { %v763_v50 = vadd.f32 %v762_v48, %v700_v23  ;;  %v7089_v47 = vpop.f32.mrf.mxu0  ;;  %v1320_v23 = vld [vmem:[#allocation2 + $0x12c] sm:$0x1] }
 0x1d6   :  { %v1321_v48 = vsel %vm6636_vm2, 0, %v1320_v23 }
 0x1d7   :  { %v764_v51 = vadd.f32 %v763_v50, %v701_v26  ;;  %1322 = vst [vmem:[#allocation2 + $0x12c] sm:$0x1] %v1321_v48 }
 0x1d9   :  { %v765_v53 = vadd.f32 %v764_v51, %v702_v31  ;;  %v6268_v31 = vld [vmem:[%s9197_s0 + $0xd8] sm:$0xff] }
 0x1da   :  { %512 = vmatmul.bf16.gmra.mxu0 %v6268_v31 }
 0x1db   :  { %v766_v56 = vadd.f32 %v765_v53, %v703_v37 }
 0x1dd   :  { %v767_v60 = vadd.f32 %v766_v56, %v704_v43  ;;  %v7093_v50 = vpop.f32.mrf.mxu0  ;;  %v1324_v43 = vld [vmem:[#allocation2 + $0x134] sm:$0x1] }
 0x1df   :  { %v768_v22 = vadd.f32 %v767_v60, %v705_v55  ;;  %v1325_v55 = vsel %vm6636_vm2, 0, %v1324_v43 }
 0x1e0   :  { %1326 = vst [vmem:[#allocation2 + $0x134] sm:$0x1] %v1325_v55 }
 0x1e1   :  { %v769_v61 = vadd.f32 %v768_v22, %v706_v0 }
 0x1e3   :  { %v770_v27 = vadd.f32 %v769_v61, %v707_v7  ;;  %v7105_v7 = vld [vmem:[%s9201_s4] ss:$0 sm:$0xff] }
 0x1e5   :  { %v771_v2 = vadd.f32 %v770_v27, %v708_v6  ;;  %v7100_v60 = vpop.f32.mrf.mxu0  ;;  %v7110_v6 = vld [vmem:[%s9202_s5] ss:$0 sm:$0xff] }
 0x1e7   :  { %v772_v13 = vadd.f32 %v771_v2, %v709_v10 }
 0x1e9   :  { %v773_v5 = vrot.slane %v772_v13, 4 }
 0x1eb   :  { %v774_v8 = vadd.f32 %v773_v5, %v772_v13 }
 0x1ed   :  { %v775_v9 = vrot.slane %v774_v8, 2  ;;  %v7114_v13 = vpop.f32.mrf.mxu0 }
 0x1ef   :  { %v776_v45 = vadd.f32 %v775_v9, %v774_v8 }
 0x1f1   :  { %v777_v12 = vrot.slane %v776_v45, 1 }
 0x1f3   :  { %v778_v30 = vadd.f32 %v777_v12, %v776_v45 }
 0x1f5   :  { %v816_v42 = vmul.f32 0.00390625, %v778_v30  ;;  %v7116_v9 = vpop.f32.mrf.mxu0 }
 0x1f7   :  { %v818_v26 = vadd.f32 1e-06, %v816_v42 }
 0x1f9   :  { %6461 = vrsqrt.f32 %v818_v26  ;;  %vm826_vm4 = vweird.f32 %v818_v26 }
 0x1ff   :  { %v6462_v51 = vpop.eup %6461 }
 0x200   :  { %v821_v37 = vmul.f32 %v6462_v51, %v818_v26  ;;  %vm827_vm3 = vweird.f32 %v6462_v51 }
 0x201   :  { %vm828_vm5 = vmor %vm826_vm4, %vm827_vm3 }
 0x202   :  { %v822_v53 = vmul.f32 %v6462_v51, %v821_v37  ;;  %v7166_v37 = vpop.f32.mrf.mxu0 }
 0x204   :  { %v823_v56 = vmul.f32 0.5, %v822_v53 }
 0x206   :  { %v824_v0 = vsub.f32 1.5, %v823_v56 }
 0x208   :  { %v825_v22 = vmul.f32 %v6462_v51, %v824_v0 }
 0x20a   :  { %v829_v61 = vsel %vm828_vm5, %v6462_v51, %v825_v22  ;;  %vm4910_vm5 = vcmask 1041409  }
 0x20b   :  { %v871_v27 = vmul.f32 %v829_v61, %v645_v3  ;;  %v840_v45 = vmul.f32 %v829_v61, %v6893_v46  ;;  %v841_v12 = vmul.f32 %v829_v61, %v6897_v49  ;;  %v842_v30 = vmul.f32 %v829_v61, %v6901_v52 }
 0x20c   :  { %v843_v42 = vmul.f32 %v829_v61, %v6909_v58  ;;  %v844_v3 = vmul.f32 %v829_v61, %v6913_v21  ;;  %v845_v23 = vmul.f32 %v829_v61, %v6919_v24  ;;  %v846_v48 = vmul.f32 %v829_v61, %v6925_v25 }
 0x20d   :  { %v939_v10 = vmul.f32 %v7105_v7, %v871_v27  ;;  %v847_v26 = vmul.f32 %v829_v61, %v6934_v34  ;;  %v848_v31 = vmul.f32 %v829_v61, %v6940_v44  ;;  %v849_v51 = vmul.f32 %v829_v61, %v6946_v11 }
 0x20e   :  { %v850_v46 = vmul.f32 %v829_v61, %v6952_v14  ;;  %v851_v49 = vmul.f32 %v829_v61, %v6958_v20  ;;  %v852_v52 = vmul.f32 %v829_v61, %v6964_v29  ;;  %v853_v58 = vmul.f32 %v829_v61, %v6970_v33 }
 0x20f   :  { %v1007_v2 = vadd.f32 %v7110_v6, %v939_v10  ;;  %v854_v21 = vmul.f32 %v829_v61, %v6976_v36  ;;  %v855_v24 = vmul.f32 %v829_v61, %v6982_v39  ;;  %v856_v25 = vmul.f32 %v829_v61, %v6988_v41 }
 0x210   :  { %v7136_v34 = vmul.f32 %v829_v61, %v6994_v57  ;;  %v7139_v44 = vmul.f32 %v829_v61, %v7000_v59  ;;  %v7142_v11 = vmul.f32 %v829_v61, %v7006_v62  ;;  %v7145_v14 = vmul.f32 %v829_v61, %v7012_v1 }
 0x211   :  { %v1071_v5 = vmax.f32 %v1007_v2, 0.0  ;;  %v7148_v20 = vmul.f32 %v829_v61, %v7018_v4  ;;  %v7151_v29 = vmul.f32 %v829_v61, %v7027_v18  ;;  %v7154_v33 = vmul.f32 %v829_v61, %v7033_v19 }
 0x212   :  { %v916_v36 = vmul.f32 %v7105_v7, %v848_v31  ;;  %v917_v39 = vmul.f32 %v7105_v7, %v849_v51  ;;  %v864_v41 = vmul.f32 %v829_v61, %v7039_v16  ;;  %v865_v57 = vmul.f32 %v829_v61, %v7045_v28 }
 0x213   :  { %v1135_v8 = vpack.c.bf16 %v1071_v5, %v1071_v5  ;;  %v918_v59 = vmul.f32 %v7105_v7, %v850_v46  ;;  %v919_v62 = vmul.f32 %v7105_v7, %v851_v49  ;;  %v866_v1 = vmul.f32 %v829_v61, %v7051_v32 }
 0x214   :  { %v867_v4 = vmul.f32 %v829_v61, %v7057_v35  ;;  %v868_v18 = vmul.f32 %v829_v61, %v7063_v38  ;;  %v869_v19 = vmul.f32 %v829_v61, %v7069_v40  ;;  %v870_v53 = vmul.f32 %v829_v61, %v7077_v63 }
 0x215   :  { %2036 = vst [vmem:[#allocation2 + $0x110] sm:$0xf] %v1135_v8  ;;  %v908_v16 = vmul.f32 %v7105_v7, %v840_v45  ;;  %v909_v28 = vmul.f32 %v7105_v7, %v841_v12  ;;  %v920_v43 = vmul.f32 %v7105_v7, %v852_v52  ;;  %v910_v56 = vmul.f32 %v7105_v7, %v842_v30  ;;  %v1328_v12 = vld [vmem:[#allocation2 + $0x13c] sm:$0x1] }
 0x216   :  { %v921_v32 = vmul.f32 %v7105_v7, %v853_v58  ;;  %v984_v35 = vadd.f32 %v7110_v6, %v916_v36  ;;  %v985_v38 = vadd.f32 %v7110_v6, %v917_v39  ;;  %v911_v40 = vmul.f32 %v7105_v7, %v843_v42 }
 0x217   :  { %v922_v55 = vmul.f32 %v7105_v7, %v854_v21  ;;  %v986_v63 = vadd.f32 %v7110_v6, %v918_v59  ;;  %v987_v0 = vadd.f32 %v7110_v6, %v919_v62  ;;  %v7181_v22 = vmul.f32 %v7105_v7, %v844_v3  ;;  %v7211_v62 = vpop.f32.mrf.mxu0 }
 0x218   :  { %v7184_v61 = vmul.f32 %v7105_v7, %v845_v23  ;;  %v7187_v27 = vmul.f32 %v7105_v7, %v846_v48  ;;  %v923_v10 = vmul.f32 %v7105_v7, %v855_v24  ;;  %v7191_v2 = vmul.f32 %v7105_v7, %v847_v26 }
 0x219   :  { %v7194_v5 = vmul.f32 %v7105_v7, %v856_v25  ;;  %v932_v8 = vmul.f32 %v7105_v7, %v864_v41  ;;  %v988_v45 = vadd.f32 %v7110_v6, %v920_v43  ;;  %v933_v30 = vmul.f32 %v7105_v7, %v865_v57 }
 0x21a   :  { %v989_v42 = vadd.f32 %v7110_v6, %v921_v32  ;;  %v1048_v3 = vmax.f32 %v984_v35, 0.0  ;;  %v1049_v23 = vmax.f32 %v985_v38, 0.0  ;;  %v934_v48 = vmul.f32 %v7105_v7, %v866_v1 }
 0x21b   :  { %v990_v31 = vadd.f32 %v7110_v6, %v922_v55  ;;  %v1050_v26 = vmax.f32 %v986_v63, 0.0  ;;  %v1051_v51 = vmax.f32 %v987_v0, 0.0  ;;  %v935_v46 = vmul.f32 %v7105_v7, %v867_v4 }
 0x21c   :  { %v936_v49 = vmul.f32 %v7105_v7, %v868_v18  ;;  %v991_v52 = vadd.f32 %v7110_v6, %v923_v10  ;;  %v1329_v58 = vsel %vm6636_vm2, 0, %v1328_v12  ;;  %v937_v21 = vmul.f32 %v7105_v7, %v869_v19  ;;  %v6269_v10 = vld [vmem:[%s9197_s0 + $0xe0] sm:$0xff] }
 0x21d   :  { %v938_v24 = vmul.f32 %v7105_v7, %v870_v53  ;;  %v1000_v25 = vadd.f32 %v7110_v6, %v932_v8  ;;  %v1052_v36 = vmax.f32 %v988_v45, 0.0  ;;  %1330 = vst [vmem:[#allocation2 + $0x13c] sm:$0x1] %v1329_v58  ;;  %v1001_v39 = vadd.f32 %v7110_v6, %v933_v30  ;;  %517 = vmatmul.bf16.gmra.mxu0 %v6269_v10 }
 0x21e   :  { %v1053_v41 = vmax.f32 %v989_v42, 0.0  ;;  %v1112_v57 = vpack.c.bf16 %v1048_v3, %v1048_v3  ;;  %v1113_v59 = vpack.c.bf16 %v1049_v23, %v1049_v23  ;;  %v1002_v1 = vadd.f32 %v7110_v6, %v934_v48 }
 0x21f   :  { %v1054_v4 = vmax.f32 %v990_v31, 0.0  ;;  %v1114_v18 = vpack.c.bf16 %v1050_v26, %v1050_v26  ;;  %v1115_v43 = vpack.c.bf16 %v1051_v51, %v1051_v51  ;;  %v925_v19 = vmul.f32 %v7105_v7, %v7136_v34 }
 0x220   :  { %v976_v53 = vadd.f32 %v7110_v6, %v908_v16  ;;  %v1003_v32 = vadd.f32 %v7110_v6, %v935_v46  ;;  %v1055_v35 = vmax.f32 %v991_v52, 0.0  ;;  %1727 = vst [vmem:[#allocation2 + $0x50] sm:$0xf] %v1112_v57  ;;  %v977_v38 = vadd.f32 %v7110_v6, %v909_v28 }
 0x221   :  { %v1004_v55 = vadd.f32 %v7110_v6, %v936_v49  ;;  %v1064_v63 = vmax.f32 %v1000_v25, 0.0  ;;  %v1116_v0 = vpack.c.bf16 %v1052_v36, %v1052_v36  ;;  %1730 = vst [vmem:[#allocation2 + $0x58] sm:$0xf] %v1113_v59  ;;  %v978_v8 = vadd.f32 %v7110_v6, %v910_v56 }
 0x222   :  { %v1005_v34 = vadd.f32 %v7110_v6, %v937_v21  ;;  %v1065_v16 = vmax.f32 %v1001_v39, 0.0  ;;  %v1117_v45 = vpack.c.bf16 %v1053_v41, %v1053_v41  ;;  %1733 = vst [vmem:[#allocation2 + $0x60] sm:$0xf] %v1114_v18  ;;  %v926_v12 = vmul.f32 %v7105_v7, %v7139_v44  ;;  %v7241_v41 = vpop.f32.mrf.mxu0 }
 0x223   :  { %v1006_v28 = vadd.f32 %v7110_v6, %v938_v24  ;;  %v1066_v30 = vmax.f32 %v1002_v1, 0.0  ;;  %v1118_v42 = vpack.c.bf16 %v1054_v4, %v1054_v4  ;;  %1736 = vst [vmem:[#allocation2 + $0x68] sm:$0xf] %v1115_v43  ;;  %v979_v3 = vadd.f32 %v7110_v6, %v911_v40 }
 0x224   :  { %v1040_v23 = vmax.f32 %v976_v53, 0.0  ;;  %v1067_v48 = vmax.f32 %v1003_v32, 0.0  ;;  %v1119_v31 = vpack.c.bf16 %v1055_v35, %v1055_v35  ;;  %v927_v56 = vmul.f32 %v7105_v7, %v7142_v11  ;;  %1739 = vst [vmem:[#allocation2 + $0x70] sm:$0xf] %v1116_v0 }
 0x225   :  { %v1041_v26 = vmax.f32 %v977_v38, 0.0  ;;  %v1068_v51 = vmax.f32 %v1004_v55, 0.0  ;;  %v1128_v46 = vpack.c.bf16 %v1064_v63, %v1064_v63  ;;  %v928_v44 = vmul.f32 %v7105_v7, %v7145_v14  ;;  %1742 = vst [vmem:[#allocation2 + $0x78] sm:$0xf] %v1117_v45  ;;  %v1336_v63 = vld [vmem:[#allocation2 + $0x14c] sm:$0x1] }
 0x226   :  { %v1042_v49 = vmax.f32 %v978_v8, 0.0  ;;  %v1069_v52 = vmax.f32 %v1005_v34, 0.0  ;;  %v1129_v58 = vpack.c.bf16 %v1065_v16, %v1065_v16  ;;  %v929_v40 = vmul.f32 %v7105_v7, %v7148_v20  ;;  %1745 = vst [vmem:[#allocation2 + $0x80] sm:$0xf] %v1118_v42 }
 0x227   :  { %v980_v21 = vadd.f32 %v7110_v6, %v7181_v22  ;;  %v1070_v24 = vmax.f32 %v1006_v28, 0.0  ;;  %v1130_v25 = vpack.c.bf16 %v1066_v30, %v1066_v30  ;;  %v981_v11 = vadd.f32 %v7110_v6, %v7184_v61  ;;  %1748 = vst [vmem:[#allocation2 + $0x88] sm:$0xf] %v1119_v31 }
 0x228   :  { %v1043_v36 = vmax.f32 %v979_v3, 0.0  ;;  %v7239_v39 = vpack.c.bf16 %v1040_v23, %v1040_v23  ;;  %v1131_v14 = vpack.c.bf16 %v1067_v48, %v1067_v48  ;;  %v930_v57 = vmul.f32 %v7105_v7, %v7151_v29  ;;  %2015 = vst [vmem:[#allocation2 + $0xd8] sm:$0xf] %v1128_v46  ;;  %v1332_v29 = vld [vmem:[#allocation2 + $0x144] sm:$0x1]  ;;  %v6270_v46 = vld [vmem:[%s9197_s0 + $0xe8] sm:$0xff] }
 0x229   :  { %v931_v20 = vmul.f32 %v7105_v7, %v7154_v33  ;;  %v7247_v22 = vpack.c.bf16 %v1041_v26, %v1041_v26  ;;  %v1132_v59 = vpack.c.bf16 %v1068_v51, %v1068_v51  ;;  %v982_v61 = vadd.f32 %v7110_v6, %v7187_v27  ;;  %2018 = vst [vmem:[#allocation2 + $0xe0] sm:$0xf] %v1129_v58 }
 0x22a   :  { %v983_v1 = vadd.f32 %v7110_v6, %v7191_v2  ;;  %v7253_v4 = vpack.c.bf16 %v1042_v49, %v1042_v49  ;;  %v1133_v18 = vpack.c.bf16 %v1069_v52, %v1069_v52  ;;  %v992_v7 = vadd.f32 %v7110_v6, %v7194_v5  ;;  %2021 = vst [vmem:[#allocation2 + $0xe8] sm:$0xf] %v1130_v25  ;;  %v7287_v48 = vpop.f32.mrf.mxu0  ;;  %v1483_v25 = vld [vmem:[#allocation2 + $0x8] sm:$0xf] }
 0x22b   :  { %v993_v33 = vadd.f32 %v7110_v6, %v925_v19  ;;  %v1044_v43 = vmax.f32 %v980_v21, 0.0  ;;  %v1134_v53 = vpack.c.bf16 %v1070_v24, %v1070_v24  ;;  %v7259_v32 = vadd.f32 %v7110_v6, %v926_v12  ;;  %2024 = vst [vmem:[#allocation2 + $0xf0] sm:$0xf] %v1131_v14 }
 0x22c   :  { %v1045_v27 = vmax.f32 %v981_v11, 0.0  ;;  %v7261_v35 = vpack.c.bf16 %v1043_v36, %v1043_v36  ;;  %v1460_v2 = vshrl.u32 %v7239_v39, 16  ;;  %v7265_v38 = vadd.f32 %v7110_v6, %v927_v56  ;;  %2027 = vst [vmem:[#allocation2 + $0xf8] sm:$0xf] %v1132_v59 }
 0x22d   :  { %v7268_v55 = vadd.f32 %v7110_v6, %v928_v44  ;;  %v1496_v5 = vshrl.u32 %v7247_v22, 16  ;;  %v1333_v19 = vsel %vm6636_vm2, 0, %v1332_v29  ;;  %v7274_v0 = vadd.f32 %v7110_v6, %v929_v40  ;;  %2030 = vst [vmem:[#allocation2 + $0x100] sm:$0xf] %v1133_v18  ;;  %522 = vmatmul.bf16.gmra.mxu0 %v6270_v46  ;;  %v1516_v18 = vld [vmem:[#allocation2 + $0x10] sm:$0xf] }
 0x22e   :  { %v7277_v10 = vadd.f32 %v7110_v6, %v930_v57  ;;  %v1046_v8 = vmax.f32 %v982_v61, 0.0  ;;  %v1529_v34 = vshrl.u32 %v7253_v4, 16  ;;  %v1047_v16 = vmax.f32 %v983_v1, 0.0  ;;  %2033 = vst [vmem:[#allocation2 + $0x108] sm:$0xf] %v1134_v53 }
 0x22f   :  { %v1056_v45 = vmax.f32 %v992_v7, 0.0  ;;  %v1057_v12 = vmax.f32 %v993_v33, 0.0  ;;  %v7280_v28 = vpack.c.bf16 %v1044_v43, %v1044_v43  ;;  %v7282_v30 = vpack.c.bf16 %v1045_v27, %v1045_v27  ;;  %1334 = vst [vmem:[#allocation2 + $0x144] sm:$0x1] %v1333_v19  ;;  %v1519_v29 = vld [vmem:[#allocation2 + $0x14] sm:$0x1] }
 0x230   :  { %v1562_v42 = vshrl.u32 %v7261_v35, 16  ;;  %v1462_v3 = vrot.slane %v1460_v2, 7  ;;  %v1337_v23 = vsel %vm6636_vm2, 0, %v1336_v63  ;;  %v7290_v31 = vadd.f32 %v7110_v6, %v931_v20  ;;  %v1486_v20 = vld [vmem:[#allocation2 + $0xc] sm:$0x1] }
 0x231   :  { %v1058_v56 = vmax.f32 %v7259_v32, 0.0  ;;  %v1059_v26 = vmax.f32 %v7265_v38, 0.0  ;;  %v1498_v51 = vrot.slane %v1496_v5, 7  ;;  %1338 = vst [vmem:[#allocation2 + $0x14c] sm:$0x1] %v1337_v23  ;;  %v1060_v44 = vmax.f32 %v7268_v55, 0.0 }
 0x232   :  { %v1061_v49 = vmax.f32 %v7274_v0, 0.0  ;;  %v1463_v52 = vshll.u32 %v7239_v39, 16  ;;  %v1531_v58 = vrot.slane %v1529_v34, 7  ;;  %v7300_v40 = vpack.c.bf16 %v1046_v8, %v1046_v8  ;;  %v1549_v53 = vld [vmem:[#allocation2 + $0x18] sm:$0xf] }
 0x233   :  { %v7302_v6 = vpack.c.bf16 %v1047_v16, %v1047_v16  ;;  %v1499_v21 = vshll.u32 %v7247_v22, 16  ;;  %v1595_v24 = vshrl.u32 %v7280_v28, 16  ;;  %v1532_v11 = vshll.u32 %v7253_v4, 16  ;;  %v1552_v5 = vld [vmem:[#allocation2 + $0x1c] sm:$0x1]  ;;  %v7327_v16 = vpop.f32.mrf.mxu0 }
 0x234   :  { %v1628_v36 = vshrl.u32 %v7282_v30, 16  ;;  %v1564_v14 = vrot.slane %v1562_v42, 7  ;;  %v1465_v57 = vor.u32 %v1463_v52, %v1462_v3  ;;  %v9227_v39 = vmov 0 }
 0x235   :  { %v9228_v39 = vsel %vm7310_vm8, 4294967295, %v9227_v39  ;;  %v1062_v59 = vmax.f32 %v7277_v10, 0.0  ;;  %v1466_v22 = vrot.slane %v1462_v3, 4  ;;  %v1501_v61 = vor.u32 %v1499_v21, %v1498_v51  ;;  %v1585_v3 = vld [vmem:[#allocation2 + $0x24] sm:$0x1]  ;;  %v6368_v10 = vld [vmem:[%s9199_s2 + $0x78] sm:$0xff] }
 0x236   :  { %9229 = vst [vmem:[#allocation8_spill] sm:$0xff] %v9228_v39  ;;  %v1502_v1 = vrot.slane %v1498_v51, 4  ;;  %v7315_v4 = vpack.c.bf16 %v1056_v45, %v1056_v45  ;;  %v7317_v7 = vpack.c.bf16 %v1057_v12, %v1057_v12  ;;  %v1565_v33 = vshll.u32 %v7261_v35, 16  ;;  %v1582_v35 = vld [vmem:[#allocation2 + $0x20] sm:$0xf]  ;;  %4171 = vmatpush.bf16.msra.mxu2 %v6368_v10  ;;  %6441 = vmatpush.bf16.msra.mxu3 %v6368_v10 }
 0x237   :  { %v1534_v43 = vor.u32 %v1532_v11, %v1531_v58  ;;  %v1598_v32 = vshll.u32 %v7280_v28, 16  ;;  %v1661_v27 = vshrl.u32 %v7300_v40, 16  ;;  %v1597_v2 = vrot.slane %v1595_v24, 7 }
 0x238   :  { %v1535_v38 = vrot.slane %v1531_v58, 4  ;;  %v1694_v19 = vshrl.u32 %v7302_v6, 16  ;;  %v7323_v63 = vrot.slane %v1628_v36, 7  ;;  %v1567_v8 = vor.u32 %v1565_v33, %v1564_v14  ;;  %v1615_v58 = vld [vmem:[#allocation2 + $0x28] sm:$0xf] }
 0x239   :  { %v1484_v34 = vsel %vm7310_vm8, %v1465_v57, %v1483_v25  ;;  %v1568_v45 = vrot.slane %v1564_v14, 4  ;;  %v1487_v12 = vsel %vm6636_vm2, %v1466_v22, %v1486_v20  ;;  %v1517_v28 = vsel %vm7310_vm8, %v1501_v61, %v1516_v18  ;;  %v1618_v36 = vld [vmem:[#allocation2 + $0x2c] sm:$0x1]  ;;  %v1648_v14 = vld [vmem:[#allocation2 + $0x30] sm:$0xf] }
 0x23a   :  { %v1520_v42 = vsel %vm6636_vm2, %v1502_v1, %v1519_v29  ;;  %1485 = vst [vmem:[#allocation2 + $0x8] sm:$0xf] %v1484_v34  ;;  %v1063_v23 = vmax.f32 %v7290_v31, 0.0  ;;  %v7336_v51 = vpack.c.bf16 %v1058_v56, %v1058_v56  ;;  %v1631_v46 = vshll.u32 %v7282_v30, 16  ;;  %v1340_v29 = vld [vmem:[#allocation2 + $0x154] sm:$0x1] }
 0x23b   :  { %v1550_v52 = vsel %vm7310_vm8, %v1534_v43, %v1549_v53  ;;  %1488 = vst [vmem:[#allocation2 + $0xc] sm:$0x1] %v1487_v12  ;;  %v1751_v21 = vshrl.u32 %v7315_v4, 16  ;;  %v1663_v24 = vrot.slane %v1661_v27, 7  ;;  %v1600_v25 = vor.u32 %v1598_v32, %v1597_v2  ;;  %v1681_v33 = vld [vmem:[#allocation2 + $0x38] sm:$0xf] }
 0x23c   :  { %v1553_v11 = vsel %vm6636_vm2, %v1535_v38, %v1552_v5  ;;  %1518 = vst [vmem:[#allocation2 + $0x10] sm:$0xf] %v1517_v28  ;;  %v7344_v57 = vpack.c.bf16 %v1059_v26, %v1059_v26  ;;  %v1664_v56 = vshll.u32 %v7300_v40, 16  ;;  %v1601_v30 = vrot.slane %v1597_v2, 4  ;;  %v1651_v26 = vld [vmem:[#allocation2 + $0x34] sm:$0x1] }
 0x23d   :  { %v1583_v20 = vsel %vm7310_vm8, %v1567_v8, %v1582_v35  ;;  %1521 = vst [vmem:[#allocation2 + $0x14] sm:$0x1] %v1520_v42  ;;  %v1784_v22 = vshrl.u32 %v7317_v7, 16  ;;  %v7350_v61 = vrot.slane %v1694_v19, 7  ;;  %v1633_v1 = vor.u32 %v1631_v46, %v7323_v63  ;;  %v1684_v27 = vld [vmem:[#allocation2 + $0x3c] sm:$0x1] }
 0x23e   :  { %v1586_v18 = vsel %vm6636_vm2, %v1568_v45, %v1585_v3  ;;  %1551 = vst [vmem:[#allocation2 + $0x18] sm:$0xf] %v1550_v52  ;;  %v7358_v40 = vpack.c.bf16 %v1060_v44, %v1060_v44  ;;  %v7363_v43 = vpack.c.bf16 %v1061_v49, %v1061_v49  ;;  %v1697_v53 = vshll.u32 %v7302_v6, 16  ;;  %v1714_v44 = vld [vmem:[#allocation2 + $0x40] sm:$0xf]  ;;  %v6367_v31 = vld [vmem:[%s9199_s2 + $0x70] sm:$0xff] }
 0x23f   :  { %v1634_v32 = vrot.slane %v7323_v63, 4  ;;  %1554 = vst [vmem:[#allocation2 + $0x1c] sm:$0x1] %v1553_v11  ;;  %v1817_v2 = vshrl.u32 %v7336_v51, 16  ;;  %v1753_v38 = vrot.slane %v1751_v21, 7  ;;  %v1666_v5 = vor.u32 %v1664_v56, %v1663_v24  ;;  %v7375_v63 = vpop.f32.mrf.mxu0  ;;  %4172 = vmatpush.bf16.msra.mxu2 %v6367_v31  ;;  %6442 = vmatpush.bf16.msra.mxu3 %v6367_v31 }
 0x240   :  { %v1616_v55 = vsel %vm7310_vm8, %v1600_v25, %v1615_v58  ;;  %1584 = vst [vmem:[#allocation2 + $0x20] sm:$0xf] %v1583_v20  ;;  %v1754_v0 = vshll.u32 %v7315_v4, 16  ;;  %v1667_v19 = vrot.slane %v1663_v24, 4  ;;  %v1619_v49 = vsel %vm6636_vm2, %v1601_v30, %v1618_v36  ;;  %v1717_v8 = vld [vmem:[#allocation2 + $0x44] sm:$0x1] }
 0x241   :  { %v1341_v6 = vsel %vm6636_vm2, 0, %v1340_v29  ;;  %1587 = vst [vmem:[#allocation2 + $0x24] sm:$0x1] %v1586_v18  ;;  %v1850_v34 = vshrl.u32 %v7344_v57, 16  ;;  %v1786_v35 = vrot.slane %v1784_v22, 7  ;;  %v1699_v45 = vor.u32 %v1697_v53, %v7350_v61  ;;  %v6271_v4 = vld [vmem:[%s9197_s0 + $0xf0] sm:$0xff] }
 0x242   :  { %v1649_v12 = vsel %vm7310_vm8, %v1633_v1, %v1648_v14  ;;  %1342 = vst [vmem:[#allocation2 + $0x154] sm:$0x1] %v1341_v6  ;;  %v1771_v28 = vld [vmem:[#allocation2 + $0x90] sm:$0xf]  ;;  %v7387_v42 = vpack.c.bf16 %v1062_v59, %v1062_v59  ;;  %v1787_v3 = vshll.u32 %v7317_v7, 16  ;;  %v1700_v46 = vrot.slane %v7350_v61, 4  ;;  %527 = vmatmul.bf16.gmra.mxu0 %v6271_v4 }
 0x243   :  { %v1652_v52 = vsel %vm6636_vm2, %v1634_v32, %v1651_v26  ;;  %1617 = vst [vmem:[#allocation2 + $0x28] sm:$0xf] %v1616_v55  ;;  %v1883_v58 = vshrl.u32 %v7358_v40, 16  ;;  %v1819_v21 = vrot.slane %v1817_v2, 7  ;;  %v1756_v24 = vor.u32 %v1754_v0, %v1753_v38  ;;  %v1774_v59 = vld [vmem:[#allocation2 + $0x94] sm:$0x1] }
 0x244   :  { %v1682_v25 = vsel %vm7310_vm8, %v1666_v5, %v1681_v33  ;;  %1620 = vst [vmem:[#allocation2 + $0x2c] sm:$0x1] %v1619_v49  ;;  %v7402_v7 = vpack.c.bf16 %v1063_v23, %v1063_v23  ;;  %v1820_v11 = vshll.u32 %v7336_v51, 16  ;;  %v1757_v36 = vrot.slane %v1753_v38, 4  ;;  %v1804_v23 = vld [vmem:[#allocation2 + $0x98] sm:$0xf] }
 0x245   :  { %v1685_v14 = vsel %vm6636_vm2, %v1667_v19, %v1684_v27  ;;  %1650 = vst [vmem:[#allocation2 + $0x30] sm:$0xf] %v1649_v12  ;;  %v1916_v56 = vshrl.u32 %v7363_v43, 16  ;;  %v1852_v30 = vrot.slane %v1850_v34, 7  ;;  %v1789_v20 = vor.u32 %v1787_v3, %v1786_v35  ;;  %v1807_v18 = vld [vmem:[#allocation2 + $0x9c] sm:$0x1] }
 0x246   :  { %v1715_v22 = vsel %vm7310_vm8, %v1699_v45, %v1714_v44  ;;  %1653 = vst [vmem:[#allocation2 + $0x34] sm:$0x1] %v1652_v52  ;;  %v1853_v51 = vshll.u32 %v7344_v57, 16  ;;  %v1790_v61 = vrot.slane %v1786_v35, 4  ;;  %v1718_v1 = vsel %vm6636_vm2, %v1700_v46, %v1717_v8  ;;  %v1837_v32 = vld [vmem:[#allocation2 + $0xa0] sm:$0xf] }
 0x247   :  { %1683 = vst [vmem:[#allocation2 + $0x38] sm:$0xf] %v1682_v25  ;;  %v1949_v29 = vshrl.u32 %v7387_v42, 16  ;;  %v1885_v26 = vrot.slane %v1883_v58, 7  ;;  %v1822_v33 = vor.u32 %v1820_v11, %v1819_v21  ;;  %v1772_v53 = vsel %vm7310_vm8, %v1756_v24, %v1771_v28  ;;  %v7422_v38 = vpop.f32.mrf.mxu0  ;;  %v1840_v5 = vld [vmem:[#allocation2 + $0xa4] sm:$0x1] }
 0x248   :  { %1686 = vst [vmem:[#allocation2 + $0x3c] sm:$0x1] %v1685_v14  ;;  %v1886_v27 = vshll.u32 %v7358_v40, 16  ;;  %v1823_v2 = vrot.slane %v1819_v21, 4  ;;  %v1775_v57 = vsel %vm6636_vm2, %v1757_v36, %v1774_v59  ;;  %v1982_v55 = vshrl.u32 %v7402_v7, 16 }
 0x249   :  { %1716 = vst [vmem:[#allocation2 + $0x40] sm:$0xf] %v1715_v22  ;;  %v1918_v44 = vrot.slane %v1916_v56, 7  ;;  %v1855_v0 = vor.u32 %v1853_v51, %v1852_v30  ;;  %v1805_v19 = vsel %vm7310_vm8, %v1789_v20, %v1804_v23  ;;  %v1870_v49 = vld [vmem:[#allocation2 + $0xa8] sm:$0xf]  ;;  %v1856_v40 = vrot.slane %v1852_v30, 4 }
 0x24a   :  { %1719 = vst [vmem:[#allocation2 + $0x44] sm:$0x1] %v1718_v1  ;;  %v1808_v6 = vsel %vm6636_vm2, %v1790_v61, %v1807_v18  ;;  %v1873_v8 = vld [vmem:[#allocation2 + $0xac] sm:$0x1]  ;;  %v1919_v34 = vshll.u32 %v7363_v43, 16  ;;  %v1951_v35 = vrot.slane %v1949_v29, 7  ;;  %v1888_v45 = vor.u32 %v1886_v27, %v1885_v26 }
 0x24b   :  { %1773 = vst [vmem:[#allocation2 + $0x90] sm:$0xf] %v1772_v53  ;;  %v1838_v12 = vsel %vm7310_vm8, %v1822_v33, %v1837_v32  ;;  %v1903_v4 = vld [vmem:[#allocation2 + $0xb0] sm:$0xf]  ;;  %v1889_v28 = vrot.slane %v1885_v26, 4  ;;  %v1841_v3 = vsel %vm6636_vm2, %v1823_v2, %v1840_v5  ;;  %v1952_v52 = vshll.u32 %v7387_v42, 16 }
 0x24c   :  { %1776 = vst [vmem:[#allocation2 + $0x94] sm:$0x1] %v1775_v57  ;;  %v1906_v46 = vld [vmem:[#allocation2 + $0xb4] sm:$0x1]  ;;  %v1984_v58 = vrot.slane %v1982_v55, 7  ;;  %v1921_v21 = vor.u32 %v1919_v34, %v1918_v44  ;;  %v1871_v43 = vsel %vm7310_vm8, %v1855_v0, %v1870_v49  ;;  %v1922_v25 = vrot.slane %v1918_v44, 4 }
 0x24d   :  { %1806 = vst [vmem:[#allocation2 + $0x98] sm:$0xf] %v1805_v19  ;;  %v1936_v24 = vld [vmem:[#allocation2 + $0xb8] sm:$0xf]  ;;  %v1874_v10 = vsel %vm6636_vm2, %v1856_v40, %v1873_v8  ;;  %v1939_v59 = vld [vmem:[#allocation2 + $0xbc] sm:$0x1]  ;;  %v1954_v36 = vor.u32 %v1952_v52, %v1951_v35  ;;  %v1904_v14 = vsel %vm7310_vm8, %v1888_v45, %v1903_v4  ;;  %v1907_v20 = vsel %vm6636_vm2, %v1889_v28, %v1906_v46 }
 0x24e   :  { %1809 = vst [vmem:[#allocation2 + $0x9c] sm:$0x1] %v1808_v6  ;;  %v1985_v11 = vshll.u32 %v7402_v7, 16  ;;  %v6360_v42 = vld [vmem:[%s9199_s2 + $0x38] sm:$0xff]  ;;  %v1969_v56 = vld [vmem:[#allocation2 + $0xc0] sm:$0xf]  ;;  %v1937_v51 = vsel %vm7310_vm8, %v1921_v21, %v1936_v24  ;;  %v1940_v29 = vsel %vm6636_vm2, %v1922_v25, %v1939_v59 }
 0x24f   :  { %1839 = vst [vmem:[#allocation2 + $0xa0] sm:$0xf] %v1838_v12  ;;  %v1955_v30 = vrot.slane %v1951_v35, 4  ;;  %v7447_v22 = vpop.f32.mrf.mxu0  ;;  %v6366_v7 = vld [vmem:[%s9199_s2 + $0x68] sm:$0xff]  ;;  %v1972_v31 = vld [vmem:[#allocation2 + $0xc4] sm:$0x1]  ;;  %4122 = vmatpush.bf16.msra.mxu1 %v6360_v42  ;;  %v1970_v33 = vsel %vm7310_vm8, %v1954_v36, %v1969_v56 }
 0x250   :  { %1842 = vst [vmem:[#allocation2 + $0xa4] sm:$0x1] %v1841_v3  ;;  %v1987_v23 = vor.u32 %v1985_v11, %v1984_v58  ;;  %v6272_v61 = vld [vmem:[%s9197_s0 + $0xf8] sm:$0xff]  ;;  %v2002_v1 = vld [vmem:[#allocation2 + $0xc8] sm:$0xf]  ;;  %v1988_v18 = vrot.slane %v1984_v58, 4  ;;  %4173 = vmatpush.bf16.msra.mxu2 %v6366_v7  ;;  %6443 = vmatpush.bf16.msra.mxu3 %v6366_v7 }
 0x251   :  { %1872 = vst [vmem:[#allocation2 + $0xa8] sm:$0xf] %v1871_v43  ;;  %v2005_v26 = vld [vmem:[#allocation2 + $0xcc] sm:$0x1]  ;;  %v6359_v53 = vld [vmem:[%s9199_s2 + $0x30] sm:$0xff]  ;;  %v1973_v32 = vsel %vm6636_vm2, %v1955_v30, %v1972_v31  ;;  %v6365_v0 = vld [vmem:[%s9199_s2 + $0x60] sm:$0xff] }
 0x252   :  { %1875 = vst [vmem:[#allocation2 + $0xac] sm:$0x1] %v1874_v10  ;;  %v1344_v27 = vld [vmem:[#allocation2 + $0x15c] sm:$0x1]  ;;  %532 = vmatmul.bf16.gmra.mxu0 %v6272_v61  ;;  %v2003_v2 = vsel %vm7310_vm8, %v1987_v23, %v2002_v1  ;;  %v1348_v57 = vld [vmem:[#allocation2 + $0x164] sm:$0x1]  ;;  %v2006_v55 = vsel %vm6636_vm2, %v1988_v18, %v2005_v26 }
 0x253   :  { %1905 = vst [vmem:[#allocation2 + $0xb0] sm:$0xf] %v1904_v14  ;;  %v1208_v5 = vld [vmem:[#allocation2 + $0x4c] sm:$0x1]  ;;  %4123 = vmatpush.bf16.msra.mxu1 %v6359_v53  ;;  %v1212_v44 = vld [vmem:[#allocation2 + $0x54] sm:$0x1] }
 0x254   :  { %1908 = vst [vmem:[#allocation2 + $0xb4] sm:$0x1] %v1907_v20  ;;  %v1345_v19 = vsel %vm6636_vm2, 0, %v1344_v27  ;;  %v6358_v49 = vld [vmem:[%s9199_s2 + $0x28] sm:$0xff]  ;;  %v1349_v40 = vsel %vm6636_vm2, 0, %v1348_v57  ;;  %4174 = vmatpush.bf16.msra.mxu2 %v6365_v0  ;;  %6444 = vmatpush.bf16.msra.mxu3 %v6365_v0  ;;  %v6364_v34 = vld [vmem:[%s9199_s2 + $0x58] sm:$0xff] }
 0x255   :  { %1938 = vst [vmem:[#allocation2 + $0xb8] sm:$0xf] %v1937_v51  ;;  %v1216_v6 = vld [vmem:[#allocation2 + $0x5c] sm:$0x1]  ;;  %v1209_v35 = vsel %vm6636_vm2, 0, %v1208_v5  ;;  %v1213_v45 = vsel %vm6636_vm2, 0, %v1212_v44 }
 0x256   :  { %1941 = vst [vmem:[#allocation2 + $0xbc] sm:$0x1] %v1940_v29  ;;  %v1220_v12 = vld [vmem:[#allocation2 + $0x64] sm:$0x1]  ;;  %v1224_v4 = vld [vmem:[#allocation2 + $0x6c] sm:$0x1] }
 0x257   :  { %1971 = vst [vmem:[#allocation2 + $0xc0] sm:$0xf] %v1970_v33  ;;  %v7480_v8 = vpop.f32.mrf.mxu0  ;;  %4124 = vmatpush.bf16.msra.mxu1 %v6358_v49  ;;  %v1228_v28 = vld [vmem:[#allocation2 + $0x74] sm:$0x1]  ;;  %v1217_v3 = vsel %vm6636_vm2, 0, %v1216_v6  ;;  %v6357_v46 = vld [vmem:[%s9199_s2 + $0x20] sm:$0xff] }
 0x258   :  { %1974 = vst [vmem:[#allocation2 + $0xc4] sm:$0x1] %v1973_v32  ;;  %v1221_v52 = vsel %vm6636_vm2, 0, %v1220_v12  ;;  %v1232_v58 = vld [vmem:[#allocation2 + $0x7c] sm:$0x1]  ;;  %4175 = vmatpush.bf16.msra.mxu2 %v6364_v34  ;;  %6445 = vmatpush.bf16.msra.mxu3 %v6364_v34  ;;  %v6363_v21 = vld [vmem:[%s9199_s2 + $0x50] sm:$0xff] }
 0x259   :  { %2004 = vst [vmem:[#allocation2 + $0xc8] sm:$0xf] %v2003_v2  ;;  %v1225_v43 = vsel %vm6636_vm2, 0, %v1224_v4  ;;  %v1229_v24 = vsel %vm6636_vm2, 0, %v1228_v28  ;;  %v1236_v25 = vld [vmem:[#allocation2 + $0x84] sm:$0x1] }
 0x25a   :  { %2007 = vst [vmem:[#allocation2 + $0xcc] sm:$0x1] %v2006_v55  ;;  %v1240_v10 = vld [vmem:[#allocation2 + $0x8c] sm:$0x1]  ;;  %v1276_v59 = vld [vmem:[#allocation2 + $0xd4] sm:$0x1] }
 0x25b   :  { %1346 = vst [vmem:[#allocation2 + $0x15c] sm:$0x1] %v1345_v19  ;;  %4125 = vmatpush.bf16.msra.mxu1 %v6357_v46  ;;  %v1233_v11 = vsel %vm6636_vm2, 0, %v1232_v58  ;;  %v1280_v36 = vld [vmem:[#allocation2 + $0xdc] sm:$0x1]  ;;  %v1237_v42 = vsel %vm6636_vm2, 0, %v1236_v25 }
 0x25c   :  { %1350 = vst [vmem:[#allocation2 + $0x164] sm:$0x1] %v1349_v40  ;;  %v6356_v14 = vld [vmem:[%s9199_s2 + $0x18] sm:$0xff]  ;;  %v1284_v56 = vld [vmem:[#allocation2 + $0xe4] sm:$0x1]  ;;  %4176 = vmatpush.bf16.msra.mxu2 %v6363_v21  ;;  %6446 = vmatpush.bf16.msra.mxu3 %v6363_v21  ;;  %v6362_v20 = vld [vmem:[%s9199_s2 + $0x48] sm:$0xff] }
 0x25d   :  { %1210 = vst [vmem:[#allocation2 + $0x4c] sm:$0x1] %v1209_v35  ;;  %v1241_v7 = vsel %vm6636_vm2, 0, %v1240_v10  ;;  %v1288_v31 = vld [vmem:[#allocation2 + $0xec] sm:$0x1]  ;;  %v1277_v23 = vsel %vm6636_vm2, 0, %v1276_v59 }
 0x25e   :  { %1214 = vst [vmem:[#allocation2 + $0x54] sm:$0x1] %v1213_v45  ;;  %v1281_v51 = vsel %vm6636_vm2, 0, %v1280_v36  ;;  %v1285_v61 = vsel %vm6636_vm2, 0, %v1284_v56  ;;  %v1292_v1 = vld [vmem:[#allocation2 + $0xf4] sm:$0x1] }
 0x25f   :  { %1218 = vst [vmem:[#allocation2 + $0x5c] sm:$0x1] %v1217_v3  ;;  %v7510_v30 = vpop.f32.mrf.mxu0  ;;  %4126 = vmatpush.bf16.msra.mxu1 %v6356_v14  ;;  %v6355_v18 = vld [vmem:[%s9199_s2 + $0x10] sm:$0xff]  ;;  %v1289_v29 = vsel %vm6636_vm2, 0, %v1288_v31  ;;  %v1296_v26 = vld [vmem:[#allocation2 + $0xfc] sm:$0x1] }
 0x260   :  { %1222 = vst [vmem:[#allocation2 + $0x64] sm:$0x1] %v1221_v52  ;;  %4177 = vmatpush.bf16.msra.mxu2 %v6362_v20  ;;  %6447 = vmatpush.bf16.msra.mxu3 %v6362_v20  ;;  %v6361_v33 = vld [vmem:[%s9199_s2 + $0x40] sm:$0xff]  ;;  %v1304_v32 = vld [vmem:[#allocation2 + $0x10c] sm:$0x1]  ;;  %v1293_v27 = vsel %vm6636_vm2, 0, %v1292_v1 }
 0x261   :  { %1226 = vst [vmem:[#allocation2 + $0x6c] sm:$0x1] %v1225_v43  ;;  %v1300_v53 = vld [vmem:[#allocation2 + $0x104] sm:$0x1]  ;;  %v1297_v2 = vsel %vm6636_vm2, 0, %v1296_v26  ;;  %v6354_v5 = vld [vmem:[%s9199_s2 + $0x8] sm:$0xff] }
 0x262   :  { %1230 = vst [vmem:[#allocation2 + $0x74] sm:$0x1] %v1229_v24  ;;  %v1308_v57 = vld [vmem:[#allocation2 + $0x114] sm:$0x1]  ;;  %v1301_v55 = vsel %vm6636_vm2, 0, %v1300_v53  ;;  %v1305_v44 = vsel %vm6636_vm2, 0, %v1304_v32 }
 0x263   :  { %1234 = vst [vmem:[#allocation2 + $0x7c] sm:$0x1] %v1233_v11  ;;  %4127 = vmatpush.bf16.msra.mxu1 %v6355_v18  ;;  %v1312_v0 = vld [vmem:[#allocation2 + $0x11c] sm:$0x1]  ;;  %v1352_v49 = vld [vmem:[#allocation2 + $0x16c] sm:$0x1] }
 0x264   :  { %1238 = vst [vmem:[#allocation2 + $0x84] sm:$0x1] %v1237_v42  ;;  %4178 = vmatpush.bf16.msra.mxu2 %v6361_v33  ;;  %6448 = vmatpush.bf16.msra.mxu3 %v6361_v33  ;;  %v1356_v40 = vld [vmem:[#allocation2 + $0x174] sm:$0x1]  ;;  %v1309_v6 = vsel %vm6636_vm2, 0, %v1308_v57  ;;  %v1313_v34 = vsel %vm6636_vm2, 0, %v1312_v0 }
 0x265   :  { %1242 = vst [vmem:[#allocation2 + $0x8c] sm:$0x1] %v1241_v7  ;;  %v1360_v35 = vld [vmem:[#allocation2 + $0x17c] sm:$0x1]  ;;  %v1353_v45 = vsel %vm6636_vm2, 0, %v1352_v49  ;;  %v1357_v12 = vsel %vm6636_vm2, 0, %v1356_v40 }
 0x266   :  { %1278 = vst [vmem:[#allocation2 + $0xd4] sm:$0x1] %v1277_v23  ;;  %v1364_v4 = vld [vmem:[#allocation2 + $0x184] sm:$0x1]  ;;  %v1368_v28 = vld [vmem:[#allocation2 + $0x18c] sm:$0x1] }
 0x267   :  { %1282 = vst [vmem:[#allocation2 + $0xdc] sm:$0x1] %v1281_v51  ;;  %v7542_v19 = vpop.f32.mrf.mxu0  ;;  %4128 = vmatpush.bf16.msra.mxu1 %v6354_v5  ;;  %v1372_v3 = vld [vmem:[#allocation2 + $0x194] sm:$0x1]  ;;  %v1361_v46 = vsel %vm6636_vm2, 0, %v1360_v35  ;;  %v1365_v52 = vsel %vm6636_vm2, 0, %v1364_v4 }
 0x268   :  { %1286 = vst [vmem:[#allocation2 + $0xe4] sm:$0x1] %v1285_v61  ;;  %v1376_v58 = vld [vmem:[#allocation2 + $0x19c] sm:$0x1]  ;;  %v1369_v21 = vsel %vm6636_vm2, 0, %v1368_v28  ;;  %v1373_v43 = vsel %vm6636_vm2, 0, %v1372_v3 }
 0x269   :  { %1290 = vst [vmem:[#allocation2 + $0xec] sm:$0x1] %v1289_v29  ;;  %v1380_v24 = vld [vmem:[#allocation2 + $0x1a4] sm:$0x1]  ;;  %v1384_v25 = vld [vmem:[#allocation2 + $0x1ac] sm:$0x1] }
 0x26a   :  { %1294 = vst [vmem:[#allocation2 + $0xf4] sm:$0x1] %v1293_v27  ;;  %v6392_v10 = vld [vmem:[%s9199_s2 + $0x138] sm:$0xff]  ;;  %v6353_v59 = vld [vmem:[%s9199_s2] sm:$0xff]  ;;  %v1377_v36 = vsel %vm6636_vm2, 0, %v1376_v58  ;;  %v1381_v42 = vsel %vm6636_vm2, 0, %v1380_v24 }
 0x26b   :  { %1298 = vst [vmem:[#allocation2 + $0xfc] sm:$0x1] %v1297_v2  ;;  %v1420_v14 = vld [vmem:[#allocation2 + $0x1f4] sm:$0x1]  ;;  %v1424_v56 = vld [vmem:[#allocation2 + $0x1fc] sm:$0x1]  ;;  %4318 = vmatpush.bf16.msrb.mxu2 %v6392_v10  ;;  %4129 = vmatpush.bf16.msra.mxu1 %v6353_v59 }
 0x26c   :  { %1302 = vst [vmem:[#allocation2 + $0x104] sm:$0x1] %v1301_v55  ;;  %v6391_v20 = vld [vmem:[%s9199_s2 + $0x130] sm:$0xff]  ;;  %v1385_v7 = vsel %vm6636_vm2, 0, %v1384_v25  ;;  %v1428_v31 = vld [vmem:[#allocation2 + $0x204] sm:$0x1] }
 0x26d   :  { %1306 = vst [vmem:[#allocation2 + $0x10c] sm:$0x1] %v1305_v44  ;;  %v1421_v23 = vsel %vm6636_vm2, 0, %v1420_v14  ;;  %v1432_v51 = vld [vmem:[#allocation2 + $0x20c] sm:$0x1]  ;;  %v1425_v61 = vsel %vm6636_vm2, 0, %v1424_v56 }
 0x26e   :  { %1310 = vst [vmem:[#allocation2 + $0x114] sm:$0x1] %v1309_v6  ;;  %v1436_v1 = vld [vmem:[#allocation2 + $0x214] sm:$0x1]  ;;  %v1429_v18 = vsel %vm6636_vm2, 0, %v1428_v31  ;;  %v6390_v26 = vld [vmem:[%s9199_s2 + $0x128] sm:$0xff] }
 0x26f   :  { %1314 = vst [vmem:[#allocation2 + $0x11c] sm:$0x1] %v1313_v34  ;;  %v7566_v11 = vpop.f32.mrf.mxu0  ;;  %v1440_v29 = vld [vmem:[#allocation2 + $0x21c] sm:$0x1]  ;;  %4319 = vmatpush.bf16.msrb.mxu2 %v6391_v20  ;;  %v1433_v33 = vsel %vm6636_vm2, 0, %v1432_v51  ;;  %v1437_v32 = vsel %vm6636_vm2, 0, %v1436_v1 }
 0x270   :  { %1354 = vst [vmem:[#allocation2 + $0x16c] sm:$0x1] %v1353_v45  ;;  %v1444_v53 = vld [vmem:[#allocation2 + $0x224] sm:$0x1]  ;;  %v1448_v27 = vld [vmem:[#allocation2 + $0x22c] sm:$0x1] }
 0x271   :  { %1358 = vst [vmem:[#allocation2 + $0x174] sm:$0x1] %v1357_v12  ;;  %v1441_v57 = vsel %vm6636_vm2, 0, %v1440_v29  ;;  %v1452_v5 = vld [vmem:[#allocation2 + $0x234] sm:$0x1]  ;;  %v1445_v55 = vsel %vm6636_vm2, 0, %v1444_v53 }
 0x272   :  { %1362 = vst [vmem:[#allocation2 + $0x17c] sm:$0x1] %v1361_v46  ;;  %v1456_v44 = vld [vmem:[#allocation2 + $0x23c] sm:$0x1]  ;;  %v6389_v0 = vld [vmem:[%s9199_s2 + $0x120] sm:$0xff]  ;;  %v1449_v49 = vsel %vm6636_vm2, 0, %v1448_v27 }
 0x273   :  { %1366 = vst [vmem:[#allocation2 + $0x184] sm:$0x1] %v1365_v52  ;;  %4320 = vmatpush.bf16.msrb.mxu2 %v6390_v26  ;;  %v1388_v40 = vld [vmem:[#allocation2 + $0x1b4] sm:$0x1]  ;;  %v1453_v6 = vsel %vm6636_vm2, 0, %v1452_v5  ;;  %v1457_v35 = vsel %vm6636_vm2, 0, %v1456_v44 }
 0x274   :  { %1370 = vst [vmem:[#allocation2 + $0x18c] sm:$0x1] %v1369_v21  ;;  %v1392_v34 = vld [vmem:[#allocation2 + $0x1bc] sm:$0x1]  ;;  %v1389_v45 = vsel %vm6636_vm2, 0, %v1388_v40  ;;  %v6387_v21 = vld [vmem:[%s9199_s2 + $0x110] sm:$0xff] }
 0x275   :  { %1374 = vst [vmem:[#allocation2 + $0x194] sm:$0x1] %v1373_v43  ;;  %v1393_v12 = vsel %vm6636_vm2, 0, %v1392_v34  ;;  %v2071_v4 = vld [vmem:[#allocation2 + $0x48] sm:$0xf]  ;;  %v6388_v28 = vld [vmem:[%s9199_s2 + $0x118] sm:$0xff] }
 0x276   :  { %1378 = vst [vmem:[#allocation2 + $0x19c] sm:$0x1] %v1377_v36  ;;  %v2072_v46 = vld [vmem:[#allocation2 + $0x50] sm:$0xf]  ;;  %v1396_v52 = vld [vmem:[#allocation2 + $0x1c4] sm:$0x1] }
 0x277   :  { %1382 = vst [vmem:[#allocation2 + $0x1a4] sm:$0x1] %v1381_v42  ;;  %v7590_v2 = vpop.f32.mrf.mxu0  ;;  %4321 = vmatpush.bf16.msrb.mxu2 %v6389_v0  ;;  %v2075_v58 = vld [vmem:[#allocation2 + $0x68] sm:$0xf]  ;;  %v2076_v43 = vld [vmem:[#allocation2 + $0x70] sm:$0xf] }
 0x278   :  { %1386 = vst [vmem:[#allocation2 + $0x1ac] sm:$0x1] %v1385_v7  ;;  %v1397_v24 = vsel %vm6636_vm2, 0, %v1396_v52  ;;  %v1400_v25 = vld [vmem:[#allocation2 + $0x1cc] sm:$0x1] }
 0x279   :  { %1422 = vst [vmem:[#allocation2 + $0x1f4] sm:$0x1] %v1421_v23  ;;  %v2038_v10 = vld [vmem:[#allocation2] sm:$0xf]  ;;  %v2039_v59 = vld [vmem:[#allocation2 + $0x8] sm:$0xf] }
 0x27a   :  { %1426 = vst [vmem:[#allocation2 + $0x1fc] sm:$0x1] %v1425_v61  ;;  %v6386_v36 = vld [vmem:[%s9199_s2 + $0x108] sm:$0xff]  ;;  %v1401_v14 = vsel %vm6636_vm2, 0, %v1400_v25  ;;  %v2073_v42 = vld [vmem:[#allocation2 + $0x58] sm:$0xf] }
 0x27b   :  { %1430 = vst [vmem:[#allocation2 + $0x204] sm:$0x1] %v1429_v18  ;;  %4322 = vmatpush.bf16.msrb.mxu2 %v6388_v28  ;;  %v2074_v56 = vld [vmem:[#allocation2 + $0x60] sm:$0xf]  ;;  %v2077_v20 = vld [vmem:[#allocation2 + $0x78] sm:$0xf] }
 0x27c   :  { %1434 = vst [vmem:[#allocation2 + $0x20c] sm:$0x1] %v1433_v33  ;;  %v2078_v31 = vld [vmem:[#allocation2 + $0x80] sm:$0xf]  ;;  %v1404_v23 = vld [vmem:[#allocation2 + $0x1d4] sm:$0x1] }
 0x27d   :  { %1438 = vst [vmem:[#allocation2 + $0x214] sm:$0x1] %v1437_v32  ;;  %v6385_v61 = vld [vmem:[%s9199_s2 + $0x100] sm:$0xff]  ;;  %v1408_v18 = vld [vmem:[#allocation2 + $0x1dc] sm:$0x1]  ;;  %v1405_v33 = vsel %vm6636_vm2, 0, %v1404_v23 }
 0x27e   :  { %1442 = vst [vmem:[#allocation2 + $0x21c] sm:$0x1] %v1441_v57  ;;  %v2040_v32 = vld [vmem:[#allocation2 + $0x10] sm:$0xf]  ;;  %v2041_v57 = vld [vmem:[#allocation2 + $0x18] sm:$0xf] }
 0x27f   :  { %1446 = vst [vmem:[#allocation2 + $0x224] sm:$0x1] %v1445_v55  ;;  %v7612_v3 = vpop.f32.mrf.mxu0  ;;  %4323 = vmatpush.bf16.msrb.mxu2 %v6387_v21  ;;  %v1409_v5 = vsel %vm6636_vm2, 0, %v1408_v18  ;;  %v1412_v44 = vld [vmem:[#allocation2 + $0x1e4] sm:$0x1] }
 0x280   :  { %1450 = vst [vmem:[#allocation2 + $0x22c] sm:$0x1] %v1449_v49  ;;  %v2426_v49 = vld [vmem:[#allocation2 + $0xd8] sm:$0xf]  ;;  %v2427_v34 = vld [vmem:[#allocation2 + $0xe0] sm:$0xf] }
 0x281   :  { %1454 = vst [vmem:[#allocation2 + $0x234] sm:$0x1] %v1453_v6  ;;  %v2429_v52 = vld [vmem:[#allocation2 + $0xf0] sm:$0xf] }
 0x282   :  { %1458 = vst [vmem:[#allocation2 + $0x23c] sm:$0x1] %v1457_v35  ;;  %v1413_v35 = vsel %vm6636_vm2, 0, %v1412_v44  ;;  %v2044_v21 = vld [vmem:[#allocation2 + $0x30] sm:$0xf] }
 0x283   :  { %1390 = vst [vmem:[#allocation2 + $0x1b4] sm:$0x1] %v1389_v45  ;;  %4324 = vmatpush.bf16.msrb.mxu2 %v6386_v36  ;;  %v2042_v45 = vld [vmem:[#allocation2 + $0x20] sm:$0xf] }
 0x284   :  { %1394 = vst [vmem:[#allocation2 + $0x1bc] sm:$0x1] %v1393_v12  ;;  %v1416_v12 = vld [vmem:[#allocation2 + $0x1ec] sm:$0x1] }
 0x285   :  { %2087 = vst [vmem:[#allocation3 + $0x4] sm:$0xf] %v2071_v4  ;;  %v2043_v4 = vld [vmem:[#allocation2 + $0x28] sm:$0xf]  ;;  %v1417_v28 = vsel %vm6636_vm2, 0, %v1416_v12 }
 0x286   :  { %2088 = vst [vmem:[#allocation3 + $0x28] sm:$0xf] %v2072_v46  ;;  %v2428_v46 = vld [vmem:[#allocation2 + $0xe8] sm:$0xf] }
 0x287   :  { %2091 = vst [vmem:[#allocation3 + $0x94] sm:$0xf] %v2075_v58  ;;  %v7624_v7 = vpop.f32.mrf.mxu0  ;;  %4325 = vmatpush.bf16.msrb.mxu2 %v6385_v61 }
 0x288   :  { %2092 = vst [vmem:[#allocation3 + $0xb8] sm:$0xf] %v2076_v43  ;;  %v2045_v43 = vld [vmem:[#allocation2 + $0x38] sm:$0xf] }
 0x289   :  { %1398 = vst [vmem:[#allocation2 + $0x1c4] sm:$0x1] %v1397_v24 }
 0x28a   :  { %2054 = vst [vmem:[#allocation3] sm:$0xf] %v2038_v10  ;;  %v2430_v10 = vld [vmem:[#allocation2 + $0xf8] sm:$0xf] }
 0x28b   :  { %2055 = vst [vmem:[#allocation3 + $0x24] sm:$0xf] %v2039_v59  ;;  %v2431_v59 = vld [vmem:[#allocation2 + $0x100] sm:$0xf] }
 0x28c   :  { %v6281_v51 = vld [vmem:[#allocation3 + $0x4] sm:$0xf]  ;;  %1402 = vst [vmem:[#allocation2 + $0x1cc] sm:$0x1] %v1401_v14 }
 0x28d   :  { %v5605_v1 = vld [vmem:[#allocation3 + $0x24] sm:$0xf0]  ;;  %2089 = vst [vmem:[#allocation3 + $0x4c] sm:$0xf] %v2073_v42  ;;  %v575_v42 = vadd.f32 %v7087_v15, %v7073_v54 }
 0x28e   :  { %v5608_v29 = vor.u32 %v6281_v51, %v5605_v1  ;;  %v6299_v26 = vld [vmem:[#allocation3 + $0x94] sm:$0xf]  ;;  %2090 = vst [vmem:[#allocation3 + $0x70] sm:$0xf] %v2074_v56 }
 0x28f   :  { %v5677_v53 = vld [vmem:[#allocation3 + $0xb4] sm:$0xf0]  ;;  %2093 = vst [vmem:[#allocation3 + $0xdc] sm:$0xf] %v2077_v20  ;;  %v7633_v40 = vpop.f32.mrf.mxu0  ;;  %v2432_v20 = vld [vmem:[#allocation2 + $0x108] sm:$0xf]  ;;  %v576_v23 = vadd.f32 %v575_v42, %v7089_v47 }
 0x290   :  { %4179 = vmatmul.bf16.vlgmr.msra.gmra.mxu2 %v5608_v29  ;;  %v5680_v27 = vor.u32 %v6299_v26, %v5677_v53  ;;  %2094 = vst [vmem:[#allocation3 + $0x100] sm:$0xf] %v2078_v31  ;;  %v2433_v31 = vld [vmem:[#allocation2 + $0x110] sm:$0xf] }
 0x291   :  { %v5603_v55 = vld [vmem:[#allocation3] sm:$0xf]  ;;  %1406 = vst [vmem:[#allocation2 + $0x1d4] sm:$0x1] %v1405_v33  ;;  %v577_v18 = vadd.f32 %v576_v23, %v7093_v50 }
 0x292   :  { %4189 = vmatmul.bf16.vlgmr.msra.gmra.mxu3 %v5680_v27  ;;  %v6285_v0 = vld [vmem:[#allocation3 + $0x20] sm:$0xf0]  ;;  %2056 = vst [vmem:[#allocation3 + $0x48] sm:$0xf] %v2040_v32  ;;  %v2103_v23 = vld [vmem:[#allocation2] sm:$0xf] }
 0x293   :  { %v5604_v6 = vor.u32 %v6285_v0, %v5603_v55  ;;  %2057 = vst [vmem:[#allocation3 + $0x6c] sm:$0xf] %v2041_v57  ;;  %v578_v33 = vadd.f32 %v577_v18, %v7100_v60  ;;  %v2139_v18 = vshrl.u32 %v2103_v23, 16 }
 0x294   :  { %1410 = vst [vmem:[#allocation2 + $0x1dc] sm:$0x1] %v1409_v5  ;;  %v6290_v24 = vld [vmem:[#allocation3 + $0x4c] sm:$0xf] }
 0x295   :  { %4130 = vmatmul.bf16.vlgmr.msra.gmra.mxu1 %v5604_v6  ;;  %2442 = vst [vmem:[#allocation3 + $0x10] sm:$0xf] %v2426_v49  ;;  %v5641_v25 = vld [vmem:[#allocation3 + $0x6c] sm:$0xf0]  ;;  %v579_v53 = vadd.f32 %v578_v33, %v7114_v13 }
 0x296   :  { %2443 = vst [vmem:[#allocation3 + $0x34] sm:$0xf] %v2427_v34  ;;  %v6308_v36 = vld [vmem:[#allocation3 + $0xdc] sm:$0xf]  ;;  %v5644_v56 = vor.u32 %v6290_v24, %v5641_v25  ;;  %v1172_v24 = vld [vmem:[#allocation2 + $0x4] sm:$0x1] }
 0x297   :  { %1414 = vst [vmem:[#allocation2 + $0x1e4] sm:$0x1] %v1413_v35  ;;  %v7639_v58 = vpop.f32.mrf.mxu0  ;;  %v5713_v14 = vld [vmem:[#allocation3 + $0xfc] sm:$0xf0]  ;;  %v580_v32 = vadd.f32 %v579_v53, %v7116_v9  ;;  %v2781_v25 = vld [vmem:[#allocation2 + $0x68] sm:$0xf] }
 0x298   :  { %2058 = vst [vmem:[#allocation3 + $0x90] sm:$0xf] %v2042_v45  ;;  %v5716_v51 = vor.u32 %v6308_v36, %v5713_v14  ;;  %v2782_v36 = vld [vmem:[#allocation2 + $0x70] sm:$0xf] }
 0x299   :  { %2059 = vst [vmem:[#allocation3 + $0xb4] sm:$0xf] %v2043_v4  ;;  %v5639_v61 = vld [vmem:[#allocation3 + $0x48] sm:$0xf]  ;;  %v581_v27 = vadd.f32 %v580_v32, %v7166_v37 }
 0x29a   :  { %1418 = vst [vmem:[#allocation2 + $0x1ec] sm:$0x1] %v1417_v28  ;;  %v6294_v1 = vld [vmem:[#allocation3 + $0x68] sm:$0xf0] }
 0x29b   :  { %2444 = vst [vmem:[#allocation3 + $0x58] sm:$0xf] %v2428_v46  ;;  %v5640_v26 = vor.u32 %v6294_v1, %v5639_v61  ;;  %v582_v44 = vadd.f32 %v581_v27, %v7211_v62  ;;  %v2778_v46 = vld [vmem:[#allocation2 + $0x50] sm:$0xf]  ;;  %v2106_v61 = vld [vmem:[#allocation2 + $0xc] sm:$0x1] }
 0x29c   :  { %2445 = vst [vmem:[#allocation3 + $0x7c] sm:$0xf] %v2429_v52  ;;  %v5619_v5 = vld [vmem:[#allocation3 + $0x10] sm:$0xf]  ;;  %v2779_v52 = vld [vmem:[#allocation2 + $0x58] sm:$0xf] }
 0x29d   :  { %2060 = vst [vmem:[#allocation3 + $0xd8] sm:$0xf] %v2044_v21  ;;  %v6287_v55 = vld [vmem:[#allocation3 + $0x30] sm:$0xf0]  ;;  %v583_v0 = vadd.f32 %v582_v44, %v7241_v41  ;;  %v2780_v21 = vld [vmem:[#allocation2 + $0x60] sm:$0xf] }
 0x29e   :  { %2061 = vst [vmem:[#allocation3 + $0xfc] sm:$0xf] %v2045_v43  ;;  %v5620_v49 = vor.u32 %v6287_v55, %v5619_v5  ;;  %v2162_v55 = vshll.u32 %v2106_v61, 16  ;;  %v2394_v44 = vld [vmem:[#allocation2 + $0x90] sm:$0xf] }
 0x29f   :  { %2446 = vst [vmem:[#allocation3 + $0xa0] sm:$0xf] %v2430_v10  ;;  %v7645_v29 = vpop.f32.mrf.mxu0  ;;  %v584_v6 = vadd.f32 %v583_v0, %v7287_v48  ;;  %v5675_v34 = vld [vmem:[#allocation3 + $0x90] sm:$0xf]  ;;  %v2141_v0 = vrot.slane %v2139_v18, 4 }
 0x2a0   :  { %4184 = vmatmul.bf16.gmra.mxu2 %v5644_v56  ;;  %2447 = vst [vmem:[#allocation3 + $0xc4] sm:$0xf] %v2431_v59  ;;  %v6303_v35 = vld [vmem:[#allocation3 + $0xb0] sm:$0xf0]  ;;  %v1173_v59 = vsel %vm6636_vm2, 0, %v1172_v24 }
 0x2a1   :  { %2448 = vst [vmem:[#allocation3 + $0xe8] sm:$0xf] %v2432_v20  ;;  %v585_v45 = vadd.f32 %v584_v6, %v7327_v16  ;;  %v5676_v4 = vor.u32 %v6303_v35, %v5675_v34  ;;  %v2395_v35 = vld [vmem:[#allocation2 + $0x98] sm:$0xf] }
 0x2a2   :  { %4194 = vmatmul.bf16.gmra.mxu3 %v5716_v51  ;;  %2449 = vst [vmem:[#allocation3 + $0x10c] sm:$0xf] %v2433_v31  ;;  %v5655_v56 = vld [vmem:[#allocation3 + $0x58] sm:$0xf]  ;;  %v2105_v51 = vld [vmem:[#allocation2 + $0x8] sm:$0xf] }
 0x2a3   :  { %v586_v28 = vadd.f32 %v585_v45, %v7375_v63  ;;  %2794 = vst [vmem:[#allocation3 + $0x1c] sm:$0xf] %v2778_v46  ;;  %v6296_v20 = vld [vmem:[#allocation3 + $0x78] sm:$0xf0]  ;;  %v2153_v33 = vshrl.u32 %v2105_v51, 16  ;;  %v2156_v53 = vshll.u32 %v2105_v51, 16 }
 0x2a4   :  { %2795 = vst [vmem:[#allocation3 + $0x40] sm:$0xf] %v2779_v52  ;;  %v5711_v1 = vld [vmem:[#allocation3 + $0xd8] sm:$0xf]  ;;  %v5656_v27 = vor.u32 %v6296_v20, %v5655_v56 }
 0x2a5   :  { %4135 = vmatmul.bf16.gmra.mxu1 %v5640_v26  ;;  %v587_v43 = vadd.f32 %v586_v28, %v7422_v38  ;;  %2796 = vst [vmem:[#allocation3 + $0x64] sm:$0xf] %v2780_v21  ;;  %v2142_v26 = vshll.u32 %v2103_v23, 16  ;;  %v6312_v5 = vld [vmem:[#allocation3 + $0xf8] sm:$0xf0]  ;;  %v2155_v6 = vrot.slane %v2153_v33, 4 }
 0x2a6   :  { %1174 = vst [vmem:[#allocation2 + $0x4] sm:$0x1] %v1173_v59  ;;  %v2158_v34 = vrot.slane %v2156_v53, 5  ;;  %v2107_v21 = vld [vmem:[#allocation2 + $0x10] sm:$0xf]  ;;  %v5712_v24 = vor.u32 %v6312_v5, %v5711_v1 }
 0x2a7   :  { %v7651_v57 = vpop.f32.mrf.mxu0  ;;  %v588_v10 = vadd.f32 %v587_v43, %v7447_v22  ;;  %2797 = vst [vmem:[#allocation3 + $0x88] sm:$0xf] %v2781_v25  ;;  %v2109_v59 = vld [vmem:[#allocation2 + $0x18] sm:$0xf]  ;;  %v2110_v23 = vld [vmem:[#allocation2 + $0x1c] sm:$0x1] }
 0x2a8   :  { %2798 = vst [vmem:[#allocation3 + $0xac] sm:$0xf] %v2782_v36  ;;  %v2159_v52 = vor.u32 %v2158_v34, %v2155_v6  ;;  %v2167_v51 = vshrl.u32 %v2107_v21, 16  ;;  %v2170_v61 = vshll.u32 %v2107_v21, 16  ;;  %v2184_v33 = vshll.u32 %v2109_v59, 16 }
 0x2a9   :  { %v589_v14 = vadd.f32 %v588_v10, %v7480_v8  ;;  %2410 = vst [vmem:[#allocation3 + $0xc] sm:$0xf] %v2394_v44  ;;  %v2108_v10 = vld [vmem:[#allocation2 + $0x14] sm:$0x1]  ;;  %v2397_v6 = vld [vmem:[#allocation2 + $0xa8] sm:$0xf] }
 0x2aa   :  { %2411 = vst [vmem:[#allocation3 + $0x30] sm:$0xf] %v2395_v35  ;;  %v2176_v1 = vshll.u32 %v2108_v10, 16  ;;  %v2172_v5 = vrot.slane %v2170_v61, 5  ;;  %v2111_v21 = vld [vmem:[#allocation2 + $0x20] sm:$0xf] }
 0x2ab   :  { %v590_v31 = vadd.f32 %v589_v14, %v7510_v30  ;;  %v2164_v14 = vrot.slane %v2162_v55, 5  ;;  %v2396_v55 = vld [vmem:[#allocation2 + $0xa0] sm:$0xf]  ;;  %2413 = vst [vmem:[#allocation3 + $0x78] sm:$0xf] %v2397_v6 }
 0x2ac   :  { %v2178_v35 = vrot.slane %v2176_v1, 5  ;;  %2412 = vst [vmem:[#allocation3 + $0x54] sm:$0xf] %v2396_v55  ;;  %v7690_v55 = vld [vmem:[#allocation2 + $0x90] sm:$0xf] }
 0x2ad   :  { %v591_v32 = vadd.f32 %v590_v31, %v7542_v19  ;;  %v2160_v31 = vrot.slane %v2159_v52, 4  ;;  %v6305_v52 = vld [vmem:[#allocation3 + $0xc0] sm:$0xf0] }
 0x2af   :  { %v7657_v12 = vpop.f32.mrf.mxu0  ;;  %v592_v45 = vadd.f32 %v591_v32, %v7566_v11  ;;  %v2165_v32 = vsel %vm7673_vm11, %v2160_v31, %v2164_v14  ;;  %v2195_v14 = vshrl.u32 %v2111_v21, 16 }
 0x2b0   :  { %4326 = vmatmul.bf16.vlgmr.msrb.gmra.mxu2 %v5620_v49  ;;  %v2144_v49 = vrot.slane %v2142_v26, 5  ;;  %v2181_v26 = vshrl.u32 %v2109_v59, 16  ;;  %2379 = vst [vmem:[#allocation3 + $0x2c] sm:$0xf] %v2165_v32 }
 0x2b1   :  { %v593_v43 = vadd.f32 %v592_v45, %v7590_v2  ;;  %v2186_v45 = vrot.slane %v2184_v33, 5 }
 0x2b2   :  { %v2145_v28 = vor.u32 %v2144_v49, %v2141_v0  ;;  %v2183_v0 = vrot.slane %v2181_v26, 4  ;;  %v2190_v49 = vshll.u32 %v2110_v23, 16  ;;  %v2114_v23 = vld [vmem:[#allocation2 + $0x2c] sm:$0x1]  ;;  %v2197_v26 = vrot.slane %v2195_v14, 4 }
 0x2b3   :  { %v594_v18 = vadd.f32 %v593_v43, %v7612_v3  ;;  %v2112_v43 = vld [vmem:[#allocation2 + $0x24] sm:$0x1]  ;;  %v2218_v6 = vshll.u32 %v2114_v23, 16  ;;  %v2115_v14 = vld [vmem:[#allocation2 + $0x30] sm:$0xf] }
 0x2b4   :  { %v2146_v36 = vrot.slane %v2145_v28, 4  ;;  %v2187_v59 = vor.u32 %v2186_v45, %v2183_v0  ;;  %v2192_v31 = vrot.slane %v2190_v49, 5  ;;  %v2116_v23 = vld [vmem:[#allocation2 + $0x34] sm:$0x1] }
 0x2b5   :  { %4140 = vmatmul.bf16.gmra.mxu1 %v5676_v4  ;;  %v2104_v4 = vld [vmem:[#allocation2 + $0x4] sm:$0x1]  ;;  %v595_v44 = vadd.f32 %v594_v18, %v7624_v7 }
 0x2b6   :  { %v2148_v46 = vshll.u32 %v2104_v4, 16  ;;  %v2783_v4 = vld [vmem:[#allocation2 + $0x78] sm:$0xf]  ;;  %v2188_v1 = vrot.slane %v2187_v59, 4 }
 0x2b7   :  { %v7665_v42 = vpop.f32.mrf.mxu0  ;;  %v596_v28 = vadd.f32 %v595_v44, %v7633_v40  ;;  %2799 = vst [vmem:[#allocation3 + $0xd0] sm:$0xf] %v2783_v4  ;;  %v2398_v4 = vld [vmem:[#allocation2 + $0xb0] sm:$0xf] }
 0x2b8   :  { %v2150_v20 = vrot.slane %v2148_v46, 5  ;;  %v5691_v46 = vld [vmem:[#allocation3 + $0xa0] sm:$0xf]  ;;  %v2193_v0 = vsel %vm7673_vm11, %v2188_v1, %v2192_v31  ;;  %2414 = vst [vmem:[#allocation3 + $0x9c] sm:$0xf] %v2398_v4 }
 0x2b9   :  { %v5692_v44 = vor.u32 %v6305_v52, %v5691_v46  ;;  %2381 = vst [vmem:[#allocation3 + $0x74] sm:$0xf] %v2193_v0  ;;  %v2118_v1 = vld [vmem:[#allocation2 + $0x3c] sm:$0x1] }
 0x2ba   :  { %v2151_v53 = vsel %vm7673_vm11, %v2146_v36, %v2150_v20  ;;  %v2113_v36 = vld [vmem:[#allocation2 + $0x28] sm:$0xf]  ;;  %v597_v20 = vadd.f32 %v596_v28, %v7639_v58  ;;  %v2399_v28 = vld [vmem:[#allocation2 + $0xb8] sm:$0xf] }
 0x2bb   :  { %2378 = vst [vmem:[#allocation3 + $0x8] sm:$0xf] %v2151_v53  ;;  %v2209_v61 = vshrl.u32 %v2113_v36, 16  ;;  %v2212_v33 = vshll.u32 %v2113_v36, 16  ;;  %v2220_v36 = vrot.slane %v2218_v6, 5 }
 0x2bc   :  { %v598_v53 = vadd.f32 %v597_v20, %v7645_v29  ;;  %2415 = vst [vmem:[#allocation3 + $0xc0] sm:$0xf] %v2399_v28 }
 0x2bd   :  { %v2214_v49 = vrot.slane %v2212_v33, 5 }
 0x2bf   :  { %v7671_v25 = vpop.f32.mrf.mxu0 }
 0x2c0   :  { %4331 = vmatmul.bf16.gmra.mxu2 %v5656_v27  ;;  %v2169_v27 = vrot.slane %v2167_v51, 4  ;;  %v2198_v51 = vshll.u32 %v2111_v21, 16  ;;  %v2491_v21 = vshrl.u32 %v7690_v55, 16 }
 0x2c2   :  { %v2173_v34 = vor.u32 %v2172_v5, %v2169_v27  ;;  %v2200_v32 = vrot.slane %v2198_v51, 5  ;;  %v2204_v27 = vshll.u32 %v2112_v43, 16  ;;  %v2211_v5 = vrot.slane %v2209_v61, 4  ;;  %v2117_v51 = vld [vmem:[#allocation2 + $0x38] sm:$0xf] }
 0x2c3   :  { %v2784_v61 = vld [vmem:[#allocation2 + $0x80] sm:$0xf]  ;;  %v2240_v0 = vshll.u32 %v2117_v51, 16 }
 0x2c4   :  { %v2174_v10 = vrot.slane %v2173_v34, 4  ;;  %v599_v34 = vadd.f32 %v598_v53, %v7651_v57  ;;  %v2215_v45 = vor.u32 %v2214_v49, %v2211_v5  ;;  %v2206_v59 = vrot.slane %v2204_v27, 5  ;;  %2800 = vst [vmem:[#allocation3 + $0xf4] sm:$0xf] %v2784_v61 }
 0x2c5   :  { %4145 = vmatmul.bf16.gmra.mxu1 %v5712_v24  ;;  %v2223_v53 = vshrl.u32 %v2115_v14, 16  ;;  %v2237_v27 = vshrl.u32 %v2117_v51, 16  ;;  %v2494_v5 = vshll.u32 %v7690_v55, 16  ;;  %v2242_v28 = vrot.slane %v2240_v0, 5  ;;  %v2459_v51 = vld [vmem:[#allocation2 + $0x94] sm:$0x1] }
 0x2c6   :  { %v2179_v18 = vsel %vm7673_vm11, %v2174_v10, %v2178_v35  ;;  %v2201_v35 = vor.u32 %v2200_v32, %v2197_v26  ;;  %v600_v43 = vadd.f32 %v599_v34, %v7657_v12  ;;  %v2216_v52 = vrot.slane %v2215_v45, 4  ;;  %v2785_v26 = vld [vmem:[#allocation2 + $0x88] sm:$0xf]  ;;  %v2460_v45 = vld [vmem:[#allocation2 + $0x98] sm:$0xf] }
 0x2c7   :  { %v7684_v24 = vpop.f32.mrf.mxu0  ;;  %2380 = vst [vmem:[#allocation3 + $0x50] sm:$0xf] %v2179_v18  ;;  %v2226_v32 = vshll.u32 %v2115_v14, 16  ;;  %v2225_v6 = vrot.slane %v2223_v53, 4  ;;  %v2239_v4 = vrot.slane %v2237_v27, 4  ;;  %v2493_v55 = vrot.slane %v2491_v21, 4 }
 0x2c8   :  { %v2202_v10 = vrot.slane %v2201_v35, 4  ;;  %v601_v20 = vadd.f32 %v600_v43, %v7665_v42  ;;  %v2221_v18 = vsel %vm7673_vm11, %v2216_v52, %v2220_v36  ;;  %v2246_v35 = vshll.u32 %v2118_v1, 16  ;;  %2801 = vst [vmem:[#allocation3 + $0x118] sm:$0xf] %v2785_v26  ;;  %v5727_v43 = vld [vmem:[#allocation3 + $0xe8] sm:$0xf] }
 0x2c9   :  { %2383 = vst [vmem:[#allocation3 + $0xbc] sm:$0xf] %v2221_v18  ;;  %v2228_v34 = vrot.slane %v2226_v32, 5  ;;  %v2400_v36 = vld [vmem:[#allocation2 + $0xc0] sm:$0xf]  ;;  %v2496_v26 = vrot.slane %v2494_v5, 5 }
 0x2ca   :  { %v2207_v31 = vsel %vm7673_vm11, %v2202_v10, %v2206_v59  ;;  %v602_v33 = vadd.f32 %v601_v20, %v7671_v25  ;;  %v6314_v10 = vld [vmem:[#allocation3 + $0x108] sm:$0xf0]  ;;  %v2401_v14 = vld [vmem:[#allocation2 + $0xc8] sm:$0xf]  ;;  %2416 = vst [vmem:[#allocation3 + $0xe4] sm:$0xf] %v2400_v36 }
 0x2cb   :  { %2382 = vst [vmem:[#allocation3 + $0x98] sm:$0xf] %v2207_v31  ;;  %v2229_v52 = vor.u32 %v2228_v34, %v2225_v6  ;;  %v2248_v1 = vrot.slane %v2246_v35, 5  ;;  %v2500_v53 = vshll.u32 %v2459_v51, 16  ;;  %v2505_v32 = vshrl.u32 %v2460_v45, 16 }
 0x2cc   :  { %v603_v49 = vadd.f32 %v602_v33, %v7684_v24  ;;  %2417 = vst [vmem:[#allocation3 + $0x108] sm:$0xf] %v2401_v14  ;;  %v2508_v27 = vshll.u32 %v2460_v45, 16  ;;  %v2497_v6 = vor.u32 %v2496_v26, %v2493_v55  ;;  %v5728_v34 = vor.u32 %v6314_v10, %v5727_v43  ;;  %v2747_v36 = vld [vmem:[#allocation2 + $0x10] sm:$0xf] }
 0x2cd   :  { %v2230_v18 = vrot.slane %v2229_v52, 4  ;;  %v2507_v35 = vrot.slane %v2505_v32, 4  ;;  %v2462_v14 = vld [vmem:[#allocation2 + $0xa0] sm:$0xf]  ;;  %2763 = vst [vmem:[#allocation3 + $0x3c] sm:$0xf] %v2747_v36 }
 0x2ce   :  { %v2498_v5 = vrot.slane %v2497_v6, 4  ;;  %v2510_v52 = vrot.slane %v2508_v27, 5  ;;  %v2519_v10 = vshrl.u32 %v2462_v14, 16  ;;  %v2748_v27 = vld [vmem:[#allocation2 + $0x18] sm:$0xf] }
 0x2cf   :  { %v7697_v46 = vpop.f32.mrf.mxu0  ;;  %2764 = vst [vmem:[#allocation3 + $0x60] sm:$0xf] %v2748_v27  ;;  %v2465_v36 = vld [vmem:[#allocation2 + $0xac] sm:$0x1] }
 0x2d0   :  { %4336 = vmatmul.bf16.gmra.mxu2 %v5692_v44  ;;  %v2232_v44 = vshll.u32 %v2116_v23, 16  ;;  %v604_v59 = vadd.f32 %v603_v49, %v7697_v46  ;;  %v2243_v23 = vor.u32 %v2242_v28, %v2239_v4  ;;  %v2461_v49 = vld [vmem:[#allocation2 + $0x9c] sm:$0x1]  ;;  %v2502_v28 = vrot.slane %v2500_v53, 5 }
 0x2d1   :  { %v2514_v45 = vshll.u32 %v2461_v49, 16  ;;  %v2511_v43 = vor.u32 %v2510_v52, %v2507_v35  ;;  %v2521_v26 = vrot.slane %v2519_v10, 4  ;;  %v2749_v49 = vld [vmem:[#allocation2 + $0x20] sm:$0xf]  ;;  %v2750_v35 = vld [vmem:[#allocation2 + $0x28] sm:$0xf] }
 0x2d2   :  { %v2234_v31 = vrot.slane %v2232_v44, 5  ;;  %v2244_v33 = vrot.slane %v2243_v23, 4  ;;  %v2746_v44 = vld [vmem:[#allocation2 + $0x8] sm:$0xf]  ;;  %v2503_v55 = vsel %vm7673_vm11, %v2498_v5, %v2502_v28  ;;  %v2522_v23 = vshll.u32 %v2462_v14, 16 }
 0x2d3   :  { %2762 = vst [vmem:[#allocation3 + $0x18] sm:$0xf] %v2746_v44  ;;  %v2751_v52 = vld [vmem:[#allocation2 + $0x30] sm:$0xf]  ;;  %v2752_v14 = vld [vmem:[#allocation2 + $0x38] sm:$0xf] }
 0x2d4   :  { %v2235_v21 = vsel %vm7673_vm11, %v2230_v18, %v2234_v31  ;;  %v2249_v4 = vsel %vm7673_vm11, %v2244_v33, %v2248_v1  ;;  %2730 = vst [vmem:[#allocation3 + $0x14] sm:$0xf] %v2503_v55  ;;  %v2512_v18 = vrot.slane %v2511_v43, 4  ;;  %v2463_v1 = vld [vmem:[#allocation2 + $0xa4] sm:$0x1]  ;;  %v2524_v33 = vrot.slane %v2522_v23, 5 }
 0x2d5   :  { %2384 = vst [vmem:[#allocation3 + $0xe0] sm:$0xf] %v2235_v21  ;;  %v2528_v53 = vshll.u32 %v2463_v1, 16  ;;  %v2753_v55 = vld [vmem:[#allocation2 + $0x40] sm:$0xf]  ;;  %v2542_v23 = vshll.u32 %v2465_v36, 16 }
 0x2d6   :  { %2385 = vst [vmem:[#allocation3 + $0x104] sm:$0xf] %v2249_v4  ;;  %v2470_v1 = vld [vmem:[#allocation2 + $0xc0] sm:$0xf] }
 0x2d7   :  { %v7708_v20 = vpop.f32.mrf.mxu0  ;;  %v2530_v44 = vrot.slane %v2528_v53, 5  ;;  %2765 = vst [vmem:[#allocation3 + $0x84] sm:$0xf] %v2749_v49  ;;  %v2544_v53 = vrot.slane %v2542_v23, 5  ;;  %v2466_v49 = vld [vmem:[#allocation2 + $0xb0] sm:$0xf] }
 0x2d8   :  { %v605_v61 = vadd.f32 %v604_v59, %v7708_v20  ;;  %2766 = vst [vmem:[#allocation3 + $0xa8] sm:$0xf] %v2750_v35 }
 0x2d9   :  { %2767 = vst [vmem:[#allocation3 + $0xcc] sm:$0xf] %v2751_v52  ;;  %v2550_v52 = vshll.u32 %v2466_v49, 16 }
 0x2da   :  { %v606_v0 = vrot.slane %v605_v61, 4  ;;  %2768 = vst [vmem:[#allocation3 + $0xf0] sm:$0xf] %v2752_v14 }
 0x2db   :  { %2769 = vst [vmem:[#allocation3 + $0x114] sm:$0xf] %v2753_v55 }
 0x2dc   :  { %v607_v59 = vadd.f32 %v606_v0, %v605_v61  ;;  %v2516_v61 = vrot.slane %v2514_v45, 5  ;;  %v2525_v0 = vor.u32 %v2524_v33, %v2521_v26  ;;  %v7721_v45 = vld [vmem:[#allocation2 + $0x8] sm:$0xf] }
 0x2de   :  { %v608_v31 = vrot.slane %v607_v59, 2  ;;  %v2517_v32 = vsel %vm7673_vm11, %v2512_v18, %v2516_v61  ;;  %v2526_v6 = vrot.slane %v2525_v0, 4 }
 0x2df   :  { %2731 = vst [vmem:[#allocation3 + $0x38] sm:$0xf] %v2517_v32 }
 0x2e0   :  { %4341 = vmatmul.bf16.gmra.mxu2 %v5728_v34  ;;  %v609_v51 = vadd.f32 %v608_v31, %v607_v59  ;;  %v2464_v34 = vld [vmem:[#allocation2 + $0xa8] sm:$0xf]  ;;  %v2531_v4 = vsel %vm7673_vm11, %v2526_v6, %v2530_v44  ;;  %v2467_v6 = vld [vmem:[#allocation2 + $0xb4] sm:$0x1]  ;;  %v2468_v44 = vld [vmem:[#allocation2 + $0xb8] sm:$0xf] }
 0x2e1   :  { %2732 = vst [vmem:[#allocation3 + $0x5c] sm:$0xf] %v2531_v4  ;;  %v2533_v59 = vshrl.u32 %v2464_v34, 16  ;;  %v2536_v5 = vshll.u32 %v2464_v34, 16  ;;  %v2556_v36 = vshll.u32 %v2467_v6, 16  ;;  %v2561_v14 = vshrl.u32 %v2468_v44, 16 }
 0x2e2   :  { %v610_v21 = vrot.slane %v609_v51, 1 }
 0x2e3   :  { %v2535_v43 = vrot.slane %v2533_v59, 4  ;;  %v2538_v10 = vrot.slane %v2536_v5, 5  ;;  %v2547_v5 = vshrl.u32 %v2466_v49, 16  ;;  %v2558_v49 = vrot.slane %v2556_v36, 5  ;;  %v2812_v36 = vld [vmem:[#allocation2 + $0x10] sm:$0xf] }
 0x2e4   :  { %v611_v28 = vadd.f32 %v610_v21, %v609_v51  ;;  %v2472_v51 = vld [vmem:[#allocation2 + $0xc8] sm:$0xf] }
 0x2e5   :  { %v2539_v33 = vor.u32 %v2538_v10, %v2535_v43  ;;  %v2564_v10 = vshll.u32 %v2468_v44, 16  ;;  %v2549_v39 = vrot.slane %v2547_v5, 4 }
 0x2e6   :  { %v7723_v31 = vmul.f32 0.00390625, %v611_v28 }
 0x2e7   :  { %v2540_v59 = vrot.slane %v2539_v33, 4  ;;  %v2563_v33 = vrot.slane %v2561_v14, 4  ;;  %v2566_v6 = vrot.slane %v2564_v10, 5  ;;  %v2811_v10 = vld [vmem:[#allocation2 + $0xc] sm:$0x1] }
 0x2e8   :  { %v7728_v18 = vsub.f32 %v7073_v54, %v7723_v31  ;;  %v7732_v61 = vsub.f32 %v7087_v15, %v7723_v31  ;;  %v7737_v26 = vsub.f32 %v7089_v47, %v7723_v31  ;;  %v7741_v32 = vsub.f32 %v7093_v50, %v7723_v31 }
 0x2e9   :  { %v7745_v54 = vsub.f32 %v7100_v60, %v7723_v31  ;;  %v7749_v15 = vsub.f32 %v7114_v13, %v7723_v31  ;;  %v7753_v27 = vsub.f32 %v7116_v9, %v7723_v31  ;;  %v7757_v47 = vsub.f32 %v7166_v37, %v7723_v31 }
 0x2ea   :  { %9232 = vst [vmem:[#allocation9_spill] sm:$0xff] %v7741_v32  ;;  %v7761_v50 = vsub.f32 %v7211_v62, %v7723_v31  ;;  %v7765_v60 = vsub.f32 %v7241_v41, %v7723_v31  ;;  %v7769_v13 = vsub.f32 %v7287_v48, %v7723_v31  ;;  %v7773_v9 = vsub.f32 %v7327_v16, %v7723_v31 }
 0x2eb   :  { %9233 = vst [vmem:[#allocation10_spill] sm:$0xff] %v7745_v54  ;;  %v7777_v37 = vsub.f32 %v7375_v63, %v7723_v31  ;;  %v710_v62 = vmul.f32 %v7728_v18, %v7728_v18  ;;  %v711_v0 = vmul.f32 %v7732_v61, %v7732_v61  ;;  %v7785_v41 = vsub.f32 %v7422_v38, %v7723_v31 }
 0x2ec   :  { %9234 = vst [vmem:[#allocation11_spill] sm:$0xff] %v7749_v15  ;;  %v7789_v48 = vsub.f32 %v7447_v22, %v7723_v31  ;;  %v7793_v16 = vsub.f32 %v7480_v8, %v7723_v31  ;;  %v7797_v63 = vsub.f32 %v7510_v30, %v7723_v31  ;;  %v7801_v21 = vsub.f32 %v7542_v19, %v7723_v31 }
 0x2ed   :  { %9235 = vst [vmem:[#allocation12_spill] sm:$0xff] %v7753_v27  ;;  %v7805_v38 = vsub.f32 %v7566_v11, %v7723_v31  ;;  %v7809_v22 = vsub.f32 %v7590_v2, %v7723_v31  ;;  %v712_v8 = vmul.f32 %v7737_v26, %v7737_v26  ;;  %v713_v30 = vmul.f32 %v7741_v32, %v7741_v32  ;;  %v2469_v2 = vld [vmem:[#allocation2 + $0xbc] sm:$0x1] }
 0x2ee   :  { %9236 = vst [vmem:[#allocation13_spill] sm:$0xff] %v7757_v47  ;;  %v714_v19 = vmul.f32 %v7745_v54, %v7745_v54  ;;  %v715_v11 = vmul.f32 %v7749_v15, %v7749_v15  ;;  %v716_v34 = vmul.f32 %v7753_v27, %v7753_v27  ;;  %v717_v4 = vmul.f32 %v7757_v47, %v7757_v47 }
 0x2ef   :  { %9237 = vst [vmem:[#allocation14_spill] sm:$0xff] %v7761_v50  ;;  %v7825_v28 = vmul.f32 %v7761_v50, %v7761_v50  ;;  %v779_v35 = vadd.f32 %v711_v0, %v710_v62  ;;  %v2545_v43 = vsel %vm7673_vm11, %v2540_v59, %v2544_v53  ;;  %v2570_v23 = vshll.u32 %v2469_v2, 16  ;;  %v2471_v53 = vld [vmem:[#allocation2 + $0xc4] sm:$0x1] }
 0x2f0   :  { %9238 = vst [vmem:[#allocation15_spill] sm:$0xff] %v7765_v60  ;;  %v7831_v17 = vmul.f32 %v7765_v60, %v7765_v60  ;;  %v2552_v62 = vrot.slane %v2550_v52, 5  ;;  %v7835_v0 = vmul.f32 %v7769_v13, %v7769_v13  ;;  %v2578_v59 = vshll.u32 %v2470_v1, 16  ;;  %v2473_v60 = vld [vmem:[#allocation2 + $0xcc] sm:$0x1] }
 0x2f1   :  { %9239 = vst [vmem:[#allocation16_spill] sm:$0xff] %v7769_v13  ;;  %v780_v55 = vadd.f32 %v779_v35, %v712_v8  ;;  %v2572_v2 = vrot.slane %v2570_v23, 5  ;;  %v2575_v35 = vshrl.u32 %v2470_v1, 16  ;;  %v2567_v47 = vor.u32 %v2566_v6, %v2563_v33 }
 0x2f2   :  { %2733 = vst [vmem:[#allocation3 + $0x80] sm:$0xf] %v2545_v43  ;;  %v2553_v44 = vor.u32 %v2552_v62, %v2549_v39  ;;  %v2589_v27 = vshrl.u32 %v2472_v51, 16  ;;  %v2592_v43 = vshll.u32 %v2472_v51, 16  ;;  %v2580_v14 = vrot.slane %v2578_v59, 5 }
 0x2f3   :  { %v781_v8 = vadd.f32 %v780_v55, %v713_v30  ;;  %v2577_v52 = vrot.slane %v2575_v35, 4  ;;  %v2584_v15 = vshll.u32 %v2471_v53, 16  ;;  %v2568_v13 = vrot.slane %v2567_v47, 4  ;;  %v2816_v59 = vld [vmem:[#allocation2 + $0x20] sm:$0xf] }
 0x2f4   :  { %v2554_v5 = vrot.slane %v2553_v44, 4  ;;  %v2591_v32 = vrot.slane %v2589_v27, 4  ;;  %v2594_v30 = vrot.slane %v2592_v43, 5  ;;  %v721_v39 = vmul.f32 %v7773_v9, %v7773_v9 }
 0x2f5   :  { %v782_v50 = vadd.f32 %v781_v8, %v714_v19  ;;  %v2581_v19 = vor.u32 %v2580_v14, %v2577_v52  ;;  %v2598_v55 = vshll.u32 %v2473_v60, 16  ;;  %v2573_v51 = vsel %vm7673_vm11, %v2568_v13, %v2572_v2 }
 0x2f6   :  { %v2559_v1 = vsel %vm7673_vm11, %v2554_v5, %v2558_v49  ;;  %v2595_v62 = vor.u32 %v2594_v30, %v2591_v32  ;;  %v9240_v27 = vshrl.u32 %v7721_v45, 16  ;;  %2735 = vst [vmem:[#allocation3 + $0xc8] sm:$0xf] %v2573_v51  ;;  %v2586_v33 = vrot.slane %v2584_v15, 5  ;;  %v2815_v5 = vld [vmem:[#allocation2 + $0x1c] sm:$0x1] }
 0x2f7   :  { %v783_v54 = vadd.f32 %v782_v50, %v715_v11  ;;  %2734 = vst [vmem:[#allocation3 + $0xa4] sm:$0xf] %v2559_v1  ;;  %v2813_v50 = vld [vmem:[#allocation2 + $0x14] sm:$0x1]  ;;  %v2582_v11 = vrot.slane %v2581_v19, 4  ;;  %v2600_v8 = vrot.slane %v2598_v55, 5  ;;  %v722_v13 = vmul.f32 %v7777_v37, %v7777_v37 }
 0x2f8   :  { %v2845_v47 = vrot.slane %v9240_v27, 4  ;;  %v9241_v6 = vshll.u32 %v7721_v45, 16  ;;  %v2596_v60 = vrot.slane %v2595_v62, 4  ;;  %v2852_v44 = vshll.u32 %v2811_v10, 16  ;;  %v2817_v51 = vld [vmem:[#allocation2 + $0x24] sm:$0x1] }
 0x2f9   :  { %v784_v23 = vadd.f32 %v783_v54, %v716_v34  ;;  %v2857_v54 = vshrl.u32 %v2812_v36, 16  ;;  %v2814_v34 = vld [vmem:[#allocation2 + $0x18] sm:$0xf]  ;;  %v2587_v32 = vsel %vm7673_vm11, %v2582_v11, %v2586_v33  ;;  %v2860_v35 = vshll.u32 %v2812_v36, 16  ;;  %v2818_v27 = vld [vmem:[#allocation2 + $0x28] sm:$0xf] }
 0x2fa   :  { %v2848_v49 = vrot.slane %v9241_v6, 5  ;;  %v2601_v45 = vsel %vm7673_vm11, %v2596_v60, %v2600_v8  ;;  %2736 = vst [vmem:[#allocation3 + $0xec] sm:$0xf] %v2587_v32  ;;  %v2866_v43 = vshll.u32 %v2813_v50, 16  ;;  %v2854_v14 = vrot.slane %v2852_v44, 5 }
 0x2fb   :  { %v785_v53 = vadd.f32 %v784_v23, %v717_v4  ;;  %v2859_v4 = vrot.slane %v2857_v54, 4  ;;  %2737 = vst [vmem:[#allocation3 + $0x110] sm:$0xf] %v2601_v45  ;;  %v2862_v30 = vrot.slane %v2860_v35, 5  ;;  %v2871_v1 = vshrl.u32 %v2814_v34, 16 }
 0x2fc   :  { %v2849_v2 = vor.u32 %v2848_v49, %v2845_v47  ;;  %v723_v19 = vmul.f32 %v7785_v41, %v7785_v41  ;;  %v2874_v55 = vshll.u32 %v2814_v34, 16  ;;  %v2885_v10 = vshrl.u32 %v2816_v59, 16  ;;  %v2819_v6 = vld [vmem:[#allocation2 + $0x2c] sm:$0x1] }
 0x2fd   :  { %v786_v15 = vadd.f32 %v785_v53, %v7825_v28  ;;  %v2863_v23 = vor.u32 %v2862_v30, %v2859_v4  ;;  %v2873_v62 = vrot.slane %v2871_v1, 4  ;;  %v2888_v50 = vshll.u32 %v2816_v59, 16  ;;  %v2820_v59 = vld [vmem:[#allocation2 + $0x30] sm:$0xf]  ;;  %v2822_v1 = vld [vmem:[#allocation2 + $0x38] sm:$0xf] }
 0x2fe   :  { %v2850_v52 = vrot.slane %v2849_v2, 4  ;;  %v724_v47 = vmul.f32 %v7789_v48, %v7789_v48  ;;  %v2876_v33 = vrot.slane %v2874_v55, 5  ;;  %v2880_v8 = vshll.u32 %v2815_v5, 16 }
 0x2ff   :  { %v787_v36 = vadd.f32 %v786_v15, %v7831_v17  ;;  %v2864_v17 = vrot.slane %v2863_v23, 4  ;;  %v2868_v49 = vrot.slane %v2866_v43, 5  ;;  %v2887_v53 = vrot.slane %v2885_v10, 4 }
 0x300   :  { %v2855_v28 = vsel %vm7673_vm11, %v2850_v52, %v2854_v14  ;;  %v2890_v60 = vrot.slane %v2888_v50, 5  ;;  %v2877_v54 = vor.u32 %v2876_v33, %v2873_v62  ;;  %v2894_v34 = vshll.u32 %v2817_v51, 16  ;;  %v2823_v51 = vld [vmem:[#allocation2 + $0x3c] sm:$0x1] }
 0x301   :  { %v788_v11 = vadd.f32 %v787_v36, %v7835_v0  ;;  %3082 = vst [vmem:[#allocation3 + $0x20] sm:$0xf] %v2855_v28  ;;  %v2899_v32 = vshrl.u32 %v2818_v27, 16  ;;  %v2869_v2 = vsel %vm7673_vm11, %v2864_v17, %v2868_v49  ;;  %v2902_v15 = vshll.u32 %v2818_v27, 16  ;;  %v2821_v28 = vld [vmem:[#allocation2 + $0x34] sm:$0x1] }
 0x302   :  { %v2891_v35 = vor.u32 %v2890_v60, %v2887_v53  ;;  %v2908_v45 = vshll.u32 %v2819_v6, 16  ;;  %v725_v0 = vmul.f32 %v7793_v16, %v7793_v16  ;;  %3083 = vst [vmem:[#allocation3 + $0x44] sm:$0xf] %v2869_v2  ;;  %v2878_v5 = vrot.slane %v2877_v54, 4  ;;  %v2825_v54 = vld [vmem:[#allocation2 + $0x44] sm:$0x1] }
 0x303   :  { %v789_v44 = vadd.f32 %v788_v11, %v721_v39  ;;  %v2882_v43 = vrot.slane %v2880_v8, 5  ;;  %v2896_v14 = vrot.slane %v2894_v34, 5  ;;  %v2901_v39 = vrot.slane %v2899_v32, 4  ;;  %v2824_v11 = vld [vmem:[#allocation2 + $0x40] sm:$0xf] }
 0x304   :  { %v2892_v52 = vrot.slane %v2891_v35, 4  ;;  %v2904_v30 = vrot.slane %v2902_v15, 5  ;;  %v726_v36 = vmul.f32 %v7797_v63, %v7797_v63  ;;  %v2913_v23 = vshrl.u32 %v2820_v59, 16 }
 0x305   :  { %v790_v4 = vadd.f32 %v789_v44, %v722_v13  ;;  %v2883_v10 = vsel %vm7673_vm11, %v2878_v5, %v2882_v43  ;;  %v2910_v50 = vrot.slane %v2908_v45, 5  ;;  %v2916_v27 = vshll.u32 %v2820_v59, 16 }
 0x306   :  { %v2897_v13 = vsel %vm7673_vm11, %v2892_v52, %v2896_v14  ;;  %3084 = vst [vmem:[#allocation3 + $0x68] sm:$0xf] %v2883_v10  ;;  %v2905_v62 = vor.u32 %v2904_v30, %v2901_v39  ;;  %v2915_v8 = vrot.slane %v2913_v23, 4  ;;  %v2927_v6 = vshrl.u32 %v2822_v1, 16 }
 0x307   :  { %v791_v55 = vadd.f32 %v790_v4, %v723_v19  ;;  %3085 = vst [vmem:[#allocation3 + $0x8c] sm:$0xf] %v2897_v13  ;;  %v2930_v17 = vshll.u32 %v2822_v1, 16  ;;  %v2918_v49 = vrot.slane %v2916_v27, 5  ;;  %v2922_v53 = vshll.u32 %v2821_v28, 16 }
 0x308   :  { %v2906_v19 = vrot.slane %v2905_v62, 4  ;;  %v2936_v60 = vshll.u32 %v2823_v51, 16  ;;  %v2929_v34 = vrot.slane %v2927_v6, 4  ;;  %v2941_v2 = vshrl.u32 %v2824_v11, 16 }
 0x309   :  { %v792_v33 = vadd.f32 %v791_v55, %v724_v47  ;;  %v2932_v32 = vrot.slane %v2930_v17, 5  ;;  %v7874_v35 = vsub.f32 %v7612_v3, %v7723_v31  ;;  %v2919_v59 = vor.u32 %v2918_v49, %v2915_v8 }
 0x30a   :  { %v2911_v47 = vsel %vm7673_vm11, %v2906_v19, %v2910_v50  ;;  %v2944_v15 = vshll.u32 %v2824_v11, 16  ;;  %v727_v45 = vmul.f32 %v7801_v21, %v7801_v21  ;;  %v2924_v52 = vrot.slane %v2922_v53, 5 }
 0x30b   :  { %v793_v44 = vadd.f32 %v792_v33, %v725_v0  ;;  %3086 = vst [vmem:[#allocation3 + $0xb0] sm:$0xf] %v2911_v47  ;;  %v2933_v5 = vor.u32 %v2932_v32, %v2929_v34  ;;  %v2943_v0 = vrot.slane %v2941_v2, 4  ;;  %v2920_v43 = vrot.slane %v2919_v59, 4 }
 0x30c   :  { %v2946_v14 = vrot.slane %v2944_v15, 5  ;;  %v2950_v39 = vshll.u32 %v2825_v54, 16  ;;  %v728_v3 = vmul.f32 %v7805_v38, %v7805_v38  ;;  %v2938_v55 = vrot.slane %v2936_v60, 5 }
 0x30d   :  { %v794_v4 = vadd.f32 %v793_v44, %v726_v36  ;;  %v2934_v1 = vrot.slane %v2933_v5, 4  ;;  %v2925_v10 = vsel %vm7673_vm11, %v2920_v43, %v2924_v52  ;;  %v7886_v36 = vsub.f32 %v7624_v7, %v7723_v31 }
 0x30e   :  { %v2947_v28 = vor.u32 %v2946_v14, %v2943_v0  ;;  %v729_v23 = vmul.f32 %v7809_v22, %v7809_v22  ;;  %3087 = vst [vmem:[#allocation3 + $0xd4] sm:$0xf] %v2925_v10  ;;  %v2952_v50 = vrot.slane %v2950_v39, 5  ;;  %v7894_v27 = vsub.f32 %v7633_v40, %v7723_v31 }
 0x30f   :  { %v795_v30 = vadd.f32 %v794_v4, %v727_v45  ;;  %v2939_v13 = vsel %vm7673_vm11, %v2934_v1, %v2938_v55  ;;  %v730_v11 = vmul.f32 %v7874_v35, %v7874_v35  ;;  %v7902_v6 = vsub.f32 %v7639_v58, %v7723_v31 }
 0x310   :  { %v2948_v62 = vrot.slane %v2947_v28, 4  ;;  %3088 = vst [vmem:[#allocation3 + $0xf8] sm:$0xf] %v2939_v13  ;;  %v731_v17 = vmul.f32 %v7886_v36, %v7886_v36  ;;  %v7908_v40 = vsub.f32 %v7645_v29, %v7723_v31  ;;  %v732_v49 = vmul.f32 %v7894_v27, %v7894_v27 }
 0x311   :  { %v796_v51 = vadd.f32 %v795_v30, %v728_v3  ;;  %v7916_v58 = vsub.f32 %v7651_v57, %v7723_v31  ;;  %v733_v54 = vmul.f32 %v7902_v6, %v7902_v6  ;;  %v7922_v32 = vsub.f32 %v7657_v12, %v7723_v31 }
 0x312   :  { %v2953_v8 = vsel %vm7673_vm11, %v2948_v62, %v2952_v50  ;;  %v4131_v60 = vpop.f32.mrf.mxu1  ;;  %v734_v29 = vmul.f32 %v7908_v40, %v7908_v40  ;;  %v7928_v47 = vsub.f32 %v7665_v42, %v7723_v31  ;;  %v7936_v45 = vsub.f32 %v7671_v25, %v7723_v31 }
 0x313   :  { %v797_v7 = vadd.f32 %v796_v51, %v729_v23  ;;  %v4180_v33 = vpop.f32.mrf.mxu2  ;;  %3089 = vst [vmem:[#allocation3 + $0x11c] sm:$0xf] %v2953_v8  ;;  %v735_v57 = vmul.f32 %v7916_v58, %v7916_v58  ;;  %v736_v12 = vmul.f32 %v7922_v32, %v7922_v32  ;;  %v7944_v42 = vsub.f32 %v7684_v24, %v7723_v31 }
 0x314   :  { %v7912_v44 = vadd.f32 %v4180_v33, %v4131_v60  ;;  %v737_v0 = vmul.f32 %v7928_v47, %v7928_v47  ;;  %v7950_v52 = vsub.f32 %v7697_v46, %v7723_v31  ;;  %v738_v25 = vmul.f32 %v7936_v45, %v7936_v45 }
 0x315   :  { %v798_v19 = vadd.f32 %v797_v7, %v730_v11  ;;  %v677_v39 = vsub.f32 %v7708_v20, %v7723_v31  ;;  %v739_v3 = vmul.f32 %v7944_v42, %v7944_v42  ;;  %v4190_v11 = vpop.f32.mrf.mxu3 }
 0x316   :  { %v740_v1 = vmul.f32 %v7950_v52, %v7950_v52 }
 0x317   :  { %v799_v53 = vadd.f32 %v798_v19, %v731_v17  ;;  %v741_v46 = vmul.f32 %v677_v39, %v677_v39 }
 0x319   :  { %v800_v34 = vadd.f32 %v799_v53, %v732_v49 }
 0x31a   :  { %v7940_v5 = vpop.f32.mrf.mxu1 }
 0x31b   :  { %v801_v2 = vadd.f32 %v800_v34, %v733_v54  ;;  %v7932_v15 = vpop.f32.mrf.mxu2 }
 0x31d   :  { %v802_v59 = vadd.f32 %v801_v2, %v734_v29  ;;  %v7966_v53 = vpop.f32.mrf.mxu3 }
 0x31f   :  { %v803_v4 = vadd.f32 %v802_v59, %v735_v57 }
 0x321   :  { %v804_v43 = vadd.f32 %v803_v4, %v736_v12 }
 0x322   :  { %v4136_v10 = vpop.f32.mrf.mxu1 }
 0x323   :  { %v805_v14 = vadd.f32 %v804_v43, %v737_v0  ;;  %v4185_v30 = vpop.f32.mrf.mxu2 }
 0x324   :  { %v7960_v28 = vadd.f32 %v4185_v30, %v4136_v10 }
 0x325   :  { %v806_v24 = vadd.f32 %v805_v14, %v738_v25  ;;  %v4195_v2 = vpop.f32.mrf.mxu3  ;;  %v7975_v14 = vld [vmem:[%s9201_s4] ss:$0 sm:$0xff]  ;;  %s5429_s4 = sshll.u32 %s9211_s14, 4  ;;  %s5430_s4 = int_to_ptr.hbm [resolvable:$true] %s5429_s4 }
 0x327   :  { %v807_v55 = vadd.f32 %v806_v24, %v739_v3  ;;  %v7981_v24 = vld [vmem:[%s9202_s5] ss:$0 sm:$0xff] }
 0x329   :  { %v808_v23 = vadd.f32 %v807_v55, %v740_v1 }
 0x32a   :  { %v7962_v50 = vpop.f32.mrf.mxu1 }
 0x32b   :  { %v809_v51 = vadd.f32 %v808_v23, %v741_v46  ;;  %v9242_v46 = vld [vmem:[#allocation9_spill] sm:$0xff] }
 0x32d   :  { %v810_v13 = vrot.slane %v809_v51, 4 }
 0x32f   :  { %v811_v62 = vadd.f32 %v810_v13, %v809_v51  ;;  %v9243_v51 = vld [vmem:[#allocation10_spill] sm:$0xff] }
 0x331   :  { %v812_v20 = vrot.slane %v811_v62, 2 }
 0x332   :  { %v4141_v8 = vpop.f32.mrf.mxu1 }
 0x333   :  { %v813_v31 = vadd.f32 %v812_v20, %v811_v62  ;;  %v7964_v17 = vadd.f32 %v4190_v11, %v4141_v8  ;;  %v9244_v20 = vld [vmem:[#allocation11_spill] sm:$0xff]  ;;  %v9245_v11 = vld [vmem:[#allocation12_spill] sm:$0xff] }
 0x335   :  { %v814_v7 = vrot.slane %v813_v31, 1 }
 0x337   :  { %v815_v33 = vadd.f32 %v814_v7, %v813_v31 }
 0x339   :  { %v817_v19 = vmul.f32 0.00390625, %v815_v33  ;;  %v9246_v33 = vld [vmem:[#allocation13_spill] sm:$0xff] }
 0x33a   :  { %v7968_v60 = vpop.f32.mrf.mxu1 }
 0x33b   :  { %v819_v49 = vadd.f32 1e-06, %v817_v19  ;;  %v9247_v19 = vld [vmem:[#allocation14_spill] sm:$0xff] }
 0x33d   :  { %6463 = vrsqrt.f32 %v819_v49  ;;  %vm836_vm13 = vweird.f32 %v819_v49 }
 0x342   :  { %v4146_v57 = vpop.f32.mrf.mxu1 }
 0x343   :  { %v6464_v54 = vpop.eup %6463  ;;  %v7970_v12 = vadd.f32 %v4195_v2, %v4146_v57 }
 0x344   :  { %v831_v34 = vmul.f32 %v6464_v54, %v819_v49  ;;  %vm837_vm12 = vweird.f32 %v6464_v54 }
 0x345   :  { %vm838_vm14 = vmor %vm836_vm13, %vm837_vm12 }
 0x346   :  { %v832_v29 = vmul.f32 %v6464_v54, %v831_v34 }
 0x348   :  { %v833_v59 = vmul.f32 0.5, %v832_v29 }
 0x34a   :  { %v834_v4 = vsub.f32 1.5, %v833_v59 }
 0x34c   :  { %v835_v0 = vmul.f32 %v6464_v54, %v834_v4 }
 0x34e   :  { %v839_v43 = vsel %vm838_vm14, %v6464_v54, %v835_v0  ;;  %v9248_v54 = vld [vmem:[#allocation15_spill] sm:$0xff] }
 0x34f   :  { %v903_v25 = vmul.f32 %v839_v43, %v677_v39  ;;  %v872_v55 = vmul.f32 %v839_v43, %v7728_v18  ;;  %v873_v10 = vmul.f32 %v839_v43, %v7732_v61  ;;  %v874_v39 = vmul.f32 %v839_v43, %v7737_v26  ;;  %v9249_v18 = vld [vmem:[#allocation16_spill] sm:$0xff] }
 0x350   :  { %v875_v23 = vmul.f32 %v839_v43, %v9242_v46  ;;  %v876_v13 = vmul.f32 %v839_v43, %v9243_v51  ;;  %v877_v31 = vmul.f32 %v839_v43, %v9244_v20  ;;  %v878_v7 = vmul.f32 %v839_v43, %v9245_v11 }
 0x351   :  { %v971_v3 = vmul.f32 %v7975_v14, %v903_v25  ;;  %v879_v8 = vmul.f32 %v839_v43, %v9246_v33  ;;  %v880_v49 = vmul.f32 %v839_v43, %v9247_v19  ;;  %v881_v34 = vmul.f32 %v839_v43, %v9248_v54 }
 0x352   :  { %v882_v29 = vmul.f32 %v839_v43, %v9249_v18  ;;  %v883_v61 = vmul.f32 %v839_v43, %v7773_v9  ;;  %v884_v26 = vmul.f32 %v839_v43, %v7777_v37  ;;  %v885_v2 = vmul.f32 %v839_v43, %v7785_v41 }
 0x353   :  { %v1039_v30 = vadd.f32 %v7981_v24, %v971_v3  ;;  %v886_v57 = vmul.f32 %v839_v43, %v7789_v48  ;;  %v887_v59 = vmul.f32 %v839_v43, %v7793_v16  ;;  %v888_v4 = vmul.f32 %v839_v43, %v7797_v63 }
 0x354   :  { %v889_v0 = vmul.f32 %v839_v43, %v7801_v21  ;;  %v890_v25 = vmul.f32 %v839_v43, %v7805_v38  ;;  %v891_v3 = vmul.f32 %v839_v43, %v7809_v22  ;;  %v893_v9 = vmul.f32 %v839_v43, %v7886_v36 }
 0x355   :  { %v1103_v1 = vmax.f32 %v1039_v30, 0.0  ;;  %v892_v30 = vmul.f32 %v839_v43, %v7874_v35  ;;  %v894_v37 = vmul.f32 %v839_v43, %v7894_v27  ;;  %v895_v41 = vmul.f32 %v839_v43, %v7902_v6 }
 0x356   :  { %v896_v48 = vmul.f32 %v839_v43, %v7908_v40  ;;  %v897_v16 = vmul.f32 %v839_v43, %v7916_v58  ;;  %v898_v63 = vmul.f32 %v839_v43, %v7922_v32  ;;  %v8012_v21 = vmul.f32 %v839_v43, %v7928_v47 }
 0x357   :  { %v1167_v62 = vpack.c.bf16 %v1103_v1, %v1103_v1  ;;  %v8015_v38 = vmul.f32 %v839_v43, %v7936_v45  ;;  %v8018_v22 = vmul.f32 %v839_v43, %v7944_v42  ;;  %v8021_v35 = vmul.f32 %v839_v43, %v7950_v52 }
 0x358   :  { %v940_v36 = vmul.f32 %v7975_v14, %v872_v55  ;;  %v941_v27 = vmul.f32 %v7975_v14, %v873_v10  ;;  %v942_v6 = vmul.f32 %v7975_v14, %v874_v39  ;;  %v943_v40 = vmul.f32 %v7975_v14, %v875_v23 }
 0x359   :  { %2037 = vst [vmem:[#allocation2 + $0x230] sm:$0xf] %v1167_v62  ;;  %v944_v58 = vmul.f32 %v7975_v14, %v876_v13  ;;  %v945_v32 = vmul.f32 %v7975_v14, %v877_v31  ;;  %v946_v47 = vmul.f32 %v7975_v14, %v878_v7  ;;  %v947_v45 = vmul.f32 %v7975_v14, %v879_v8 }
 0x35a   :  { %v948_v42 = vmul.f32 %v7975_v14, %v880_v49  ;;  %v949_v52 = vmul.f32 %v7975_v14, %v881_v34  ;;  %v950_v43 = vmul.f32 %v7975_v14, %v882_v29  ;;  %v951_v1 = vmul.f32 %v7975_v14, %v883_v61 }
 0x35b   :  { %v952_v55 = vmul.f32 %v7975_v14, %v884_v26  ;;  %v953_v10 = vmul.f32 %v7975_v14, %v885_v2  ;;  %v954_v39 = vmul.f32 %v7975_v14, %v886_v57  ;;  %v955_v46 = vmul.f32 %v7975_v14, %v887_v59 }
 0x35c   :  { %v956_v23 = vmul.f32 %v7975_v14, %v888_v4  ;;  %v957_v51 = vmul.f32 %v7975_v14, %v889_v0  ;;  %v958_v13 = vmul.f32 %v7975_v14, %v890_v25  ;;  %v959_v62 = vmul.f32 %v7975_v14, %v891_v3 }
 0x35d   :  { %v960_v20 = vmul.f32 %v7975_v14, %v892_v30  ;;  %v961_v31 = vmul.f32 %v7975_v14, %v893_v9  ;;  %v962_v11 = vmul.f32 %v7975_v14, %v894_v37  ;;  %v963_v7 = vmul.f32 %v7975_v14, %v895_v41 }
 0x35e   :  { %v964_v33 = vmul.f32 %v7975_v14, %v896_v48  ;;  %v965_v8 = vmul.f32 %v7975_v14, %v897_v16  ;;  %v966_v19 = vmul.f32 %v7975_v14, %v898_v63  ;;  %v1008_v49 = vadd.f32 %v7981_v24, %v940_v36 }
 0x35f   :  { %v1009_v54 = vadd.f32 %v7981_v24, %v941_v27  ;;  %v1010_v34 = vadd.f32 %v7981_v24, %v942_v6  ;;  %v1011_v18 = vadd.f32 %v7981_v24, %v943_v40  ;;  %v1012_v29 = vadd.f32 %v7981_v24, %v944_v58 }
 0x360   :  { %v1013_v61 = vadd.f32 %v7981_v24, %v945_v32  ;;  %v8057_v26 = vadd.f32 %v7981_v24, %v946_v47  ;;  %v8060_v2 = vadd.f32 %v7981_v24, %v947_v45  ;;  %v1016_v57 = vadd.f32 %v7981_v24, %v948_v42 }
 0x361   :  { %v1017_v59 = vadd.f32 %v7981_v24, %v949_v52  ;;  %v1018_v4 = vadd.f32 %v7981_v24, %v950_v43  ;;  %v1019_v0 = vadd.f32 %v7981_v24, %v951_v1  ;;  %v1020_v25 = vadd.f32 %v7981_v24, %v952_v55 }
 0x362   :  { %v1021_v3 = vadd.f32 %v7981_v24, %v953_v10  ;;  %v1022_v30 = vadd.f32 %v7981_v24, %v954_v39  ;;  %v1023_v9 = vadd.f32 %v7981_v24, %v955_v46  ;;  %v1024_v37 = vadd.f32 %v7981_v24, %v956_v23 }
 0x363   :  { %v1025_v41 = vadd.f32 %v7981_v24, %v957_v51  ;;  %v1026_v48 = vadd.f32 %v7981_v24, %v958_v13  ;;  %v8074_v16 = vadd.f32 %v7981_v24, %v959_v62  ;;  %v8077_v63 = vadd.f32 %v7981_v24, %v960_v20 }
 0x364   :  { %v8080_v36 = vadd.f32 %v7981_v24, %v961_v31  ;;  %v8083_v27 = vadd.f32 %v7981_v24, %v962_v11  ;;  %v8086_v6 = vadd.f32 %v7981_v24, %v963_v7  ;;  %v1032_v40 = vadd.f32 %v7981_v24, %v964_v33 }
 0x365   :  { %v1033_v58 = vadd.f32 %v7981_v24, %v965_v8  ;;  %v1034_v32 = vadd.f32 %v7981_v24, %v966_v19  ;;  %v1072_v47 = vmax.f32 %v1008_v49, 0.0  ;;  %v1073_v45 = vmax.f32 %v1009_v54, 0.0 }
 0x366   :  { %v1074_v42 = vmax.f32 %v1010_v34, 0.0  ;;  %v1075_v52 = vmax.f32 %v1011_v18, 0.0  ;;  %v1076_v43 = vmax.f32 %v1012_v29, 0.0  ;;  %v1077_v1 = vmax.f32 %v1013_v61, 0.0 }
 0x367   :  { %v1078_v55 = vmax.f32 %v8057_v26, 0.0  ;;  %v1079_v10 = vmax.f32 %v8060_v2, 0.0  ;;  %v1080_v39 = vmax.f32 %v1016_v57, 0.0  ;;  %v1081_v46 = vmax.f32 %v1017_v59, 0.0 }
 0x368   :  { %v1082_v23 = vmax.f32 %v1018_v4, 0.0  ;;  %v1083_v51 = vmax.f32 %v1019_v0, 0.0  ;;  %v1084_v13 = vmax.f32 %v1020_v25, 0.0  ;;  %v1085_v62 = vmax.f32 %v1021_v3, 0.0 }
 0x369   :  { %v1086_v20 = vmax.f32 %v1022_v30, 0.0  ;;  %v1087_v31 = vmax.f32 %v1023_v9, 0.0  ;;  %v1088_v11 = vmax.f32 %v1024_v37, 0.0  ;;  %v1089_v7 = vmax.f32 %v1025_v41, 0.0 }
 0x36a   :  { %v1090_v33 = vmax.f32 %v1026_v48, 0.0  ;;  %v1091_v8 = vmax.f32 %v8074_v16, 0.0  ;;  %v1092_v19 = vmax.f32 %v8077_v63, 0.0  ;;  %v1093_v49 = vmax.f32 %v8080_v36, 0.0  ;;  %v6375_v63 = vld [vmem:[%s9199_s2 + $0xb0] sm:$0xff] }
 0x36b   :  { %v1094_v54 = vmax.f32 %v8083_v27, 0.0  ;;  %v1144_v18 = vpack.c.bf16 %v1080_v39, %v1080_v39  ;;  %v1145_v29 = vpack.c.bf16 %v1081_v46, %v1081_v46  ;;  %v1146_v61 = vpack.c.bf16 %v1082_v23, %v1082_v23  ;;  %v1492_v23 = vld [vmem:[#allocation2 + $0x12c] sm:$0x1] }
 0x36c   :  { %v1096_v26 = vmax.f32 %v1032_v40, 0.0  ;;  %v1097_v2 = vmax.f32 %v1033_v58, 0.0  ;;  %v1098_v57 = vmax.f32 %v1034_v32, 0.0  ;;  %v1147_v59 = vpack.c.bf16 %v1083_v51, %v1083_v51 }
 0x36d   :  { %v1136_v4 = vpack.c.bf16 %v1072_v47, %v1072_v47  ;;  %v1137_v0 = vpack.c.bf16 %v1073_v45, %v1073_v45  ;;  %v1138_v25 = vpack.c.bf16 %v1074_v42, %v1074_v42  ;;  %v1148_v3 = vpack.c.bf16 %v1084_v13, %v1084_v13  ;;  %1728 = vst [vmem:[#allocation2 + $0x170] sm:$0xf] %v1144_v18 }
 0x36e   :  { %v1139_v30 = vpack.c.bf16 %v1075_v52, %v1075_v52  ;;  %v8098_v9 = vpack.c.bf16 %v1076_v43, %v1076_v43  ;;  %v8100_v37 = vpack.c.bf16 %v1077_v1, %v1077_v1  ;;  %v1149_v41 = vpack.c.bf16 %v1085_v62, %v1085_v62  ;;  %1731 = vst [vmem:[#allocation2 + $0x178] sm:$0xf] %v1145_v29 }
 0x36f   :  { %v8102_v48 = vpack.c.bf16 %v1078_v55, %v1078_v55  ;;  %v8104_v39 = vpack.c.bf16 %v1079_v10, %v1079_v10  ;;  %v1150_v40 = vpack.c.bf16 %v1086_v20, %v1086_v20  ;;  %v1151_v58 = vpack.c.bf16 %v1087_v31, %v1087_v31  ;;  %1734 = vst [vmem:[#allocation2 + $0x180] sm:$0xf] %v1146_v61  ;;  %v1489_v55 = vld [vmem:[#allocation2 + $0x128] sm:$0xf]  ;;  %v1522_v10 = vld [vmem:[#allocation2 + $0x130] sm:$0xf] }
 0x370   :  { %v8106_v32 = vpack.c.bf16 %v1088_v11, %v1088_v11  ;;  %v8108_v47 = vpack.c.bf16 %v1089_v7, %v1089_v7  ;;  %v8110_v45 = vpack.c.bf16 %v1090_v33, %v1090_v33  ;;  %v1160_v42 = vpack.c.bf16 %v1096_v26, %v1096_v26  ;;  %1737 = vst [vmem:[#allocation2 + $0x188] sm:$0xf] %v1147_v59  ;;  %v1525_v31 = vld [vmem:[#allocation2 + $0x134] sm:$0x1] }
 0x371   :  { %v1161_v52 = vpack.c.bf16 %v1097_v2, %v1097_v2  ;;  %v1162_v43 = vpack.c.bf16 %v1098_v57, %v1098_v57  ;;  %v1468_v1 = vshrl.u32 %v1136_v4, 16  ;;  %v1504_v46 = vshrl.u32 %v1137_v0, 16  ;;  %1740 = vst [vmem:[#allocation2 + $0x190] sm:$0xf] %v1148_v3  ;;  %v1555_v57 = vld [vmem:[#allocation2 + $0x138] sm:$0xf] }
 0x372   :  { %v1471_v51 = vshll.u32 %v1136_v4, 16  ;;  %v1507_v13 = vshll.u32 %v1137_v0, 16  ;;  %v1537_v62 = vshrl.u32 %v1138_v25, 16  ;;  %v1570_v20 = vshrl.u32 %v1139_v30, 16  ;;  %1743 = vst [vmem:[#allocation2 + $0x198] sm:$0xf] %v1149_v41 }
 0x373   :  { %v1470_v11 = vrot.slane %v1468_v1, 7  ;;  %v1506_v7 = vrot.slane %v1504_v46, 7  ;;  %v1540_v33 = vshll.u32 %v1138_v25, 16  ;;  %v1573_v18 = vshll.u32 %v1139_v30, 16  ;;  %1746 = vst [vmem:[#allocation2 + $0x1a0] sm:$0xf] %v1150_v40 }
 0x374   :  { %v1539_v29 = vrot.slane %v1537_v62, 7  ;;  %v1572_v61 = vrot.slane %v1570_v20, 7  ;;  %v1603_v26 = vshrl.u32 %v8098_v9, 16  ;;  %v1636_v2 = vshrl.u32 %v8100_v37, 16  ;;  %1749 = vst [vmem:[#allocation2 + $0x1a8] sm:$0xf] %v1151_v58 }
 0x375   :  { %v1473_v59 = vor.u32 %v1471_v51, %v1470_v11  ;;  %v1474_v4 = vrot.slane %v1470_v11, 4  ;;  %v1509_v0 = vor.u32 %v1507_v13, %v1506_v7  ;;  %v1510_v3 = vrot.slane %v1506_v7, 4  ;;  %2016 = vst [vmem:[#allocation2 + $0x1f8] sm:$0xf] %v1160_v42  ;;  %v1558_v41 = vld [vmem:[#allocation2 + $0x13c] sm:$0x1] }
 0x376   :  { %v1542_v34 = vor.u32 %v1540_v33, %v1539_v29  ;;  %v1543_v1 = vrot.slane %v1539_v29, 4  ;;  %v1575_v46 = vor.u32 %v1573_v18, %v1572_v61  ;;  %v1576_v25 = vrot.slane %v1572_v61, 4  ;;  %2019 = vst [vmem:[#allocation2 + $0x200] sm:$0xf] %v1161_v52  ;;  %v1588_v30 = vld [vmem:[#allocation2 + $0x140] sm:$0xf] }
 0x377   :  { %v1591_v40 = vld [vmem:[#allocation2 + $0x144] sm:$0x1]  ;;  %v8117_v62 = vpack.c.bf16 %v1091_v8, %v1091_v8  ;;  %v1490_v51 = vsel %vm7310_vm8, %v1473_v59, %v1489_v55  ;;  %v1493_v13 = vsel %vm6636_vm2, %v1474_v4, %v1492_v23  ;;  %v1523_v42 = vsel %vm7310_vm8, %v1509_v0, %v1522_v10  ;;  %2022 = vst [vmem:[#allocation2 + $0x208] sm:$0xf] %v1162_v43  ;;  %v1621_v11 = vld [vmem:[#allocation2 + $0x148] sm:$0xf] }
 0x378   :  { %1491 = vst [vmem:[#allocation2 + $0x128] sm:$0xf] %v1490_v51  ;;  %v1526_v52 = vsel %vm6636_vm2, %v1510_v3, %v1525_v31  ;;  %v1556_v16 = vsel %vm7310_vm8, %v1542_v34, %v1555_v57  ;;  %v1606_v8 = vshll.u32 %v8098_v9, 16  ;;  %v1639_v7 = vshll.u32 %v8100_v37, 16  ;;  %v1624_v10 = vld [vmem:[#allocation2 + $0x14c] sm:$0x1] }
 0x379   :  { %1494 = vst [vmem:[#allocation2 + $0x12c] sm:$0x1] %v1493_v13  ;;  %v1559_v55 = vsel %vm6636_vm2, %v1543_v1, %v1558_v41  ;;  %v1605_v23 = vrot.slane %v1603_v26, 7  ;;  %v1638_v33 = vrot.slane %v1636_v2, 7  ;;  %v1669_v43 = vshrl.u32 %v8102_v48, 16  ;;  %v6376_v59 = vld [vmem:[%s9199_s2 + $0xb8] sm:$0xff] }
 0x37a   :  { %v1654_v18 = vld [vmem:[#allocation2 + $0x150] sm:$0xf]  ;;  %1524 = vst [vmem:[#allocation2 + $0x130] sm:$0xf] %v1523_v42  ;;  %v1589_v31 = vsel %vm7310_vm8, %v1575_v46, %v1588_v30  ;;  %v1592_v34 = vsel %vm6636_vm2, %v1576_v25, %v1591_v40  ;;  %v1702_v9 = vshrl.u32 %v8104_v39, 16  ;;  %v1759_v37 = vshrl.u32 %v8106_v32, 16  ;;  %4220 = vmatpush.bf16.msrb.mxu3 %v6376_v59 }
 0x37b   :  { %v1657_v29 = vld [vmem:[#allocation2 + $0x154] sm:$0x1]  ;;  %1527 = vst [vmem:[#allocation2 + $0x134] sm:$0x1] %v1526_v52  ;;  %v1608_v61 = vor.u32 %v1606_v8, %v1605_v23  ;;  %v1609_v26 = vrot.slane %v1605_v23, 4  ;;  %v1641_v2 = vor.u32 %v1639_v7, %v1638_v33  ;;  %v1672_v57 = vshll.u32 %v8102_v48, 16 }
 0x37c   :  { %v1687_v4 = vld [vmem:[#allocation2 + $0x158] sm:$0xf]  ;;  %1557 = vst [vmem:[#allocation2 + $0x138] sm:$0xf] %v1556_v16  ;;  %v1642_v0 = vrot.slane %v1638_v33, 4  ;;  %v1671_v3 = vrot.slane %v1669_v43, 7  ;;  %v8148_v25 = vpack.c.bf16 %v1092_v19, %v1092_v19  ;;  %v8164_v23 = vpack.c.bf16 %v1093_v49, %v1093_v49 }
 0x37d   :  { %v1704_v41 = vrot.slane %v1702_v9, 7  ;;  %v1792_v1 = vshrl.u32 %v8108_v47, 16  ;;  %v1690_v46 = vld [vmem:[#allocation2 + $0x15c] sm:$0x1]  ;;  %1560 = vst [vmem:[#allocation2 + $0x13c] sm:$0x1] %v1559_v55  ;;  %v1622_v48 = vsel %vm7310_vm8, %v1608_v61, %v1621_v11  ;;  %v1625_v13 = vsel %vm6636_vm2, %v1609_v26, %v1624_v10 }
 0x37e   :  { %v1705_v30 = vshll.u32 %v8104_v39, 16  ;;  %v1761_v40 = vrot.slane %v1759_v37, 7  ;;  %v1720_v51 = vld [vmem:[#allocation2 + $0x160] sm:$0xf]  ;;  %1590 = vst [vmem:[#allocation2 + $0x140] sm:$0xf] %v1589_v31  ;;  %v1674_v42 = vor.u32 %v1672_v57, %v1671_v3  ;;  %v1655_v39 = vsel %vm7310_vm8, %v1641_v2, %v1654_v18  ;;  %4221 = vmatpush.bf16.msrb.mxu3 %v6375_v63 }
 0x37f   :  { %v1675_v52 = vrot.slane %v1671_v3, 4  ;;  %v1762_v16 = vshll.u32 %v8106_v32, 16  ;;  %v1723_v19 = vld [vmem:[#allocation2 + $0x164] sm:$0x1]  ;;  %1593 = vst [vmem:[#allocation2 + $0x144] sm:$0x1] %v1592_v34  ;;  %v8169_v32 = vpack.c.bf16 %v1094_v54, %v1094_v54  ;;  %v1658_v33 = vsel %vm6636_vm2, %v1642_v0, %v1657_v29 }
 0x380   :  { %v1707_v11 = vor.u32 %v1705_v30, %v1704_v41  ;;  %v1708_v8 = vrot.slane %v1704_v41, 4  ;;  %v1794_v7 = vrot.slane %v1792_v1, 7  ;;  %v1777_v55 = vld [vmem:[#allocation2 + $0x1b0] sm:$0xf]  ;;  %1623 = vst [vmem:[#allocation2 + $0x148] sm:$0xf] %v1622_v48  ;;  %v1688_v27 = vsel %vm7310_vm8, %v1674_v42, %v1687_v4 }
 0x381   :  { %v1795_v43 = vshll.u32 %v8108_v47, 16  ;;  %v1780_v10 = vld [vmem:[#allocation2 + $0x1b4] sm:$0x1]  ;;  %v1810_v18 = vld [vmem:[#allocation2 + $0x1b8] sm:$0xf]  ;;  %v9252_v31 = vmax.f32 %v8086_v6, 0.0  ;;  %v1764_v49 = vor.u32 %v1762_v16, %v1761_v40  ;;  %v1691_v34 = vsel %vm6636_vm2, %v1675_v52, %v1690_v46 }
 0x382   :  { %1626 = vst [vmem:[#allocation2 + $0x14c] sm:$0x1] %v1625_v13  ;;  %v1765_v54 = vrot.slane %v1761_v40, 4  ;;  %v1825_v47 = vshrl.u32 %v8110_v45, 16  ;;  %v1858_v37 = vshrl.u32 %v8117_v62, 16  ;;  %v6374_v6 = vld [vmem:[%s9199_s2 + $0xa8] sm:$0xff]  ;;  %v1721_v61 = vsel %vm7310_vm8, %v1707_v11, %v1720_v51 }
 0x383   :  { %v8177_v36 = vpack.c.bf16 %v9252_v31, %v9252_v31  ;;  %1656 = vst [vmem:[#allocation2 + $0x150] sm:$0xf] %v1655_v39  ;;  %v1797_v9 = vor.u32 %v1795_v43, %v1794_v7  ;;  %v1813_v29 = vld [vmem:[#allocation2 + $0x1bc] sm:$0x1]  ;;  %v1724_v26 = vsel %vm6636_vm2, %v1708_v8, %v1723_v19  ;;  %v1798_v2 = vrot.slane %v1794_v7, 4  ;;  %4222 = vmatpush.bf16.msrb.mxu3 %v6374_v6 }
 0x384   :  { %1659 = vst [vmem:[#allocation2 + $0x154] sm:$0x1] %v1658_v33  ;;  %v1891_v57 = vshrl.u32 %v8148_v25, 16  ;;  %v1843_v59 = vld [vmem:[#allocation2 + $0x1c0] sm:$0xf]  ;;  %v1827_v4 = vrot.slane %v1825_v47, 7  ;;  %v1778_v1 = vsel %vm7310_vm8, %v1764_v49, %v1777_v55  ;;  %v1781_v13 = vsel %vm6636_vm2, %v1765_v54, %v1780_v10 }
 0x385   :  { %1689 = vst [vmem:[#allocation2 + $0x158] sm:$0xf] %v1688_v27  ;;  %v1828_v0 = vshll.u32 %v8110_v45, 16  ;;  %v1860_v3 = vrot.slane %v1858_v37, 7  ;;  %v1924_v41 = vshrl.u32 %v8164_v23, 16  ;;  %v1861_v46 = vshll.u32 %v8117_v62, 16 }
 0x386   :  { %1692 = vst [vmem:[#allocation2 + $0x15c] sm:$0x1] %v1691_v34  ;;  %v1893_v48 = vrot.slane %v1891_v57, 7  ;;  %v1957_v30 = vshrl.u32 %v8169_v32, 16  ;;  %v1846_v40 = vld [vmem:[#allocation2 + $0x1c4] sm:$0x1]  ;;  %v1811_v45 = vsel %vm7310_vm8, %v1797_v9, %v1810_v18  ;;  %v967_v11 = vmul.f32 %v7975_v14, %v8012_v21 }
 0x387   :  { %v1876_v51 = vld [vmem:[#allocation2 + $0x1c8] sm:$0xf]  ;;  %1722 = vst [vmem:[#allocation2 + $0x160] sm:$0xf] %v1721_v61  ;;  %v1830_v42 = vor.u32 %v1828_v0, %v1827_v4  ;;  %v1831_v52 = vrot.slane %v1827_v4, 4  ;;  %v1863_v16 = vor.u32 %v1861_v46, %v1860_v3  ;;  %v1894_v63 = vshll.u32 %v8148_v25, 16 }
 0x388   :  { %1725 = vst [vmem:[#allocation2 + $0x164] sm:$0x1] %v1724_v26  ;;  %v1926_v62 = vrot.slane %v1924_v41, 7  ;;  %v1990_v19 = vshrl.u32 %v8177_v36, 16  ;;  %v1879_v39 = vld [vmem:[#allocation2 + $0x1cc] sm:$0x1]  ;;  %v968_v8 = vmul.f32 %v7975_v14, %v8015_v38  ;;  %v1814_v7 = vsel %vm6636_vm2, %v1798_v2, %v1813_v29 }
 0x389   :  { %1779 = vst [vmem:[#allocation2 + $0x1b0] sm:$0xf] %v1778_v1  ;;  %v1864_v55 = vrot.slane %v1860_v3, 4  ;;  %v1844_v33 = vsel %vm7310_vm8, %v1830_v42, %v1843_v59  ;;  %v1896_v25 = vor.u32 %v1894_v63, %v1893_v48  ;;  %v1927_v43 = vshll.u32 %v8164_v23, 16  ;;  %v6373_v21 = vld [vmem:[%s9199_s2 + $0xa0] sm:$0xff] }
 0x38a   :  { %1782 = vst [vmem:[#allocation2 + $0x1b4] sm:$0x1] %v1781_v13  ;;  %v1959_v10 = vrot.slane %v1957_v30, 7  ;;  %v1909_v18 = vld [vmem:[#allocation2 + $0x1d0] sm:$0xf]  ;;  %v969_v38 = vmul.f32 %v7975_v14, %v8018_v22  ;;  %v970_v31 = vmul.f32 %v7975_v14, %v8021_v35  ;;  %v1847_v27 = vsel %vm6636_vm2, %v1831_v52, %v1846_v40  ;;  %4223 = vmatpush.bf16.msrb.mxu3 %v6373_v21 }
 0x38b   :  { %1812 = vst [vmem:[#allocation2 + $0x1b8] sm:$0xf] %v1811_v45  ;;  %v1897_v49 = vrot.slane %v1893_v48, 4  ;;  %v1912_v54 = vld [vmem:[#allocation2 + $0x1d4] sm:$0x1]  ;;  %v1877_v23 = vsel %vm7310_vm8, %v1863_v16, %v1876_v51  ;;  %v1929_v34 = vor.u32 %v1927_v43, %v1926_v62  ;;  %v1960_v9 = vshll.u32 %v8169_v32, 16 }
 0x38c   :  { %1815 = vst [vmem:[#allocation2 + $0x1bc] sm:$0x1] %v1814_v7  ;;  %v1992_v47 = vrot.slane %v1990_v19, 7  ;;  %v1942_v37 = vld [vmem:[#allocation2 + $0x1d8] sm:$0xf]  ;;  %v1035_v22 = vadd.f32 %v7981_v24, %v967_v11  ;;  %v1880_v14 = vsel %vm6636_vm2, %v1864_v55, %v1879_v39  ;;  %v1930_v35 = vrot.slane %v1926_v62, 4 }
 0x38d   :  { %1845 = vst [vmem:[#allocation2 + $0x1c0] sm:$0xf] %v1844_v33  ;;  %v1945_v6 = vld [vmem:[#allocation2 + $0x1dc] sm:$0x1]  ;;  %v1036_v29 = vadd.f32 %v7981_v24, %v968_v8  ;;  %v1910_v61 = vsel %vm7310_vm8, %v1896_v25, %v1909_v18  ;;  %v1962_v26 = vor.u32 %v1960_v9, %v1959_v10  ;;  %v1993_v32 = vshll.u32 %v8177_v36, 16  ;;  %v6371_v55 = vld [vmem:[%s9199_s2 + $0x90] sm:$0xff] }
 0x38e   :  { %1848 = vst [vmem:[#allocation2 + $0x1c4] sm:$0x1] %v1847_v27  ;;  %v1975_v2 = vld [vmem:[#allocation2 + $0x1e0] sm:$0xf]  ;;  %v1037_v57 = vadd.f32 %v7981_v24, %v969_v38  ;;  %v1913_v59 = vsel %vm6636_vm2, %v1897_v49, %v1912_v54  ;;  %v1963_v4 = vrot.slane %v1959_v10, 4  ;;  %v1038_v3 = vadd.f32 %v7981_v24, %v970_v31  ;;  %v6372_v11 = vld [vmem:[%s9199_s2 + $0x98] sm:$0xff] }
 0x38f   :  { %1878 = vst [vmem:[#allocation2 + $0x1c8] sm:$0xf] %v1877_v23  ;;  %v1978_v0 = vld [vmem:[#allocation2 + $0x1e4] sm:$0x1]  ;;  %v1943_v41 = vsel %vm7310_vm8, %v1929_v34, %v1942_v37  ;;  %v1995_v1 = vor.u32 %v1993_v32, %v1992_v47  ;;  %v2008_v46 = vld [vmem:[#allocation2 + $0x1e8] sm:$0xf]  ;;  %v1946_v36 = vsel %vm6636_vm2, %v1930_v35, %v1945_v6  ;;  %v1976_v13 = vsel %vm7310_vm8, %v1962_v26, %v1975_v2 }
 0x390   :  { %1881 = vst [vmem:[#allocation2 + $0x1cc] sm:$0x1] %v1880_v14  ;;  %v1099_v48 = vmax.f32 %v1035_v22, 0.0  ;;  %v1996_v30 = vrot.slane %v1992_v47, 4  ;;  %v2011_v40 = vld [vmem:[#allocation2 + $0x1ec] sm:$0x1]  ;;  %v1979_v24 = vsel %vm6636_vm2, %v1963_v4, %v1978_v0  ;;  %4224 = vmatpush.bf16.msrb.mxu3 %v6372_v11 }
 0x391   :  { %1911 = vst [vmem:[#allocation2 + $0x1d0] sm:$0xf] %v1910_v61  ;;  %v1100_v51 = vmax.f32 %v1036_v29, 0.0  ;;  %v1101_v45 = vmax.f32 %v1037_v57, 0.0  ;;  %v1102_v42 = vmax.f32 %v1038_v3, 0.0  ;;  %v2009_v52 = vsel %vm7310_vm8, %v1995_v1, %v2008_v46  ;;  %v6416_v26 = vld [vmem:[%s9199_s2 + $0x1f8] sm:$0xff] }
 0x392   :  { %1914 = vst [vmem:[#allocation2 + $0x1d4] sm:$0x1] %v1913_v59  ;;  %v1163_v16 = vpack.c.bf16 %v1099_v48, %v1099_v48  ;;  %v2012_v63 = vsel %vm6636_vm2, %v1996_v30, %v2011_v40  ;;  %v2079_v8 = vld [vmem:[#allocation2 + $0x168] sm:$0xf]  ;;  %v2080_v58 = vld [vmem:[#allocation2 + $0x170] sm:$0xf]  ;;  %4465 = vmatpush.bf16.msra.mxu2 %v6416_v26 }
 0x393   :  { %1944 = vst [vmem:[#allocation2 + $0x1d8] sm:$0xf] %v1943_v41  ;;  %v1164_v62 = vpack.c.bf16 %v1100_v51, %v1100_v51  ;;  %v1165_v19 = vpack.c.bf16 %v1101_v45, %v1101_v45  ;;  %v1166_v39 = vpack.c.bf16 %v1102_v42, %v1102_v42  ;;  %v2434_v7 = vld [vmem:[#allocation2 + $0x1f8] sm:$0xf]  ;;  %v2435_v33 = vld [vmem:[#allocation2 + $0x200] sm:$0xf] }
 0x394   :  { %1947 = vst [vmem:[#allocation2 + $0x1dc] sm:$0x1] %v1946_v36  ;;  %v2046_v25 = vld [vmem:[#allocation2 + $0x120] sm:$0xf]  ;;  %4225 = vmatpush.bf16.msrb.mxu3 %v6371_v55  ;;  %v2047_v43 = vld [vmem:[#allocation2 + $0x128] sm:$0xf] }
 0x395   :  { %1977 = vst [vmem:[#allocation2 + $0x1e0] sm:$0xf] %v1976_v13  ;;  %v2081_v10 = vld [vmem:[#allocation2 + $0x178] sm:$0xf]  ;;  %v2082_v21 = vld [vmem:[#allocation2 + $0x180] sm:$0xf] }
 0x396   :  { %1980 = vst [vmem:[#allocation2 + $0x1e4] sm:$0x1] %v1979_v24  ;;  %v2436_v18 = vld [vmem:[#allocation2 + $0x208] sm:$0xf]  ;;  %v2048_v27 = vld [vmem:[#allocation2 + $0x130] sm:$0xf] }
 0x397   :  { %2010 = vst [vmem:[#allocation2 + $0x1e8] sm:$0xf] %v2009_v52  ;;  %v2049_v54 = vld [vmem:[#allocation2 + $0x138] sm:$0xf]  ;;  %v2083_v9 = vld [vmem:[#allocation2 + $0x188] sm:$0xf] }
 0x398   :  { %2013 = vst [vmem:[#allocation2 + $0x1ec] sm:$0x1] %v2012_v63  ;;  %v2084_v37 = vld [vmem:[#allocation2 + $0x190] sm:$0xf]  ;;  %v2050_v32 = vld [vmem:[#allocation2 + $0x140] sm:$0xf] }
 0x399   :  { %2025 = vst [vmem:[#allocation2 + $0x210] sm:$0xf] %v1163_v16  ;;  %v2085_v2 = vld [vmem:[#allocation2 + $0x198] sm:$0xf]  ;;  %v6415_v57 = vld [vmem:[%s9199_s2 + $0x1f0] sm:$0xff]  ;;  %v6370_v4 = vld [vmem:[%s9199_s2 + $0x88] sm:$0xff] }
 0x39a   :  { %2028 = vst [vmem:[#allocation2 + $0x218] sm:$0xf] %v1164_v62  ;;  %v2051_v59 = vld [vmem:[#allocation2 + $0x148] sm:$0xf]  ;;  %v6384_v0 = vld [vmem:[%s9199_s2 + $0xf8] sm:$0xff]  ;;  %4226 = vmatpush.bf16.msrb.mxu3 %v6370_v4  ;;  %v6383_v1 = vld [vmem:[%s9199_s2 + $0xf0] sm:$0xff]  ;;  %4466 = vmatpush.bf16.msra.mxu2 %v6415_v57 }
 0x39b   :  { %2031 = vst [vmem:[#allocation2 + $0x220] sm:$0xf] %v1165_v19  ;;  %v2086_v3 = vld [vmem:[#allocation2 + $0x1a0] sm:$0xf]  ;;  %4269 = vmatpush.bf16.msrb.mxu1 %v6384_v0  ;;  %v2441_v46 = vld [vmem:[#allocation2 + $0x230] sm:$0xf] }
 0x39c   :  { %2034 = vst [vmem:[#allocation2 + $0x228] sm:$0xf] %v1166_v39  ;;  %v6414_v48 = vld [vmem:[%s9199_s2 + $0x1e8] sm:$0xff]  ;;  %v2052_v36 = vld [vmem:[#allocation2 + $0x150] sm:$0xf]  ;;  %v6413_v42 = vld [vmem:[%s9199_s2 + $0x1e0] sm:$0xff] }
 0x39d   :  { %2095 = vst [vmem:[#allocation3 + $0x124] sm:$0xf] %v2079_v8  ;;  %v2053_v40 = vld [vmem:[#allocation2 + $0x158] sm:$0xf]  ;;  %v1316_v13 = vld [vmem:[#allocation2 + $0x124] sm:$0x1] }
 0x39e   :  { %2096 = vst [vmem:[#allocation3 + $0x148] sm:$0xf] %v2080_v58  ;;  %v1317_v24 = vsel %vm6636_vm2, 0, %v1316_v13  ;;  %4467 = vmatpush.bf16.msra.mxu2 %v6414_v48  ;;  %v2119_v52 = vld [vmem:[#allocation2 + $0x120] sm:$0xf]  ;;  %v6379_v57 = vld [vmem:[%s9199_s2 + $0xd0] sm:$0xff] }
 0x39f   :  { %2450 = vst [vmem:[#allocation3 + $0x130] sm:$0xf] %v2434_v7  ;;  %4270 = vmatpush.bf16.msrb.mxu1 %v6383_v1  ;;  %v2121_v63 = vld [vmem:[#allocation2 + $0x128] sm:$0xf]  ;;  %v2122_v19 = vld [vmem:[#allocation2 + $0x12c] sm:$0x1] }
 0x3a0   :  { %2451 = vst [vmem:[#allocation3 + $0x154] sm:$0xf] %v2435_v33  ;;  %v2437_v38 = vld [vmem:[#allocation2 + $0x210] sm:$0xf]  ;;  %v2251_v39 = vshrl.u32 %v2119_v52, 16  ;;  %v2254_v11 = vshll.u32 %v2119_v52, 16 }
 0x3a1   :  { %2062 = vst [vmem:[#allocation3 + $0x120] sm:$0xf] %v2046_v25  ;;  %v2438_v35 = vld [vmem:[#allocation2 + $0x218] sm:$0xf]  ;;  %v2265_v7 = vshrl.u32 %v2121_v63, 16  ;;  %v2268_v55 = vshll.u32 %v2121_v63, 16 }
 0x3a2   :  { %2063 = vst [vmem:[#allocation3 + $0x144] sm:$0xf] %v2047_v43  ;;  %v2439_v29 = vld [vmem:[#allocation2 + $0x220] sm:$0xf]  ;;  %4468 = vmatpush.bf16.msra.mxu2 %v6413_v42  ;;  %v6382_v33 = vld [vmem:[%s9199_s2 + $0xe8] sm:$0xff]  ;;  %v2253_v25 = vrot.slane %v2251_v39, 4 }
 0x3a3   :  { %2097 = vst [vmem:[#allocation3 + $0x16c] sm:$0xf] %v2081_v10  ;;  %v2440_v41 = vld [vmem:[#allocation2 + $0x228] sm:$0xf]  ;;  %v2256_v43 = vrot.slane %v2254_v11, 5  ;;  %v2274_v10 = vshll.u32 %v2122_v19, 16  ;;  %4271 = vmatpush.bf16.msrb.mxu1 %v6382_v33 }
 0x3a4   :  { %v6317_v31 = vld [vmem:[#allocation3 + $0x124] sm:$0xf]  ;;  %2098 = vst [vmem:[#allocation3 + $0x190] sm:$0xf] %v2082_v21  ;;  %v2267_v21 = vrot.slane %v2265_v7, 4 }
 0x3a5   :  { %v5749_v49 = vld [vmem:[#allocation3 + $0x144] sm:$0xf0]  ;;  %2452 = vst [vmem:[#allocation3 + $0x178] sm:$0xf] %v2436_v18  ;;  %v2270_v18 = vrot.slane %v2268_v55, 5 }
 0x3a6   :  { %v5752_v23 = vor.u32 %v6317_v31, %v5749_v49  ;;  %v5763_v34 = vld [vmem:[#allocation3 + $0x130] sm:$0xf]  ;;  %2453 = vst [vmem:[#allocation3 + $0x19c] sm:$0xf] %v2437_v38  ;;  %v6412_v31 = vld [vmem:[%s9199_s2 + $0x1d8] sm:$0xff]  ;;  %v6381_v49 = vld [vmem:[%s9199_s2 + $0xe0] sm:$0xff] }
 0x3a7   :  { %v6323_v47 = vld [vmem:[#allocation3 + $0x150] sm:$0xf0]  ;;  %2064 = vst [vmem:[#allocation3 + $0x168] sm:$0xf] %v2048_v27  ;;  %v6369_v27 = vld [vmem:[%s9199_s2 + $0x80] sm:$0xff]  ;;  %4469 = vmatpush.bf16.msra.mxu2 %v6412_v31  ;;  %4272 = vmatpush.bf16.msrb.mxu1 %v6381_v49 }
 0x3a8   :  { %4199 = vmatmul.bf16.gmra.mxu3 %v5752_v23  ;;  %v5764_v22 = vor.u32 %v6323_v47, %v5763_v34  ;;  %v5747_v14 = vld [vmem:[#allocation3 + $0x120] sm:$0xf]  ;;  %2065 = vst [vmem:[#allocation3 + $0x18c] sm:$0xf] %v2049_v54  ;;  %v2257_v54 = vor.u32 %v2256_v43, %v2253_v25  ;;  %v2271_v23 = vor.u32 %v2270_v18, %v2267_v21  ;;  %v6411_v34 = vld [vmem:[%s9199_s2 + $0x1d0] sm:$0xff]  ;;  %v6380_v47 = vld [vmem:[%s9199_s2 + $0xd8] sm:$0xff] }
 0x3a9   :  { %v6321_v6 = vld [vmem:[#allocation3 + $0x140] sm:$0xf0]  ;;  %2099 = vst [vmem:[#allocation3 + $0x1b4] sm:$0xf] %v2083_v9  ;;  %v2276_v9 = vrot.slane %v2274_v10, 5  ;;  %4227 = vmatpush.bf16.msrb.mxu3 %v6369_v27  ;;  %v6378_v10 = vld [vmem:[%s9199_s2 + $0xc8] sm:$0xff] }
 0x3aa   :  { %4346 = vmatmul.bf16.gmra.mxu2 %v5764_v22  ;;  %v5748_v61 = vor.u32 %v6321_v6, %v5747_v14  ;;  %2100 = vst [vmem:[#allocation3 + $0x1d8] sm:$0xf] %v2084_v37  ;;  %v6326_v30 = vld [vmem:[#allocation3 + $0x16c] sm:$0xf]  ;;  %v2272_v22 = vrot.slane %v2271_v23, 4  ;;  %v2258_v6 = vrot.slane %v2257_v54, 4 }
 0x3ab   :  { %2454 = vst [vmem:[#allocation3 + $0x1c0] sm:$0xf] %v2438_v35  ;;  %v5785_v51 = vld [vmem:[#allocation3 + $0x18c] sm:$0xf0]  ;;  %v6410_v35 = vld [vmem:[%s9199_s2 + $0x1c8] sm:$0xff]  ;;  %4470 = vmatpush.bf16.msra.mxu2 %v6411_v34  ;;  %4273 = vmatpush.bf16.msrb.mxu1 %v6380_v47  ;;  %v6400_v21 = vld [vmem:[%s9199_s2 + $0x178] sm:$0xff] }
 0x3ac   :  { %4150 = vmatmul.bf16.gmra.mxu1 %v5748_v61  ;;  %2455 = vst [vmem:[#allocation3 + $0x1e4] sm:$0xf] %v2439_v29  ;;  %v5799_v45 = vld [vmem:[#allocation3 + $0x178] sm:$0xf]  ;;  %v5788_v62 = vor.u32 %v6326_v30, %v5785_v51  ;;  %v2786_v14 = vld [vmem:[#allocation2 + $0x170] sm:$0xf]  ;;  %v2277_v26 = vsel %vm7673_vm11, %v2272_v22, %v2276_v9 }
 0x3ad   :  { %2066 = vst [vmem:[#allocation3 + $0x1b0] sm:$0xf] %v2050_v32  ;;  %v6332_v16 = vld [vmem:[#allocation3 + $0x198] sm:$0xf0]  ;;  %v2787_v61 = vld [vmem:[#allocation2 + $0x178] sm:$0xf]  ;;  %4367 = vmatpush.bf16.msra.mxu3 %v6400_v21 }
 0x3ae   :  { %2067 = vst [vmem:[#allocation3 + $0x1d4] sm:$0xf] %v2051_v59  ;;  %v5783_v8 = vld [vmem:[#allocation3 + $0x168] sm:$0xf]  ;;  %v5800_v20 = vor.u32 %v6332_v16, %v5799_v45  ;;  %v2402_v32 = vld [vmem:[#allocation2 + $0x1b0] sm:$0xf] }
 0x3af   :  { %2101 = vst [vmem:[#allocation3 + $0x1fc] sm:$0xf] %v2085_v2  ;;  %v6330_v58 = vld [vmem:[#allocation3 + $0x188] sm:$0xf0]  ;;  %v2403_v2 = vld [vmem:[#allocation2 + $0x1b8] sm:$0xf]  ;;  %4471 = vmatpush.bf16.msra.mxu2 %v6410_v35  ;;  %4274 = vmatpush.bf16.msrb.mxu1 %v6379_v57 }
 0x3b0   :  { %2102 = vst [vmem:[#allocation3 + $0x220] sm:$0xf] %v2086_v3  ;;  %v5784_v38 = vor.u32 %v6330_v58, %v5783_v8  ;;  %v2123_v4 = vld [vmem:[#allocation2 + $0x130] sm:$0xf]  ;;  %v6335_v0 = vld [vmem:[#allocation3 + $0x1b4] sm:$0xf] }
 0x3b1   :  { %2456 = vst [vmem:[#allocation3 + $0x208] sm:$0xf] %v2440_v41  ;;  %v5821_v3 = vld [vmem:[#allocation3 + $0x1d4] sm:$0xf0]  ;;  %v2124_v41 = vld [vmem:[#allocation2 + $0x134] sm:$0x1] }
 0x3b2   :  { %2457 = vst [vmem:[#allocation3 + $0x22c] sm:$0xf] %v2441_v46  ;;  %v2125_v1 = vld [vmem:[#allocation2 + $0x138] sm:$0xf]  ;;  %v2126_v48 = vld [vmem:[#allocation2 + $0x13c] sm:$0x1]  ;;  %v5824_v8 = vor.u32 %v6335_v0, %v5821_v3 }
 0x3b3   :  { %2068 = vst [vmem:[#allocation3 + $0x1f8] sm:$0xf] %v2052_v36  ;;  %v2279_v36 = vshrl.u32 %v2123_v4, 16  ;;  %v2282_v30 = vshll.u32 %v2123_v4, 16  ;;  %v6409_v51 = vld [vmem:[%s9199_s2 + $0x1c0] sm:$0xff]  ;;  %v2288_v13 = vshll.u32 %v2124_v41, 16  ;;  %4275 = vmatpush.bf16.msrb.mxu1 %v6378_v10 }
 0x3b4   :  { %2069 = vst [vmem:[#allocation3 + $0x21c] sm:$0xf] %v2053_v40  ;;  %v5835_v40 = vld [vmem:[#allocation3 + $0x1c0] sm:$0xf]  ;;  %v2293_v45 = vshrl.u32 %v2125_v1, 16  ;;  %v2302_v11 = vshll.u32 %v2126_v48, 16  ;;  %4472 = vmatpush.bf16.msra.mxu2 %v6409_v51 }
 0x3b5   :  { %1318 = vst [vmem:[#allocation2 + $0x124] sm:$0x1] %v1317_v24  ;;  %v2296_v24 = vshll.u32 %v2125_v1, 16  ;;  %v2281_v42 = vrot.slane %v2279_v36, 4  ;;  %v2284_v52 = vrot.slane %v2282_v30, 5  ;;  %v6377_v54 = vld [vmem:[%s9199_s2 + $0xc0] sm:$0xff] }
 0x3b6   :  { %2802 = vst [vmem:[#allocation3 + $0x13c] sm:$0xf] %v2786_v14  ;;  %v2788_v16 = vld [vmem:[#allocation2 + $0x180] sm:$0xf]  ;;  %v2789_v63 = vld [vmem:[#allocation2 + $0x188] sm:$0xf] }
 0x3b7   :  { %2803 = vst [vmem:[#allocation3 + $0x160] sm:$0xf] %v2787_v61  ;;  %v2295_v19 = vrot.slane %v2293_v45, 4  ;;  %v2298_v39 = vrot.slane %v2296_v24, 5  ;;  %v5819_v58 = vld [vmem:[#allocation3 + $0x1b0] sm:$0xf]  ;;  %v2285_v7 = vor.u32 %v2284_v52, %v2281_v42  ;;  %4276 = vmatpush.bf16.msrb.mxu1 %v6377_v54 }
 0x3b8   :  { %4204 = vmatmul.bf16.gmra.mxu3 %v5788_v62  ;;  %2387 = vst [vmem:[#allocation3 + $0x14c] sm:$0xf] %v2277_v26  ;;  %v6341_v62 = vld [vmem:[#allocation3 + $0x1e0] sm:$0xf0]  ;;  %v2404_v55 = vld [vmem:[#allocation2 + $0x1c0] sm:$0xf] }
 0x3b9   :  { %2418 = vst [vmem:[#allocation3 + $0x12c] sm:$0xf] %v2402_v32  ;;  %v2299_v33 = vor.u32 %v2298_v39, %v2295_v19  ;;  %v2405_v25 = vld [vmem:[#allocation2 + $0x1c8] sm:$0xf]  ;;  %v5836_v43 = vor.u32 %v6341_v62, %v5835_v40  ;;  %v2286_v18 = vrot.slane %v2285_v7, 4  ;;  %v2304_v27 = vrot.slane %v2302_v11, 5 }
 0x3ba   :  { %4351 = vmatmul.bf16.gmra.mxu2 %v5800_v20  ;;  %2419 = vst [vmem:[#allocation3 + $0x150] sm:$0xf] %v2403_v2  ;;  %v6339_v20 = vld [vmem:[#allocation3 + $0x1d0] sm:$0xf0]  ;;  %v2127_v9 = vld [vmem:[#allocation2 + $0x140] sm:$0xf] }
 0x3bb   :  { %2804 = vst [vmem:[#allocation3 + $0x184] sm:$0xf] %v2788_v16  ;;  %v2300_v31 = vrot.slane %v2299_v33, 4  ;;  %v5820_v49 = vor.u32 %v6339_v20, %v5819_v58  ;;  %v2128_v47 = vld [vmem:[#allocation2 + $0x144] sm:$0x1]  ;;  %v2307_v14 = vshrl.u32 %v2127_v9, 16 }
 0x3bc   :  { %4155 = vmatmul.bf16.gmra.mxu1 %v5784_v38  ;;  %v2120_v37 = vld [vmem:[#allocation2 + $0x124] sm:$0x1]  ;;  %2805 = vst [vmem:[#allocation3 + $0x1a8] sm:$0xf] %v2789_v63  ;;  %v2290_v38 = vrot.slane %v2288_v13, 5  ;;  %v2310_v35 = vshll.u32 %v2127_v9, 16 }
 0x3bd   :  { %v2260_v29 = vshll.u32 %v2120_v37, 16  ;;  %2420 = vst [vmem:[#allocation3 + $0x174] sm:$0xf] %v2404_v55  ;;  %v2305_v34 = vsel %vm7673_vm11, %v2300_v31, %v2304_v27  ;;  %v2129_v37 = vld [vmem:[#allocation2 + $0x148] sm:$0xf]  ;;  %v2309_v26 = vrot.slane %v2307_v14, 4 }
 0x3be   :  { %v2291_v23 = vsel %vm7673_vm11, %v2286_v18, %v2290_v38  ;;  %2421 = vst [vmem:[#allocation3 + $0x198] sm:$0xf] %v2405_v25  ;;  %v2130_v22 = vld [vmem:[#allocation2 + $0x14c] sm:$0x1]  ;;  %v2790_v61 = vld [vmem:[#allocation2 + $0x190] sm:$0xf] }
 0x3bf   :  { %v2262_v59 = vrot.slane %v2260_v29, 5  ;;  %2388 = vst [vmem:[#allocation3 + $0x170] sm:$0xf] %v2291_v23  ;;  %v2324_v29 = vshll.u32 %v2129_v37, 16  ;;  %v2312_v32 = vrot.slane %v2310_v35, 5  ;;  %v2316_v2 = vshll.u32 %v2128_v47, 16 }
 0x3c0   :  { %2389 = vst [vmem:[#allocation3 + $0x194] sm:$0xf] %v2305_v34  ;;  %v2791_v57 = vld [vmem:[#allocation2 + $0x198] sm:$0xf]  ;;  %v2330_v0 = vshll.u32 %v2130_v22, 16  ;;  %v6399_v25 = vld [vmem:[%s9199_s2 + $0x170] sm:$0xff] }
 0x3c1   :  { %v2263_v46 = vsel %vm7673_vm11, %v2258_v6, %v2262_v59  ;;  %v2321_v6 = vshrl.u32 %v2129_v37, 16  ;;  %v2326_v4 = vrot.slane %v2324_v29, 5  ;;  %v6344_v3 = vld [vmem:[#allocation3 + $0x1fc] sm:$0xf]  ;;  %v2313_v41 = vor.u32 %v2312_v32, %v2309_v26  ;;  %2806 = vst [vmem:[#allocation3 + $0x1cc] sm:$0xf] %v2790_v61  ;;  %4368 = vmatpush.bf16.msra.mxu3 %v6399_v25 }
 0x3c2   :  { %2386 = vst [vmem:[#allocation3 + $0x128] sm:$0xf] %v2263_v46  ;;  %v2406_v1 = vld [vmem:[#allocation2 + $0x1d0] sm:$0xf]  ;;  %v5857_v46 = vld [vmem:[#allocation3 + $0x21c] sm:$0xf0] }
 0x3c3   :  { %v2323_v59 = vrot.slane %v2321_v6, 4  ;;  %2807 = vst [vmem:[#allocation3 + $0x1f0] sm:$0xf] %v2791_v57  ;;  %v2407_v36 = vld [vmem:[#allocation2 + $0x1d8] sm:$0xf]  ;;  %v2314_v51 = vrot.slane %v2313_v41, 4  ;;  %v5860_v19 = vor.u32 %v6344_v3, %v5857_v46 }
 0x3c4   :  { %v5871_v30 = vld [vmem:[#allocation3 + $0x208] sm:$0xf]  ;;  %v6350_v40 = vld [vmem:[#allocation3 + $0x228] sm:$0xf0]  ;;  %v2318_v13 = vrot.slane %v2316_v2, 5  ;;  %v2332_v24 = vrot.slane %v2330_v0, 5 }
 0x3c5   :  { %v2327_v48 = vor.u32 %v2326_v4, %v2323_v59  ;;  %2422 = vst [vmem:[#allocation3 + $0x1bc] sm:$0xf] %v2406_v1  ;;  %v2131_v42 = vld [vmem:[#allocation2 + $0x150] sm:$0xf]  ;;  %v5855_v52 = vld [vmem:[#allocation3 + $0x1f8] sm:$0xf]  ;;  %v5872_v33 = vor.u32 %v6350_v40, %v5871_v30 }
 0x3c6   :  { %2423 = vst [vmem:[#allocation3 + $0x1e0] sm:$0xf] %v2407_v36  ;;  %v2319_v16 = vsel %vm7673_vm11, %v2314_v51, %v2318_v13  ;;  %v2132_v63 = vld [vmem:[#allocation2 + $0x154] sm:$0x1]  ;;  %v2133_v62 = vld [vmem:[#allocation2 + $0x158] sm:$0xf] }
 0x3c7   :  { %v2328_v45 = vrot.slane %v2327_v48, 4  ;;  %2390 = vst [vmem:[#allocation3 + $0x1b8] sm:$0xf] %v2319_v16  ;;  %v2134_v11 = vld [vmem:[#allocation2 + $0x15c] sm:$0x1]  ;;  %v2338_v58 = vshll.u32 %v2131_v42, 16 }
 0x3c8   :  { %4209 = vmatmul.bf16.gmra.mxu3 %v5824_v8  ;;  %v2335_v8 = vshrl.u32 %v2131_v42, 16  ;;  %v6348_v7 = vld [vmem:[#allocation3 + $0x218] sm:$0xf0]  ;;  %v2349_v55 = vshrl.u32 %v2133_v62, 16  ;;  %v2352_v20 = vshll.u32 %v2133_v62, 16  ;;  %v2344_v21 = vshll.u32 %v2132_v63, 16 }
 0x3c9   :  { %v2333_v39 = vsel %vm7673_vm11, %v2328_v45, %v2332_v24  ;;  %v2340_v10 = vrot.slane %v2338_v58, 5  ;;  %v2358_v31 = vshll.u32 %v2134_v11, 16  ;;  %v5856_v27 = vor.u32 %v6348_v7, %v5855_v52  ;;  %v2792_v54 = vld [vmem:[#allocation2 + $0x1a0] sm:$0xf]  ;;  %v2793_v23 = vld [vmem:[#allocation2 + $0x1a8] sm:$0xf] }
 0x3ca   :  { %4356 = vmatmul.bf16.gmra.mxu2 %v5836_v43  ;;  %2391 = vst [vmem:[#allocation3 + $0x1dc] sm:$0xf] %v2333_v39  ;;  %v2337_v43 = vrot.slane %v2335_v8, 4  ;;  %v2351_v18 = vrot.slane %v2349_v55, 4  ;;  %v2354_v38 = vrot.slane %v2352_v20, 5  ;;  %v2346_v37 = vrot.slane %v2344_v21, 5 }
 0x3cb   :  { %2808 = vst [vmem:[#allocation3 + $0x214] sm:$0xf] %v2792_v54  ;;  %v2408_v9 = vld [vmem:[#allocation2 + $0x1e0] sm:$0xf]  ;;  %v2409_v22 = vld [vmem:[#allocation2 + $0x1e8] sm:$0xf] }
 0x3cc   :  { %4160 = vmatmul.bf16.gmra.mxu1 %v5820_v49  ;;  %v2341_v49 = vor.u32 %v2340_v10, %v2337_v43  ;;  %v2355_v34 = vor.u32 %v2354_v38, %v2351_v18  ;;  %2809 = vst [vmem:[#allocation3 + $0x238] sm:$0xf] %v2793_v23  ;;  %v2360_v35 = vrot.slane %v2358_v31, 5  ;;  %v2474_v29 = vld [vmem:[#allocation2 + $0x1b0] sm:$0xf]  ;;  %v6398_v10 = vld [vmem:[%s9199_s2 + $0x168] sm:$0xff] }
 0x3cd   :  { %2424 = vst [vmem:[#allocation3 + $0x204] sm:$0xf] %v2408_v9  ;;  %v2475_v26 = vld [vmem:[#allocation2 + $0x1b4] sm:$0x1]  ;;  %v2476_v32 = vld [vmem:[#allocation2 + $0x1b8] sm:$0xf]  ;;  %4369 = vmatpush.bf16.msra.mxu3 %v6398_v10 }
 0x3ce   :  { %v2342_v47 = vrot.slane %v2341_v49, 4  ;;  %v2356_v14 = vrot.slane %v2355_v34, 4  ;;  %2425 = vst [vmem:[#allocation3 + $0x228] sm:$0xf] %v2409_v22  ;;  %v2477_v2 = vld [vmem:[#allocation2 + $0x1bc] sm:$0x1] }
 0x3cf   :  { %v2603_v57 = vshrl.u32 %v2474_v29, 16  ;;  %v2606_v59 = vshll.u32 %v2474_v29, 16  ;;  %v5611_v4 = vld [vmem:[#allocation3 + $0x8] sm:$0xf]  ;;  %v2617_v0 = vshrl.u32 %v2476_v32, 16  ;;  %v2620_v3 = vshll.u32 %v2476_v32, 16 }
 0x3d0   :  { %v2347_v6 = vsel %vm7673_vm11, %v2342_v47, %v2346_v37  ;;  %v2361_v61 = vsel %vm7673_vm11, %v2356_v14, %v2360_v35  ;;  %v2754_v41 = vld [vmem:[#allocation2 + $0x128] sm:$0xf]  ;;  %v2612_v48 = vshll.u32 %v2475_v26, 16  ;;  %v2755_v36 = vld [vmem:[#allocation2 + $0x130] sm:$0xf]  ;;  %v2626_v45 = vshll.u32 %v2477_v2, 16 }
 0x3d1   :  { %2392 = vst [vmem:[#allocation3 + $0x200] sm:$0xf] %v2347_v6  ;;  %v2605_v1 = vrot.slane %v2603_v57, 4  ;;  %v2608_v46 = vrot.slane %v2606_v59, 5  ;;  %v6286_v30 = vld [vmem:[#allocation3 + $0x28] sm:$0xf0] }
 0x3d2   :  { %2393 = vst [vmem:[#allocation3 + $0x224] sm:$0xf] %v2361_v61  ;;  %v6284_v40 = vld [vmem:[#allocation3 + $0x1c] sm:$0xf]  ;;  %v2619_v51 = vrot.slane %v2617_v0, 4  ;;  %v2622_v13 = vrot.slane %v2620_v3, 5  ;;  %v5612_v39 = vor.u32 %v6286_v30, %v5611_v4 }
 0x3d3   :  { %v5629_v24 = vld [vmem:[#allocation3 + $0x3c] sm:$0xf0]  ;;  %v2609_v42 = vor.u32 %v2608_v46, %v2605_v1  ;;  %2770 = vst [vmem:[#allocation3 + $0x138] sm:$0xf] %v2754_v41  ;;  %v6282_v16 = vld [vmem:[#allocation3 + $0xc] sm:$0xf] }
 0x3d4   :  { %v2478_v52 = vld [vmem:[#allocation2 + $0x1c0] sm:$0xf]  ;;  %v5613_v63 = vld [vmem:[#allocation3 + $0x2c] sm:$0xf0]  ;;  %v2623_v62 = vor.u32 %v2622_v13, %v2619_v51  ;;  %2771 = vst [vmem:[#allocation3 + $0x15c] sm:$0xf] %v2755_v36  ;;  %v5632_v43 = vor.u32 %v6284_v40, %v5629_v24 }
 0x3d5   :  { %v2610_v11 = vrot.slane %v2609_v42, 4  ;;  %v2614_v8 = vrot.slane %v2612_v48, 5  ;;  %v2480_v58 = vld [vmem:[#allocation2 + $0x1c8] sm:$0xf]  ;;  %v2631_v7 = vshrl.u32 %v2478_v52, 16  ;;  %v2628_v20 = vrot.slane %v2626_v45, 5 }
 0x3d6   :  { %v2624_v55 = vrot.slane %v2623_v62, 4  ;;  %v2634_v25 = vshll.u32 %v2478_v52, 16  ;;  %v2756_v31 = vld [vmem:[#allocation2 + $0x138] sm:$0xf]  ;;  %v2645_v54 = vshrl.u32 %v2480_v58, 16  ;;  %v2648_v23 = vshll.u32 %v2480_v58, 16 }
 0x3d7   :  { %v2615_v21 = vsel %vm7673_vm11, %v2610_v11, %v2614_v8  ;;  %v2633_v18 = vrot.slane %v2631_v7, 4  ;;  %v5616_v34 = vor.u32 %v6282_v16, %v5613_v63  ;;  %v2757_v9 = vld [vmem:[#allocation2 + $0x140] sm:$0xf]  ;;  %2772 = vst [vmem:[#allocation3 + $0x180] sm:$0xf] %v2756_v31 }
 0x3d8   :  { %4214 = vmatmul.bf16.gmra.mxu3 %v5860_v19  ;;  %v2479_v19 = vld [vmem:[#allocation2 + $0x1c4] sm:$0x1]  ;;  %2738 = vst [vmem:[#allocation3 + $0x134] sm:$0xf] %v2615_v21  ;;  %v2636_v49 = vrot.slane %v2634_v25, 5  ;;  %v2647_v37 = vrot.slane %v2645_v54, 4 }
 0x3d9   :  { %v2640_v38 = vshll.u32 %v2479_v19, 16  ;;  %v2650_v22 = vrot.slane %v2648_v23, 5  ;;  %2773 = vst [vmem:[#allocation3 + $0x1a4] sm:$0xf] %v2757_v9  ;;  %v2482_v61 = vld [vmem:[#allocation2 + $0x1d0] sm:$0xf] }
 0x3da   :  { %4361 = vmatmul.bf16.gmra.mxu2 %v5872_v33  ;;  %v2481_v33 = vld [vmem:[#allocation2 + $0x1cc] sm:$0x1]  ;;  %v2637_v47 = vor.u32 %v2636_v49, %v2633_v18  ;;  %v2483_v26 = vld [vmem:[#allocation2 + $0x1d4] sm:$0x1]  ;;  %v2484_v32 = vld [vmem:[#allocation2 + $0x1d8] sm:$0xf] }
 0x3db   :  { %v2654_v14 = vshll.u32 %v2481_v33, 16  ;;  %v2642_v6 = vrot.slane %v2640_v38, 5  ;;  %v2651_v29 = vor.u32 %v2650_v22, %v2647_v37  ;;  %v2659_v2 = vshrl.u32 %v2482_v61, 16  ;;  %v2485_v3 = vld [vmem:[#allocation2 + $0x1dc] sm:$0x1]  ;;  %v6397_v49 = vld [vmem:[%s9199_s2 + $0x160] sm:$0xff] }
 0x3dc   :  { %4165 = vmatmul.bf16.gmra.mxu1 %v5856_v27  ;;  %v2629_v27 = vsel %vm7673_vm11, %v2624_v55, %v2628_v20  ;;  %v2638_v35 = vrot.slane %v2637_v47, 4  ;;  %v2662_v57 = vshll.u32 %v2482_v61, 16  ;;  %v2673_v41 = vshrl.u32 %v2484_v32, 16  ;;  %v5647_v36 = vld [vmem:[#allocation3 + $0x50] sm:$0xf]  ;;  %4370 = vmatpush.bf16.msra.mxu3 %v6397_v49 }
 0x3dd   :  { %2739 = vst [vmem:[#allocation3 + $0x158] sm:$0xf] %v2629_v27  ;;  %v2652_v4 = vrot.slane %v2651_v29, 4  ;;  %v2656_v0 = vrot.slane %v2654_v14, 5  ;;  %v2661_v1 = vrot.slane %v2659_v2, 4  ;;  %v2668_v48 = vshll.u32 %v2483_v26, 16 }
 0x3de   :  { %v2643_v59 = vsel %vm7673_vm11, %v2638_v35, %v2642_v6  ;;  %v2664_v46 = vrot.slane %v2662_v57, 5  ;;  %v2675_v40 = vrot.slane %v2673_v41, 4  ;;  %v2676_v51 = vshll.u32 %v2484_v32, 16  ;;  %v2758_v13 = vld [vmem:[#allocation2 + $0x148] sm:$0xf] }
 0x3df   :  { %2740 = vst [vmem:[#allocation3 + $0x17c] sm:$0xf] %v2643_v59  ;;  %v2657_v30 = vsel %vm7673_vm11, %v2652_v4, %v2656_v0  ;;  %v6295_v45 = vld [vmem:[#allocation3 + $0x70] sm:$0xf0]  ;;  %v6293_v24 = vld [vmem:[#allocation3 + $0x64] sm:$0xf] }
 0x3e0   :  { %2741 = vst [vmem:[#allocation3 + $0x1a0] sm:$0xf] %v2657_v30  ;;  %v2665_v42 = vor.u32 %v2664_v46, %v2661_v1  ;;  %v2682_v52 = vshll.u32 %v2485_v3, 16  ;;  %v5665_v16 = vld [vmem:[#allocation3 + $0x84] sm:$0xf0]  ;;  %v2678_v63 = vrot.slane %v2676_v51, 5  ;;  %v5648_v8 = vor.u32 %v6295_v45, %v5647_v36 }
 0x3e1   :  { %v2759_v62 = vld [vmem:[#allocation2 + $0x150] sm:$0xf]  ;;  %2774 = vst [vmem:[#allocation3 + $0x1c8] sm:$0xf] %v2758_v13  ;;  %v2486_v11 = vld [vmem:[#allocation2 + $0x1e0] sm:$0xf]  ;;  %v5668_v18 = vor.u32 %v6293_v24, %v5665_v16 }
 0x3e2   :  { %v2666_v19 = vrot.slane %v2665_v42, 4  ;;  %v6291_v58 = vld [vmem:[#allocation3 + $0x54] sm:$0xf]  ;;  %v2679_v7 = vor.u32 %v2678_v63, %v2675_v40  ;;  %2775 = vst [vmem:[#allocation3 + $0x1ec] sm:$0xf] %v2759_v62  ;;  %v2687_v10 = vshrl.u32 %v2486_v11, 16 }
 0x3e3   :  { %v2487_v55 = vld [vmem:[#allocation2 + $0x1e4] sm:$0x1]  ;;  %v2488_v20 = vld [vmem:[#allocation2 + $0x1e8] sm:$0xf]  ;;  %v5649_v33 = vld [vmem:[#allocation3 + $0x74] sm:$0xf0] }
 0x3e4   :  { %v2690_v21 = vshll.u32 %v2486_v11, 16  ;;  %v2680_v38 = vrot.slane %v2679_v7, 4  ;;  %v2489_v31 = vld [vmem:[#allocation2 + $0x1ec] sm:$0x1]  ;;  %v2701_v27 = vshrl.u32 %v2488_v20, 16  ;;  %v2689_v54 = vrot.slane %v2687_v10, 4 }
 0x3e5   :  { %v2704_v9 = vshll.u32 %v2488_v20, 16  ;;  %v2760_v22 = vld [vmem:[#allocation2 + $0x158] sm:$0xf]  ;;  %v5652_v14 = vor.u32 %v6291_v58, %v5649_v33  ;;  %v2710_v29 = vshll.u32 %v2489_v31, 16  ;;  %v2761_v61 = vld [vmem:[#allocation2 + $0x160] sm:$0xf] }
 0x3e6   :  { %v2692_v23 = vrot.slane %v2690_v21, 5  ;;  %v2703_v37 = vrot.slane %v2701_v27, 4  ;;  %2776 = vst [vmem:[#allocation3 + $0x210] sm:$0xf] %v2760_v22  ;;  %v2826_v57 = vld [vmem:[#allocation2 + $0x128] sm:$0xf] }
 0x3e7   :  { %v2706_v6 = vrot.slane %v2704_v9, 5  ;;  %2777 = vst [vmem:[#allocation3 + $0x234] sm:$0xf] %v2761_v61  ;;  %v2827_v59 = vld [vmem:[#allocation2 + $0x12c] sm:$0x1]  ;;  %v2712_v41 = vrot.slane %v2710_v29, 5 }
 0x3e8   :  { %4228 = vmatmul.bf16.vlgmr.msrb.gmra.mxu3 %v5612_v39  ;;  %v2670_v39 = vrot.slane %v2668_v48, 5  ;;  %v2693_v35 = vor.u32 %v2692_v23, %v2689_v54  ;;  %v2828_v4 = vld [vmem:[#allocation2 + $0x130] sm:$0xf]  ;;  %v2829_v1 = vld [vmem:[#allocation2 + $0x134] sm:$0x1]  ;;  %v2955_v46 = vshrl.u32 %v2826_v57, 16 }
 0x3e9   :  { %v2707_v2 = vor.u32 %v2706_v6, %v2703_v37  ;;  %v2958_v48 = vshll.u32 %v2826_v57, 16  ;;  %v2964_v36 = vshll.u32 %v2827_v59, 16  ;;  %v2969_v30 = vshrl.u32 %v2828_v4, 16  ;;  %v5683_v51 = vld [vmem:[#allocation3 + $0x98] sm:$0xf] }
 0x3ea   :  { %4473 = vmatmul.bf16.vlgmr.msra.gmra.mxu2 %v5632_v43  ;;  %v2671_v25 = vsel %vm7673_vm11, %v2666_v19, %v2670_v39  ;;  %v2684_v43 = vrot.slane %v2682_v52, 5  ;;  %v2694_v26 = vrot.slane %v2693_v35, 4  ;;  %v2972_v40 = vshll.u32 %v2828_v4, 16  ;;  %v6304_v13 = vld [vmem:[#allocation3 + $0xb8] sm:$0xf0] }
 0x3eb   :  { %2742 = vst [vmem:[#allocation3 + $0x1c4] sm:$0xf] %v2671_v25  ;;  %v2708_v3 = vrot.slane %v2707_v2, 4  ;;  %v2957_v24 = vrot.slane %v2955_v46, 4  ;;  %v2978_v42 = vshll.u32 %v2829_v1, 16  ;;  %v2960_v52 = vrot.slane %v2958_v48, 5  ;;  %v8362_v1 = vpop.f32.mrf.mxu2 }
 0x3ec   :  { %4277 = vmatmul.bf16.vlgmr.msrb.gmra.mxu1 %v5616_v34  ;;  %v2696_v34 = vshll.u32 %v2487_v55, 16  ;;  %v2685_v47 = vsel %vm7673_vm11, %v2680_v38, %v2684_v43  ;;  %v2830_v16 = vld [vmem:[#allocation2 + $0x138] sm:$0xf]  ;;  %v6302_v63 = vld [vmem:[#allocation3 + $0xac] sm:$0xf]  ;;  %v2971_v19 = vrot.slane %v2969_v30, 4 }
 0x3ed   :  { %2743 = vst [vmem:[#allocation3 + $0x1e8] sm:$0xf] %v2685_v47  ;;  %v2713_v45 = vsel %vm7673_vm11, %v2708_v3, %v2712_v41  ;;  %v5701_v62 = vld [vmem:[#allocation3 + $0xcc] sm:$0xf0]  ;;  %v2974_v39 = vrot.slane %v2972_v40, 5  ;;  %v2961_v58 = vor.u32 %v2960_v52, %v2957_v24  ;;  %v2966_v7 = vrot.slane %v2964_v36, 5 }
 0x3ee   :  { %v2698_v32 = vrot.slane %v2696_v34, 5  ;;  %2745 = vst [vmem:[#allocation3 + $0x230] sm:$0xf] %v2713_v45  ;;  %v2831_v11 = vld [vmem:[#allocation2 + $0x13c] sm:$0x1]  ;;  %v2980_v43 = vrot.slane %v2978_v42, 5  ;;  %v5704_v37 = vor.u32 %v6302_v63, %v5701_v62 }
 0x3ef   :  { %v2832_v55 = vld [vmem:[#allocation2 + $0x140] sm:$0xf]  ;;  %v2833_v20 = vld [vmem:[#allocation2 + $0x144] sm:$0x1]  ;;  %v6300_v33 = vld [vmem:[#allocation3 + $0x9c] sm:$0xf]  ;;  %v2975_v25 = vor.u32 %v2974_v39, %v2971_v19 }
 0x3f0   :  { %v2699_v0 = vsel %vm7673_vm11, %v2694_v26, %v2698_v32  ;;  %v2983_v10 = vshrl.u32 %v2830_v16, 16  ;;  %v2986_v21 = vshll.u32 %v2830_v16, 16  ;;  %v2962_v38 = vrot.slane %v2961_v58, 4  ;;  %v2834_v47 = vld [vmem:[#allocation2 + $0x148] sm:$0xf]  ;;  %v6396_v26 = vld [vmem:[%s9199_s2 + $0x158] sm:$0xff] }
 0x3f1   :  { %2744 = vst [vmem:[#allocation3 + $0x20c] sm:$0xf] %v2699_v0  ;;  %v2992_v31 = vshll.u32 %v2831_v11, 16  ;;  %v2997_v27 = vshrl.u32 %v2832_v55, 16  ;;  %v3000_v49 = vshll.u32 %v2832_v55, 16  ;;  %v2976_v54 = vrot.slane %v2975_v25, 4  ;;  %4371 = vmatpush.bf16.msra.mxu3 %v6396_v26 }
 0x3f2   :  { %v2985_v23 = vrot.slane %v2983_v10, 4  ;;  %v2988_v34 = vrot.slane %v2986_v21, 5  ;;  %v3006_v9 = vshll.u32 %v2833_v20, 16  ;;  %v2967_v22 = vsel %vm7673_vm11, %v2962_v38, %v2966_v7  ;;  %v2835_v6 = vld [vmem:[#allocation2 + $0x14c] sm:$0x1] }
 0x3f3   :  { %v3002_v35 = vrot.slane %v3000_v49, 5  ;;  %v2836_v29 = vld [vmem:[#allocation2 + $0x150] sm:$0xf]  ;;  %v2981_v32 = vsel %vm7673_vm11, %v2976_v54, %v2980_v43  ;;  %3090 = vst [vmem:[#allocation3 + $0x140] sm:$0xf] %v2967_v22  ;;  %v2994_v57 = vrot.slane %v2992_v31, 5  ;;  %v8372_v22 = vpop.f32.mrf.mxu2 }
 0x3f4   :  { %v2989_v2 = vor.u32 %v2988_v34, %v2985_v23  ;;  %v2837_v59 = vld [vmem:[#allocation2 + $0x154] sm:$0x1]  ;;  %3091 = vst [vmem:[#allocation3 + $0x164] sm:$0xf] %v2981_v32  ;;  %v3008_v0 = vrot.slane %v3006_v9, 5  ;;  %v3011_v3 = vshrl.u32 %v2834_v47, 16 }
 0x3f5   :  { %v3014_v41 = vshll.u32 %v2834_v47, 16  ;;  %v3020_v48 = vshll.u32 %v2835_v6, 16  ;;  %v3025_v36 = vshrl.u32 %v2836_v29, 16  ;;  %v3028_v30 = vshll.u32 %v2836_v29, 16  ;;  %v2838_v40 = vld [vmem:[#allocation2 + $0x158] sm:$0xf] }
 0x3f6   :  { %v2990_v46 = vrot.slane %v2989_v2, 4  ;;  %v3034_v24 = vshll.u32 %v2837_v59, 16  ;;  %v2840_v42 = vld [vmem:[#allocation2 + $0x160] sm:$0xf]  ;;  %v2839_v11 = vld [vmem:[#allocation2 + $0x15c] sm:$0x1] }
 0x3f7   :  { %v3016_v45 = vrot.slane %v3014_v41, 5  ;;  %v3027_v16 = vrot.slane %v3025_v36, 4  ;;  %v3030_v63 = vrot.slane %v3028_v30, 5  ;;  %v3022_v39 = vrot.slane %v3020_v48, 5  ;;  %v2841_v7 = vld [vmem:[#allocation2 + $0x164] sm:$0x1]  ;;  %v8383_v48 = vpop.f32.mrf.mxu1  ;;  %v8385_v36 = vpop.f32.mrf.mxu3 }
 0x3f8   :  { %4233 = vmatmul.bf16.gmra.mxu3 %v5648_v8  ;;  %v5684_v8 = vor.u32 %v6304_v13, %v5683_v51  ;;  %v3013_v13 = vrot.slane %v3011_v3, 4  ;;  %v2995_v52 = vsel %vm7673_vm11, %v2990_v46, %v2994_v57  ;;  %v3042_v55 = vshll.u32 %v2838_v40, 16  ;;  %v5719_v9 = vld [vmem:[#allocation3 + $0xe0] sm:$0xf]  ;;  %v6313_v47 = vld [vmem:[#allocation3 + $0x100] sm:$0xf0] }
 0x3f9   :  { %3092 = vst [vmem:[#allocation3 + $0x188] sm:$0xf] %v2995_v52  ;;  %v3031_v58 = vor.u32 %v3030_v63, %v3027_v16  ;;  %v3053_v20 = vshrl.u32 %v2840_v42, 16  ;;  %v3036_v25 = vrot.slane %v3034_v24, 5  ;;  %v3056_v10 = vshll.u32 %v2840_v42, 16  ;;  %v6395_v3 = vld [vmem:[%s9199_s2 + $0x150] sm:$0xff] }
 0x3fa   :  { %4478 = vmatmul.bf16.gmra.mxu2 %v5668_v18  ;;  %v5685_v18 = vld [vmem:[#allocation3 + $0xbc] sm:$0xf0]  ;;  %v3017_v19 = vor.u32 %v3016_v45, %v3013_v13  ;;  %v3048_v38 = vshll.u32 %v2839_v11, 16  ;;  %v3062_v54 = vshll.u32 %v2841_v7, 16  ;;  %v6311_v6 = vld [vmem:[#allocation3 + $0xf4] sm:$0xf]  ;;  %v5720_v32 = vor.u32 %v6313_v47, %v5719_v9  ;;  %4372 = vmatpush.bf16.msra.mxu3 %v6395_v3 }
 0x3fb   :  { %v5688_v61 = vor.u32 %v6300_v33, %v5685_v18  ;;  %v3032_v21 = vrot.slane %v3031_v58, 4  ;;  %v3044_v18 = vrot.slane %v3042_v55, 5  ;;  %v3055_v31 = vrot.slane %v3053_v20, 4  ;;  %v5737_v29 = vld [vmem:[#allocation3 + $0x114] sm:$0xf0]  ;;  %v8381_v46 = vpop.f32.mrf.mxu2  ;;  %v6394_v16 = vld [vmem:[%s9199_s2 + $0x148] sm:$0xff] }
 0x3fc   :  { %4282 = vmatmul.bf16.gmra.mxu1 %v5652_v14  ;;  %v2999_v14 = vrot.slane %v2997_v27, 4  ;;  %v3018_v33 = vrot.slane %v3017_v19, 4  ;;  %v3058_v49 = vrot.slane %v3056_v10, 5  ;;  %v3064_v26 = vrot.slane %v3062_v54, 5  ;;  %v6309_v57 = vld [vmem:[#allocation3 + $0xe4] sm:$0xf] }
 0x3fd   :  { %v3037_v23 = vsel %vm7673_vm11, %v3032_v21, %v3036_v25  ;;  %v5721_v59 = vld [vmem:[#allocation3 + $0x104] sm:$0xf0]  ;;  %v6322_v30 = vld [vmem:[#allocation3 + $0x148] sm:$0xf0]  ;;  %v5757_v24 = vld [vmem:[#allocation3 + $0x14c] sm:$0xf0] }
 0x3fe   :  { %v3003_v4 = vor.u32 %v3002_v35, %v2999_v14  ;;  %v3023_v27 = vsel %vm7673_vm11, %v3018_v33, %v3022_v39  ;;  %3095 = vst [vmem:[#allocation3 + $0x1f4] sm:$0xf] %v3037_v23  ;;  %v3050_v35 = vrot.slane %v3048_v38, 5  ;;  %v5724_v41 = vor.u32 %v6309_v57, %v5721_v59  ;;  %v5755_v56 = vld [vmem:[#allocation3 + $0x128] sm:$0xf]  ;;  %4373 = vmatpush.bf16.msra.mxu3 %v6394_v16  ;;  %v6408_v11 = vld [vmem:[%s9199_s2 + $0x1b8] sm:$0xff] }
 0x3ff   :  { %3094 = vst [vmem:[#allocation3 + $0x1d0] sm:$0xf] %v3023_v27  ;;  %v5756_v13 = vor.u32 %v6322_v30, %v5755_v56  ;;  %v6318_v45 = vld [vmem:[#allocation3 + $0x12c] sm:$0xf]  ;;  %4416 = vmatpush.bf16.msra.mxu1 %v6408_v11  ;;  %v5791_v55 = vld [vmem:[#allocation3 + $0x170] sm:$0xf] }
 0x400   :  { %v3004_v51 = vrot.slane %v3003_v4, 4  ;;  %v6331_v20 = vld [vmem:[#allocation3 + $0x190] sm:$0xf0]  ;;  %v6329_v25 = vld [vmem:[#allocation3 + $0x184] sm:$0xf]  ;;  %v6402_v56 = vld [vmem:[%s9199_s2 + $0x188] sm:$0xff] }
 0x401   :  { %v6407_v10 = vld [vmem:[%s9199_s2 + $0x1b0] sm:$0xff]  ;;  %v5792_v21 = vor.u32 %v6331_v20, %v5791_v55  ;;  %v5793_v38 = vld [vmem:[#allocation3 + $0x194] sm:$0xf0]  ;;  %v6393_v27 = vld [vmem:[%s9199_s2 + $0x140] sm:$0xff] }
 0x402   :  { %v3009_v62 = vsel %vm7673_vm11, %v3004_v51, %v3008_v0  ;;  %v5740_v0 = vor.u32 %v6311_v6, %v5737_v29  ;;  %v5773_v51 = vld [vmem:[#allocation3 + $0x15c] sm:$0xf0]  ;;  %4374 = vmatpush.bf16.msra.mxu3 %v6393_v27  ;;  %v5827_v29 = vld [vmem:[#allocation3 + $0x1b8] sm:$0xf]  ;;  %v6403_v57 = vld [vmem:[%s9199_s2 + $0x190] sm:$0xff] }
 0x403   :  { %3093 = vst [vmem:[#allocation3 + $0x1ac] sm:$0xf] %v3009_v62  ;;  %v8387_v42 = vpop.f32.mrf.mxu2  ;;  %v5760_v62 = vor.u32 %v6318_v45, %v5757_v24  ;;  %4417 = vmatpush.bf16.msra.mxu1 %v6407_v10  ;;  %v5829_v3 = vld [vmem:[#allocation3 + $0x1dc] sm:$0xf0]  ;;  %v6424_v30 = vld [vmem:[%s9199_s2 + $0x238] sm:$0xff]  ;;  %v6423_v10 = vld [vmem:[%s9199_s2 + $0x230] sm:$0xff] }
 0x404   :  { %v6401_v24 = vld [vmem:[%s9199_s2 + $0x180] sm:$0xff] }
 0x405   :  { %v6345_v20 = vld [vmem:[#allocation3 + $0x204] sm:$0xf] }
 0x406   :  { %4514 = vmatpush.bf16.msrb.mxu3 %v6424_v30  ;;  %v5657_v30 = vld [vmem:[#allocation3 + $0x7c] sm:$0xf0] }
 0x408   :  { %4238 = vmatmul.bf16.gmra.mxu3 %v5684_v8  ;;  %v3039_v8 = vshrl.u32 %v2838_v40, 16  ;;  %v6320_v40 = vld [vmem:[#allocation3 + $0x13c] sm:$0xf] }
 0x409   :  { %v5776_v52 = vor.u32 %v6320_v40, %v5773_v51 }
 0x40a   :  { %4483 = vmatmul.bf16.gmra.mxu2 %v5704_v37  ;;  %v3041_v43 = vrot.slane %v3039_v8, 4  ;;  %v3059_v37 = vor.u32 %v3058_v49, %v3055_v31  ;;  %v6406_v49 = vld [vmem:[%s9199_s2 + $0x1a8] sm:$0xff]  ;;  %4515 = vmatpush.bf16.msrb.mxu3 %v6423_v10 }
 0x40b   :  { %v8397_v58 = vpop.f32.mrf.mxu2  ;;  %4418 = vmatpush.bf16.msra.mxu1 %v6406_v49 }
 0x40c   :  { %4287 = vmatmul.bf16.gmra.mxu1 %v5688_v61  ;;  %v3045_v34 = vor.u32 %v3044_v18, %v3041_v43  ;;  %v3060_v61 = vrot.slane %v3059_v37, 4  ;;  %v5809_v43 = vld [vmem:[#allocation3 + $0x1a4] sm:$0xf0]  ;;  %v6327_v18 = vld [vmem:[#allocation3 + $0x174] sm:$0xf]  ;;  %v6405_v37 = vld [vmem:[%s9199_s2 + $0x1a0] sm:$0xff] }
 0x40d   :  { %v5812_v31 = vor.u32 %v6329_v25, %v5809_v43  ;;  %v5796_v23 = vor.u32 %v6327_v18, %v5793_v38  ;;  %v5865_v25 = vld [vmem:[#allocation3 + $0x224] sm:$0xf0] }
 0x40e   :  { %v3046_v14 = vrot.slane %v3045_v34, 4  ;;  %v3065_v4 = vsel %vm7673_vm11, %v3060_v61, %v3064_v26  ;;  %v6340_v61 = vld [vmem:[#allocation3 + $0x1d8] sm:$0xf0]  ;;  %v5868_v38 = vor.u32 %v6345_v20, %v5865_v25  ;;  %v6301_v20 = vld [vmem:[#allocation3 + $0xa4] sm:$0xf] }
 0x40f   :  { %3097 = vst [vmem:[#allocation3 + $0x23c] sm:$0xf] %v3065_v4  ;;  %4419 = vmatpush.bf16.msra.mxu1 %v6405_v37  ;;  %v5828_v4 = vor.u32 %v6340_v61, %v5827_v29  ;;  %v6422_v29 = vld [vmem:[%s9199_s2 + $0x228] sm:$0xff] }
 0x410   :  { %v3051_v2 = vsel %vm7673_vm11, %v3046_v14, %v3050_v35  ;;  %v6404_v14 = vld [vmem:[%s9199_s2 + $0x198] sm:$0xff]  ;;  %4516 = vmatpush.bf16.msrb.mxu3 %v6422_v29  ;;  %v5693_v25 = vld [vmem:[#allocation3 + $0xc4] sm:$0xf0]  ;;  %v5729_v29 = vld [vmem:[#allocation3 + $0x10c] sm:$0xf0] }
 0x411   :  { %3096 = vst [vmem:[#allocation3 + $0x218] sm:$0xf] %v3051_v2  ;;  %v5845_v2 = vld [vmem:[#allocation3 + $0x1ec] sm:$0xf0] }
 0x413   :  { %v8410_v9 = vpop.f32.mrf.mxu2  ;;  %4420 = vmatpush.bf16.msra.mxu1 %v6404_v14 }
 0x417   :  { %4421 = vmatpush.bf16.msra.mxu1 %v6403_v57 }
 0x418   :  { %4243 = vmatmul.bf16.gmra.mxu3 %v5720_v32  ;;  %v6338_v32 = vld [vmem:[#allocation3 + $0x1cc] sm:$0xf] }
 0x41a   :  { %4488 = vmatmul.bf16.gmra.mxu2 %v5740_v0  ;;  %v6336_v0 = vld [vmem:[#allocation3 + $0x1bc] sm:$0xf] }
 0x41b   :  { %v8425_v59 = vpop.f32.mrf.mxu2  ;;  %v5832_v51 = vor.u32 %v6336_v0, %v5829_v3  ;;  %4422 = vmatpush.bf16.msra.mxu1 %v6402_v56  ;;  %v4183_v3 = vadd.f32 %v7932_v15, %v7940_v5  ;;  %v6292_v56 = vld [vmem:[#allocation3 + $0x5c] sm:$0xf] }
 0x41c   :  { %4292 = vmatmul.bf16.gmra.mxu1 %v5724_v41  ;;  %v5848_v41 = vor.u32 %v6338_v32, %v5845_v2 }
 0x41f   :  { %4423 = vmatpush.bf16.msra.mxu1 %v6401_v24  ;;  %v5663_v24 = vld [vmem:[#allocation3 + $0x60] sm:$0xf] }
 0x428   :  { %4248 = vmatmul.bf16.gmra.mxu3 %v5756_v13 }
 0x429   :  { %v4151_v63 = vpop.f32.mrf.mxu1 }
 0x42a   :  { %4493 = vmatmul.bf16.gmra.mxu2 %v5776_v52  ;;  %v8438_v52 = vpop.f32.mrf.mxu2 }
 0x42b   :  { %v4200_v19 = vpop.f32.mrf.mxu3 }
 0x42c   :  { %v8392_v39 = vadd.f32 %v4200_v19, %v4151_v63  ;;  %4297 = vmatmul.bf16.gmra.mxu1 %v5760_v62  ;;  %v5863_v62 = vld [vmem:[#allocation3 + $0x200] sm:$0xf]  ;;  %v6349_v19 = vld [vmem:[#allocation3 + $0x220] sm:$0xf0] }
 0x42d   :  { %v5864_v55 = vor.u32 %v6349_v19, %v5863_v62 }
 0x431   :  { %v4153_v8 = vpop.f32.mrf.mxu1 }
 0x432   :  { %v8445_v18 = vpop.f32.mrf.mxu2 }
 0x433   :  { %v4202_v7 = vpop.f32.mrf.mxu3 }
 0x434   :  { %v8399_v33 = vadd.f32 %v4202_v7, %v4153_v8  ;;  %v6347_v8 = vld [vmem:[#allocation3 + $0x214] sm:$0xf]  ;;  %v5881_v7 = vld [vmem:[#allocation3 + $0x234] sm:$0xf0] }
 0x435   :  { %v5884_v43 = vor.u32 %v6347_v8, %v5881_v7  ;;  %v4188_v7 = vadd.f32 %v8362_v1, %v7962_v50 }
 0x438   :  { %4253 = vmatmul.bf16.gmra.mxu3 %v5792_v21 }
 0x439   :  { %v4156_v54 = vpop.f32.mrf.mxu1 }
 0x43a   :  { %4498 = vmatmul.bf16.gmra.mxu2 %v5812_v31 }
 0x43b   :  { %v4205_v34 = vpop.f32.mrf.mxu3 }
 0x43c   :  { %v8412_v47 = vadd.f32 %v4205_v34, %v4156_v54  ;;  %4302 = vmatmul.bf16.gmra.mxu1 %v5796_v23  ;;  %v6283_v23 = vld [vmem:[#allocation3 + $0x14] sm:$0xf]  ;;  %v5621_v34 = vld [vmem:[#allocation3 + $0x34] sm:$0xf0] }
 0x43d   :  { %v5624_v14 = vor.u32 %v6283_v23, %v5621_v34 }
 0x441   :  { %v4158_v35 = vpop.f32.mrf.mxu1 }
 0x443   :  { %v4207_v6 = vpop.f32.mrf.mxu3 }
 0x444   :  { %v8420_v26 = vadd.f32 %v4207_v6, %v4158_v35  ;;  %v5627_v35 = vld [vmem:[#allocation3 + $0x18] sm:$0xf]  ;;  %v6288_v6 = vld [vmem:[#allocation3 + $0x38] sm:$0xf0] }
 0x445   :  { %v5628_v32 = vor.u32 %v6288_v6, %v5627_v35  ;;  %v6310_v6 = vld [vmem:[#allocation3 + $0xec] sm:$0xf] }
 0x448   :  { %4258 = vmatmul.bf16.gmra.mxu3 %v5828_v4 }
 0x449   :  { %v4161_v40 = vpop.f32.mrf.mxu1 }
 0x44a   :  { %4503 = vmatmul.bf16.gmra.mxu2 %v5848_v41 }
 0x44b   :  { %v4210_v13 = vpop.f32.mrf.mxu3 }
 0x44c   :  { %v8433_v45 = vadd.f32 %v4210_v13, %v4161_v40  ;;  %4307 = vmatmul.bf16.gmra.mxu1 %v5832_v51  ;;  %v5660_v13 = vor.u32 %v6292_v56, %v5657_v30 }
 0x451   :  { %v4163_v16 = vpop.f32.mrf.mxu1 }
 0x453   :  { %v4212_v63 = vpop.f32.mrf.mxu3 }
 0x454   :  { %v8440_v11 = vadd.f32 %v4212_v63, %v4163_v16  ;;  %v6297_v16 = vld [vmem:[#allocation3 + $0x80] sm:$0xf0] }
 0x455   :  { %v5664_v62 = vor.u32 %v6297_v16, %v5663_v24  ;;  %v6319_v24 = vld [vmem:[#allocation3 + $0x134] sm:$0xf]  ;;  %v5765_v16 = vld [vmem:[#allocation3 + $0x154] sm:$0xf0] }
 0x458   :  { %4263 = vmatmul.bf16.gmra.mxu3 %v5864_v55 }
 0x459   :  { %v4166_v21 = vpop.f32.mrf.mxu1 }
 0x45a   :  { %4508 = vmatmul.bf16.gmra.mxu2 %v5884_v43 }
 0x45b   :  { %v4215_v31 = vpop.f32.mrf.mxu3 }
 0x45c   :  { %v8447_v27 = vadd.f32 %v4215_v31, %v4166_v21  ;;  %4312 = vmatmul.bf16.gmra.mxu1 %v5868_v38  ;;  %v5696_v21 = vor.u32 %v6301_v20, %v5693_v25  ;;  %v5699_v38 = vld [vmem:[#allocation3 + $0xa8] sm:$0xf]  ;;  %v6306_v31 = vld [vmem:[#allocation3 + $0xc8] sm:$0xf0] }
 0x461   :  { %v4168_v49 = vpop.f32.mrf.mxu1 }
 0x463   :  { %v4217_v54 = vpop.f32.mrf.mxu3 }
 0x464   :  { %v8449_v37 = vadd.f32 %v4217_v54, %v4168_v49  ;;  %v5700_v54 = vor.u32 %v6306_v31, %v5699_v38 }
 0x468   :  { %4375 = vmatmul.bf16.vlgmr.msra.gmra.mxu3 %v5624_v14  ;;  %v4193_v14 = vadd.f32 %v7966_v53, %v7968_v60 }
 0x469   :  { %v4278_v61 = vpop.f32.mrf.mxu1 }
 0x46b   :  { %v4229_v2 = vpop.f32.mrf.mxu3 }
 0x46c   :  { %v4230_v57 = vadd.f32 %v4229_v2, %v7912_v44  ;;  %4424 = vmatmul.bf16.vlgmr.msra.gmra.mxu1 %v5628_v32  ;;  %v6421_v44 = vld [vmem:[%s9199_s2 + $0x220] sm:$0xff]  ;;  %v5732_v2 = vor.u32 %v6310_v6, %v5729_v29  ;;  %v5837_v29 = vld [vmem:[#allocation3 + $0x1e4] sm:$0xf0] }
 0x46d   :  { %4517 = vmatpush.bf16.msrb.mxu3 %v6421_v44  ;;  %v6337_v6 = vld [vmem:[#allocation3 + $0x1c4] sm:$0xf] }
 0x46e   :  { %v8455_v4 = vadd.f32 %v4278_v61, %v4230_v57  ;;  %v5735_v57 = vld [vmem:[#allocation3 + $0xf0] sm:$0xf] }
 0x471   :  { %v4280_v0 = vpop.f32.mrf.mxu1 }
 0x473   :  { %v4231_v41 = vpop.f32.mrf.mxu3 }
 0x474   :  { %v4232_v40 = vadd.f32 %v4231_v41, %v4183_v3 }
 0x476   :  { %v8459_v51 = vadd.f32 %v4280_v0, %v4232_v40  ;;  %v6315_v0 = vld [vmem:[#allocation3 + $0x110] sm:$0xf0]  ;;  %v4198_v40 = vadd.f32 %v8385_v36, %v8383_v48 }
 0x477   :  { %v5736_v41 = vor.u32 %v6315_v0, %v5735_v57  ;;  %v5843_v57 = vld [vmem:[#allocation3 + $0x1c8] sm:$0xf]  ;;  %v6342_v0 = vld [vmem:[#allocation3 + $0x1e8] sm:$0xf0] }
 0x478   :  { %4380 = vmatmul.bf16.gmra.mxu3 %v5660_v13 }
 0x479   :  { %v4283_v63 = vpop.f32.mrf.mxu1 }
 0x47b   :  { %v4234_v19 = vpop.f32.mrf.mxu3 }
 0x47c   :  { %v4235_v15 = vadd.f32 %v4234_v19, %v7960_v28  ;;  %4429 = vmatmul.bf16.gmra.mxu1 %v5664_v62  ;;  %v6420_v28 = vld [vmem:[%s9199_s2 + $0x218] sm:$0xff]  ;;  %v5768_v62 = vor.u32 %v6319_v24, %v5765_v16  ;;  %v5879_v16 = vld [vmem:[#allocation3 + $0x210] sm:$0xf] }
 0x47d   :  { %4518 = vmatpush.bf16.msrb.mxu3 %v6420_v28  ;;  %v5771_v19 = vld [vmem:[#allocation3 + $0x138] sm:$0xf]  ;;  %v5807_v28 = vld [vmem:[#allocation3 + $0x180] sm:$0xf] }
 0x47e   :  { %v8465_v5 = vadd.f32 %v4283_v63, %v4235_v15  ;;  %v6324_v15 = vld [vmem:[#allocation3 + $0x158] sm:$0xf0] }
 0x481   :  { %v4285_v8 = vpop.f32.mrf.mxu1 }
 0x483   :  { %v4236_v55 = vpop.f32.mrf.mxu3 }
 0x484   :  { %v4237_v43 = vadd.f32 %v4236_v55, %v4188_v7  ;;  %v5772_v7 = vor.u32 %v6324_v15, %v5771_v19 }
 0x486   :  { %v8469_v10 = vadd.f32 %v4285_v8, %v4237_v43  ;;  %v6328_v43 = vld [vmem:[#allocation3 + $0x17c] sm:$0xf] }
 0x488   :  { %4385 = vmatmul.bf16.gmra.mxu3 %v5696_v21  ;;  %v5801_v21 = vld [vmem:[#allocation3 + $0x19c] sm:$0xf0] }
 0x489   :  { %v4288_v49 = vpop.f32.mrf.mxu1  ;;  %v5804_v31 = vor.u32 %v6328_v43, %v5801_v21 }
 0x48b   :  { %v4239_v23 = vpop.f32.mrf.mxu3 }
 0x48c   :  { %v4240_v50 = vadd.f32 %v4239_v23, %v7964_v17  ;;  %4434 = vmatmul.bf16.gmra.mxu1 %v5700_v54  ;;  %v6419_v17 = vld [vmem:[%s9199_s2 + $0x210] sm:$0xff]  ;;  %v6417_v54 = vld [vmem:[%s9199_s2 + $0x200] sm:$0xff] }
 0x48d   :  { %4519 = vmatpush.bf16.msrb.mxu3 %v6419_v17 }
 0x48e   :  { %v8475_v1 = vadd.f32 %v4288_v49, %v4240_v50  ;;  %v6333_v49 = vld [vmem:[#allocation3 + $0x1a0] sm:$0xf0] }
 0x48f   :  { %v5808_v23 = vor.u32 %v6333_v49, %v5807_v28  ;;  %v5671_v28 = vld [vmem:[#allocation3 + $0x68] sm:$0xf]  ;;  %v6298_v49 = vld [vmem:[#allocation3 + $0x88] sm:$0xf0] }
 0x491   :  { %v4290_v34 = vpop.f32.mrf.mxu1 }
 0x493   :  { %v4241_v35 = vpop.f32.mrf.mxu3 }
 0x494   :  { %v4242_v61 = vadd.f32 %v4241_v35, %v4193_v14 }
 0x496   :  { %v8479_v32 = vadd.f32 %v4290_v34, %v4242_v61 }
 0x498   :  { %4390 = vmatmul.bf16.gmra.mxu3 %v5732_v2  ;;  %v5840_v2 = vor.u32 %v6337_v6, %v5837_v29  ;;  %v4338_v6 = vadd.f32 %v8410_v9, %v8475_v1  ;;  %v8545_v29 = vpop.f32.mrf.mxu2 }
 0x499   :  { %v4293_v3 = vpop.f32.mrf.mxu1 }
 0x49b   :  { %v4244_v56 = vpop.f32.mrf.mxu3 }
 0x49c   :  { %v4245_v53 = vadd.f32 %v4244_v56, %v7970_v12  ;;  %4439 = vmatmul.bf16.gmra.mxu1 %v5736_v41  ;;  %v6418_v12 = vld [vmem:[%s9199_s2 + $0x208] sm:$0xff] }
 0x49d   :  { %4520 = vmatpush.bf16.msrb.mxu3 %v6418_v12 }
 0x49e   :  { %v8485_v60 = vadd.f32 %v4293_v3, %v4245_v53  ;;  %v5844_v3 = vor.u32 %v6342_v0, %v5843_v57 }
 0x4a1   :  { %v4295_v30 = vpop.f32.mrf.mxu1  ;;  %4521 = vmatpush.bf16.msrb.mxu3 %v6417_v54 }
 0x4a3   :  { %v4246_v13 = vpop.f32.mrf.mxu3 }
 0x4a4   :  { %v4247_v44 = vadd.f32 %v4246_v13, %v4198_v40  ;;  %v6346_v40 = vld [vmem:[#allocation3 + $0x20c] sm:$0xf]  ;;  %v5873_v13 = vld [vmem:[#allocation3 + $0x22c] sm:$0xf0] }
 0x4a5   :  { %v5876_v24 = vor.u32 %v6346_v40, %v5873_v13 }
 0x4a6   :  { %v8489_v63 = vadd.f32 %v4295_v30, %v4247_v44  ;;  %v6351_v44 = vld [vmem:[#allocation3 + $0x230] sm:$0xf0] }
 0x4a8   :  { %4395 = vmatmul.bf16.gmra.mxu3 %v5768_v62  ;;  %v5880_v62 = vor.u32 %v6351_v44, %v5879_v16 }
 0x4a9   :  { %v4298_v8 = vpop.f32.mrf.mxu1 }
 0x4ab   :  { %v4249_v55 = vpop.f32.mrf.mxu3 }
 0x4ac   :  { %v4250_v48 = vadd.f32 %v4249_v55, %v8392_v39  ;;  %4444 = vmatmul.bf16.gmra.mxu1 %v5772_v7  ;;  %v5635_v7 = vld [vmem:[#allocation3 + $0x20] sm:$0xf]  ;;  %v6289_v55 = vld [vmem:[#allocation3 + $0x40] sm:$0xf0] }
 0x4ae   :  { %v8495_v36 = vadd.f32 %v4298_v8, %v4250_v48 }
 0x4b1   :  { %v8497_v20 = vpop.f32.mrf.mxu1 }
 0x4b3   :  { %v4251_v25 = vpop.f32.mrf.mxu3 }
 0x4b4   :  { %v8500_v38 = vadd.f32 %v4251_v25, %v8399_v33  ;;  %v4328_v25 = vadd.f32 %v8372_v22, %v8455_v4  ;;  %v4335_v22 = vadd.f32 %v8397_v58, %v8469_v10  ;;  %v5743_v58 = vld [vmem:[#allocation3 + $0xf8] sm:$0xf]  ;;  %v6316_v10 = vld [vmem:[#allocation3 + $0x118] sm:$0xf0] }
 0x4b8   :  { %4400 = vmatmul.bf16.gmra.mxu3 %v5804_v31 }
 0x4b9   :  { %v4303_v39 = vpop.f32.mrf.mxu1 }
 0x4bb   :  { %v4254_v50 = vpop.f32.mrf.mxu3 }
 0x4bc   :  { %v4255_v34 = vadd.f32 %v4254_v50, %v8412_v47  ;;  %4449 = vmatmul.bf16.gmra.mxu1 %v5808_v23 }
 0x4be   :  { %v8506_v14 = vadd.f32 %v4303_v39, %v4255_v34  ;;  %v5672_v39 = vor.u32 %v6298_v49, %v5671_v28  ;;  %v5707_v34 = vld [vmem:[#allocation3 + $0xb0] sm:$0xf] }
 0x4c1   :  { %v8508_v35 = vpop.f32.mrf.mxu1 }
 0x4c3   :  { %v4256_v33 = vpop.f32.mrf.mxu3 }
 0x4c4   :  { %v8511_v61 = vadd.f32 %v4256_v33, %v8420_v26  ;;  %v6307_v33 = vld [vmem:[#allocation3 + $0xd0] sm:$0xf0] }
 0x4c8   :  { %4405 = vmatmul.bf16.gmra.mxu3 %v5840_v2 }
 0x4c9   :  { %v4308_v17 = vpop.f32.mrf.mxu1 }
 0x4cb   :  { %v4259_v41 = vpop.f32.mrf.mxu3 }
 0x4cc   :  { %v4260_v47 = vadd.f32 %v4259_v41, %v8433_v45  ;;  %4454 = vmatmul.bf16.gmra.mxu1 %v5844_v3  ;;  %v5744_v3 = vor.u32 %v6316_v10, %v5743_v58  ;;  %v4343_v41 = vadd.f32 %v8438_v52, %v8485_v60  ;;  %v4301_v52 = vadd.f32 %v8497_v20, %v8500_v38  ;;  %v5851_v38 = vld [vmem:[#allocation3 + $0x1d0] sm:$0xf] }
 0x4ce   :  { %v8514_v56 = vadd.f32 %v4308_v17, %v4260_v47  ;;  %v4349_v17 = vpop.f32.mrf.mxu2 }
 0x4cf   :  { %v4350_v60 = vadd.f32 %v4349_v17, %v4301_v52 }
 0x4d1   :  { %v8516_v53 = vpop.f32.mrf.mxu1 }
 0x4d3   :  { %v4261_v30 = vpop.f32.mrf.mxu3 }
 0x4d4   :  { %v8519_v26 = vadd.f32 %v4261_v30, %v8440_v11  ;;  %v5636_v11 = vor.u32 %v6289_v55, %v5635_v7  ;;  %v4345_v30 = vadd.f32 %v8445_v18, %v8489_v63 }
 0x4d6   :  { %v4352_v47 = vpop.f32.mrf.mxu2 }
 0x4d7   :  { %v4353_v63 = vadd.f32 %v4352_v47, %v8506_v14  ;;  %v6431_v47 = vld [vmem:[%s9200_s3 + $0x30] sm:$0xff] }
 0x4d8   :  { %4410 = vmatmul.bf16.gmra.mxu3 %v5876_v24 }
 0x4d9   :  { %v4313_v15 = vpop.f32.mrf.mxu1 }
 0x4db   :  { %v4264_v19 = vpop.f32.mrf.mxu3 }
 0x4dc   :  { %v4265_v45 = vadd.f32 %v4264_v19, %v8447_v27  ;;  %4459 = vmatmul.bf16.gmra.mxu1 %v5880_v62  ;;  %v4330_v27 = vadd.f32 %v8381_v46, %v8459_v51  ;;  %v5708_v51 = vor.u32 %v6307_v33, %v5707_v34  ;;  %v5887_v34 = vld [vmem:[#allocation3 + $0x218] sm:$0xf]  ;;  %v6352_v33 = vld [vmem:[#allocation3 + $0x238] sm:$0xf0] }
 0x4de   :  { %v8522_v12 = vadd.f32 %v4313_v15, %v4265_v45  ;;  %v4354_v16 = vpop.f32.mrf.mxu2  ;;  %v5815_v15 = vld [vmem:[#allocation3 + $0x188] sm:$0xf]  ;;  %v6334_v45 = vld [vmem:[#allocation3 + $0x1a8] sm:$0xf0] }
 0x4df   :  { %v5816_v18 = vor.u32 %v6334_v45, %v5815_v15  ;;  %v6430_v45 = vld [vmem:[%s9200_s3 + $0x28] sm:$0xff] }
 0x4e3   :  { %v4266_v8 = vpop.f32.mrf.mxu3 }
 0x4e4   :  { %v8525_v48 = vadd.f32 %v4266_v8, %v8449_v37  ;;  %v4333_v37 = vadd.f32 %v8387_v42, %v8465_v5  ;;  %v4340_v5 = vadd.f32 %v8425_v59, %v8479_v32  ;;  %v5779_v59 = vld [vmem:[#allocation3 + $0x140] sm:$0xf]  ;;  %v6325_v32 = vld [vmem:[#allocation3 + $0x160] sm:$0xf0] }
 0x4e5   :  { %v5780_v24 = vor.u32 %v6325_v32, %v5779_v59 }
 0x4e6   :  { %v4357_v62 = vpop.f32.mrf.mxu2 }
 0x4e8   :  { %4522 = vmatmul.bf16.vlgmr.msrb.gmra.mxu3 %v5636_v11 }
 0x4eb   :  { %v4376_v43 = vpop.f32.mrf.mxu3 }
 0x4ec   :  { %v8529_v21 = vadd.f32 %v4376_v43, %v4328_v25  ;;  %v4306_v25 = vadd.f32 %v8508_v35, %v8511_v61 }
 0x4ee   :  { %v4359_v11 = vpop.f32.mrf.mxu2  ;;  %v4355_v43 = vadd.f32 %v4354_v16, %v4306_v25 }
 0x4f3   :  { %v4378_v31 = vpop.f32.mrf.mxu3 }
 0x4f4   :  { %v8533_v54 = vadd.f32 %v4378_v31, %v4330_v27  ;;  %v6343_v27 = vld [vmem:[#allocation3 + $0x1f0] sm:$0xf0] }
 0x4f5   :  { %v5852_v28 = vor.u32 %v6343_v27, %v5851_v38 }
 0x4f6   :  { %v4362_v49 = vpop.f32.mrf.mxu2 }
 0x4f8   :  { %4527 = vmatmul.bf16.gmra.mxu3 %v5672_v39  ;;  %v4358_v39 = vadd.f32 %v4357_v62, %v8514_v56  ;;  %v6432_v56 = vld [vmem:[%s9200_s3 + $0x38] sm:$0xff] }
 0x4f9   :  { %4817 = vmatpush.bf16.msrb.mxu1 %v6432_v56 }
 0x4fb   :  { %v4381_v23 = vpop.f32.mrf.mxu3 }
 0x4fc   :  { %v8537_v50 = vadd.f32 %v4381_v23, %v4333_v37  ;;  %v4315_v37 = vpop.f32.mrf.mxu1 }
 0x4fd   :  { %4818 = vmatpush.bf16.msrb.mxu1 %v6431_v47 }
 0x501   :  { %4819 = vmatpush.bf16.msrb.mxu1 %v6430_v45 }
 0x503   :  { %v4383_v4 = vpop.f32.mrf.mxu3 }
 0x504   :  { %v8541_v46 = vadd.f32 %v4383_v4, %v4335_v22  ;;  %v4311_v22 = vadd.f32 %v8516_v53, %v8519_v26  ;;  %v4364_v4 = vpop.f32.mrf.mxu2  ;;  %v4316_v26 = vadd.f32 %v4315_v37, %v8525_v48 }
 0x506   :  { %v4360_v35 = vadd.f32 %v4359_v11, %v4311_v22  ;;  %v4365_v17 = vadd.f32 %v4364_v4, %v4316_v26 }
 0x508   :  { %4532 = vmatmul.bf16.gmra.mxu3 %v5708_v51 }
 0x50b   :  { %v4386_v2 = vpop.f32.mrf.mxu3 }
 0x50c   :  { %v8547_v42 = vadd.f32 %v4386_v2, %v4338_v6  ;;  %v4425_v6 = vpop.f32.mrf.mxu1  ;;  %v5888_v2 = vor.u32 %v6352_v33, %v5887_v34 }
 0x513   :  { %v4388_v57 = vpop.f32.mrf.mxu3 }
 0x514   :  { %v8551_v0 = vadd.f32 %v4388_v57, %v4340_v5  ;;  %v4363_v5 = vadd.f32 %v4362_v49, %v8522_v12  ;;  %v4474_v57 = vpop.f32.mrf.mxu2  ;;  %v4427_v10 = vpop.f32.mrf.mxu1  ;;  %v4426_v12 = vadd.f32 %v4425_v6, %v8529_v21 }
 0x515   :  { %v4428_v59 = vadd.f32 %v4427_v10, %v8533_v54 }
 0x518   :  { %4537 = vmatmul.bf16.gmra.mxu3 %v5744_v3 }
 0x51b   :  { %v4391_v9 = vpop.f32.mrf.mxu3 }
 0x51c   :  { %v8555_v1 = vadd.f32 %v4391_v9, %v4343_v41  ;;  %v4476_v9 = vpop.f32.mrf.mxu2 }
 0x51d   :  { %v4477_v48 = vadd.f32 %v4476_v9, %v4428_v59 }
 0x523   :  { %v4393_v40 = vpop.f32.mrf.mxu3 }
 0x524   :  { %v8559_v13 = vadd.f32 %v4393_v40, %v4345_v30  ;;  %v4430_v30 = vpop.f32.mrf.mxu1  ;;  %v4479_v32 = vpop.f32.mrf.mxu2 }
 0x528   :  { %4542 = vmatmul.bf16.gmra.mxu3 %v5780_v24  ;;  %v4475_v24 = vadd.f32 %v4474_v57, %v4426_v12 }
 0x52b   :  { %v8561_v44 = vpop.f32.mrf.mxu3 }
 0x52c   :  { %v4432_v16 = vpop.f32.mrf.mxu1 }
 0x52d   :  { %v4433_v11 = vadd.f32 %v4432_v16, %v8541_v46 }
 0x533   :  { %v4398_v19 = vpop.f32.mrf.mxu3 }
 0x534   :  { %v8565_v8 = vadd.f32 %v4398_v19, %v4350_v60  ;;  %v4431_v19 = vadd.f32 %v4430_v30, %v8537_v50  ;;  %v4435_v54 = vpop.f32.mrf.mxu1 }
 0x535   :  { %v4436_v50 = vadd.f32 %v4435_v54, %v8547_v42 }
 0x538   :  { %4547 = vmatmul.bf16.gmra.mxu3 %v5816_v18  ;;  %v4481_v18 = vpop.f32.mrf.mxu2 }
 0x53b   :  { %v4401_v7 = vpop.f32.mrf.mxu3 }
 0x53c   :  { %v8568_v55 = vadd.f32 %v4401_v7, %v4353_v63  ;;  %v4480_v63 = vadd.f32 %v4479_v32, %v4431_v19  ;;  %v4437_v49 = vpop.f32.mrf.mxu1 }
 0x53d   :  { %v4438_v4 = vadd.f32 %v4437_v49, %v8551_v0 }
 0x543   :  { %v4403_v20 = vpop.f32.mrf.mxu3 }
 0x544   :  { %v8572_v31 = vadd.f32 %v4403_v20, %v4355_v43  ;;  %v4482_v43 = vadd.f32 %v4481_v18, %v4433_v11  ;;  %v4484_v20 = vpop.f32.mrf.mxu2 }
 0x548   :  { %4552 = vmatmul.bf16.gmra.mxu3 %v5852_v28 }
 0x54b   :  { %v4406_v14 = vpop.f32.mrf.mxu3 }
 0x54c   :  { %v8575_v23 = vadd.f32 %v4406_v14, %v4358_v39  ;;  %v4485_v39 = vadd.f32 %v4484_v20, %v4436_v50  ;;  %v4486_v22 = vpop.f32.mrf.mxu2 }
 0x54d   :  { %v4487_v34 = vadd.f32 %v4486_v22, %v4438_v4 }
 0x553   :  { %v4408_v61 = vpop.f32.mrf.mxu3 }
 0x554   :  { %v8579_v51 = vadd.f32 %v4408_v61, %v4360_v35  ;;  %v4440_v61 = vpop.f32.mrf.mxu1  ;;  %v4489_v56 = vpop.f32.mrf.mxu2 }
 0x555   :  { %v4441_v6 = vadd.f32 %v4440_v61, %v8555_v1 }
 0x558   :  { %4557 = vmatmul.bf16.gmra.mxu3 %v5888_v2 }
 0x55b   :  { %v4411_v58 = vpop.f32.mrf.mxu3 }
 0x55c   :  { %v8585_v53 = vadd.f32 %v4411_v58, %v4363_v5  ;;  %v4490_v5 = vadd.f32 %v4489_v56, %v4441_v6  ;;  %v4442_v57 = vpop.f32.mrf.mxu1  ;;  %v6429_v6 = vld [vmem:[%s9200_s3 + $0x20] sm:$0xff] }
 0x55d   :  { %v4443_v26 = vadd.f32 %v4442_v57, %v8559_v13  ;;  %4820 = vmatpush.bf16.msrb.mxu1 %v6429_v6 }
 0x563   :  { %v4413_v3 = vpop.f32.mrf.mxu3 }
 0x564   :  { %v8588_v41 = vadd.f32 %v4413_v3, %v4365_v17  ;;  %v4491_v17 = vpop.f32.mrf.mxu2 }
 0x565   :  { %v4492_v3 = vadd.f32 %v4491_v17, %v4443_v26 }
 0x56b   :  { %v4523_v40 = vpop.f32.mrf.mxu3 }
 0x56c   :  { %v4524_v60 = vadd.f32 %v4523_v40, %v4475_v24  ;;  %v4494_v54 = vpop.f32.mrf.mxu2 }
 0x573   :  { %v4525_v52 = vpop.f32.mrf.mxu3 }
 0x574   :  { %v4526_v62 = vadd.f32 %v4525_v52, %v4477_v48  ;;  %v4445_v48 = vpop.f32.mrf.mxu1 }
 0x576   :  { %v4563_v15 = vadd.f32 %v4526_v62, %v4524_v60 }
 0x57b   :  { %v4528_v21 = vpop.f32.mrf.mxu3 }
 0x57c   :  { %v4529_v7 = vadd.f32 %v4528_v21, %v4480_v63 }
 0x57e   :  { %v4564_v25 = vadd.f32 %v4563_v15, %v4529_v7 }
 0x583   :  { %v4530_v38 = vpop.f32.mrf.mxu3 }
 0x584   :  { %v4531_v27 = vadd.f32 %v4530_v38, %v4482_v43  ;;  %v4447_v38 = vpop.f32.mrf.mxu1 }
 0x586   :  { %v4565_v28 = vadd.f32 %v4564_v25, %v4531_v27 }
 0x58b   :  { %v4533_v37 = vpop.f32.mrf.mxu3 }
 0x58c   :  { %v4534_v14 = vadd.f32 %v4533_v37, %v4485_v39  ;;  %v4450_v61 = vpop.f32.mrf.mxu1 }
 0x58e   :  { %v4566_v35 = vadd.f32 %v4565_v28, %v4534_v14 }
 0x593   :  { %v4535_v33 = vpop.f32.mrf.mxu3 }
 0x594   :  { %v4536_v46 = vadd.f32 %v4535_v33, %v4487_v34  ;;  %v4452_v17 = vpop.f32.mrf.mxu1 }
 0x596   :  { %v4567_v2 = vadd.f32 %v4566_v35, %v4536_v46  ;;  %v4348_v35 = vadd.f32 %v8545_v29, %v8495_v36 }
 0x598   :  { %v4397_v33 = vadd.f32 %v8561_v44, %v4348_v35  ;;  %v6427_v44 = vld [vmem:[%s9200_s3 + $0x10] sm:$0xff] }
 0x59a   :  { %v4446_v57 = vadd.f32 %v4445_v48, %v4397_v33 }
 0x59b   :  { %v4538_v42 = vpop.f32.mrf.mxu3 }
 0x59c   :  { %v4539_v58 = vadd.f32 %v4538_v42, %v4490_v5  ;;  %v6428_v5 = vld [vmem:[%s9200_s3 + $0x18] sm:$0xff]  ;;  %v4448_v42 = vadd.f32 %v4447_v38, %v8565_v8  ;;  %v4495_v26 = vadd.f32 %v4494_v54, %v4446_v57  ;;  %v4451_v8 = vadd.f32 %v4450_v61, %v8568_v55 }
 0x59d   :  { %4821 = vmatpush.bf16.msrb.mxu1 %v6428_v5 }
 0x59e   :  { %v4568_v10 = vadd.f32 %v4567_v2, %v4539_v58 }
 0x5a1   :  { %4822 = vmatpush.bf16.msrb.mxu1 %v6427_v44 }
 0x5a3   :  { %v4540_v9 = vpop.f32.mrf.mxu3 }
 0x5a4   :  { %v4541_v0 = vadd.f32 %v4540_v9, %v4492_v3 }
 0x5a6   :  { %v4569_v47 = vadd.f32 %v4568_v10, %v4541_v0 }
 0x5a8   :  { %v4570_v30 = vrot.slane %v4569_v47, 4 }
 0x5aa   :  { %v4571_v40 = vadd.f32 %v4570_v30, %v4569_v47 }
 0x5ab   :  { %v4543_v2 = vpop.f32.mrf.mxu3 }
 0x5ac   :  { %v4572_v12 = vrot.slane %v4571_v40, 2 }
 0x5ae   :  { %v4573_v59 = vadd.f32 %v4572_v12, %v4571_v40  ;;  %v6426_v12 = vld [vmem:[%s9200_s3 + $0x8] sm:$0xff] }
 0x5af   :  { %4823 = vmatpush.bf16.msrb.mxu1 %v6426_v12 }
 0x5b0   :  { %v4574_v32 = vrot.slane %v4573_v59, 1 }
 0x5b2   :  { %v4575_v1 = vadd.f32 %v4574_v32, %v4573_v59 }
 0x5b3   :  { %v4545_v9 = vpop.f32.mrf.mxu3 }
 0x5b4   :  { %v4589_v24 = vmul.f32 0.015625, %v4575_v1 }
 0x5b6   :  { %v8604_v16 = vsub.f32 %v4524_v60, %v4589_v24  ;;  %v8606_v52 = vsub.f32 %v4526_v62, %v4589_v24  ;;  %v8608_v19 = vsub.f32 %v4529_v7, %v4589_v24  ;;  %v8610_v13 = vsub.f32 %v4531_v27, %v4589_v24 }
 0x5b7   :  { %v8612_v15 = vsub.f32 %v4534_v14, %v4589_v24  ;;  %v8614_v45 = vsub.f32 %v4536_v46, %v4589_v24  ;;  %v8616_v18 = vsub.f32 %v4539_v58, %v4589_v24  ;;  %v8618_v63 = vsub.f32 %v4541_v0, %v4589_v24  ;;  %v4496_v14 = vpop.f32.mrf.mxu2 }
 0x5b8   :  { %v4607_v21 = vmul.f32 %v8604_v16, %v8604_v16  ;;  %v4608_v60 = vmul.f32 %v8606_v52, %v8606_v52  ;;  %v4609_v62 = vmul.f32 %v8608_v19, %v8608_v19  ;;  %v4610_v11 = vmul.f32 %v8610_v13, %v8610_v13 }
 0x5b9   :  { %v4611_v43 = vmul.f32 %v8612_v15, %v8612_v15  ;;  %v4612_v27 = vmul.f32 %v8614_v45, %v8614_v45  ;;  %v4613_v28 = vmul.f32 %v8616_v18, %v8616_v18  ;;  %v4614_v39 = vmul.f32 %v8618_v63, %v8618_v63 }
 0x5ba   :  { %v4623_v7 = vadd.f32 %v4608_v60, %v4607_v21  ;;  %v4497_v10 = vadd.f32 %v4496_v14, %v4448_v42  ;;  %v8649_v0 = vadd.f32 %v4543_v2, %v4495_v26  ;;  %v4455_v21 = vpop.f32.mrf.mxu1  ;;  %v4453_v60 = vadd.f32 %v4452_v17, %v8572_v31 }
 0x5bb   :  { %v4548_v1 = vpop.f32.mrf.mxu3 }
 0x5bc   :  { %v4624_v25 = vadd.f32 %v4623_v7, %v4609_v62  ;;  %v8651_v47 = vadd.f32 %v4545_v9, %v4497_v10 }
 0x5be   :  { %v4625_v20 = vadd.f32 %v4624_v25, %v4610_v11  ;;  %v4576_v40 = vadd.f32 %v8651_v47, %v8649_v0 }
 0x5bf   :  { %v4499_v36 = vpop.f32.mrf.mxu2 }
 0x5c0   :  { %v4626_v50 = vadd.f32 %v4625_v20, %v4611_v43  ;;  %v4500_v32 = vadd.f32 %v4499_v36, %v4451_v8 }
 0x5c2   :  { %v4627_v49 = vadd.f32 %v4626_v50, %v4612_v27  ;;  %v4549_v24 = vadd.f32 %v4548_v1, %v4500_v32  ;;  %v4456_v27 = vadd.f32 %v4455_v21, %v8575_v23 }
 0x5c3   :  { %v4550_v43 = vpop.f32.mrf.mxu3 }
 0x5c4   :  { %v4628_v37 = vadd.f32 %v4627_v49, %v4613_v28  ;;  %v4577_v7 = vadd.f32 %v4576_v40, %v4549_v24  ;;  %v4457_v49 = vpop.f32.mrf.mxu1 }
 0x5c5   :  { %v4458_v35 = vadd.f32 %v4457_v49, %v8579_v51 }
 0x5c6   :  { %v4629_v22 = vadd.f32 %v4628_v37, %v4614_v39 }
 0x5c7   :  { %v4501_v59 = vpop.f32.mrf.mxu2 }
 0x5c8   :  { %v4630_v4 = vrot.slane %v4629_v22, 4  ;;  %v4502_v11 = vadd.f32 %v4501_v59, %v4453_v60 }
 0x5ca   :  { %v4631_v34 = vadd.f32 %v4630_v4, %v4629_v22  ;;  %v4551_v38 = vadd.f32 %v4550_v43, %v4502_v11 }
 0x5cb   :  { %v4553_v14 = vpop.f32.mrf.mxu3 }
 0x5cc   :  { %v4632_v46 = vrot.slane %v4631_v34, 2  ;;  %v4578_v28 = vadd.f32 %v4577_v7, %v4551_v38 }
 0x5ce   :  { %v4633_v56 = vadd.f32 %v4632_v46, %v4631_v34  ;;  %v4460_v34 = vpop.f32.mrf.mxu1 }
 0x5cf   :  { %v4504_v25 = vpop.f32.mrf.mxu2  ;;  %v4461_v6 = vadd.f32 %v4460_v34, %v8585_v53  ;;  %v8719_v34 = vld [vmem:[%s9204_s7] ss:$0 sm:$0xff] }
 0x5d0   :  { %v4634_v29 = vrot.slane %v4633_v56, 1  ;;  %v4505_v37 = vadd.f32 %v4504_v25, %v4456_v27 }
 0x5d2   :  { %v4635_v58 = vadd.f32 %v4634_v29, %v4633_v56  ;;  %v4554_v22 = vadd.f32 %v4553_v14, %v4505_v37  ;;  %v8707_v37 = vld [vmem:[%s9203_s6] ss:$0 sm:$0xff] }
 0x5d3   :  { %v4555_v33 = vpop.f32.mrf.mxu3 }
 0x5d4   :  { %v4649_v3 = vmul.f32 0.015625, %v4635_v58  ;;  %v4579_v61 = vadd.f32 %v4578_v28, %v4554_v22 }
 0x5d6   :  { %v4651_v30 = vadd.f32 1e-06, %v4649_v3  ;;  %v4462_v57 = vpop.f32.mrf.mxu1 }
 0x5d7   :  { %v4506_v4 = vpop.f32.mrf.mxu2  ;;  %v4463_v36 = vadd.f32 %v4462_v57, %v8588_v41 }
 0x5d8   :  { %6465 = vrsqrt.f32 %v4651_v30  ;;  %vm4659_vm0 = vweird.f32 %v4651_v30  ;;  %v4507_v23 = vadd.f32 %v4506_v4, %v4458_v35  ;;  %v6425_v4 = vld [vmem:[%s9200_s3] sm:$0xff]  ;;  %s6513_s3 = smov 128  }
 0x5d9   :  { %4824 = vmatpush.bf16.msrb.mxu1 %v6425_v4 }
 0x5da   :  { %v4556_v46 = vadd.f32 %v4555_v33, %v4507_v23 }
 0x5db   :  { %v4558_v42 = vpop.f32.mrf.mxu3 }
 0x5dc   :  { %v4580_v2 = vadd.f32 %v4579_v61, %v4556_v46 }
 0x5de   :  { %v6466_v48 = vpop.eup %6465 }
 0x5df   :  { %v4654_v62 = vmul.f32 %v6466_v48, %v4651_v30  ;;  %vm4660_vm15 = vweird.f32 %v6466_v48  ;;  %v4509_v56 = vpop.f32.mrf.mxu2 }
 0x5e0   :  { %vm4661_vm1 = vmor %vm4659_vm0, %vm4660_vm15  ;;  %v4510_v5 = vadd.f32 %v4509_v56, %v4461_v6 }
 0x5e1   :  { %v4655_v55 = vmul.f32 %v6466_v48, %v4654_v62 }
 0x5e3   :  { %v4656_v54 = vmul.f32 0.5, %v4655_v55  ;;  %v4560_v26 = vpop.f32.mrf.mxu3 }
 0x5e5   :  { %v4657_v20 = vsub.f32 1.5, %v4656_v54 }
 0x5e7   :  { %v4658_v50 = vmul.f32 %v6466_v48, %v4657_v20  ;;  %v4511_v58 = vpop.f32.mrf.mxu2 }
 0x5e8   :  { %v4512_v44 = vadd.f32 %v4511_v58, %v4463_v36 }
 0x5e9   :  { %v8661_v39 = vsel %vm4661_vm1, %v6466_v48, %v4658_v50 }
 0x5ea   :  { %v8665_v31 = vmul.f32 %v8661_v39, %v8618_v63  ;;  %v4559_v63 = vadd.f32 %v4558_v42, %v4510_v5  ;;  %v4561_v51 = vadd.f32 %v4560_v26, %v4512_v44  ;;  %v4673_v35 = vmul.f32 %v8661_v39, %v8604_v16 }
 0x5eb   :  { %v4674_v61 = vmul.f32 %v8661_v39, %v8606_v52  ;;  %v4675_v23 = vmul.f32 %v8661_v39, %v8608_v19  ;;  %v4676_v33 = vmul.f32 %v8661_v39, %v8610_v13  ;;  %v4679_v26 = vmul.f32 %v8661_v39, %v8616_v18 }
 0x5ec   :  { %v4581_v29 = vadd.f32 %v4580_v2, %v4559_v63  ;;  %v4693_v6 = vmul.f32 %v8707_v37, %v4673_v35  ;;  %v4700_v13 = vmul.f32 %v8707_v37, %v8665_v31  ;;  %v4677_v18 = vmul.f32 %v8661_v39, %v8612_v15 }
 0x5ed   :  { %v4694_v16 = vmul.f32 %v8707_v37, %v4674_v61  ;;  %v4695_v2 = vmul.f32 %v8707_v37, %v4675_v23  ;;  %v4696_v52 = vmul.f32 %v8707_v37, %v4676_v33 }
 0x5ee   :  { %v4582_v10 = vadd.f32 %v4581_v29, %v4561_v51  ;;  %v4713_v5 = vadd.f32 %v8719_v34, %v4693_v6 }
 0x5ef   :  { %v4714_v57 = vadd.f32 %v8719_v34, %v4694_v16  ;;  %v4715_v19 = vadd.f32 %v8719_v34, %v4695_v2  ;;  %v4716_v42 = vadd.f32 %v8719_v34, %v4696_v52 }
 0x5f0   :  { %v4583_v17 = vrot.slane %v4582_v10, 4  ;;  %v4729_v36 = vmax.f32 %v4713_v5, 0.0 }
 0x5f1   :  { %v4730_v29 = vmax.f32 %v4714_v57, 0.0  ;;  %v4731_v58 = vmax.f32 %v4715_v19, 0.0  ;;  %v4732_v44 = vmax.f32 %v4716_v42, 0.0 }
 0x5f2   :  { %v4584_v3 = vadd.f32 %v4583_v17, %v4582_v10 }
 0x5f3   :  { %v4745_v10 = vpack.c.bf16 %v4730_v29, %v4729_v36  ;;  %v4746_v17 = vpack.c.bf16 %v4732_v44, %v4731_v58 }
 0x5f4   :  { %v4585_v9 = vrot.slane %v4584_v3, 2 }
 0x5f5   :  { %4825 = vmatmul.bf16.vlgmr.msrb.gmra.mxu1 %v4745_v10 }
 0x5f6   :  { %v4586_v30 = vadd.f32 %v4585_v9, %v4584_v3  ;;  %v4699_v3 = vmul.f32 %v8707_v37, %v4679_v26 }
 0x5f8   :  { %v4587_v8 = vrot.slane %v4586_v30, 1  ;;  %v4719_v31 = vadd.f32 %v8719_v34, %v4699_v3 }
 0x5fa   :  { %v4588_v53 = vadd.f32 %v4587_v8, %v4586_v30  ;;  %v4720_v30 = vadd.f32 %v8719_v34, %v4700_v13 }
 0x5fc   :  { %v4590_v40 = vmul.f32 0.015625, %v4588_v53  ;;  %v4736_v8 = vmax.f32 %v4720_v30, 0.0  ;;  %v4735_v53 = vmax.f32 %v4719_v31, 0.0  ;;  %v4902_v31 = vld [vmem:[%s9207_s10 + $0x50] sm:$0xff] }
 0x5fe   :  { %v8671_v12 = vsub.f32 %v8649_v0, %v4590_v40  ;;  %v8674_v59 = vsub.f32 %v8651_v47, %v4590_v40  ;;  %v8676_v41 = vsub.f32 %v4549_v24, %v4590_v40  ;;  %v8678_v32 = vsub.f32 %v4551_v38, %v4590_v40 }
 0x5ff   :  { %v8680_v1 = vsub.f32 %v4554_v22, %v4590_v40  ;;  %v8682_v48 = vsub.f32 %v4556_v46, %v4590_v40  ;;  %v8684_v21 = vsub.f32 %v4559_v63, %v4590_v40  ;;  %v8686_v60 = vsub.f32 %v4561_v51, %v4590_v40 }
 0x600   :  { %v4615_v62 = vmul.f32 %v8671_v12, %v8671_v12  ;;  %v4616_v0 = vmul.f32 %v8674_v59, %v8674_v59  ;;  %v4617_v47 = vmul.f32 %v8676_v41, %v8676_v41  ;;  %v4618_v7 = vmul.f32 %v8678_v32, %v8678_v32 }
 0x601   :  { %v4619_v54 = vmul.f32 %v8680_v1, %v8680_v1  ;;  %v4620_v25 = vmul.f32 %v8682_v48, %v8682_v48  ;;  %v4621_v20 = vmul.f32 %v8684_v21, %v8684_v21  ;;  %v4622_v27 = vmul.f32 %v8686_v60, %v8686_v60 }
 0x602   :  { %v4636_v24 = vadd.f32 %v4616_v0, %v4615_v62  ;;  %v4748_v40 = vpack.c.bf16 %v4736_v8, %v4735_v53 }
 0x604   :  { %v4637_v55 = vadd.f32 %v4636_v24, %v4617_v47 }
 0x605   :  { %4830 = vmatmul.bf16.gmra.mxu1 %v4746_v17  ;;  %v4907_v17 = vld [vmem:[%s9207_s10 + $0x78] sm:$0xff] }
 0x606   :  { %v4638_v11 = vadd.f32 %v4637_v55, %v4618_v7  ;;  %v4678_v7 = vmul.f32 %v8661_v39, %v8614_v45  ;;  %4913 = vmatpush.msrb.mxu2 %v4907_v17  ;;  %5002 = vmatpush.msra.mxu3 %v4907_v17 }
 0x608   :  { %v4639_v43 = vadd.f32 %v4638_v11, %v4619_v54  ;;  %v4697_v11 = vmul.f32 %v8707_v37, %v4677_v18  ;;  %v4898_v18 = vld [vmem:[%s9207_s10 + $0x30] sm:$0xff] }
 0x60a   :  { %v4640_v38 = vadd.f32 %v4639_v43, %v4620_v25  ;;  %v4698_v25 = vmul.f32 %v8707_v37, %v4678_v7 }
 0x60c   :  { %v4641_v50 = vadd.f32 %v4640_v38, %v4621_v20  ;;  %v4718_v45 = vadd.f32 %v8719_v34, %v4698_v25 }
 0x60e   :  { %v4642_v28 = vadd.f32 %v4641_v50, %v4622_v27  ;;  %v4717_v27 = vadd.f32 %v8719_v34, %v4697_v11  ;;  %v4896_v11 = vld [vmem:[%s9207_s10 + $0x20] sm:$0xff] }
 0x610   :  { %v4643_v49 = vrot.slane %v4642_v28, 4 }
 0x612   :  { %v4644_v14 = vadd.f32 %v4643_v49, %v4642_v28 }
 0x614   :  { %v4645_v22 = vrot.slane %v4644_v14, 2 }
 0x616   :  { %v4646_v46 = vadd.f32 %v4645_v22, %v4644_v14  ;;  %v4733_v14 = vmax.f32 %v4717_v27, 0.0  ;;  %v4734_v22 = vmax.f32 %v4718_v45, 0.0  ;;  %v4892_v27 = vld [vmem:[%s9207_s10] sm:$0xff]  ;;  %v6440_v45 = vld [vmem:[%s9208_s11 + $0x38] sm:$0xff] }
 0x618   :  { %v4647_v56 = vrot.slane %v4646_v46, 1 }
 0x61a   :  { %v4648_v63 = vadd.f32 %v4647_v56, %v4646_v46 }
 0x61c   :  { %v4650_v51 = vmul.f32 0.015625, %v4648_v63 }
 0x61e   :  { %v4652_v9 = vadd.f32 1e-06, %v4650_v51 }
 0x620   :  { %6467 = vrsqrt.f32 %v4652_v9  ;;  %vm4669_vm3 = vweird.f32 %v4652_v9 }
 0x626   :  { %v6468_v62 = vpop.eup %6467 }
 0x627   :  { %v4664_v0 = vmul.f32 %v6468_v62, %v4652_v9  ;;  %vm4670_vm2 = vweird.f32 %v6468_v62  ;;  %v4903_v9 = vld [vmem:[%s9207_s10 + $0x58] sm:$0xff] }
 0x628   :  { %vm4671_vm4 = vmor %vm4669_vm3, %vm4670_vm2 }
 0x629   :  { %v4665_v47 = vmul.f32 %v6468_v62, %v4664_v0 }
 0x62b   :  { %v4666_v24 = vmul.f32 0.5, %v4665_v47  ;;  %v4899_v47 = vld [vmem:[%s9207_s10 + $0x38] sm:$0xff] }
 0x62d   :  { %v4667_v55 = vsub.f32 1.5, %v4666_v24 }
 0x62f   :  { %v4668_v54 = vmul.f32 %v6468_v62, %v4667_v55  ;;  %v4897_v55 = vld [vmem:[%s9207_s10 + $0x28] sm:$0xff] }
 0x631   :  { %v4672_v43 = vsel %vm4671_vm4, %v6468_v62, %v4668_v54  ;;  %v4900_v62 = vld [vmem:[%s9207_s10 + $0x40] sm:$0xff] }
 0x632   :  { %v4688_v20 = vmul.f32 %v4672_v43, %v8686_v60  ;;  %v4681_v38 = vmul.f32 %v4672_v43, %v8671_v12  ;;  %v4682_v15 = vmul.f32 %v4672_v43, %v8674_v59  ;;  %v4747_v12 = vpack.c.bf16 %v4734_v22, %v4733_v14 }
 0x633   :  { %v4683_v59 = vmul.f32 %v4672_v43, %v8676_v41  ;;  %v4684_v61 = vmul.f32 %v4672_v43, %v8678_v32  ;;  %v4687_v5 = vmul.f32 %v4672_v43, %v8684_v21  ;;  %v4685_v63 = vmul.f32 %v4672_v43, %v8680_v1  ;;  %v4906_v1 = vld [vmem:[%s9207_s10 + $0x70] sm:$0xff] }
 0x634   :  { %v4701_v39 = vmul.f32 %v8707_v37, %v4681_v38  ;;  %v4702_v50 = vmul.f32 %v8707_v37, %v4682_v15  ;;  %4835 = vmatmul.bf16.gmra.mxu1 %v4747_v12  ;;  %v4708_v56 = vmul.f32 %v8707_v37, %v4688_v20  ;;  %v4686_v36 = vmul.f32 %v4672_v43, %v8682_v48  ;;  %v4905_v48 = vld [vmem:[%s9207_s10 + $0x68] sm:$0xff]  ;;  %v4895_v43 = vld [vmem:[%s9207_s10 + $0x18] sm:$0xff]  ;;  %v4894_v20 = vld [vmem:[%s9207_s10 + $0x10] sm:$0xff] }
 0x635   :  { %v4703_v23 = vmul.f32 %v8707_v37, %v4683_v59  ;;  %v4704_v33 = vmul.f32 %v8707_v37, %v4684_v61  ;;  %v4707_v41 = vmul.f32 %v8707_v37, %v4687_v5  ;;  %v4705_v29 = vmul.f32 %v8707_v37, %v4685_v63  ;;  %4914 = vmatpush.msrb.mxu2 %v4906_v1  ;;  %v4893_v38 = vld [vmem:[%s9207_s10 + $0x8] sm:$0xff] }
 0x636   :  { %v4721_v28 = vadd.f32 %v8719_v34, %v4701_v39  ;;  %v4722_v49 = vadd.f32 %v8719_v34, %v4702_v50  ;;  %v4728_v32 = vadd.f32 %v8719_v34, %v4708_v56  ;;  %v4706_v58 = vmul.f32 %v8707_v37, %v4686_v36  ;;  %5003 = vmatpush.msra.mxu3 %v4906_v1  ;;  %v6439_v39 = vld [vmem:[%s9208_s11 + $0x30] sm:$0xff] }
 0x637   :  { %v4723_v46 = vadd.f32 %v8719_v34, %v4703_v23  ;;  %v4724_v6 = vadd.f32 %v8719_v34, %v4704_v33  ;;  %v4727_v57 = vadd.f32 %v8719_v34, %v4707_v41  ;;  %v4725_v21 = vadd.f32 %v8719_v34, %v4705_v29  ;;  %4915 = vmatpush.msrb.mxu2 %v4905_v48  ;;  %v6436_v23 = vld [vmem:[%s9208_s11 + $0x18] sm:$0xff]  ;;  %v6434_v41 = vld [vmem:[%s9208_s11 + $0x8] sm:$0xff] }
 0x638   :  { %v4737_v4 = vmax.f32 %v4721_v28, 0.0  ;;  %v4738_v60 = vmax.f32 %v4722_v49, 0.0  ;;  %v4744_v19 = vmax.f32 %v4728_v32, 0.0  ;;  %v4726_v44 = vadd.f32 %v8719_v34, %v4706_v58  ;;  %5004 = vmatpush.msra.mxu3 %v4905_v48  ;;  %v4904_v34 = vld [vmem:[%s9207_s10 + $0x60] sm:$0xff] }
 0x639   :  { %v4739_v16 = vmax.f32 %v4723_v46, 0.0  ;;  %v4740_v2 = vmax.f32 %v4724_v6, 0.0  ;;  %v4743_v13 = vmax.f32 %v4727_v57, 0.0  ;;  %v4741_v26 = vmax.f32 %v4725_v21, 0.0  ;;  %4916 = vmatpush.msrb.mxu2 %v4904_v34 }
 0x63a   :  { %v4749_v35 = vpack.c.bf16 %v4738_v60, %v4737_v4  ;;  %v4742_v51 = vmax.f32 %v4726_v44, 0.0  ;;  %5005 = vmatpush.msra.mxu3 %v4904_v34  ;;  %v6438_v4 = vld [vmem:[%s9208_s11 + $0x28] sm:$0xff]  ;;  %v6477_v34 = vld [vmem:[%s9197_s0 + $0x60] sm:$0xff] }
 0x63b   :  { %v4750_v52 = vpack.c.bf16 %v4740_v2, %v4739_v16  ;;  %v4752_v42 = vpack.c.bf16 %v4744_v19, %v4743_v13  ;;  %4917 = vmatpush.msrb.mxu2 %v4903_v9  ;;  %v6435_v16 = vld [vmem:[%s9208_s11 + $0x10] sm:$0xff]  ;;  %v6433_v13 = vld [vmem:[%s9208_s11] sm:$0xff] }
 0x63c   :  { %v4751_v10 = vpack.c.bf16 %v4742_v51, %v4741_v26  ;;  %5006 = vmatpush.msra.mxu3 %v4903_v9  ;;  %v6478_v9 = vld [vmem:[%s9197_s0 + $0x68] sm:$0xff] }
 0x63d   :  { %4918 = vmatpush.msrb.mxu2 %v4902_v31 }
 0x63e   :  { %5007 = vmatpush.msra.mxu3 %v4902_v31  ;;  %v6479_v31 = vld [vmem:[%s9197_s0 + $0x70] sm:$0xff] }
 0x644   :  { %4840 = vmatmul.bf16.gmra.mxu1 %v4748_v40  ;;  %v4901_v40 = vld [vmem:[%s9207_s10 + $0x48] sm:$0xff] }
 0x645   :  { %4919 = vmatpush.msrb.mxu2 %v4901_v40  ;;  %5008 = vmatpush.msra.mxu3 %v4901_v40  ;;  %v6480_v40 = vld [vmem:[%s9197_s0 + $0x78] sm:$0xff] }
 0x647   :  { %4920 = vmatpush.msrb.mxu2 %v4900_v62  ;;  %5009 = vmatpush.msra.mxu3 %v4900_v62  ;;  %v6481_v62 = vld [vmem:[%s9197_s0 + $0xe0] sm:$0xff] }
 0x649   :  { %4921 = vmatpush.msrb.mxu2 %v4899_v47  ;;  %5010 = vmatpush.msra.mxu3 %v4899_v47  ;;  %v6482_v47 = vld [vmem:[%s9197_s0 + $0xe8] sm:$0xff] }
 0x64b   :  { %4922 = vmatpush.msrb.mxu2 %v4898_v18  ;;  %5011 = vmatpush.msra.mxu3 %v4898_v18  ;;  %v6483_v18 = vld [vmem:[%s9197_s0 + $0xf0] sm:$0xff] }
 0x64d   :  { %4923 = vmatpush.msrb.mxu2 %v4897_v55  ;;  %5012 = vmatpush.msra.mxu3 %v4897_v55  ;;  %v6484_v55 = vld [vmem:[%s9197_s0 + $0xf8] sm:$0xff] }
 0x64f   :  { %4924 = vmatpush.msrb.mxu2 %v4896_v11  ;;  %5013 = vmatpush.msra.mxu3 %v4896_v11 }
 0x651   :  { %4925 = vmatpush.msrb.mxu2 %v4895_v43  ;;  %5014 = vmatpush.msra.mxu3 %v4895_v43 }
 0x653   :  { %4926 = vmatpush.msrb.mxu2 %v4894_v20  ;;  %5015 = vmatpush.msra.mxu3 %v4894_v20 }
 0x654   :  { %4845 = vmatmul.bf16.gmra.mxu1 %v4749_v35  ;;  %v6437_v35 = vld [vmem:[%s9208_s11 + $0x20] sm:$0xff]  ;;  %s6514_s11 = smov 8  }
 0x655   :  { %4927 = vmatpush.msrb.mxu2 %v4893_v38  ;;  %5016 = vmatpush.msra.mxu3 %v4893_v38 }
 0x657   :  { %4928 = vmatpush.msrb.mxu2 %v4892_v27  ;;  %5017 = vmatpush.msra.mxu3 %v4892_v27 }
 0x659   :  { %5160 = vmatpush.bf16.msra.mxu2 %v6440_v45 }
 0x65d   :  { %5161 = vmatpush.bf16.msra.mxu2 %v6439_v39 }
 0x661   :  { %5162 = vmatpush.bf16.msra.mxu2 %v6438_v4 }
 0x664   :  { %4850 = vmatmul.bf16.gmra.mxu1 %v4750_v52 }
 0x665   :  { %5163 = vmatpush.bf16.msra.mxu2 %v6437_v35 }
 0x669   :  { %5164 = vmatpush.bf16.msra.mxu2 %v6436_v23 }
 0x66d   :  { %5165 = vmatpush.bf16.msra.mxu2 %v6435_v16 }
 0x671   :  { %5166 = vmatpush.bf16.msra.mxu2 %v6434_v41 }
 0x672   :  { %v8781_v37 = vpop.f32.mrf.mxu1 }
 0x674   :  { %4855 = vmatmul.bf16.gmra.mxu1 %v4751_v10 }
 0x675   :  { %5167 = vmatpush.bf16.msra.mxu2 %v6433_v13 }
 0x67a   :  { %v8786_v3 = vpop.f32.mrf.mxu1 }
 0x67b   :  { %v4866_v49 = vadd.f32 %v8786_v3, %v8781_v37 }
 0x682   :  { %v8791_v30 = vpop.f32.mrf.mxu1 }
 0x683   :  { %v4867_v14 = vadd.f32 %v4866_v49, %v8791_v30 }
 0x684   :  { %4860 = vmatmul.bf16.gmra.mxu1 %v4752_v42 }
 0x68a   :  { %v8796_v8 = vpop.f32.mrf.mxu1 }
 0x68b   :  { %v4868_v22 = vadd.f32 %v4867_v14, %v8796_v8 }
 0x6b1   :  { %v8798_v53 = vpop.f32.mrf.mxu1 }
 0x6b2   :  { %v4869_v60 = vadd.f32 %v4868_v22, %v8798_v53 }
 0x6b9   :  { %v8806_v0 = vpop.f32.mrf.mxu1 }
 0x6ba   :  { %v4870_v59 = vadd.f32 %v4869_v60, %v8806_v0 }
 0x6c1   :  { %v8811_v24 = vpop.f32.mrf.mxu1 }
 0x6c2   :  { %v4871_v61 = vadd.f32 %v4870_v59, %v8811_v24 }
 0x6c9   :  { %v8816_v7 = vpop.f32.mrf.mxu1 }
 0x6ca   :  { %v4872_v33 = vadd.f32 %v4871_v61, %v8816_v7 }
 0x6cc   :  { %v4873_v52 = vrot.slane %v4872_v33, 4 }
 0x6ce   :  { %v4874_v32 = vadd.f32 %v4873_v52, %v4872_v33 }
 0x6d0   :  { %v4875_v63 = vrot.slane %v4874_v32, 2 }
 0x6d1   :  { %v8821_v54 = vpop.f32.mrf.mxu1 }
 0x6d2   :  { %v4876_v58 = vadd.f32 %v4875_v63, %v4874_v32 }
 0x6d4   :  { %v4877_v26 = vrot.slane %v4876_v58, 1 }
 0x6d6   :  { %v4878_v17 = vadd.f32 %v4877_v26, %v4876_v58 }
 0x6d9   :  { %v8826_v25 = vpop.f32.mrf.mxu1 }
 0x6da   :  { %v4879_v46 = vadd.f32 %v8826_v25, %v8821_v54 }
 0x6e1   :  { %v8837_v15 = vpop.f32.mrf.mxu1 }
 0x6e2   :  { %v4880_v6 = vadd.f32 %v4879_v46, %v8837_v15 }
 0x6e9   :  { %v8848_v50 = vpop.f32.mrf.mxu1 }
 0x6ea   :  { %v4881_v56 = vadd.f32 %v4880_v6, %v8848_v50 }
 0x6f1   :  { %v8850_v28 = vpop.f32.mrf.mxu1 }
 0x6f2   :  { %v4882_v5 = vadd.f32 %v4881_v56, %v8850_v28 }
 0x6f9   :  { %v8863_v12 = vpop.f32.mrf.mxu1 }
 0x6fa   :  { %v4883_v57 = vadd.f32 %v4882_v5, %v8863_v12 }
 0x701   :  { %v8877_v2 = vpop.f32.mrf.mxu1 }
 0x702   :  { %v4884_v19 = vadd.f32 %v4883_v57, %v8877_v2 }
 0x709   :  { %v8889_v42 = vpop.f32.mrf.mxu1 }
 0x70a   :  { %v4885_v36 = vadd.f32 %v4884_v19, %v8889_v42 }
 0x70c   :  { %v4886_v29 = vrot.slane %v4885_v36, 4 }
 0x70e   :  { %v4887_v21 = vadd.f32 %v4886_v29, %v4885_v36 }
 0x710   :  { %v4888_v44 = vrot.slane %v4887_v21, 2 }
 0x712   :  { %v4889_v51 = vadd.f32 %v4888_v44, %v4887_v21 }
 0x714   :  { %v4890_v10 = vrot.slane %v4889_v51, 1 }
 0x716   :  { %v4891_v1 = vadd.f32 %v4890_v10, %v4889_v51 }
 0x718   :  { %v4911_v48 = vsel %vm4910_vm5, %v4891_v1, %v4878_v17 }
 0x719   :  { %4929 = vmatmul.f32.vlgmr.msrb.gmra.mxu2 %v4911_v48 }
 0x721   :  { %5168 = vmatmul.bf16.vlgmr.msra.gmra.mxu2 %v6477_v34 }
 0x731   :  { %5173 = vmatmul.bf16.gmra.mxu2 %v6478_v9 }
 0x741   :  { %5178 = vmatmul.bf16.gmra.mxu2 %v6479_v31 }
 0x751   :  { %5183 = vmatmul.bf16.gmra.mxu2 %v6480_v40 }
 0x761   :  { %5188 = vmatmul.bf16.gmra.mxu2 %v6481_v62 }
 0x771   :  { %5193 = vmatmul.bf16.gmra.mxu2 %v6482_v47 }
 0x781   :  { %5198 = vmatmul.bf16.gmra.mxu2 %v6483_v18 }
 0x791   :  { %5203 = vmatmul.bf16.gmra.mxu2 %v6484_v55 }
 0x79c   :  { %v4930_v11 = vpop.f32.mrf.mxu2 }
 0x79d   :  { %v4933_v43 = vmul.f32 0.015625, %v4930_v11 }
 0x79f   :  { %v4935_v20 = vrot.slane %v4933_v43, 1  ;;  %v4936_v38 = vperm.slane %v4933_v43, 0 }
 0x7a1   :  { %v4937_v27 = vperm.slane %v4935_v20, 0  ;;  %v8918_v45 = vsub.f32 %v8781_v37, %v4936_v38  ;;  %v8921_v39 = vsub.f32 %v8786_v3, %v4936_v38  ;;  %v8932_v4 = vsub.f32 %v8791_v30, %v4936_v38 }
 0x7a2   :  { %v8962_v33 = vsub.f32 %v8806_v0, %v4936_v38  ;;  %v8972_v56 = vsub.f32 %v8811_v24, %v4936_v38  ;;  %v8982_v57 = vsub.f32 %v8816_v7, %v4936_v38 }
 0x7a3   :  { %v8924_v49 = vsub.f32 %v8821_v54, %v4937_v27  ;;  %v8927_v14 = vsub.f32 %v8826_v25, %v4937_v27  ;;  %v8935_v60 = vsub.f32 %v8837_v15, %v4937_v27  ;;  %v4956_v37 = vmul.f32 %v8918_v45, %v8918_v45 }
 0x7a4   :  { %v8929_v22 = vpop.f32.mrf.mxu2  ;;  %v4957_v3 = vmul.f32 %v8921_v39, %v8921_v39  ;;  %v8942_v54 = vsub.f32 %v8796_v8, %v4936_v38  ;;  %v8945_v25 = vsub.f32 %v8848_v50, %v4937_v27  ;;  %v8952_v15 = vsub.f32 %v8798_v53, %v4936_v38 }
 0x7a5   :  { %v4964_v35 = vmul.f32 %v8924_v49, %v8924_v49  ;;  %v4965_v30 = vmul.f32 %v8927_v14, %v8927_v14  ;;  %v8955_v59 = vsub.f32 %v8850_v28, %v4937_v27  ;;  %v4958_v61 = vmul.f32 %v8932_v4, %v8932_v4 }
 0x7a6   :  { %v4966_v8 = vmul.f32 %v8935_v60, %v8935_v60  ;;  %v4972_v50 = vadd.f32 %v4957_v3, %v4956_v37  ;;  %v8965_v46 = vsub.f32 %v8863_v12, %v4937_v27  ;;  %v4959_v53 = vmul.f32 %v8942_v54, %v8942_v54 }
 0x7a7   :  { %v4985_v23 = vadd.f32 %v4965_v30, %v4964_v35  ;;  %v4967_v28 = vmul.f32 %v8945_v25, %v8945_v25  ;;  %v8975_v5 = vsub.f32 %v8877_v2, %v4937_v27  ;;  %v4960_v0 = vmul.f32 %v8952_v15, %v8952_v15 }
 0x7a8   :  { %v4973_v6 = vadd.f32 %v4972_v50, %v4958_v61  ;;  %v4968_v12 = vmul.f32 %v8955_v59, %v8955_v59  ;;  %v8985_v19 = vsub.f32 %v8889_v42, %v4937_v27  ;;  %v4961_v24 = vmul.f32 %v8962_v33, %v8962_v33 }
 0x7a9   :  { %v4986_v16 = vadd.f32 %v4985_v23, %v4966_v8  ;;  %v4969_v2 = vmul.f32 %v8965_v46, %v8965_v46  ;;  %v4962_v36 = vmul.f32 %v8972_v56, %v8972_v56  ;;  %v4970_v29 = vmul.f32 %v8975_v5, %v8975_v5 }
 0x7aa   :  { %v4974_v41 = vadd.f32 %v4973_v6, %v4959_v53  ;;  %v4963_v42 = vmul.f32 %v8982_v57, %v8982_v57  ;;  %v4971_v44 = vmul.f32 %v8985_v19, %v8985_v19 }
 0x7ab   :  { %v4987_v32 = vadd.f32 %v4986_v16, %v4967_v28 }
 0x7ac   :  { %v5171_v52 = vpop.f32.mrf.mxu2  ;;  %v4975_v13 = vadd.f32 %v4974_v41, %v4960_v0 }
 0x7ad   :  { %v4988_v63 = vadd.f32 %v4987_v32, %v4968_v12  ;;  %v5209_v21 = vadd.f32 %v5171_v52, %v8929_v22 }
 0x7ae   :  { %v4976_v58 = vadd.f32 %v4975_v13, %v4961_v24 }
 0x7af   :  { %v4989_v7 = vadd.f32 %v4988_v63, %v4969_v2 }
 0x7b0   :  { %v4977_v26 = vadd.f32 %v4976_v58, %v4962_v36 }
 0x7b1   :  { %v4990_v51 = vadd.f32 %v4989_v7, %v4970_v29 }
 0x7b2   :  { %v4978_v1 = vadd.f32 %v4977_v26, %v4963_v42 }
 0x7b3   :  { %v4991_v48 = vadd.f32 %v4990_v51, %v4971_v44 }
 0x7b4   :  { %v5174_v10 = vpop.f32.mrf.mxu2  ;;  %v4979_v34 = vrot.slane %v4978_v1, 4 }
 0x7b5   :  { %v5210_v17 = vadd.f32 %v5209_v21, %v5174_v10  ;;  %v4992_v9 = vrot.slane %v4991_v48, 4 }
 0x7b6   :  { %v4980_v31 = vadd.f32 %v4979_v34, %v4978_v1 }
 0x7b7   :  { %v4993_v40 = vadd.f32 %v4992_v9, %v4991_v48 }
 0x7b8   :  { %v4981_v62 = vrot.slane %v4980_v31, 2 }
 0x7b9   :  { %v4994_v47 = vrot.slane %v4993_v40, 2 }
 0x7ba   :  { %v4982_v11 = vadd.f32 %v4981_v62, %v4980_v31 }
 0x7bb   :  { %v4995_v43 = vadd.f32 %v4994_v47, %v4993_v40 }
 0x7bc   :  { %v5176_v18 = vpop.f32.mrf.mxu2  ;;  %v4983_v20 = vrot.slane %v4982_v11, 1 }
 0x7bd   :  { %v5211_v55 = vadd.f32 %v5210_v17, %v5176_v18  ;;  %v4996_v38 = vrot.slane %v4995_v43, 1 }
 0x7be   :  { %v4984_v27 = vadd.f32 %v4983_v20, %v4982_v11 }
 0x7bf   :  { %v4997_v37 = vadd.f32 %v4996_v38, %v4995_v43 }
 0x7c1   :  { %v5000_v3 = vsel %vm4910_vm5, %v4997_v37, %v4984_v27 }
 0x7c2   :  { %5018 = vmatmul.f32.vlgmr.msra.gmra.mxu3 %v5000_v3 }
 0x7c4   :  { %v5179_v35 = vpop.f32.mrf.mxu2 }
 0x7c5   :  { %v5212_v30 = vadd.f32 %v5211_v55, %v5179_v35 }
 0x7cc   :  { %v5181_v61 = vpop.f32.mrf.mxu2 }
 0x7cd   :  { %v5213_v8 = vadd.f32 %v5212_v30, %v5181_v61 }
 0x7d4   :  { %v5184_v50 = vpop.f32.mrf.mxu2 }
 0x7d5   :  { %v5214_v23 = vadd.f32 %v5213_v8, %v5184_v50 }
 0x7dc   :  { %v5186_v53 = vpop.f32.mrf.mxu2 }
 0x7dd   :  { %v5215_v28 = vadd.f32 %v5214_v23, %v5186_v53 }
 0x7df   :  { %v5216_v6 = vrot.slane %v5215_v28, 4 }
 0x7e1   :  { %v5217_v16 = vadd.f32 %v5216_v6, %v5215_v28 }
 0x7e3   :  { %v5218_v0 = vrot.slane %v5217_v16, 2 }
 0x7e4   :  { %v9001_v2 = vpop.f32.mrf.mxu2 }
 0x7e5   :  { %v5219_v12 = vadd.f32 %v5218_v0, %v5217_v16 }
 0x7e7   :  { %v5220_v41 = vrot.slane %v5219_v12, 1 }
 0x7e9   :  { %v5221_v32 = vadd.f32 %v5220_v41, %v5219_v12 }
 0x7eb   :  { %v5235_v24 = vmul.f32 0.015625, %v5221_v32 }
 0x7ec   :  { %v5191_v34 = vpop.f32.mrf.mxu2 }
 0x7ed   :  { %v5237_v13 = vsub.f32 %v8929_v22, %v5235_v24  ;;  %v5238_v63 = vsub.f32 %v5171_v52, %v5235_v24  ;;  %v5239_v36 = vsub.f32 %v5174_v10, %v5235_v24  ;;  %v5240_v29 = vsub.f32 %v5176_v18, %v5235_v24 }
 0x7ee   :  { %v5241_v58 = vsub.f32 %v5179_v35, %v5235_v24  ;;  %v5242_v7 = vsub.f32 %v5181_v61, %v5235_v24  ;;  %v5243_v42 = vsub.f32 %v5184_v50, %v5235_v24  ;;  %v5244_v21 = vsub.f32 %v5186_v53, %v5235_v24 }
 0x7ef   :  { %v5253_v44 = vmul.f32 %v5237_v13, %v5237_v13  ;;  %v5254_v26 = vmul.f32 %v5238_v63, %v5238_v63  ;;  %v5255_v51 = vmul.f32 %v5239_v36, %v5239_v36  ;;  %v5256_v1 = vmul.f32 %v5240_v29, %v5240_v29 }
 0x7f0   :  { %v5257_v9 = vmul.f32 %v5241_v58, %v5241_v58  ;;  %v5258_v40 = vmul.f32 %v5242_v7, %v5242_v7  ;;  %v5259_v47 = vmul.f32 %v5243_v42, %v5243_v42  ;;  %v5260_v52 = vmul.f32 %v5244_v21, %v5244_v21 }
 0x7f1   :  { %v5269_v17 = vadd.f32 %v5254_v26, %v5253_v44  ;;  %v5222_v6 = vadd.f32 %v5191_v34, %v9001_v2 }
 0x7f3   :  { %v5270_v48 = vadd.f32 %v5269_v17, %v5255_v51 }
 0x7f4   :  { %v5194_v18 = vpop.f32.mrf.mxu2 }
 0x7f5   :  { %v5271_v31 = vadd.f32 %v5270_v48, %v5256_v1  ;;  %v5223_v12 = vadd.f32 %v5222_v6, %v5194_v18 }
 0x7f7   :  { %v5272_v62 = vadd.f32 %v5271_v31, %v5257_v9 }
 0x7f9   :  { %v5273_v22 = vadd.f32 %v5272_v62, %v5258_v40 }
 0x7fb   :  { %v5274_v10 = vadd.f32 %v5273_v22, %v5259_v47 }
 0x7fc   :  { %v5196_v38 = vpop.f32.mrf.mxu2 }
 0x7fd   :  { %v5275_v55 = vadd.f32 %v5274_v10, %v5260_v52  ;;  %v5224_v32 = vadd.f32 %v5223_v12, %v5196_v38 }
 0x7ff   :  { %v5276_v11 = vrot.slane %v5275_v55, 4 }
 0x801   :  { %v5277_v43 = vadd.f32 %v5276_v11, %v5275_v55 }
 0x803   :  { %v5278_v20 = vrot.slane %v5277_v43, 2 }
 0x804   :  { %v5199_v30 = vpop.f32.mrf.mxu2 }
 0x805   :  { %v5279_v27 = vadd.f32 %v5278_v20, %v5277_v43  ;;  %v5225_v44 = vadd.f32 %v5224_v32, %v5199_v30 }
 0x807   :  { %v5280_v37 = vrot.slane %v5279_v27, 1 }
 0x809   :  { %v5281_v3 = vadd.f32 %v5280_v37, %v5279_v27 }
 0x80b   :  { %v5295_v35 = vmul.f32 0.015625, %v5281_v3 }
 0x80c   :  { %v5201_v8 = vpop.f32.mrf.mxu2 }
 0x80d   :  { %v5297_v61 = vadd.f32 1e-05, %v5295_v35  ;;  %v5226_v62 = vadd.f32 %v5225_v44, %v5201_v8 }
 0x80f   :  { %6469 = vrsqrt.f32 %v5297_v61  ;;  %vm5305_vm7 = vweird.f32 %v5297_v61 }
 0x814   :  { %v5204_v16 = vpop.f32.mrf.mxu2 }
 0x815   :  { %v6470_v50 = vpop.eup %6469  ;;  %v5227_v22 = vadd.f32 %v5226_v62, %v5204_v16 }
 0x816   :  { %v5300_v23 = vmul.f32 %v6470_v50, %v5297_v61  ;;  %vm5306_vm6 = vweird.f32 %v6470_v50 }
 0x817   :  { %vm5307_vm8 = vmor %vm5305_vm7, %vm5306_vm6 }
 0x818   :  { %v5301_v53 = vmul.f32 %v6470_v50, %v5300_v23 }
 0x81a   :  { %v5302_v28 = vmul.f32 0.5, %v5301_v53 }
 0x81c   :  { %v5303_v0 = vsub.f32 1.5, %v5302_v28  ;;  %v5206_v47 = vpop.f32.mrf.mxu2 }
 0x81d   :  { %v5228_v52 = vadd.f32 %v5227_v22, %v5206_v47 }
 0x81e   :  { %v5304_v41 = vmul.f32 %v6470_v50, %v5303_v0 }
 0x820   :  { %v5308_v24 = vsel %vm5307_vm8, %v6470_v50, %v5304_v41 }
 0x821   :  { %v9005_v26 = vmul.f32 %v5308_v24, %v5237_v13  ;;  %v9007_v51 = vmul.f32 %v5308_v24, %v5238_v63  ;;  %v9009_v17 = vmul.f32 %v5308_v24, %v5239_v36  ;;  %v9011_v1 = vmul.f32 %v5308_v24, %v5240_v29 }
 0x822   :  { %v9013_v48 = vmul.f32 %v5308_v24, %v5241_v58  ;;  %v9015_v9 = vmul.f32 %v5308_v24, %v5242_v7  ;;  %v9017_v31 = vmul.f32 %v5308_v24, %v5243_v42  ;;  %v9019_v40 = vmul.f32 %v5308_v24, %v5244_v21 }
 0x823   :  { %v5229_v13 = vrot.slane %v5228_v52, 4 }
 0x825   :  { %v5230_v10 = vadd.f32 %v5229_v13, %v5228_v52 }
 0x827   :  { %v5231_v63 = vrot.slane %v5230_v10, 2 }
 0x829   :  { %v5232_v55 = vadd.f32 %v5231_v63, %v5230_v10 }
 0x82b   :  { %v5233_v36 = vrot.slane %v5232_v55, 1 }
 0x82d   :  { %v5234_v11 = vadd.f32 %v5233_v36, %v5232_v55 }
 0x82f   :  { %v5236_v29 = vmul.f32 0.015625, %v5234_v11 }
 0x831   :  { %v9022_v58 = vsub.f32 %v9001_v2, %v5236_v29  ;;  %v9024_v7 = vsub.f32 %v5191_v34, %v5236_v29  ;;  %v9026_v42 = vsub.f32 %v5194_v18, %v5236_v29  ;;  %v9028_v21 = vsub.f32 %v5196_v38, %v5236_v29 }
 0x832   :  { %v9034_v27 = vsub.f32 %v5199_v30, %v5236_v29  ;;  %v9038_v2 = vsub.f32 %v5201_v8, %v5236_v29  ;;  %v9042_v38 = vsub.f32 %v5204_v16, %v5236_v29  ;;  %v9046_v50 = vsub.f32 %v5206_v47, %v5236_v29 }
 0x833   :  { %v5261_v43 = vmul.f32 %v9022_v58, %v9022_v58  ;;  %v5262_v20 = vmul.f32 %v9024_v7, %v9024_v7  ;;  %v5263_v37 = vmul.f32 %v9026_v42, %v9026_v42  ;;  %v5264_v34 = vmul.f32 %v9028_v21, %v9028_v21 }
 0x834   :  { %v5265_v35 = vmul.f32 %v9034_v27, %v9034_v27  ;;  %v5266_v30 = vmul.f32 %v9038_v2, %v9038_v2  ;;  %v5267_v8 = vmul.f32 %v9042_v38, %v9042_v38  ;;  %v5268_v28 = vmul.f32 %v9046_v50, %v9046_v50 }
 0x835   :  { %v5282_v3 = vadd.f32 %v5262_v20, %v5261_v43  ;;  %v9057_v43 = vld [vmem:[%s9209_s12] ss:$0 sm:$0xff] }
 0x837   :  { %v5283_v18 = vadd.f32 %v5282_v3, %v5263_v37 }
 0x839   :  { %v5284_v61 = vadd.f32 %v5283_v18, %v5264_v34  ;;  %v5339_v18 = vmul.f32 %v9057_v43, %v9005_v26  ;;  %v5344_v26 = vmul.f32 %v9057_v43, %v9015_v9 }
 0x83b   :  { %v5285_v23 = vadd.f32 %v5284_v61, %v5265_v35  ;;  %v5340_v35 = vmul.f32 %v9057_v43, %v9007_v51  ;;  %v5341_v61 = vmul.f32 %v9057_v43, %v9009_v17  ;;  %v5345_v51 = vmul.f32 %v9057_v43, %v9017_v31 }
 0x83c   :  { %v5346_v17 = vmul.f32 %v9057_v43, %v9019_v40 }
 0x83d   :  { %v5286_v53 = vadd.f32 %v5285_v23, %v5266_v30  ;;  %v9068_v30 = vld [vmem:[%s9210_s13] ss:$0 sm:$0xff] }
 0x83f   :  { %v5287_v6 = vadd.f32 %v5286_v53, %v5267_v8  ;;  %v5342_v8 = vmul.f32 %v9057_v43, %v9011_v1  ;;  %v5343_v53 = vmul.f32 %v9057_v43, %v9013_v48  ;;  %v9084_v1 = vadd.f32 %v9068_v30, %v5340_v35 }
 0x840   :  { %v9087_v48 = vadd.f32 %v9068_v30, %v5341_v61 }
 0x841   :  { %v5288_v16 = vadd.f32 %v5287_v6, %v5268_v28  ;;  %v9093_v31 = vadd.f32 %v9068_v30, %v5343_v53 }
 0x843   :  { %v5289_v0 = vrot.slane %v5288_v16, 4 }
 0x845   :  { %v5290_v12 = vadd.f32 %v5289_v0, %v5288_v16  ;;  %v5019_v41 = vpop.f32.mrf.mxu3  ;;  %v9081_v0 = vadd.f32 %v9068_v30, %v5339_v18 }
 0x846   :  { %v5022_v24 = vmul.f32 0.015625, %v5019_v41  ;;  %v9096_v41 = vadd.f32 %v9068_v30, %v5344_v26 }
 0x847   :  { %v5291_v32 = vrot.slane %v5290_v12, 2 }
 0x848   :  { %v5023_v62 = vadd.f32 1e-06, %v5022_v24  ;;  %v9102_v24 = vadd.f32 %v9068_v30, %v5346_v17 }
 0x849   :  { %v5292_v44 = vadd.f32 %v5291_v32, %v5290_v12  ;;  %v9090_v12 = vadd.f32 %v9068_v30, %v5342_v8  ;;  %v9099_v32 = vadd.f32 %v9068_v30, %v5345_v51 }
 0x84a   :  { %6471 = vrsqrt.f32 %v5023_v62  ;;  %vm5030_vm10 = vweird.f32 %v5023_v62 }
 0x84b   :  { %v5293_v47 = vrot.slane %v5292_v44, 1 }
 0x84d   :  { %v5294_v22 = vadd.f32 %v5293_v47, %v5292_v44 }
 0x84f   :  { %v5296_v52 = vmul.f32 0.015625, %v5294_v22 }
 0x850   :  { %v6472_v13 = vpop.eup %6471 }
 0x851   :  { %v5298_v10 = vadd.f32 1e-05, %v5296_v52  ;;  %v5025_v63 = vmul.f32 %v6472_v13, %v5023_v62  ;;  %vm5031_vm9 = vweird.f32 %v6472_v13 }
 0x852   :  { %vm5032_vm11 = vmor %vm5030_vm10, %vm5031_vm9 }
 0x853   :  { %6473 = vrsqrt.f32 %v5298_v10  ;;  %v5026_v55 = vmul.f32 %v6472_v13, %v5025_v63  ;;  %vm5315_vm13 = vweird.f32 %v5298_v10 }
 0x855   :  { %v5027_v36 = vmul.f32 0.5, %v5026_v55 }
 0x857   :  { %v5028_v11 = vsub.f32 1.5, %v5027_v36  ;;  %v9115_v36 = vld [vmem:[%s9205_s8] ss:$0 sm:$0xff] }
 0x859   :  { %v6474_v29 = vpop.eup %6473  ;;  %v5029_v37 = vmul.f32 %v6472_v13, %v5028_v11 }
 0x85a   :  { %v5310_v20 = vmul.f32 %v6474_v29, %v5298_v10  ;;  %vm5316_vm12 = vweird.f32 %v6474_v29 }
 0x85b   :  { %v5033_v34 = vsel %vm5032_vm11, %v6472_v13, %v5029_v37  ;;  %vm5317_vm14 = vmor %vm5315_vm13, %vm5316_vm12 }
 0x85c   :  { %v5311_v3 = vmul.f32 %v6474_v29, %v5310_v20  ;;  %v5035_v28 = vrot.slane %v5033_v34, 1  ;;  %v5036_v16 = vperm.slane %v5033_v34, 0 }
 0x85e   :  { %v5312_v23 = vmul.f32 0.5, %v5311_v3  ;;  %v5037_v40 = vperm.slane %v5035_v28, 0  ;;  %v5040_v44 = vmul.f32 %v5036_v16, %v8918_v45  ;;  %v5041_v47 = vmul.f32 %v5036_v16, %v8921_v39 }
 0x85f   :  { %v5042_v22 = vmul.f32 %v5036_v16, %v8932_v4  ;;  %v5043_v52 = vmul.f32 %v5036_v16, %v8942_v54  ;;  %v5044_v13 = vmul.f32 %v5036_v16, %v8952_v15  ;;  %v5045_v10 = vmul.f32 %v5036_v16, %v8962_v33 }
 0x860   :  { %v5313_v6 = vsub.f32 1.5, %v5312_v23  ;;  %v5046_v63 = vmul.f32 %v5036_v16, %v8972_v56  ;;  %v5047_v55 = vmul.f32 %v5036_v16, %v8982_v57  ;;  %v5048_v45 = vmul.f32 %v5037_v40, %v8924_v49 }
 0x861   :  { %v5049_v39 = vmul.f32 %v5037_v40, %v8927_v14  ;;  %v5050_v4 = vmul.f32 %v5037_v40, %v8935_v60  ;;  %v5051_v54 = vmul.f32 %v5037_v40, %v8945_v25  ;;  %v5052_v57 = vmul.f32 %v5037_v40, %v8955_v59  ;;  %v9136_v59 = vld [vmem:[%s9206_s9] ss:$0 sm:$0xff]  ;;  %s6512_s9 = smov [#allocation4]  }
 0x862   :  { %v5314_v9 = vmul.f32 %v6474_v29, %v5313_v6  ;;  %v5053_v14 = vmul.f32 %v5037_v40, %v8965_v46  ;;  %v5054_v60 = vmul.f32 %v5037_v40, %v8975_v5  ;;  %v5060_v25 = vmul.f32 %v9115_v36, %v5040_v44  ;;  %s5427_s27 = sshll.u32 %s6512_s9, 4  ;;  %s5428_s27 = int_to_ptr.vmem [resolvable:$true] %s5427_s27 }
 0x863   :  { %v5063_v46 = vmul.f32 %v9115_v36, %v5043_v52  ;;  %v5064_v37 = vmul.f32 %v9115_v36, %v5044_v13  ;;  %v5067_v53 = vmul.f32 %v9115_v36, %v5047_v55  ;;  %v5068_v17 = vmul.f32 %v9115_v36, %v5048_v45 }
 0x864   :  { %v5318_v62 = vsel %vm5317_vm14, %v6474_v29, %v5314_v9  ;;  %v5080_v18 = vadd.f32 %v9136_v59, %v5060_v25  ;;  %v5069_v9 = vmul.f32 %v9115_v36, %v5049_v39  ;;  %v5071_v13 = vmul.f32 %v9115_v36, %v5051_v54 }
 0x865   :  { %v5327_v15 = vmul.f32 %v5318_v62, %v9022_v58  ;;  %v5328_v33 = vmul.f32 %v5318_v62, %v9024_v7  ;;  %v5329_v56 = vmul.f32 %v5318_v62, %v9026_v42  ;;  %v5330_v11 = vmul.f32 %v5318_v62, %v9028_v21 }
 0x866   :  { %v5331_v29 = vmul.f32 %v5318_v62, %v9034_v27  ;;  %v5332_v49 = vmul.f32 %v5318_v62, %v9038_v2  ;;  %v5061_v58 = vmul.f32 %v9115_v36, %v5041_v47  ;;  %v5062_v7 = vmul.f32 %v9115_v36, %v5042_v22 }
 0x867   :  { %v5333_v42 = vmul.f32 %v5318_v62, %v9042_v38  ;;  %v5334_v21 = vmul.f32 %v5318_v62, %v9046_v50  ;;  %v5055_v27 = vmul.f32 %v5037_v40, %v8985_v19  ;;  %v5347_v5 = vmul.f32 %v9057_v43, %v5327_v15 }
 0x868   :  { %v5348_v2 = vmul.f32 %v9057_v43, %v5328_v33  ;;  %v5349_v20 = vmul.f32 %v9057_v43, %v5329_v56  ;;  %v5350_v3 = vmul.f32 %v9057_v43, %v5330_v11  ;;  %v5351_v34 = vmul.f32 %v9057_v43, %v5331_v29 }
 0x869   :  { %v5352_v38 = vmul.f32 %v9057_v43, %v5332_v49  ;;  %v5065_v50 = vmul.f32 %v9115_v36, %v5045_v10  ;;  %v5066_v19 = vmul.f32 %v9115_v36, %v5046_v63  ;;  %v5081_v35 = vadd.f32 %v9136_v59, %v5061_v58 }
 0x86a   :  { %v5082_v61 = vadd.f32 %v9136_v59, %v5062_v7  ;;  %v5353_v23 = vmul.f32 %v9057_v43, %v5333_v42  ;;  %v5354_v8 = vmul.f32 %v9057_v43, %v5334_v21  ;;  %v5083_v26 = vadd.f32 %v9136_v59, %v5063_v46 }
 0x86b   :  { %v5367_v28 = vadd.f32 %v9068_v30, %v5347_v5  ;;  %v5368_v51 = vadd.f32 %v9068_v30, %v5348_v2  ;;  %v5084_v6 = vadd.f32 %v9136_v59, %v5064_v37  ;;  %v5369_v16 = vadd.f32 %v9068_v30, %v5349_v20 }
 0x86c   :  { %v5070_v40 = vmul.f32 %v9115_v36, %v5050_v4  ;;  %v5085_v43 = vadd.f32 %v9136_v59, %v5065_v50  ;;  %v5086_v44 = vadd.f32 %v9136_v59, %v5066_v19  ;;  %v5375_v62 = vadd.f32 %v9081_v0, %v5080_v18 }
 0x86d   :  { %v5376_v47 = vadd.f32 %v9084_v1, %v5081_v35  ;;  %v5377_v22 = vadd.f32 %v9087_v48, %v5082_v61  ;;  %v5370_v52 = vadd.f32 %v9068_v30, %v5350_v3  ;;  %v5087_v10 = vadd.f32 %v9136_v59, %v5067_v53 }
 0x86e   :  { %v5378_v63 = vadd.f32 %v9090_v12, %v5083_v26  ;;  %v5072_v55 = vmul.f32 %v9115_v36, %v5052_v57  ;;  %v5073_v45 = vmul.f32 %v9115_v36, %v5053_v14  ;;  %v5088_v39 = vadd.f32 %v9136_v59, %v5068_v17 }
 0x86f   :  { %v5379_v0 = vadd.f32 %v9093_v31, %v5084_v6  ;;  %v5074_v1 = vmul.f32 %v9115_v36, %v5054_v60  ;;  %v5089_v48 = vadd.f32 %v9136_v59, %v5069_v9  ;;  %v5090_v4 = vadd.f32 %v9136_v59, %v5070_v40 }
 0x870   :  { %v5380_v54 = vadd.f32 %v9096_v41, %v5085_v43  ;;  %v5381_v15 = vadd.f32 %v9099_v32, %v5086_v44  ;;  %v5391_v33 = vmax.f32 %v5375_v62, 0.0  ;;  %v5392_v12 = vmax.f32 %v5376_v47, 0.0 }
 0x871   :  { %v5393_v56 = vmax.f32 %v5377_v22, 0.0  ;;  %v5075_v57 = vmul.f32 %v9115_v36, %v5055_v27  ;;  %v5091_v11 = vadd.f32 %v9136_v59, %v5071_v13  ;;  %v5382_v29 = vadd.f32 %v9102_v24, %v5087_v10 }
 0x872   :  { %v5394_v31 = vmax.f32 %v5378_v63, 0.0  ;;  %v5371_v49 = vadd.f32 %v9068_v30, %v5351_v34  ;;  %v5092_v14 = vadd.f32 %v9136_v59, %v5072_v55  ;;  %v5383_v60 = vadd.f32 %v5367_v28, %v5088_v39  ;;  %5407 = vst [vmem:[#allocation4] sm:$0xff] %v5391_v33 }
 0x873   :  { %v5395_v25 = vmax.f32 %v5379_v0, 0.0  ;;  %v5372_v41 = vadd.f32 %v9068_v30, %v5352_v38  ;;  %v5093_v32 = vadd.f32 %v9136_v59, %v5073_v45  ;;  %v5384_v58 = vadd.f32 %v5368_v51, %v5089_v48  ;;  %5408 = vst [vmem:[#allocation4 + $0x8] sm:$0xff] %v5392_v12 }
 0x874   :  { %v5396_v7 = vmax.f32 %v5380_v54, 0.0  ;;  %v5373_v36 = vadd.f32 %v9068_v30, %v5353_v23  ;;  %v5094_v42 = vadd.f32 %v9136_v59, %v5074_v1  ;;  %v5385_v24 = vadd.f32 %v5369_v16, %v5090_v4  ;;  %5409 = vst [vmem:[#allocation4 + $0x10] sm:$0xff] %v5393_v56 }
 0x875   :  { %v5397_v21 = vmax.f32 %v5381_v15, 0.0  ;;  %v5374_v27 = vadd.f32 %v9068_v30, %v5354_v8  ;;  %v5095_v46 = vadd.f32 %v9136_v59, %v5075_v57  ;;  %v5386_v5 = vadd.f32 %v5370_v52, %v5091_v11  ;;  %5410 = vst [vmem:[#allocation4 + $0x18] sm:$0xff] %v5394_v31 }
 0x876   :  { %v5398_v2 = vmax.f32 %v5382_v29, 0.0  ;;  %v5387_v20 = vadd.f32 %v5371_v49, %v5092_v14  ;;  %v5399_v37 = vmax.f32 %v5383_v60, 0.0  ;;  %5411 = vst [vmem:[#allocation4 + $0x20] sm:$0xff] %v5395_v25  ;;  %v5388_v3 = vadd.f32 %v5372_v41, %v5093_v32 }
 0x877   :  { %v5400_v34 = vmax.f32 %v5384_v58, 0.0  ;;  %5412 = vst [vmem:[#allocation4 + $0x28] sm:$0xff] %v5396_v7  ;;  %v5389_v38 = vadd.f32 %v5373_v36, %v5094_v42  ;;  %v5401_v50 = vmax.f32 %v5385_v24, 0.0  ;;  %v5390_v19 = vadd.f32 %v5374_v27, %v5095_v46 }
 0x878   :  { %5413 = vst [vmem:[#allocation4 + $0x30] sm:$0xff] %v5397_v21  ;;  %v5402_v18 = vmax.f32 %v5386_v5, 0.0  ;;  %v5403_v35 = vmax.f32 %v5387_v20, 0.0  ;;  %v5404_v30 = vmax.f32 %v5388_v3, 0.0 }
 0x879   :  { %5414 = vst [vmem:[#allocation4 + $0x38] sm:$0xff] %v5398_v2  ;;  %v5405_v59 = vmax.f32 %v5389_v38, 0.0  ;;  %v5406_v61 = vmax.f32 %v5390_v19, 0.0 }
 0x87a   :  { %5415 = vst [vmem:[#allocation4 + $0x40] sm:$0xff] %v5399_v37 }
 0x87b   :  { %5416 = vst [vmem:[#allocation4 + $0x48] sm:$0xff] %v5400_v34 }
 0x87c   :  { %5417 = vst [vmem:[#allocation4 + $0x50] sm:$0xff] %v5401_v50 }
 0x87d   :  { %5418 = vst [vmem:[#allocation4 + $0x58] sm:$0xff] %v5402_v18 }
 0x87e   :  { %5419 = vst [vmem:[#allocation4 + $0x60] sm:$0xff] %v5403_v35 }
 0x87f   :  { %5420 = vst [vmem:[#allocation4 + $0x68] sm:$0xff] %v5404_v30 }
 0x880   :  { %5421 = vst [vmem:[#allocation4 + $0x70] sm:$0xff] %v5405_v59 }
 0x881   :  { %5422 = vst [vmem:[#allocation4 + $0x78] sm:$0xff] %v5406_v61 }
 0x882   :  { %5435 = dma.vmem_to_hbm [thread:$0]  %s5428_s27, 2048, %s5430_s4, [#allocation5], %s6513_s3, %s6513_s3, %s6514_s11  }
 0x883   :  { %6509 = dma.done.wait [#allocation5], 2048  }
 0x884   :  { %6510 = vsyncadd [#allocation5], 4294965248 }
 0x885   :  { %5440 = vsyncpa [#allocation5], 1 }

</bundles_post_ra>
